<compile_context>
chip_gen: v7x
topology: tpu7x:2x2x1
jax: 0.10.0
libtpu: 0.0.40
codegen_flags: <defaults>
</compile_context>

<pallas_src>
import functools

import jax
import jax.numpy as jnp
from jax import lax
from jax.experimental import pallas as pl
from jax.experimental.pallas import tpu as pltpu


def _conv_kernel(x_ref, w_ref, b_ref, o_ref, xp_ref, cols_ref, *,
                 K, pad, stride, Ho, Wo, apply_relu):
    """One batch block (Nb images) per grid step.

    x_ref   : (Nb, Cin, H, W)        input dtype   (NCHW block from HBM)
    w_ref   : (Cout, K*K*Cin)        compute dtype (columns ordered (kh,kw,ci))
    b_ref   : (Cout, 1)              float32
    o_ref   : (Nb, Cout, Ho*Wo)      out dtype     (lane-dense output slab)
    xp_ref  : (Cin, Hp, Wp)          VMEM scratch: reflection-padded image
    cols_ref: (K*K, Cin, Nb*Ho*Wo)   VMEM scratch: im2col operand
    """
    Nb, Cin, H, W = x_ref.shape
    HW = Ho * Wo
    compute_dtype = w_ref.dtype

    # ---- Stage 1: per image, reflection-pad + im2col assembly (stores only).
    for n in range(Nb):
        x = x_ref[n]                                           # (Cin, H, W)

        # Reflection pad into VMEM scratch.  Rows first (columns [pad,pad+W)),
        # then full-height columns copied from already-padded interior
        # columns, which makes the corners come out right (matches
        # nn.ReflectionPad2d).
        xp_ref[:, pad:pad + H, pad:pad + W] = x
        for i in range(pad):
            xp_ref[:, pad - 1 - i:pad - i, pad:pad + W] = x[:, 1 + i:2 + i, :]
            xp_ref[:, pad + H + i:pad + H + i + 1, pad:pad + W] = (
                x[:, H - 2 - i:H - 1 - i, :])
        for j in range(pad):
            xp_ref[:, :, pad - 1 - j:pad - j] = (
                xp_ref[:, :, pad + 1 + j:pad + 2 + j])
            xp_ref[:, :, pad + W + j:pad + W + j + 1] = (
                xp_ref[:, :, pad + W - 2 - j:pad + W - 1 - j])

        # im2col: one (K*K, Cin, Wo) column block per output row at a static
        # lane offset.  No matmul, no sublane collapse and no output store in
        # this loop -- those all happen once per grid step below.
        for ho in range(Ho):
            win = xp_ref[:, ho * stride:ho * stride + K, :]    # (Cin, K, Wp)
            taps = []
            for kh in range(K):
                for kw in range(K):
                    lim = kw + (Wo - 1) * stride + 1
                    # NOTE: for stride > 1 these become lane-strided slices; a
                    # hoisted per-phase deinterleave of xp would be cheaper.
                    taps.append(win[:, kh, kw:lim:stride][None])  # (1,Cin,Wo)
            block = jnp.concatenate(taps, axis=0)              # (K*K,Cin,Wo)
            cols_ref[:, :, n * HW + ho * Wo:n * HW + (ho + 1) * Wo] = block

    # ---- Stage 2: single wide MXU contraction + epilogue. ------------------
    cols = cols_ref[...].reshape(K * K * Cin, Nb * HW)   # leading collapse
    cols = cols.astype(compute_dtype)                    # one bulk cast (v5e)
    res = jnp.dot(w_ref[...], cols,
                  preferred_element_type=jnp.float32) + b_ref[...]
    if apply_relu:
        res = jnp.maximum(res, 0.0)
    res = res.astype(o_ref.dtype)

    # One full (Cout, Ho*Wo) slab store per image: unmasked and lane-dense
    # (last dim = Ho*Wo = 256 here, a multiple of 128).
    for n in range(Nb):
        o_ref[n, :, :] = res[:, n * HW:(n + 1) * HW]


def conv_layer_forward(x_nchw, weight_oihw, bias, *, stride, is_last,
                       compute_dtype=jnp.bfloat16, out_dtype=None,
                       batch_block=None):
    """Equivalent of ConvLayer.forward: ReflectionPad2d(K//2) -> Conv2d -> ReLU.

    compute_dtype: MXU operand dtype (bf16 default; pass jnp.float32 for
                   bit-exact f32 conv numerics).  Accumulation is always f32.
    out_dtype:     output dtype (defaults to x dtype; pass jnp.bfloat16 when
                   chaining into another bf16 layer to halve HBM writeback).
    batch_block:   images per grid step.  Default: largest divisor of N that
                   still leaves >= 2 grid steps (keeps both v7x TensorCores
                   busy while keeping the per-step MXU N-dim wide).
    """
    N, Cin, H, W = x_nchw.shape
    Cout, _, K, _ = weight_oihw.shape
    pad = K // 2
    Hp, Wp = H + 2 * pad, W + 2 * pad
    Ho = (Hp - K) // stride + 1
    Wo = (Wp - K) // stride + 1
    if out_dtype is None:
        out_dtype = x_nchw.dtype
    if batch_block is None:
        batch_block = max(
            (d for d in range(1, N // 2 + 1) if N % d == 0), default=1)
    assert N % batch_block == 0
    grid = (N // batch_block,)

    # Weight as (Cout, K*K*Cin), column order (kh, kw, ci) -- matches the
    # in-kernel im2col row order.  Tiny tensor; done once in the wrapper.
    w2d = jnp.transpose(weight_oihw, (0, 2, 3, 1)).reshape(
        Cout, K * K * Cin).astype(compute_dtype)
    b2d = bias.reshape(Cout, 1).astype(jnp.float32)

    kernel = functools.partial(
        _conv_kernel, K=K, pad=pad, stride=stride, Ho=Ho, Wo=Wo,
        apply_relu=(not is_last))

    out_flat = pl.pallas_call(
        kernel,
        out_shape=jax.ShapeDtypeStruct((N, Cout, Ho * Wo), out_dtype),
        grid_spec=pltpu.PrefetchScalarGridSpec(
            num_scalar_prefetch=0,
            grid=grid,
            in_specs=[
                pl.BlockSpec((batch_block, Cin, H, W), lambda g: (g, 0, 0, 0)),
                pl.BlockSpec((Cout, K * K * Cin), lambda g: (0, 0)),
                pl.BlockSpec((Cout, 1), lambda g: (0, 0)),
            ],
            out_specs=pl.BlockSpec((batch_block, Cout, Ho * Wo),
                                   lambda g: (g, 0, 0)),
            # Padded image + im2col operand: a few tens of KiB here, far under
            # every generation's scoped-VMEM default (incl. v7x's 32 MiB
            # default / 64 MiB physical).  For large H*W, tile output rows and
            # halve any v6e-sized tile on v7x, raising vmem_limit_bytes.
            scratch_shapes=[
                pltpu.VMEM((Cin, Hp, Wp), x_nchw.dtype),
                pltpu.VMEM((K * K, Cin, batch_block * Ho * Wo), x_nchw.dtype),
            ],
        ),
        compiler_params=pltpu.CompilerParams(
            dimension_semantics=("parallel",)),
    )(x_nchw, w2d, b2d)

    # Contiguous-collapse reshape back to NCHW spatial layout (free).
    return out_flat.reshape(N, Cout, Ho, Wo)


if __name__ == "__main__":
    # ConvLayer(in_channels=4, out_channels=8, kernel_size=3, stride=1)
    N, Cin, H, W = 2, 4, 16, 16
    Cout, K, stride = 8, 3, 1
    is_last = False

    key = jax.random.PRNGKey(0)
    kx, kwt, kb = jax.random.split(key, 3)
    x = jax.random.normal(kx, (N, Cin, H, W), dtype=jnp.float32)
    fan_in = Cin * K * K
    bound = float(fan_in) ** -0.5
    weight = jax.random.uniform(kwt, (Cout, Cin, K, K), jnp.float32,
                                minval=-bound, maxval=bound)
    bias = jax.random.uniform(kb, (Cout,), jnp.float32,
                              minval=-bound, maxval=bound)

    fwd = jax.jit(functools.partial(conv_layer_forward, stride=stride,
                                    is_last=is_last))
    out = fwd(x, weight, bias)
    jax.block_until_ready(out)
    assert out.shape == (N, Cout, H, W), out.shape

    # Reference with the same numerics as the kernel (bf16 MXU operands, f32
    # accumulation): quantize operands to bf16, then a full-precision conv.
    pad = K // 2
    xq = x.astype(jnp.bfloat16).astype(jnp.float32)
    wq = weight.astype(jnp.bfloat16).astype(jnp.float32)
    x_pad = jnp.pad(xq, ((0, 0), (0, 0), (pad, pad), (pad, pad)),
                    mode="reflect")
    ref = lax.conv_general_dilated(
        x_pad, wq, window_strides=(stride, stride), padding="VALID",
        dimension_numbers=("NCHW", "OIHW", "NCHW"),
        preferred_element_type=jnp.float32,
        precision=jax.lax.Precision.HIGHEST) + bias[None, :, None, None]
    if not is_last:
        ref = jnp.maximum(ref, 0.0)
    err = float(jnp.max(jnp.abs(out - ref)))
    assert jnp.allclose(out, ref, atol=2e-3, rtol=2e-3), err

    print("KERNEL_OK")
</pallas_src>

<mosaic_0001>
module attributes {stable_mosaic.version = 11 : i64} {
  func.func @_conv_kernel(%arg0: i32, %arg1: memref<1x4x16x16xf32, #tpu.memory_space<vmem>>, %arg2: memref<8x36xbf16, #tpu.memory_space<vmem>>, %arg3: memref<8x1xf32, #tpu.memory_space<vmem>>, %arg4: memref<1x8x256xf32, #tpu.memory_space<vmem>>, %arg5: memref<4x18x18xf32, #tpu.memory_space<vmem>>, %arg6: memref<9x4x256xf32, #tpu.memory_space<vmem>>) attributes {dimension_semantics = [#tpu.dimension_semantics<parallel>], iteration_bounds = array<i64: 2>, scalar_prefetch = 0 : i64, scratch_operands = 2 : i64, tpu.core_type = #tpu.core_type<tc>, window_params = [{transform_indices = @transform_0, window_bounds = array<i64: 1, 4, 16, 16>}, {pipeline_mode = #tpu.pipeline_mode<synchronous>, transform_indices = @transform_1, window_bounds = array<i64: 8, 36>}, {pipeline_mode = #tpu.pipeline_mode<synchronous>, transform_indices = @transform_2, window_bounds = array<i64: 8, 1>}, {transform_indices = @transform_3, window_bounds = array<i64: 1, 8, 256>}]} {
    %c0 = arith.constant 0 : index
    %c0_0 = arith.constant 0 : index
    %c0_1 = arith.constant 0 : index
    %c0_2 = arith.constant 0 : index
    %0 = vector.load %arg1[%c0, %c0_0, %c0_1, %c0_2] : memref<1x4x16x16xf32, #tpu.memory_space<vmem>>, vector<1x4x16x16xf32>
    %1 = vector.shape_cast %0 : vector<1x4x16x16xf32> to vector<4x16x16xf32>
    %c0_3 = arith.constant 0 : index
    %c1 = arith.constant 1 : index
    %c1_4 = arith.constant 1 : index
    %2 = vector.load %arg5[%c0_3, %c1, %c1_4] : memref<4x18x18xf32, #tpu.memory_space<vmem>>, vector<4x16x16xf32>
    tpu.vector_store %arg5[%c0_3, %c1, %c1_4], %1 {strides = array<i32>} : memref<4x18x18xf32, #tpu.memory_space<vmem>>, vector<4x16x16xf32>,
    %3 = vector.extract_strided_slice %1 {offsets = [0, 1, 0], sizes = [4, 1, 16], strides = [1, 1, 1]} : vector<4x16x16xf32> to vector<4x1x16xf32>
    %c0_5 = arith.constant 0 : index
    %c0_6 = arith.constant 0 : index
    %c1_7 = arith.constant 1 : index
    %4 = vector.load %arg5[%c0_5, %c0_6, %c1_7] : memref<4x18x18xf32, #tpu.memory_space<vmem>>, vector<4x1x16xf32>
    tpu.vector_store %arg5[%c0_5, %c0_6, %c1_7], %3 {strides = array<i32>} : memref<4x18x18xf32, #tpu.memory_space<vmem>>, vector<4x1x16xf32>,
    %5 = vector.extract_strided_slice %1 {offsets = [0, 14, 0], sizes = [4, 1, 16], strides = [1, 1, 1]} : vector<4x16x16xf32> to vector<4x1x16xf32>
    %c0_8 = arith.constant 0 : index
    %c17 = arith.constant 17 : index
    %c1_9 = arith.constant 1 : index
    %6 = vector.load %arg5[%c0_8, %c17, %c1_9] : memref<4x18x18xf32, #tpu.memory_space<vmem>>, vector<4x1x16xf32>
    tpu.vector_store %arg5[%c0_8, %c17, %c1_9], %5 {strides = array<i32>} : memref<4x18x18xf32, #tpu.memory_space<vmem>>, vector<4x1x16xf32>,
    %c0_10 = arith.constant 0 : index
    %c0_11 = arith.constant 0 : index
    %c2 = arith.constant 2 : index
    %7 = vector.load %arg5[%c0_10, %c0_11, %c2] : memref<4x18x18xf32, #tpu.memory_space<vmem>>, vector<4x18x1xf32>
    %c0_12 = arith.constant 0 : index
    %c0_13 = arith.constant 0 : index
    %c0_14 = arith.constant 0 : index
    %8 = vector.load %arg5[%c0_12, %c0_13, %c0_14] : memref<4x18x18xf32, #tpu.memory_space<vmem>>, vector<4x18x1xf32>
    tpu.vector_store %arg5[%c0_12, %c0_13, %c0_14], %7 {strides = array<i32>} : memref<4x18x18xf32, #tpu.memory_space<vmem>>, vector<4x18x1xf32>,
    %c0_15 = arith.constant 0 : index
    %c0_16 = arith.constant 0 : index
    %c15 = arith.constant 15 : index
    %9 = vector.load %arg5[%c0_15, %c0_16, %c15] : memref<4x18x18xf32, #tpu.memory_space<vmem>>, vector<4x18x1xf32>
    %c0_17 = arith.constant 0 : index
    %c0_18 = arith.constant 0 : index
    %c17_19 = arith.constant 17 : index
    %10 = vector.load %arg5[%c0_17, %c0_18, %c17_19] : memref<4x18x18xf32, #tpu.memory_space<vmem>>, vector<4x18x1xf32>
    tpu.vector_store %arg5[%c0_17, %c0_18, %c17_19], %9 {strides = array<i32>} : memref<4x18x18xf32, #tpu.memory_space<vmem>>, vector<4x18x1xf32>,
    %c0_20 = arith.constant 0 : index
    %c0_21 = arith.constant 0 : index
    %c0_22 = arith.constant 0 : index
    %11 = vector.load %arg5[%c0_20, %c0_21, %c0_22] : memref<4x18x18xf32, #tpu.memory_space<vmem>>, vector<4x3x18xf32>
    %12 = vector.extract_strided_slice %11 {offsets = [0, 0, 0], sizes = [4, 1, 16], strides = [1, 1, 1]} : vector<4x3x18xf32> to vector<4x1x16xf32>
    %13 = vector.shape_cast %12 : vector<4x1x16xf32> to vector<4x16xf32>
    %14 = vector.shape_cast %13 : vector<4x16xf32> to vector<1x4x16xf32>
    %15 = vector.extract_strided_slice %11 {offsets = [0, 0, 1], sizes = [4, 1, 16], strides = [1, 1, 1]} : vector<4x3x18xf32> to vector<4x1x16xf32>
    %16 = vector.shape_cast %15 : vector<4x1x16xf32> to vector<4x16xf32>
    %17 = vector.shape_cast %16 : vector<4x16xf32> to vector<1x4x16xf32>
    %18 = vector.extract_strided_slice %11 {offsets = [0, 0, 2], sizes = [4, 1, 16], strides = [1, 1, 1]} : vector<4x3x18xf32> to vector<4x1x16xf32>
    %19 = vector.shape_cast %18 : vector<4x1x16xf32> to vector<4x16xf32>
    %20 = vector.shape_cast %19 : vector<4x16xf32> to vector<1x4x16xf32>
    %21 = vector.extract_strided_slice %11 {offsets = [0, 1, 0], sizes = [4, 1, 16], strides = [1, 1, 1]} : vector<4x3x18xf32> to vector<4x1x16xf32>
    %22 = vector.shape_cast %21 : vector<4x1x16xf32> to vector<4x16xf32>
    %23 = vector.shape_cast %22 : vector<4x16xf32> to vector<1x4x16xf32>
    %24 = vector.extract_strided_slice %11 {offsets = [0, 1, 1], sizes = [4, 1, 16], strides = [1, 1, 1]} : vector<4x3x18xf32> to vector<4x1x16xf32>
    %25 = vector.shape_cast %24 : vector<4x1x16xf32> to vector<4x16xf32>
    %26 = vector.shape_cast %25 : vector<4x16xf32> to vector<1x4x16xf32>
    %27 = vector.extract_strided_slice %11 {offsets = [0, 1, 2], sizes = [4, 1, 16], strides = [1, 1, 1]} : vector<4x3x18xf32> to vector<4x1x16xf32>
    %28 = vector.shape_cast %27 : vector<4x1x16xf32> to vector<4x16xf32>
    %29 = vector.shape_cast %28 : vector<4x16xf32> to vector<1x4x16xf32>
    %30 = vector.extract_strided_slice %11 {offsets = [0, 2, 0], sizes = [4, 1, 16], strides = [1, 1, 1]} : vector<4x3x18xf32> to vector<4x1x16xf32>
    %31 = vector.shape_cast %30 : vector<4x1x16xf32> to vector<4x16xf32>
    %32 = vector.shape_cast %31 : vector<4x16xf32> to vector<1x4x16xf32>
    %33 = vector.extract_strided_slice %11 {offsets = [0, 2, 1], sizes = [4, 1, 16], strides = [1, 1, 1]} : vector<4x3x18xf32> to vector<4x1x16xf32>
    %34 = vector.shape_cast %33 : vector<4x1x16xf32> to vector<4x16xf32>
    %35 = vector.shape_cast %34 : vector<4x16xf32> to vector<1x4x16xf32>
    %36 = vector.extract_strided_slice %11 {offsets = [0, 2, 2], sizes = [4, 1, 16], strides = [1, 1, 1]} : vector<4x3x18xf32> to vector<4x1x16xf32>
    %37 = vector.shape_cast %36 : vector<4x1x16xf32> to vector<4x16xf32>
    %38 = vector.shape_cast %37 : vector<4x16xf32> to vector<1x4x16xf32>
    %39 = tpu.concatenate %14, %17, %20, %23, %26, %29, %32, %35, %38 in 0 : vector<1x4x16xf32>, vector<1x4x16xf32>, vector<1x4x16xf32>, vector<1x4x16xf32>, vector<1x4x16xf32>, vector<1x4x16xf32>, vector<1x4x16xf32>, vector<1x4x16xf32>, vector<1x4x16xf32> -> vector<9x4x16xf32>
    %c0_23 = arith.constant 0 : index
    %c0_24 = arith.constant 0 : index
    %c0_25 = arith.constant 0 : index
    %40 = vector.load %arg6[%c0_23, %c0_24, %c0_25] : memref<9x4x256xf32, #tpu.memory_space<vmem>>, vector<9x4x16xf32>
    tpu.vector_store %arg6[%c0_23, %c0_24, %c0_25], %39 {strides = array<i32>} : memref<9x4x256xf32, #tpu.memory_space<vmem>>, vector<9x4x16xf32>,
    %c0_26 = arith.constant 0 : index
    %c1_27 = arith.constant 1 : index
    %c0_28 = arith.constant 0 : index
    %41 = vector.load %arg5[%c0_26, %c1_27, %c0_28] : memref<4x18x18xf32, #tpu.memory_space<vmem>>, vector<4x3x18xf32>
    %42 = vector.extract_strided_slice %41 {offsets = [0, 0, 0], sizes = [4, 1, 16], strides = [1, 1, 1]} : vector<4x3x18xf32> to vector<4x1x16xf32>
    %43 = vector.shape_cast %42 : vector<4x1x16xf32> to vector<4x16xf32>
    %44 = vector.shape_cast %43 : vector<4x16xf32> to vector<1x4x16xf32>
    %45 = vector.extract_strided_slice %41 {offsets = [0, 0, 1], sizes = [4, 1, 16], strides = [1, 1, 1]} : vector<4x3x18xf32> to vector<4x1x16xf32>
    %46 = vector.shape_cast %45 : vector<4x1x16xf32> to vector<4x16xf32>
    %47 = vector.shape_cast %46 : vector<4x16xf32> to vector<1x4x16xf32>
    %48 = vector.extract_strided_slice %41 {offsets = [0, 0, 2], sizes = [4, 1, 16], strides = [1, 1, 1]} : vector<4x3x18xf32> to vector<4x1x16xf32>
    %49 = vector.shape_cast %48 : vector<4x1x16xf32> to vector<4x16xf32>
    %50 = vector.shape_cast %49 : vector<4x16xf32> to vector<1x4x16xf32>
    %51 = vector.extract_strided_slice %41 {offsets = [0, 1, 0], sizes = [4, 1, 16], strides = [1, 1, 1]} : vector<4x3x18xf32> to vector<4x1x16xf32>
    %52 = vector.shape_cast %51 : vector<4x1x16xf32> to vector<4x16xf32>
    %53 = vector.shape_cast %52 : vector<4x16xf32> to vector<1x4x16xf32>
    %54 = vector.extract_strided_slice %41 {offsets = [0, 1, 1], sizes = [4, 1, 16], strides = [1, 1, 1]} : vector<4x3x18xf32> to vector<4x1x16xf32>
    %55 = vector.shape_cast %54 : vector<4x1x16xf32> to vector<4x16xf32>
    %56 = vector.shape_cast %55 : vector<4x16xf32> to vector<1x4x16xf32>
    %57 = vector.extract_strided_slice %41 {offsets = [0, 1, 2], sizes = [4, 1, 16], strides = [1, 1, 1]} : vector<4x3x18xf32> to vector<4x1x16xf32>
    %58 = vector.shape_cast %57 : vector<4x1x16xf32> to vector<4x16xf32>
    %59 = vector.shape_cast %58 : vector<4x16xf32> to vector<1x4x16xf32>
    %60 = vector.extract_strided_slice %41 {offsets = [0, 2, 0], sizes = [4, 1, 16], strides = [1, 1, 1]} : vector<4x3x18xf32> to vector<4x1x16xf32>
    %61 = vector.shape_cast %60 : vector<4x1x16xf32> to vector<4x16xf32>
    %62 = vector.shape_cast %61 : vector<4x16xf32> to vector<1x4x16xf32>
    %63 = vector.extract_strided_slice %41 {offsets = [0, 2, 1], sizes = [4, 1, 16], strides = [1, 1, 1]} : vector<4x3x18xf32> to vector<4x1x16xf32>
    %64 = vector.shape_cast %63 : vector<4x1x16xf32> to vector<4x16xf32>
    %65 = vector.shape_cast %64 : vector<4x16xf32> to vector<1x4x16xf32>
    %66 = vector.extract_strided_slice %41 {offsets = [0, 2, 2], sizes = [4, 1, 16], strides = [1, 1, 1]} : vector<4x3x18xf32> to vector<4x1x16xf32>
    %67 = vector.shape_cast %66 : vector<4x1x16xf32> to vector<4x16xf32>
    %68 = vector.shape_cast %67 : vector<4x16xf32> to vector<1x4x16xf32>
    %69 = tpu.concatenate %44, %47, %50, %53, %56, %59, %62, %65, %68 in 0 : vector<1x4x16xf32>, vector<1x4x16xf32>, vector<1x4x16xf32>, vector<1x4x16xf32>, vector<1x4x16xf32>, vector<1x4x16xf32>, vector<1x4x16xf32>, vector<1x4x16xf32>, vector<1x4x16xf32> -> vector<9x4x16xf32>
    %c0_29 = arith.constant 0 : index
    %c0_30 = arith.constant 0 : index
    %c16 = arith.constant 16 : index
    %70 = vector.load %arg6[%c0_29, %c0_30, %c16] : memref<9x4x256xf32, #tpu.memory_space<vmem>>, vector<9x4x16xf32>
    tpu.vector_store %arg6[%c0_29, %c0_30, %c16], %69 {strides = array<i32>} : memref<9x4x256xf32, #tpu.memory_space<vmem>>, vector<9x4x16xf32>,
    %c0_31 = arith.constant 0 : index
    %c2_32 = arith.constant 2 : index
    %c0_33 = arith.constant 0 : index
    %71 = vector.load %arg5[%c0_31, %c2_32, %c0_33] : memref<4x18x18xf32, #tpu.memory_space<vmem>>, vector<4x3x18xf32>
    %72 = vector.extract_strided_slice %71 {offsets = [0, 0, 0], sizes = [4, 1, 16], strides = [1, 1, 1]} : vector<4x3x18xf32> to vector<4x1x16xf32>
    %73 = vector.shape_cast %72 : vector<4x1x16xf32> to vector<4x16xf32>
    %74 = vector.shape_cast %73 : vector<4x16xf32> to vector<1x4x16xf32>
    %75 = vector.extract_strided_slice %71 {offsets = [0, 0, 1], sizes = [4, 1, 16], strides = [1, 1, 1]} : vector<4x3x18xf32> to vector<4x1x16xf32>
    %76 = vector.shape_cast %75 : vector<4x1x16xf32> to vector<4x16xf32>
    %77 = vector.shape_cast %76 : vector<4x16xf32> to vector<1x4x16xf32>
    %78 = vector.extract_strided_slice %71 {offsets = [0, 0, 2], sizes = [4, 1, 16], strides = [1, 1, 1]} : vector<4x3x18xf32> to vector<4x1x16xf32>
    %79 = vector.shape_cast %78 : vector<4x1x16xf32> to vector<4x16xf32>
    %80 = vector.shape_cast %79 : vector<4x16xf32> to vector<1x4x16xf32>
    %81 = vector.extract_strided_slice %71 {offsets = [0, 1, 0], sizes = [4, 1, 16], strides = [1, 1, 1]} : vector<4x3x18xf32> to vector<4x1x16xf32>
    %82 = vector.shape_cast %81 : vector<4x1x16xf32> to vector<4x16xf32>
    %83 = vector.shape_cast %82 : vector<4x16xf32> to vector<1x4x16xf32>
    %84 = vector.extract_strided_slice %71 {offsets = [0, 1, 1], sizes = [4, 1, 16], strides = [1, 1, 1]} : vector<4x3x18xf32> to vector<4x1x16xf32>
    %85 = vector.shape_cast %84 : vector<4x1x16xf32> to vector<4x16xf32>
    %86 = vector.shape_cast %85 : vector<4x16xf32> to vector<1x4x16xf32>
    %87 = vector.extract_strided_slice %71 {offsets = [0, 1, 2], sizes = [4, 1, 16], strides = [1, 1, 1]} : vector<4x3x18xf32> to vector<4x1x16xf32>
    %88 = vector.shape_cast %87 : vector<4x1x16xf32> to vector<4x16xf32>
    %89 = vector.shape_cast %88 : vector<4x16xf32> to vector<1x4x16xf32>
    %90 = vector.extract_strided_slice %71 {offsets = [0, 2, 0], sizes = [4, 1, 16], strides = [1, 1, 1]} : vector<4x3x18xf32> to vector<4x1x16xf32>
    %91 = vector.shape_cast %90 : vector<4x1x16xf32> to vector<4x16xf32>
    %92 = vector.shape_cast %91 : vector<4x16xf32> to vector<1x4x16xf32>
    %93 = vector.extract_strided_slice %71 {offsets = [0, 2, 1], sizes = [4, 1, 16], strides = [1, 1, 1]} : vector<4x3x18xf32> to vector<4x1x16xf32>
    %94 = vector.shape_cast %93 : vector<4x1x16xf32> to vector<4x16xf32>
    %95 = vector.shape_cast %94 : vector<4x16xf32> to vector<1x4x16xf32>
    %96 = vector.extract_strided_slice %71 {offsets = [0, 2, 2], sizes = [4, 1, 16], strides = [1, 1, 1]} : vector<4x3x18xf32> to vector<4x1x16xf32>
    %97 = vector.shape_cast %96 : vector<4x1x16xf32> to vector<4x16xf32>
    %98 = vector.shape_cast %97 : vector<4x16xf32> to vector<1x4x16xf32>
    %99 = tpu.concatenate %74, %77, %80, %83, %86, %89, %92, %95, %98 in 0 : vector<1x4x16xf32>, vector<1x4x16xf32>, vector<1x4x16xf32>, vector<1x4x16xf32>, vector<1x4x16xf32>, vector<1x4x16xf32>, vector<1x4x16xf32>, vector<1x4x16xf32>, vector<1x4x16xf32> -> vector<9x4x16xf32>
    %c0_34 = arith.constant 0 : index
    %c0_35 = arith.constant 0 : index
    %c32 = arith.constant 32 : index
    %100 = vector.load %arg6[%c0_34, %c0_35, %c32] : memref<9x4x256xf32, #tpu.memory_space<vmem>>, vector<9x4x16xf32>
    tpu.vector_store %arg6[%c0_34, %c0_35, %c32], %99 {strides = array<i32>} : memref<9x4x256xf32, #tpu.memory_space<vmem>>, vector<9x4x16xf32>,
    %c0_36 = arith.constant 0 : index
    %c3 = arith.constant 3 : index
    %c0_37 = arith.constant 0 : index
    %101 = vector.load %arg5[%c0_36, %c3, %c0_37] : memref<4x18x18xf32, #tpu.memory_space<vmem>>, vector<4x3x18xf32>
    %102 = vector.extract_strided_slice %101 {offsets = [0, 0, 0], sizes = [4, 1, 16], strides = [1, 1, 1]} : vector<4x3x18xf32> to vector<4x1x16xf32>
    %103 = vector.shape_cast %102 : vector<4x1x16xf32> to vector<4x16xf32>
    %104 = vector.shape_cast %103 : vector<4x16xf32> to vector<1x4x16xf32>
    %105 = vector.extract_strided_slice %101 {offsets = [0, 0, 1], sizes = [4, 1, 16], strides = [1, 1, 1]} : vector<4x3x18xf32> to vector<4x1x16xf32>
    %106 = vector.shape_cast %105 : vector<4x1x16xf32> to vector<4x16xf32>
    %107 = vector.shape_cast %106 : vector<4x16xf32> to vector<1x4x16xf32>
    %108 = vector.extract_strided_slice %101 {offsets = [0, 0, 2], sizes = [4, 1, 16], strides = [1, 1, 1]} : vector<4x3x18xf32> to vector<4x1x16xf32>
    %109 = vector.shape_cast %108 : vector<4x1x16xf32> to vector<4x16xf32>
    %110 = vector.shape_cast %109 : vector<4x16xf32> to vector<1x4x16xf32>
    %111 = vector.extract_strided_slice %101 {offsets = [0, 1, 0], sizes = [4, 1, 16], strides = [1, 1, 1]} : vector<4x3x18xf32> to vector<4x1x16xf32>
    %112 = vector.shape_cast %111 : vector<4x1x16xf32> to vector<4x16xf32>
    %113 = vector.shape_cast %112 : vector<4x16xf32> to vector<1x4x16xf32>
    %114 = vector.extract_strided_slice %101 {offsets = [0, 1, 1], sizes = [4, 1, 16], strides = [1, 1, 1]} : vector<4x3x18xf32> to vector<4x1x16xf32>
    %115 = vector.shape_cast %114 : vector<4x1x16xf32> to vector<4x16xf32>
    %116 = vector.shape_cast %115 : vector<4x16xf32> to vector<1x4x16xf32>
    %117 = vector.extract_strided_slice %101 {offsets = [0, 1, 2], sizes = [4, 1, 16], strides = [1, 1, 1]} : vector<4x3x18xf32> to vector<4x1x16xf32>
    %118 = vector.shape_cast %117 : vector<4x1x16xf32> to vector<4x16xf32>
    %119 = vector.shape_cast %118 : vector<4x16xf32> to vector<1x4x16xf32>
    %120 = vector.extract_strided_slice %101 {offsets = [0, 2, 0], sizes = [4, 1, 16], strides = [1, 1, 1]} : vector<4x3x18xf32> to vector<4x1x16xf32>
    %121 = vector.shape_cast %120 : vector<4x1x16xf32> to vector<4x16xf32>
    %122 = vector.shape_cast %121 : vector<4x16xf32> to vector<1x4x16xf32>
    %123 = vector.extract_strided_slice %101 {offsets = [0, 2, 1], sizes = [4, 1, 16], strides = [1, 1, 1]} : vector<4x3x18xf32> to vector<4x1x16xf32>
    %124 = vector.shape_cast %123 : vector<4x1x16xf32> to vector<4x16xf32>
    %125 = vector.shape_cast %124 : vector<4x16xf32> to vector<1x4x16xf32>
    %126 = vector.extract_strided_slice %101 {offsets = [0, 2, 2], sizes = [4, 1, 16], strides = [1, 1, 1]} : vector<4x3x18xf32> to vector<4x1x16xf32>
    %127 = vector.shape_cast %126 : vector<4x1x16xf32> to vector<4x16xf32>
    %128 = vector.shape_cast %127 : vector<4x16xf32> to vector<1x4x16xf32>
    %129 = tpu.concatenate %104, %107, %110, %113, %116, %119, %122, %125, %128 in 0 : vector<1x4x16xf32>, vector<1x4x16xf32>, vector<1x4x16xf32>, vector<1x4x16xf32>, vector<1x4x16xf32>, vector<1x4x16xf32>, vector<1x4x16xf32>, vector<1x4x16xf32>, vector<1x4x16xf32> -> vector<9x4x16xf32>
    %c0_38 = arith.constant 0 : index
    %c0_39 = arith.constant 0 : index
    %c48 = arith.constant 48 : index
    %130 = vector.load %arg6[%c0_38, %c0_39, %c48] : memref<9x4x256xf32, #tpu.memory_space<vmem>>, vector<9x4x16xf32>
    tpu.vector_store %arg6[%c0_38, %c0_39, %c48], %129 {strides = array<i32>} : memref<9x4x256xf32, #tpu.memory_space<vmem>>, vector<9x4x16xf32>,
    %c0_40 = arith.constant 0 : index
    %c4 = arith.constant 4 : index
    %c0_41 = arith.constant 0 : index
    %131 = vector.load %arg5[%c0_40, %c4, %c0_41] : memref<4x18x18xf32, #tpu.memory_space<vmem>>, vector<4x3x18xf32>
    %132 = vector.extract_strided_slice %131 {offsets = [0, 0, 0], sizes = [4, 1, 16], strides = [1, 1, 1]} : vector<4x3x18xf32> to vector<4x1x16xf32>
    %133 = vector.shape_cast %132 : vector<4x1x16xf32> to vector<4x16xf32>
    %134 = vector.shape_cast %133 : vector<4x16xf32> to vector<1x4x16xf32>
    %135 = vector.extract_strided_slice %131 {offsets = [0, 0, 1], sizes = [4, 1, 16], strides = [1, 1, 1]} : vector<4x3x18xf32> to vector<4x1x16xf32>
    %136 = vector.shape_cast %135 : vector<4x1x16xf32> to vector<4x16xf32>
    %137 = vector.shape_cast %136 : vector<4x16xf32> to vector<1x4x16xf32>
    %138 = vector.extract_strided_slice %131 {offsets = [0, 0, 2], sizes = [4, 1, 16], strides = [1, 1, 1]} : vector<4x3x18xf32> to vector<4x1x16xf32>
    %139 = vector.shape_cast %138 : vector<4x1x16xf32> to vector<4x16xf32>
    %140 = vector.shape_cast %139 : vector<4x16xf32> to vector<1x4x16xf32>
    %141 = vector.extract_strided_slice %131 {offsets = [0, 1, 0], sizes = [4, 1, 16], strides = [1, 1, 1]} : vector<4x3x18xf32> to vector<4x1x16xf32>
    %142 = vector.shape_cast %141 : vector<4x1x16xf32> to vector<4x16xf32>
    %143 = vector.shape_cast %142 : vector<4x16xf32> to vector<1x4x16xf32>
    %144 = vector.extract_strided_slice %131 {offsets = [0, 1, 1], sizes = [4, 1, 16], strides = [1, 1, 1]} : vector<4x3x18xf32> to vector<4x1x16xf32>
    %145 = vector.shape_cast %144 : vector<4x1x16xf32> to vector<4x16xf32>
    %146 = vector.shape_cast %145 : vector<4x16xf32> to vector<1x4x16xf32>
    %147 = vector.extract_strided_slice %131 {offsets = [0, 1, 2], sizes = [4, 1, 16], strides = [1, 1, 1]} : vector<4x3x18xf32> to vector<4x1x16xf32>
    %148 = vector.shape_cast %147 : vector<4x1x16xf32> to vector<4x16xf32>
    %149 = vector.shape_cast %148 : vector<4x16xf32> to vector<1x4x16xf32>
    %150 = vector.extract_strided_slice %131 {offsets = [0, 2, 0], sizes = [4, 1, 16], strides = [1, 1, 1]} : vector<4x3x18xf32> to vector<4x1x16xf32>
    %151 = vector.shape_cast %150 : vector<4x1x16xf32> to vector<4x16xf32>
    %152 = vector.shape_cast %151 : vector<4x16xf32> to vector<1x4x16xf32>
    %153 = vector.extract_strided_slice %131 {offsets = [0, 2, 1], sizes = [4, 1, 16], strides = [1, 1, 1]} : vector<4x3x18xf32> to vector<4x1x16xf32>
    %154 = vector.shape_cast %153 : vector<4x1x16xf32> to vector<4x16xf32>
    %155 = vector.shape_cast %154 : vector<4x16xf32> to vector<1x4x16xf32>
    %156 = vector.extract_strided_slice %131 {offsets = [0, 2, 2], sizes = [4, 1, 16], strides = [1, 1, 1]} : vector<4x3x18xf32> to vector<4x1x16xf32>
    %157 = vector.shape_cast %156 : vector<4x1x16xf32> to vector<4x16xf32>
    %158 = vector.shape_cast %157 : vector<4x16xf32> to vector<1x4x16xf32>
    %159 = tpu.concatenate %134, %137, %140, %143, %146, %149, %152, %155, %158 in 0 : vector<1x4x16xf32>, vector<1x4x16xf32>, vector<1x4x16xf32>, vector<1x4x16xf32>, vector<1x4x16xf32>, vector<1x4x16xf32>, vector<1x4x16xf32>, vector<1x4x16xf32>, vector<1x4x16xf32> -> vector<9x4x16xf32>
    %c0_42 = arith.constant 0 : index
    %c0_43 = arith.constant 0 : index
    %c64 = arith.constant 64 : index
    %160 = vector.load %arg6[%c0_42, %c0_43, %c64] : memref<9x4x256xf32, #tpu.memory_space<vmem>>, vector<9x4x16xf32>
    tpu.vector_store %arg6[%c0_42, %c0_43, %c64], %159 {strides = array<i32>} : memref<9x4x256xf32, #tpu.memory_space<vmem>>, vector<9x4x16xf32>,
    %c0_44 = arith.constant 0 : index
    %c5 = arith.constant 5 : index
    %c0_45 = arith.constant 0 : index
    %161 = vector.load %arg5[%c0_44, %c5, %c0_45] : memref<4x18x18xf32, #tpu.memory_space<vmem>>, vector<4x3x18xf32>
    %162 = vector.extract_strided_slice %161 {offsets = [0, 0, 0], sizes = [4, 1, 16], strides = [1, 1, 1]} : vector<4x3x18xf32> to vector<4x1x16xf32>
    %163 = vector.shape_cast %162 : vector<4x1x16xf32> to vector<4x16xf32>
    %164 = vector.shape_cast %163 : vector<4x16xf32> to vector<1x4x16xf32>
    %165 = vector.extract_strided_slice %161 {offsets = [0, 0, 1], sizes = [4, 1, 16], strides = [1, 1, 1]} : vector<4x3x18xf32> to vector<4x1x16xf32>
    %166 = vector.shape_cast %165 : vector<4x1x16xf32> to vector<4x16xf32>
    %167 = vector.shape_cast %166 : vector<4x16xf32> to vector<1x4x16xf32>
    %168 = vector.extract_strided_slice %161 {offsets = [0, 0, 2], sizes = [4, 1, 16], strides = [1, 1, 1]} : vector<4x3x18xf32> to vector<4x1x16xf32>
    %169 = vector.shape_cast %168 : vector<4x1x16xf32> to vector<4x16xf32>
    %170 = vector.shape_cast %169 : vector<4x16xf32> to vector<1x4x16xf32>
    %171 = vector.extract_strided_slice %161 {offsets = [0, 1, 0], sizes = [4, 1, 16], strides = [1, 1, 1]} : vector<4x3x18xf32> to vector<4x1x16xf32>
    %172 = vector.shape_cast %171 : vector<4x1x16xf32> to vector<4x16xf32>
    %173 = vector.shape_cast %172 : vector<4x16xf32> to vector<1x4x16xf32>
    %174 = vector.extract_strided_slice %161 {offsets = [0, 1, 1], sizes = [4, 1, 16], strides = [1, 1, 1]} : vector<4x3x18xf32> to vector<4x1x16xf32>
    %175 = vector.shape_cast %174 : vector<4x1x16xf32> to vector<4x16xf32>
    %176 = vector.shape_cast %175 : vector<4x16xf32> to vector<1x4x16xf32>
    %177 = vector.extract_strided_slice %161 {offsets = [0, 1, 2], sizes = [4, 1, 16], strides = [1, 1, 1]} : vector<4x3x18xf32> to vector<4x1x16xf32>
    %178 = vector.shape_cast %177 : vector<4x1x16xf32> to vector<4x16xf32>
    %179 = vector.shape_cast %178 : vector<4x16xf32> to vector<1x4x16xf32>
    %180 = vector.extract_strided_slice %161 {offsets = [0, 2, 0], sizes = [4, 1, 16], strides = [1, 1, 1]} : vector<4x3x18xf32> to vector<4x1x16xf32>
    %181 = vector.shape_cast %180 : vector<4x1x16xf32> to vector<4x16xf32>
    %182 = vector.shape_cast %181 : vector<4x16xf32> to vector<1x4x16xf32>
    %183 = vector.extract_strided_slice %161 {offsets = [0, 2, 1], sizes = [4, 1, 16], strides = [1, 1, 1]} : vector<4x3x18xf32> to vector<4x1x16xf32>
    %184 = vector.shape_cast %183 : vector<4x1x16xf32> to vector<4x16xf32>
    %185 = vector.shape_cast %184 : vector<4x16xf32> to vector<1x4x16xf32>
    %186 = vector.extract_strided_slice %161 {offsets = [0, 2, 2], sizes = [4, 1, 16], strides = [1, 1, 1]} : vector<4x3x18xf32> to vector<4x1x16xf32>
    %187 = vector.shape_cast %186 : vector<4x1x16xf32> to vector<4x16xf32>
    %188 = vector.shape_cast %187 : vector<4x16xf32> to vector<1x4x16xf32>
    %189 = tpu.concatenate %164, %167, %170, %173, %176, %179, %182, %185, %188 in 0 : vector<1x4x16xf32>, vector<1x4x16xf32>, vector<1x4x16xf32>, vector<1x4x16xf32>, vector<1x4x16xf32>, vector<1x4x16xf32>, vector<1x4x16xf32>, vector<1x4x16xf32>, vector<1x4x16xf32> -> vector<9x4x16xf32>
    %c0_46 = arith.constant 0 : index
    %c0_47 = arith.constant 0 : index
    %c80 = arith.constant 80 : index
    %190 = vector.load %arg6[%c0_46, %c0_47, %c80] : memref<9x4x256xf32, #tpu.memory_space<vmem>>, vector<9x4x16xf32>
    tpu.vector_store %arg6[%c0_46, %c0_47, %c80], %189 {strides = array<i32>} : memref<9x4x256xf32, #tpu.memory_space<vmem>>, vector<9x4x16xf32>,
    %c0_48 = arith.constant 0 : index
    %c6 = arith.constant 6 : index
    %c0_49 = arith.constant 0 : index
    %191 = vector.load %arg5[%c0_48, %c6, %c0_49] : memref<4x18x18xf32, #tpu.memory_space<vmem>>, vector<4x3x18xf32>
    %192 = vector.extract_strided_slice %191 {offsets = [0, 0, 0], sizes = [4, 1, 16], strides = [1, 1, 1]} : vector<4x3x18xf32> to vector<4x1x16xf32>
    %193 = vector.shape_cast %192 : vector<4x1x16xf32> to vector<4x16xf32>
    %194 = vector.shape_cast %193 : vector<4x16xf32> to vector<1x4x16xf32>
    %195 = vector.extract_strided_slice %191 {offsets = [0, 0, 1], sizes = [4, 1, 16], strides = [1, 1, 1]} : vector<4x3x18xf32> to vector<4x1x16xf32>
    %196 = vector.shape_cast %195 : vector<4x1x16xf32> to vector<4x16xf32>
    %197 = vector.shape_cast %196 : vector<4x16xf32> to vector<1x4x16xf32>
    %198 = vector.extract_strided_slice %191 {offsets = [0, 0, 2], sizes = [4, 1, 16], strides = [1, 1, 1]} : vector<4x3x18xf32> to vector<4x1x16xf32>
    %199 = vector.shape_cast %198 : vector<4x1x16xf32> to vector<4x16xf32>
    %200 = vector.shape_cast %199 : vector<4x16xf32> to vector<1x4x16xf32>
    %201 = vector.extract_strided_slice %191 {offsets = [0, 1, 0], sizes = [4, 1, 16], strides = [1, 1, 1]} : vector<4x3x18xf32> to vector<4x1x16xf32>
    %202 = vector.shape_cast %201 : vector<4x1x16xf32> to vector<4x16xf32>
    %203 = vector.shape_cast %202 : vector<4x16xf32> to vector<1x4x16xf32>
    %204 = vector.extract_strided_slice %191 {offsets = [0, 1, 1], sizes = [4, 1, 16], strides = [1, 1, 1]} : vector<4x3x18xf32> to vector<4x1x16xf32>
    %205 = vector.shape_cast %204 : vector<4x1x16xf32> to vector<4x16xf32>
    %206 = vector.shape_cast %205 : vector<4x16xf32> to vector<1x4x16xf32>
    %207 = vector.extract_strided_slice %191 {offsets = [0, 1, 2], sizes = [4, 1, 16], strides = [1, 1, 1]} : vector<4x3x18xf32> to vector<4x1x16xf32>
    %208 = vector.shape_cast %207 : vector<4x1x16xf32> to vector<4x16xf32>
    %209 = vector.shape_cast %208 : vector<4x16xf32> to vector<1x4x16xf32>
    %210 = vector.extract_strided_slice %191 {offsets = [0, 2, 0], sizes = [4, 1, 16], strides = [1, 1, 1]} : vector<4x3x18xf32> to vector<4x1x16xf32>
    %211 = vector.shape_cast %210 : vector<4x1x16xf32> to vector<4x16xf32>
    %212 = vector.shape_cast %211 : vector<4x16xf32> to vector<1x4x16xf32>
    %213 = vector.extract_strided_slice %191 {offsets = [0, 2, 1], sizes = [4, 1, 16], strides = [1, 1, 1]} : vector<4x3x18xf32> to vector<4x1x16xf32>
    %214 = vector.shape_cast %213 : vector<4x1x16xf32> to vector<4x16xf32>
    %215 = vector.shape_cast %214 : vector<4x16xf32> to vector<1x4x16xf32>
    %216 = vector.extract_strided_slice %191 {offsets = [0, 2, 2], sizes = [4, 1, 16], strides = [1, 1, 1]} : vector<4x3x18xf32> to vector<4x1x16xf32>
    %217 = vector.shape_cast %216 : vector<4x1x16xf32> to vector<4x16xf32>
    %218 = vector.shape_cast %217 : vector<4x16xf32> to vector<1x4x16xf32>
    %219 = tpu.concatenate %194, %197, %200, %203, %206, %209, %212, %215, %218 in 0 : vector<1x4x16xf32>, vector<1x4x16xf32>, vector<1x4x16xf32>, vector<1x4x16xf32>, vector<1x4x16xf32>, vector<1x4x16xf32>, vector<1x4x16xf32>, vector<1x4x16xf32>, vector<1x4x16xf32> -> vector<9x4x16xf32>
    %c0_50 = arith.constant 0 : index
    %c0_51 = arith.constant 0 : index
    %c96 = arith.constant 96 : index
    %220 = vector.load %arg6[%c0_50, %c0_51, %c96] : memref<9x4x256xf32, #tpu.memory_space<vmem>>, vector<9x4x16xf32>
    tpu.vector_store %arg6[%c0_50, %c0_51, %c96], %219 {strides = array<i32>} : memref<9x4x256xf32, #tpu.memory_space<vmem>>, vector<9x4x16xf32>,
    %c0_52 = arith.constant 0 : index
    %c7 = arith.constant 7 : index
    %c0_53 = arith.constant 0 : index
    %221 = vector.load %arg5[%c0_52, %c7, %c0_53] : memref<4x18x18xf32, #tpu.memory_space<vmem>>, vector<4x3x18xf32>
    %222 = vector.extract_strided_slice %221 {offsets = [0, 0, 0], sizes = [4, 1, 16], strides = [1, 1, 1]} : vector<4x3x18xf32> to vector<4x1x16xf32>
    %223 = vector.shape_cast %222 : vector<4x1x16xf32> to vector<4x16xf32>
    %224 = vector.shape_cast %223 : vector<4x16xf32> to vector<1x4x16xf32>
    %225 = vector.extract_strided_slice %221 {offsets = [0, 0, 1], sizes = [4, 1, 16], strides = [1, 1, 1]} : vector<4x3x18xf32> to vector<4x1x16xf32>
    %226 = vector.shape_cast %225 : vector<4x1x16xf32> to vector<4x16xf32>
    %227 = vector.shape_cast %226 : vector<4x16xf32> to vector<1x4x16xf32>
    %228 = vector.extract_strided_slice %221 {offsets = [0, 0, 2], sizes = [4, 1, 16], strides = [1, 1, 1]} : vector<4x3x18xf32> to vector<4x1x16xf32>
    %229 = vector.shape_cast %228 : vector<4x1x16xf32> to vector<4x16xf32>
    %230 = vector.shape_cast %229 : vector<4x16xf32> to vector<1x4x16xf32>
    %231 = vector.extract_strided_slice %221 {offsets = [0, 1, 0], sizes = [4, 1, 16], strides = [1, 1, 1]} : vector<4x3x18xf32> to vector<4x1x16xf32>
    %232 = vector.shape_cast %231 : vector<4x1x16xf32> to vector<4x16xf32>
    %233 = vector.shape_cast %232 : vector<4x16xf32> to vector<1x4x16xf32>
    %234 = vector.extract_strided_slice %221 {offsets = [0, 1, 1], sizes = [4, 1, 16], strides = [1, 1, 1]} : vector<4x3x18xf32> to vector<4x1x16xf32>
    %235 = vector.shape_cast %234 : vector<4x1x16xf32> to vector<4x16xf32>
    %236 = vector.shape_cast %235 : vector<4x16xf32> to vector<1x4x16xf32>
    %237 = vector.extract_strided_slice %221 {offsets = [0, 1, 2], sizes = [4, 1, 16], strides = [1, 1, 1]} : vector<4x3x18xf32> to vector<4x1x16xf32>
    %238 = vector.shape_cast %237 : vector<4x1x16xf32> to vector<4x16xf32>
    %239 = vector.shape_cast %238 : vector<4x16xf32> to vector<1x4x16xf32>
    %240 = vector.extract_strided_slice %221 {offsets = [0, 2, 0], sizes = [4, 1, 16], strides = [1, 1, 1]} : vector<4x3x18xf32> to vector<4x1x16xf32>
    %241 = vector.shape_cast %240 : vector<4x1x16xf32> to vector<4x16xf32>
    %242 = vector.shape_cast %241 : vector<4x16xf32> to vector<1x4x16xf32>
    %243 = vector.extract_strided_slice %221 {offsets = [0, 2, 1], sizes = [4, 1, 16], strides = [1, 1, 1]} : vector<4x3x18xf32> to vector<4x1x16xf32>
    %244 = vector.shape_cast %243 : vector<4x1x16xf32> to vector<4x16xf32>
    %245 = vector.shape_cast %244 : vector<4x16xf32> to vector<1x4x16xf32>
    %246 = vector.extract_strided_slice %221 {offsets = [0, 2, 2], sizes = [4, 1, 16], strides = [1, 1, 1]} : vector<4x3x18xf32> to vector<4x1x16xf32>
    %247 = vector.shape_cast %246 : vector<4x1x16xf32> to vector<4x16xf32>
    %248 = vector.shape_cast %247 : vector<4x16xf32> to vector<1x4x16xf32>
    %249 = tpu.concatenate %224, %227, %230, %233, %236, %239, %242, %245, %248 in 0 : vector<1x4x16xf32>, vector<1x4x16xf32>, vector<1x4x16xf32>, vector<1x4x16xf32>, vector<1x4x16xf32>, vector<1x4x16xf32>, vector<1x4x16xf32>, vector<1x4x16xf32>, vector<1x4x16xf32> -> vector<9x4x16xf32>
    %c0_54 = arith.constant 0 : index
    %c0_55 = arith.constant 0 : index
    %c112 = arith.constant 112 : index
    %250 = vector.load %arg6[%c0_54, %c0_55, %c112] : memref<9x4x256xf32, #tpu.memory_space<vmem>>, vector<9x4x16xf32>
    tpu.vector_store %arg6[%c0_54, %c0_55, %c112], %249 {strides = array<i32>} : memref<9x4x256xf32, #tpu.memory_space<vmem>>, vector<9x4x16xf32>,
    %c0_56 = arith.constant 0 : index
    %c8 = arith.constant 8 : index
    %c0_57 = arith.constant 0 : index
    %251 = vector.load %arg5[%c0_56, %c8, %c0_57] : memref<4x18x18xf32, #tpu.memory_space<vmem>>, vector<4x3x18xf32>
    %252 = vector.extract_strided_slice %251 {offsets = [0, 0, 0], sizes = [4, 1, 16], strides = [1, 1, 1]} : vector<4x3x18xf32> to vector<4x1x16xf32>
    %253 = vector.shape_cast %252 : vector<4x1x16xf32> to vector<4x16xf32>
    %254 = vector.shape_cast %253 : vector<4x16xf32> to vector<1x4x16xf32>
    %255 = vector.extract_strided_slice %251 {offsets = [0, 0, 1], sizes = [4, 1, 16], strides = [1, 1, 1]} : vector<4x3x18xf32> to vector<4x1x16xf32>
    %256 = vector.shape_cast %255 : vector<4x1x16xf32> to vector<4x16xf32>
    %257 = vector.shape_cast %256 : vector<4x16xf32> to vector<1x4x16xf32>
    %258 = vector.extract_strided_slice %251 {offsets = [0, 0, 2], sizes = [4, 1, 16], strides = [1, 1, 1]} : vector<4x3x18xf32> to vector<4x1x16xf32>
    %259 = vector.shape_cast %258 : vector<4x1x16xf32> to vector<4x16xf32>
    %260 = vector.shape_cast %259 : vector<4x16xf32> to vector<1x4x16xf32>
    %261 = vector.extract_strided_slice %251 {offsets = [0, 1, 0], sizes = [4, 1, 16], strides = [1, 1, 1]} : vector<4x3x18xf32> to vector<4x1x16xf32>
    %262 = vector.shape_cast %261 : vector<4x1x16xf32> to vector<4x16xf32>
    %263 = vector.shape_cast %262 : vector<4x16xf32> to vector<1x4x16xf32>
    %264 = vector.extract_strided_slice %251 {offsets = [0, 1, 1], sizes = [4, 1, 16], strides = [1, 1, 1]} : vector<4x3x18xf32> to vector<4x1x16xf32>
    %265 = vector.shape_cast %264 : vector<4x1x16xf32> to vector<4x16xf32>
    %266 = vector.shape_cast %265 : vector<4x16xf32> to vector<1x4x16xf32>
    %267 = vector.extract_strided_slice %251 {offsets = [0, 1, 2], sizes = [4, 1, 16], strides = [1, 1, 1]} : vector<4x3x18xf32> to vector<4x1x16xf32>
    %268 = vector.shape_cast %267 : vector<4x1x16xf32> to vector<4x16xf32>
    %269 = vector.shape_cast %268 : vector<4x16xf32> to vector<1x4x16xf32>
    %270 = vector.extract_strided_slice %251 {offsets = [0, 2, 0], sizes = [4, 1, 16], strides = [1, 1, 1]} : vector<4x3x18xf32> to vector<4x1x16xf32>
    %271 = vector.shape_cast %270 : vector<4x1x16xf32> to vector<4x16xf32>
    %272 = vector.shape_cast %271 : vector<4x16xf32> to vector<1x4x16xf32>
    %273 = vector.extract_strided_slice %251 {offsets = [0, 2, 1], sizes = [4, 1, 16], strides = [1, 1, 1]} : vector<4x3x18xf32> to vector<4x1x16xf32>
    %274 = vector.shape_cast %273 : vector<4x1x16xf32> to vector<4x16xf32>
    %275 = vector.shape_cast %274 : vector<4x16xf32> to vector<1x4x16xf32>
    %276 = vector.extract_strided_slice %251 {offsets = [0, 2, 2], sizes = [4, 1, 16], strides = [1, 1, 1]} : vector<4x3x18xf32> to vector<4x1x16xf32>
    %277 = vector.shape_cast %276 : vector<4x1x16xf32> to vector<4x16xf32>
    %278 = vector.shape_cast %277 : vector<4x16xf32> to vector<1x4x16xf32>
    %279 = tpu.concatenate %254, %257, %260, %263, %266, %269, %272, %275, %278 in 0 : vector<1x4x16xf32>, vector<1x4x16xf32>, vector<1x4x16xf32>, vector<1x4x16xf32>, vector<1x4x16xf32>, vector<1x4x16xf32>, vector<1x4x16xf32>, vector<1x4x16xf32>, vector<1x4x16xf32> -> vector<9x4x16xf32>
    %c0_58 = arith.constant 0 : index
    %c0_59 = arith.constant 0 : index
    %c128 = arith.constant 128 : index
    %280 = vector.load %arg6[%c0_58, %c0_59, %c128] : memref<9x4x256xf32, #tpu.memory_space<vmem>>, vector<9x4x16xf32>
    tpu.vector_store %arg6[%c0_58, %c0_59, %c128], %279 {strides = array<i32>} : memref<9x4x256xf32, #tpu.memory_space<vmem>>, vector<9x4x16xf32>,
    %c0_60 = arith.constant 0 : index
    %c9 = arith.constant 9 : index
    %c0_61 = arith.constant 0 : index
    %281 = vector.load %arg5[%c0_60, %c9, %c0_61] : memref<4x18x18xf32, #tpu.memory_space<vmem>>, vector<4x3x18xf32>
    %282 = vector.extract_strided_slice %281 {offsets = [0, 0, 0], sizes = [4, 1, 16], strides = [1, 1, 1]} : vector<4x3x18xf32> to vector<4x1x16xf32>
    %283 = vector.shape_cast %282 : vector<4x1x16xf32> to vector<4x16xf32>
    %284 = vector.shape_cast %283 : vector<4x16xf32> to vector<1x4x16xf32>
    %285 = vector.extract_strided_slice %281 {offsets = [0, 0, 1], sizes = [4, 1, 16], strides = [1, 1, 1]} : vector<4x3x18xf32> to vector<4x1x16xf32>
    %286 = vector.shape_cast %285 : vector<4x1x16xf32> to vector<4x16xf32>
    %287 = vector.shape_cast %286 : vector<4x16xf32> to vector<1x4x16xf32>
    %288 = vector.extract_strided_slice %281 {offsets = [0, 0, 2], sizes = [4, 1, 16], strides = [1, 1, 1]} : vector<4x3x18xf32> to vector<4x1x16xf32>
    %289 = vector.shape_cast %288 : vector<4x1x16xf32> to vector<4x16xf32>
    %290 = vector.shape_cast %289 : vector<4x16xf32> to vector<1x4x16xf32>
    %291 = vector.extract_strided_slice %281 {offsets = [0, 1, 0], sizes = [4, 1, 16], strides = [1, 1, 1]} : vector<4x3x18xf32> to vector<4x1x16xf32>
    %292 = vector.shape_cast %291 : vector<4x1x16xf32> to vector<4x16xf32>
    %293 = vector.shape_cast %292 : vector<4x16xf32> to vector<1x4x16xf32>
    %294 = vector.extract_strided_slice %281 {offsets = [0, 1, 1], sizes = [4, 1, 16], strides = [1, 1, 1]} : vector<4x3x18xf32> to vector<4x1x16xf32>
    %295 = vector.shape_cast %294 : vector<4x1x16xf32> to vector<4x16xf32>
    %296 = vector.shape_cast %295 : vector<4x16xf32> to vector<1x4x16xf32>
    %297 = vector.extract_strided_slice %281 {offsets = [0, 1, 2], sizes = [4, 1, 16], strides = [1, 1, 1]} : vector<4x3x18xf32> to vector<4x1x16xf32>
    %298 = vector.shape_cast %297 : vector<4x1x16xf32> to vector<4x16xf32>
    %299 = vector.shape_cast %298 : vector<4x16xf32> to vector<1x4x16xf32>
    %300 = vector.extract_strided_slice %281 {offsets = [0, 2, 0], sizes = [4, 1, 16], strides = [1, 1, 1]} : vector<4x3x18xf32> to vector<4x1x16xf32>
    %301 = vector.shape_cast %300 : vector<4x1x16xf32> to vector<4x16xf32>
    %302 = vector.shape_cast %301 : vector<4x16xf32> to vector<1x4x16xf32>
    %303 = vector.extract_strided_slice %281 {offsets = [0, 2, 1], sizes = [4, 1, 16], strides = [1, 1, 1]} : vector<4x3x18xf32> to vector<4x1x16xf32>
    %304 = vector.shape_cast %303 : vector<4x1x16xf32> to vector<4x16xf32>
    %305 = vector.shape_cast %304 : vector<4x16xf32> to vector<1x4x16xf32>
    %306 = vector.extract_strided_slice %281 {offsets = [0, 2, 2], sizes = [4, 1, 16], strides = [1, 1, 1]} : vector<4x3x18xf32> to vector<4x1x16xf32>
    %307 = vector.shape_cast %306 : vector<4x1x16xf32> to vector<4x16xf32>
    %308 = vector.shape_cast %307 : vector<4x16xf32> to vector<1x4x16xf32>
    %309 = tpu.concatenate %284, %287, %290, %293, %296, %299, %302, %305, %308 in 0 : vector<1x4x16xf32>, vector<1x4x16xf32>, vector<1x4x16xf32>, vector<1x4x16xf32>, vector<1x4x16xf32>, vector<1x4x16xf32>, vector<1x4x16xf32>, vector<1x4x16xf32>, vector<1x4x16xf32> -> vector<9x4x16xf32>
    %c0_62 = arith.constant 0 : index
    %c0_63 = arith.constant 0 : index
    %c144 = arith.constant 144 : index
    %310 = vector.load %arg6[%c0_62, %c0_63, %c144] : memref<9x4x256xf32, #tpu.memory_space<vmem>>, vector<9x4x16xf32>
    tpu.vector_store %arg6[%c0_62, %c0_63, %c144], %309 {strides = array<i32>} : memref<9x4x256xf32, #tpu.memory_space<vmem>>, vector<9x4x16xf32>,
    %c0_64 = arith.constant 0 : index
    %c10 = arith.constant 10 : index
    %c0_65 = arith.constant 0 : index
    %311 = vector.load %arg5[%c0_64, %c10, %c0_65] : memref<4x18x18xf32, #tpu.memory_space<vmem>>, vector<4x3x18xf32>
    %312 = vector.extract_strided_slice %311 {offsets = [0, 0, 0], sizes = [4, 1, 16], strides = [1, 1, 1]} : vector<4x3x18xf32> to vector<4x1x16xf32>
    %313 = vector.shape_cast %312 : vector<4x1x16xf32> to vector<4x16xf32>
    %314 = vector.shape_cast %313 : vector<4x16xf32> to vector<1x4x16xf32>
    %315 = vector.extract_strided_slice %311 {offsets = [0, 0, 1], sizes = [4, 1, 16], strides = [1, 1, 1]} : vector<4x3x18xf32> to vector<4x1x16xf32>
    %316 = vector.shape_cast %315 : vector<4x1x16xf32> to vector<4x16xf32>
    %317 = vector.shape_cast %316 : vector<4x16xf32> to vector<1x4x16xf32>
    %318 = vector.extract_strided_slice %311 {offsets = [0, 0, 2], sizes = [4, 1, 16], strides = [1, 1, 1]} : vector<4x3x18xf32> to vector<4x1x16xf32>
    %319 = vector.shape_cast %318 : vector<4x1x16xf32> to vector<4x16xf32>
    %320 = vector.shape_cast %319 : vector<4x16xf32> to vector<1x4x16xf32>
    %321 = vector.extract_strided_slice %311 {offsets = [0, 1, 0], sizes = [4, 1, 16], strides = [1, 1, 1]} : vector<4x3x18xf32> to vector<4x1x16xf32>
    %322 = vector.shape_cast %321 : vector<4x1x16xf32> to vector<4x16xf32>
    %323 = vector.shape_cast %322 : vector<4x16xf32> to vector<1x4x16xf32>
    %324 = vector.extract_strided_slice %311 {offsets = [0, 1, 1], sizes = [4, 1, 16], strides = [1, 1, 1]} : vector<4x3x18xf32> to vector<4x1x16xf32>
    %325 = vector.shape_cast %324 : vector<4x1x16xf32> to vector<4x16xf32>
    %326 = vector.shape_cast %325 : vector<4x16xf32> to vector<1x4x16xf32>
    %327 = vector.extract_strided_slice %311 {offsets = [0, 1, 2], sizes = [4, 1, 16], strides = [1, 1, 1]} : vector<4x3x18xf32> to vector<4x1x16xf32>
    %328 = vector.shape_cast %327 : vector<4x1x16xf32> to vector<4x16xf32>
    %329 = vector.shape_cast %328 : vector<4x16xf32> to vector<1x4x16xf32>
    %330 = vector.extract_strided_slice %311 {offsets = [0, 2, 0], sizes = [4, 1, 16], strides = [1, 1, 1]} : vector<4x3x18xf32> to vector<4x1x16xf32>
    %331 = vector.shape_cast %330 : vector<4x1x16xf32> to vector<4x16xf32>
    %332 = vector.shape_cast %331 : vector<4x16xf32> to vector<1x4x16xf32>
    %333 = vector.extract_strided_slice %311 {offsets = [0, 2, 1], sizes = [4, 1, 16], strides = [1, 1, 1]} : vector<4x3x18xf32> to vector<4x1x16xf32>
    %334 = vector.shape_cast %333 : vector<4x1x16xf32> to vector<4x16xf32>
    %335 = vector.shape_cast %334 : vector<4x16xf32> to vector<1x4x16xf32>
    %336 = vector.extract_strided_slice %311 {offsets = [0, 2, 2], sizes = [4, 1, 16], strides = [1, 1, 1]} : vector<4x3x18xf32> to vector<4x1x16xf32>
    %337 = vector.shape_cast %336 : vector<4x1x16xf32> to vector<4x16xf32>
    %338 = vector.shape_cast %337 : vector<4x16xf32> to vector<1x4x16xf32>
    %339 = tpu.concatenate %314, %317, %320, %323, %326, %329, %332, %335, %338 in 0 : vector<1x4x16xf32>, vector<1x4x16xf32>, vector<1x4x16xf32>, vector<1x4x16xf32>, vector<1x4x16xf32>, vector<1x4x16xf32>, vector<1x4x16xf32>, vector<1x4x16xf32>, vector<1x4x16xf32> -> vector<9x4x16xf32>
    %c0_66 = arith.constant 0 : index
    %c0_67 = arith.constant 0 : index
    %c160 = arith.constant 160 : index
    %340 = vector.load %arg6[%c0_66, %c0_67, %c160] : memref<9x4x256xf32, #tpu.memory_space<vmem>>, vector<9x4x16xf32>
    tpu.vector_store %arg6[%c0_66, %c0_67, %c160], %339 {strides = array<i32>} : memref<9x4x256xf32, #tpu.memory_space<vmem>>, vector<9x4x16xf32>,
    %c0_68 = arith.constant 0 : index
    %c11 = arith.constant 11 : index
    %c0_69 = arith.constant 0 : index
    %341 = vector.load %arg5[%c0_68, %c11, %c0_69] : memref<4x18x18xf32, #tpu.memory_space<vmem>>, vector<4x3x18xf32>
    %342 = vector.extract_strided_slice %341 {offsets = [0, 0, 0], sizes = [4, 1, 16], strides = [1, 1, 1]} : vector<4x3x18xf32> to vector<4x1x16xf32>
    %343 = vector.shape_cast %342 : vector<4x1x16xf32> to vector<4x16xf32>
    %344 = vector.shape_cast %343 : vector<4x16xf32> to vector<1x4x16xf32>
    %345 = vector.extract_strided_slice %341 {offsets = [0, 0, 1], sizes = [4, 1, 16], strides = [1, 1, 1]} : vector<4x3x18xf32> to vector<4x1x16xf32>
    %346 = vector.shape_cast %345 : vector<4x1x16xf32> to vector<4x16xf32>
    %347 = vector.shape_cast %346 : vector<4x16xf32> to vector<1x4x16xf32>
    %348 = vector.extract_strided_slice %341 {offsets = [0, 0, 2], sizes = [4, 1, 16], strides = [1, 1, 1]} : vector<4x3x18xf32> to vector<4x1x16xf32>
    %349 = vector.shape_cast %348 : vector<4x1x16xf32> to vector<4x16xf32>
    %350 = vector.shape_cast %349 : vector<4x16xf32> to vector<1x4x16xf32>
    %351 = vector.extract_strided_slice %341 {offsets = [0, 1, 0], sizes = [4, 1, 16], strides = [1, 1, 1]} : vector<4x3x18xf32> to vector<4x1x16xf32>
    %352 = vector.shape_cast %351 : vector<4x1x16xf32> to vector<4x16xf32>
    %353 = vector.shape_cast %352 : vector<4x16xf32> to vector<1x4x16xf32>
    %354 = vector.extract_strided_slice %341 {offsets = [0, 1, 1], sizes = [4, 1, 16], strides = [1, 1, 1]} : vector<4x3x18xf32> to vector<4x1x16xf32>
    %355 = vector.shape_cast %354 : vector<4x1x16xf32> to vector<4x16xf32>
    %356 = vector.shape_cast %355 : vector<4x16xf32> to vector<1x4x16xf32>
    %357 = vector.extract_strided_slice %341 {offsets = [0, 1, 2], sizes = [4, 1, 16], strides = [1, 1, 1]} : vector<4x3x18xf32> to vector<4x1x16xf32>
    %358 = vector.shape_cast %357 : vector<4x1x16xf32> to vector<4x16xf32>
    %359 = vector.shape_cast %358 : vector<4x16xf32> to vector<1x4x16xf32>
    %360 = vector.extract_strided_slice %341 {offsets = [0, 2, 0], sizes = [4, 1, 16], strides = [1, 1, 1]} : vector<4x3x18xf32> to vector<4x1x16xf32>
    %361 = vector.shape_cast %360 : vector<4x1x16xf32> to vector<4x16xf32>
    %362 = vector.shape_cast %361 : vector<4x16xf32> to vector<1x4x16xf32>
    %363 = vector.extract_strided_slice %341 {offsets = [0, 2, 1], sizes = [4, 1, 16], strides = [1, 1, 1]} : vector<4x3x18xf32> to vector<4x1x16xf32>
    %364 = vector.shape_cast %363 : vector<4x1x16xf32> to vector<4x16xf32>
    %365 = vector.shape_cast %364 : vector<4x16xf32> to vector<1x4x16xf32>
    %366 = vector.extract_strided_slice %341 {offsets = [0, 2, 2], sizes = [4, 1, 16], strides = [1, 1, 1]} : vector<4x3x18xf32> to vector<4x1x16xf32>
    %367 = vector.shape_cast %366 : vector<4x1x16xf32> to vector<4x16xf32>
    %368 = vector.shape_cast %367 : vector<4x16xf32> to vector<1x4x16xf32>
    %369 = tpu.concatenate %344, %347, %350, %353, %356, %359, %362, %365, %368 in 0 : vector<1x4x16xf32>, vector<1x4x16xf32>, vector<1x4x16xf32>, vector<1x4x16xf32>, vector<1x4x16xf32>, vector<1x4x16xf32>, vector<1x4x16xf32>, vector<1x4x16xf32>, vector<1x4x16xf32> -> vector<9x4x16xf32>
    %c0_70 = arith.constant 0 : index
    %c0_71 = arith.constant 0 : index
    %c176 = arith.constant 176 : index
    %370 = vector.load %arg6[%c0_70, %c0_71, %c176] : memref<9x4x256xf32, #tpu.memory_space<vmem>>, vector<9x4x16xf32>
    tpu.vector_store %arg6[%c0_70, %c0_71, %c176], %369 {strides = array<i32>} : memref<9x4x256xf32, #tpu.memory_space<vmem>>, vector<9x4x16xf32>,
    %c0_72 = arith.constant 0 : index
    %c12 = arith.constant 12 : index
    %c0_73 = arith.constant 0 : index
    %371 = vector.load %arg5[%c0_72, %c12, %c0_73] : memref<4x18x18xf32, #tpu.memory_space<vmem>>, vector<4x3x18xf32>
    %372 = vector.extract_strided_slice %371 {offsets = [0, 0, 0], sizes = [4, 1, 16], strides = [1, 1, 1]} : vector<4x3x18xf32> to vector<4x1x16xf32>
    %373 = vector.shape_cast %372 : vector<4x1x16xf32> to vector<4x16xf32>
    %374 = vector.shape_cast %373 : vector<4x16xf32> to vector<1x4x16xf32>
    %375 = vector.extract_strided_slice %371 {offsets = [0, 0, 1], sizes = [4, 1, 16], strides = [1, 1, 1]} : vector<4x3x18xf32> to vector<4x1x16xf32>
    %376 = vector.shape_cast %375 : vector<4x1x16xf32> to vector<4x16xf32>
    %377 = vector.shape_cast %376 : vector<4x16xf32> to vector<1x4x16xf32>
    %378 = vector.extract_strided_slice %371 {offsets = [0, 0, 2], sizes = [4, 1, 16], strides = [1, 1, 1]} : vector<4x3x18xf32> to vector<4x1x16xf32>
    %379 = vector.shape_cast %378 : vector<4x1x16xf32> to vector<4x16xf32>
    %380 = vector.shape_cast %379 : vector<4x16xf32> to vector<1x4x16xf32>
    %381 = vector.extract_strided_slice %371 {offsets = [0, 1, 0], sizes = [4, 1, 16], strides = [1, 1, 1]} : vector<4x3x18xf32> to vector<4x1x16xf32>
    %382 = vector.shape_cast %381 : vector<4x1x16xf32> to vector<4x16xf32>
    %383 = vector.shape_cast %382 : vector<4x16xf32> to vector<1x4x16xf32>
    %384 = vector.extract_strided_slice %371 {offsets = [0, 1, 1], sizes = [4, 1, 16], strides = [1, 1, 1]} : vector<4x3x18xf32> to vector<4x1x16xf32>
    %385 = vector.shape_cast %384 : vector<4x1x16xf32> to vector<4x16xf32>
    %386 = vector.shape_cast %385 : vector<4x16xf32> to vector<1x4x16xf32>
    %387 = vector.extract_strided_slice %371 {offsets = [0, 1, 2], sizes = [4, 1, 16], strides = [1, 1, 1]} : vector<4x3x18xf32> to vector<4x1x16xf32>
    %388 = vector.shape_cast %387 : vector<4x1x16xf32> to vector<4x16xf32>
    %389 = vector.shape_cast %388 : vector<4x16xf32> to vector<1x4x16xf32>
    %390 = vector.extract_strided_slice %371 {offsets = [0, 2, 0], sizes = [4, 1, 16], strides = [1, 1, 1]} : vector<4x3x18xf32> to vector<4x1x16xf32>
    %391 = vector.shape_cast %390 : vector<4x1x16xf32> to vector<4x16xf32>
    %392 = vector.shape_cast %391 : vector<4x16xf32> to vector<1x4x16xf32>
    %393 = vector.extract_strided_slice %371 {offsets = [0, 2, 1], sizes = [4, 1, 16], strides = [1, 1, 1]} : vector<4x3x18xf32> to vector<4x1x16xf32>
    %394 = vector.shape_cast %393 : vector<4x1x16xf32> to vector<4x16xf32>
    %395 = vector.shape_cast %394 : vector<4x16xf32> to vector<1x4x16xf32>
    %396 = vector.extract_strided_slice %371 {offsets = [0, 2, 2], sizes = [4, 1, 16], strides = [1, 1, 1]} : vector<4x3x18xf32> to vector<4x1x16xf32>
    %397 = vector.shape_cast %396 : vector<4x1x16xf32> to vector<4x16xf32>
    %398 = vector.shape_cast %397 : vector<4x16xf32> to vector<1x4x16xf32>
    %399 = tpu.concatenate %374, %377, %380, %383, %386, %389, %392, %395, %398 in 0 : vector<1x4x16xf32>, vector<1x4x16xf32>, vector<1x4x16xf32>, vector<1x4x16xf32>, vector<1x4x16xf32>, vector<1x4x16xf32>, vector<1x4x16xf32>, vector<1x4x16xf32>, vector<1x4x16xf32> -> vector<9x4x16xf32>
    %c0_74 = arith.constant 0 : index
    %c0_75 = arith.constant 0 : index
    %c192 = arith.constant 192 : index
    %400 = vector.load %arg6[%c0_74, %c0_75, %c192] : memref<9x4x256xf32, #tpu.memory_space<vmem>>, vector<9x4x16xf32>
    tpu.vector_store %arg6[%c0_74, %c0_75, %c192], %399 {strides = array<i32>} : memref<9x4x256xf32, #tpu.memory_space<vmem>>, vector<9x4x16xf32>,
    %c0_76 = arith.constant 0 : index
    %c13 = arith.constant 13 : index
    %c0_77 = arith.constant 0 : index
    %401 = vector.load %arg5[%c0_76, %c13, %c0_77] : memref<4x18x18xf32, #tpu.memory_space<vmem>>, vector<4x3x18xf32>
    %402 = vector.extract_strided_slice %401 {offsets = [0, 0, 0], sizes = [4, 1, 16], strides = [1, 1, 1]} : vector<4x3x18xf32> to vector<4x1x16xf32>
    %403 = vector.shape_cast %402 : vector<4x1x16xf32> to vector<4x16xf32>
    %404 = vector.shape_cast %403 : vector<4x16xf32> to vector<1x4x16xf32>
    %405 = vector.extract_strided_slice %401 {offsets = [0, 0, 1], sizes = [4, 1, 16], strides = [1, 1, 1]} : vector<4x3x18xf32> to vector<4x1x16xf32>
    %406 = vector.shape_cast %405 : vector<4x1x16xf32> to vector<4x16xf32>
    %407 = vector.shape_cast %406 : vector<4x16xf32> to vector<1x4x16xf32>
    %408 = vector.extract_strided_slice %401 {offsets = [0, 0, 2], sizes = [4, 1, 16], strides = [1, 1, 1]} : vector<4x3x18xf32> to vector<4x1x16xf32>
    %409 = vector.shape_cast %408 : vector<4x1x16xf32> to vector<4x16xf32>
    %410 = vector.shape_cast %409 : vector<4x16xf32> to vector<1x4x16xf32>
    %411 = vector.extract_strided_slice %401 {offsets = [0, 1, 0], sizes = [4, 1, 16], strides = [1, 1, 1]} : vector<4x3x18xf32> to vector<4x1x16xf32>
    %412 = vector.shape_cast %411 : vector<4x1x16xf32> to vector<4x16xf32>
    %413 = vector.shape_cast %412 : vector<4x16xf32> to vector<1x4x16xf32>
    %414 = vector.extract_strided_slice %401 {offsets = [0, 1, 1], sizes = [4, 1, 16], strides = [1, 1, 1]} : vector<4x3x18xf32> to vector<4x1x16xf32>
    %415 = vector.shape_cast %414 : vector<4x1x16xf32> to vector<4x16xf32>
    %416 = vector.shape_cast %415 : vector<4x16xf32> to vector<1x4x16xf32>
    %417 = vector.extract_strided_slice %401 {offsets = [0, 1, 2], sizes = [4, 1, 16], strides = [1, 1, 1]} : vector<4x3x18xf32> to vector<4x1x16xf32>
    %418 = vector.shape_cast %417 : vector<4x1x16xf32> to vector<4x16xf32>
    %419 = vector.shape_cast %418 : vector<4x16xf32> to vector<1x4x16xf32>
    %420 = vector.extract_strided_slice %401 {offsets = [0, 2, 0], sizes = [4, 1, 16], strides = [1, 1, 1]} : vector<4x3x18xf32> to vector<4x1x16xf32>
    %421 = vector.shape_cast %420 : vector<4x1x16xf32> to vector<4x16xf32>
    %422 = vector.shape_cast %421 : vector<4x16xf32> to vector<1x4x16xf32>
    %423 = vector.extract_strided_slice %401 {offsets = [0, 2, 1], sizes = [4, 1, 16], strides = [1, 1, 1]} : vector<4x3x18xf32> to vector<4x1x16xf32>
    %424 = vector.shape_cast %423 : vector<4x1x16xf32> to vector<4x16xf32>
    %425 = vector.shape_cast %424 : vector<4x16xf32> to vector<1x4x16xf32>
    %426 = vector.extract_strided_slice %401 {offsets = [0, 2, 2], sizes = [4, 1, 16], strides = [1, 1, 1]} : vector<4x3x18xf32> to vector<4x1x16xf32>
    %427 = vector.shape_cast %426 : vector<4x1x16xf32> to vector<4x16xf32>
    %428 = vector.shape_cast %427 : vector<4x16xf32> to vector<1x4x16xf32>
    %429 = tpu.concatenate %404, %407, %410, %413, %416, %419, %422, %425, %428 in 0 : vector<1x4x16xf32>, vector<1x4x16xf32>, vector<1x4x16xf32>, vector<1x4x16xf32>, vector<1x4x16xf32>, vector<1x4x16xf32>, vector<1x4x16xf32>, vector<1x4x16xf32>, vector<1x4x16xf32> -> vector<9x4x16xf32>
    %c0_78 = arith.constant 0 : index
    %c0_79 = arith.constant 0 : index
    %c208 = arith.constant 208 : index
    %430 = vector.load %arg6[%c0_78, %c0_79, %c208] : memref<9x4x256xf32, #tpu.memory_space<vmem>>, vector<9x4x16xf32>
    tpu.vector_store %arg6[%c0_78, %c0_79, %c208], %429 {strides = array<i32>} : memref<9x4x256xf32, #tpu.memory_space<vmem>>, vector<9x4x16xf32>,
    %c0_80 = arith.constant 0 : index
    %c14 = arith.constant 14 : index
    %c0_81 = arith.constant 0 : index
    %431 = vector.load %arg5[%c0_80, %c14, %c0_81] : memref<4x18x18xf32, #tpu.memory_space<vmem>>, vector<4x3x18xf32>
    %432 = vector.extract_strided_slice %431 {offsets = [0, 0, 0], sizes = [4, 1, 16], strides = [1, 1, 1]} : vector<4x3x18xf32> to vector<4x1x16xf32>
    %433 = vector.shape_cast %432 : vector<4x1x16xf32> to vector<4x16xf32>
    %434 = vector.shape_cast %433 : vector<4x16xf32> to vector<1x4x16xf32>
    %435 = vector.extract_strided_slice %431 {offsets = [0, 0, 1], sizes = [4, 1, 16], strides = [1, 1, 1]} : vector<4x3x18xf32> to vector<4x1x16xf32>
    %436 = vector.shape_cast %435 : vector<4x1x16xf32> to vector<4x16xf32>
    %437 = vector.shape_cast %436 : vector<4x16xf32> to vector<1x4x16xf32>
    %438 = vector.extract_strided_slice %431 {offsets = [0, 0, 2], sizes = [4, 1, 16], strides = [1, 1, 1]} : vector<4x3x18xf32> to vector<4x1x16xf32>
    %439 = vector.shape_cast %438 : vector<4x1x16xf32> to vector<4x16xf32>
    %440 = vector.shape_cast %439 : vector<4x16xf32> to vector<1x4x16xf32>
    %441 = vector.extract_strided_slice %431 {offsets = [0, 1, 0], sizes = [4, 1, 16], strides = [1, 1, 1]} : vector<4x3x18xf32> to vector<4x1x16xf32>
    %442 = vector.shape_cast %441 : vector<4x1x16xf32> to vector<4x16xf32>
    %443 = vector.shape_cast %442 : vector<4x16xf32> to vector<1x4x16xf32>
    %444 = vector.extract_strided_slice %431 {offsets = [0, 1, 1], sizes = [4, 1, 16], strides = [1, 1, 1]} : vector<4x3x18xf32> to vector<4x1x16xf32>
    %445 = vector.shape_cast %444 : vector<4x1x16xf32> to vector<4x16xf32>
    %446 = vector.shape_cast %445 : vector<4x16xf32> to vector<1x4x16xf32>
    %447 = vector.extract_strided_slice %431 {offsets = [0, 1, 2], sizes = [4, 1, 16], strides = [1, 1, 1]} : vector<4x3x18xf32> to vector<4x1x16xf32>
    %448 = vector.shape_cast %447 : vector<4x1x16xf32> to vector<4x16xf32>
    %449 = vector.shape_cast %448 : vector<4x16xf32> to vector<1x4x16xf32>
    %450 = vector.extract_strided_slice %431 {offsets = [0, 2, 0], sizes = [4, 1, 16], strides = [1, 1, 1]} : vector<4x3x18xf32> to vector<4x1x16xf32>
    %451 = vector.shape_cast %450 : vector<4x1x16xf32> to vector<4x16xf32>
    %452 = vector.shape_cast %451 : vector<4x16xf32> to vector<1x4x16xf32>
    %453 = vector.extract_strided_slice %431 {offsets = [0, 2, 1], sizes = [4, 1, 16], strides = [1, 1, 1]} : vector<4x3x18xf32> to vector<4x1x16xf32>
    %454 = vector.shape_cast %453 : vector<4x1x16xf32> to vector<4x16xf32>
    %455 = vector.shape_cast %454 : vector<4x16xf32> to vector<1x4x16xf32>
    %456 = vector.extract_strided_slice %431 {offsets = [0, 2, 2], sizes = [4, 1, 16], strides = [1, 1, 1]} : vector<4x3x18xf32> to vector<4x1x16xf32>
    %457 = vector.shape_cast %456 : vector<4x1x16xf32> to vector<4x16xf32>
    %458 = vector.shape_cast %457 : vector<4x16xf32> to vector<1x4x16xf32>
    %459 = tpu.concatenate %434, %437, %440, %443, %446, %449, %452, %455, %458 in 0 : vector<1x4x16xf32>, vector<1x4x16xf32>, vector<1x4x16xf32>, vector<1x4x16xf32>, vector<1x4x16xf32>, vector<1x4x16xf32>, vector<1x4x16xf32>, vector<1x4x16xf32>, vector<1x4x16xf32> -> vector<9x4x16xf32>
    %c0_82 = arith.constant 0 : index
    %c0_83 = arith.constant 0 : index
    %c224 = arith.constant 224 : index
    %460 = vector.load %arg6[%c0_82, %c0_83, %c224] : memref<9x4x256xf32, #tpu.memory_space<vmem>>, vector<9x4x16xf32>
    tpu.vector_store %arg6[%c0_82, %c0_83, %c224], %459 {strides = array<i32>} : memref<9x4x256xf32, #tpu.memory_space<vmem>>, vector<9x4x16xf32>,
    %c0_84 = arith.constant 0 : index
    %c15_85 = arith.constant 15 : index
    %c0_86 = arith.constant 0 : index
    %461 = vector.load %arg5[%c0_84, %c15_85, %c0_86] : memref<4x18x18xf32, #tpu.memory_space<vmem>>, vector<4x3x18xf32>
    %462 = vector.extract_strided_slice %461 {offsets = [0, 0, 0], sizes = [4, 1, 16], strides = [1, 1, 1]} : vector<4x3x18xf32> to vector<4x1x16xf32>
    %463 = vector.shape_cast %462 : vector<4x1x16xf32> to vector<4x16xf32>
    %464 = vector.shape_cast %463 : vector<4x16xf32> to vector<1x4x16xf32>
    %465 = vector.extract_strided_slice %461 {offsets = [0, 0, 1], sizes = [4, 1, 16], strides = [1, 1, 1]} : vector<4x3x18xf32> to vector<4x1x16xf32>
    %466 = vector.shape_cast %465 : vector<4x1x16xf32> to vector<4x16xf32>
    %467 = vector.shape_cast %466 : vector<4x16xf32> to vector<1x4x16xf32>
    %468 = vector.extract_strided_slice %461 {offsets = [0, 0, 2], sizes = [4, 1, 16], strides = [1, 1, 1]} : vector<4x3x18xf32> to vector<4x1x16xf32>
    %469 = vector.shape_cast %468 : vector<4x1x16xf32> to vector<4x16xf32>
    %470 = vector.shape_cast %469 : vector<4x16xf32> to vector<1x4x16xf32>
    %471 = vector.extract_strided_slice %461 {offsets = [0, 1, 0], sizes = [4, 1, 16], strides = [1, 1, 1]} : vector<4x3x18xf32> to vector<4x1x16xf32>
    %472 = vector.shape_cast %471 : vector<4x1x16xf32> to vector<4x16xf32>
    %473 = vector.shape_cast %472 : vector<4x16xf32> to vector<1x4x16xf32>
    %474 = vector.extract_strided_slice %461 {offsets = [0, 1, 1], sizes = [4, 1, 16], strides = [1, 1, 1]} : vector<4x3x18xf32> to vector<4x1x16xf32>
    %475 = vector.shape_cast %474 : vector<4x1x16xf32> to vector<4x16xf32>
    %476 = vector.shape_cast %475 : vector<4x16xf32> to vector<1x4x16xf32>
    %477 = vector.extract_strided_slice %461 {offsets = [0, 1, 2], sizes = [4, 1, 16], strides = [1, 1, 1]} : vector<4x3x18xf32> to vector<4x1x16xf32>
    %478 = vector.shape_cast %477 : vector<4x1x16xf32> to vector<4x16xf32>
    %479 = vector.shape_cast %478 : vector<4x16xf32> to vector<1x4x16xf32>
    %480 = vector.extract_strided_slice %461 {offsets = [0, 2, 0], sizes = [4, 1, 16], strides = [1, 1, 1]} : vector<4x3x18xf32> to vector<4x1x16xf32>
    %481 = vector.shape_cast %480 : vector<4x1x16xf32> to vector<4x16xf32>
    %482 = vector.shape_cast %481 : vector<4x16xf32> to vector<1x4x16xf32>
    %483 = vector.extract_strided_slice %461 {offsets = [0, 2, 1], sizes = [4, 1, 16], strides = [1, 1, 1]} : vector<4x3x18xf32> to vector<4x1x16xf32>
    %484 = vector.shape_cast %483 : vector<4x1x16xf32> to vector<4x16xf32>
    %485 = vector.shape_cast %484 : vector<4x16xf32> to vector<1x4x16xf32>
    %486 = vector.extract_strided_slice %461 {offsets = [0, 2, 2], sizes = [4, 1, 16], strides = [1, 1, 1]} : vector<4x3x18xf32> to vector<4x1x16xf32>
    %487 = vector.shape_cast %486 : vector<4x1x16xf32> to vector<4x16xf32>
    %488 = vector.shape_cast %487 : vector<4x16xf32> to vector<1x4x16xf32>
    %489 = tpu.concatenate %464, %467, %470, %473, %476, %479, %482, %485, %488 in 0 : vector<1x4x16xf32>, vector<1x4x16xf32>, vector<1x4x16xf32>, vector<1x4x16xf32>, vector<1x4x16xf32>, vector<1x4x16xf32>, vector<1x4x16xf32>, vector<1x4x16xf32>, vector<1x4x16xf32> -> vector<9x4x16xf32>
    %c0_87 = arith.constant 0 : index
    %c0_88 = arith.constant 0 : index
    %c240 = arith.constant 240 : index
    %490 = vector.load %arg6[%c0_87, %c0_88, %c240] : memref<9x4x256xf32, #tpu.memory_space<vmem>>, vector<9x4x16xf32>
    tpu.vector_store %arg6[%c0_87, %c0_88, %c240], %489 {strides = array<i32>} : memref<9x4x256xf32, #tpu.memory_space<vmem>>, vector<9x4x16xf32>,
    %c0_89 = arith.constant 0 : index
    %c0_90 = arith.constant 0 : index
    %c0_91 = arith.constant 0 : index
    %491 = vector.load %arg6[%c0_89, %c0_90, %c0_91] : memref<9x4x256xf32, #tpu.memory_space<vmem>>, vector<9x4x256xf32>
    %492 = vector.shape_cast %491 : vector<9x4x256xf32> to vector<36x256xf32>
    %493 = arith.truncf %492 : vector<36x256xf32> to vector<36x256xbf16>
    %c0_92 = arith.constant 0 : index
    %c0_93 = arith.constant 0 : index
    %494 = vector.load %arg2[%c0_92, %c0_93] : memref<8x36xbf16, #tpu.memory_space<vmem>>, vector<8x36xbf16>
    %cst = arith.constant dense<0.000000e+00> : vector<8x256xf32>
    %495 = tpu.matmul %494, %493, %cst {dimension_numbers = #tpu.dot_dimension_numbers<[1], [0], [0], [1], [0, 0, 1, 1], [], []>} : vector<8x36xbf16>, vector<36x256xbf16>, vector<8x256xf32> -> vector<8x256xf32>
    %c0_94 = arith.constant 0 : index
    %c0_95 = arith.constant 0 : index
    %496 = vector.load %arg3[%c0_94, %c0_95] : memref<8x1xf32, #tpu.memory_space<vmem>>, vector<8x1xf32>
    %497 = vector.broadcast %496 : vector<8x1xf32> to vector<8x256xf32>
    %498 = arith.addf %495, %497 : vector<8x256xf32>
    %cst_96 = arith.constant 0.000000e+00 : f32
    %499 = vector.broadcast %cst_96 : f32 to vector<8x256xf32>
    %500 = arith.maximumf %498, %499 : vector<8x256xf32>
    %c0_97 = arith.constant 0 : index
    %c0_98 = arith.constant 0 : index
    %c0_99 = arith.constant 0 : index
    %501 = vector.load %arg4[%c0_97, %c0_98, %c0_99] : memref<1x8x256xf32, #tpu.memory_space<vmem>>, vector<1x8x256xf32>
    %502 = vector.shape_cast %501 : vector<1x8x256xf32> to vector<8x256xf32>
    %503 = vector.shape_cast %500 : vector<8x256xf32> to vector<1x8x256xf32>
    tpu.vector_store %arg4[%c0_97, %c0_98, %c0_99], %503 {strides = array<i32>} : memref<1x8x256xf32, #tpu.memory_space<vmem>>, vector<1x8x256xf32>,
    return
  }
  func.func @transform_0(%arg0: i32) -> (i32, i32, i32, i32) {
    %c0_i32 = arith.constant 0 : i32
    %c0_i32_0 = arith.constant 0 : i32
    %c0_i32_1 = arith.constant 0 : i32
    %c0_i32_2 = arith.constant 0 : i32
    return %arg0, %c0_i32, %c0_i32_0, %c0_i32_1 : i32, i32, i32, i32
  }
  func.func @transform_1(%arg0: i32) -> (i32, i32) {
    %c0_i32 = arith.constant 0 : i32
    %c0_i32_0 = arith.constant 0 : i32
    %c0_i32_1 = arith.constant 0 : i32
    return %c0_i32, %c0_i32_0 : i32, i32
  }
  func.func @transform_2(%arg0: i32) -> (i32, i32) {
    %c0_i32 = arith.constant 0 : i32
    %c0_i32_0 = arith.constant 0 : i32
    %c0_i32_1 = arith.constant 0 : i32
    return %c0_i32, %c0_i32_0 : i32, i32
  }
  func.func @transform_3(%arg0: i32) -> (i32, i32, i32) {
    %c0_i32 = arith.constant 0 : i32
    %c0_i32_0 = arith.constant 0 : i32
    %c0_i32_1 = arith.constant 0 : i32
    return %arg0, %c0_i32, %c0_i32_0 : i32, i32, i32
  }
}

</mosaic_0001>

<bundles_post_ra>
// kernel: conv_layer_forward.1
= control target key start
LH: loop header
LB: loop body
LE: loop exit
PB: predicated region body
PF: predicated region fallthrough
CT: control target
= control target key end

     0   :  { %s3506_s12 = smov 0   ;;  %s7036_s0 = inlined_call_operand.vmem [shape: f32[2,4,16,16], index: 0, kind: input, shape index: {}]   ;;  %s7037_s1 = inlined_call_operand.vmem [shape: bf16[8,36], index: 1, kind: input, shape index: {}]   ;;  %s7038_s2 = inlined_call_operand.vmem [shape: f32[8,1], index: 2, kind: input, shape index: {}]   ;;  %s7039_s3 = inlined_call_operand.vmem [shape: f32[2,8,256], index: 3, kind: output, shape index: {}]  }
   0x1 LB: > { %s3413_s13 = sadd.s32 4294967295, %s3472_s12   ;;  %p3417_p0 = scmp.ge.s32.totalorder %s3472_s12, 1  ;;  %s3472_s12 = sphi %s3506_s12, %s13_s12  }
   0x2   : > { %p137_p1 = scmp.lt.s32.totalorder %s3472_s12, 3 }
   0x4   : > { %p138_p2 = pnand %p3417_p0, %p137_p1 }
   0x6   : > { %141 = sbr.rel (%p138_p2) target bundleno = 2044 (0x7fc), region = 32 }
   0xd   : > { %p161_p3 = scmp.lt.s32.totalorder %s3413_s13, 1  ;;  %s3474_s18 = smov 1   ;;  %vm212_vm0 = vcmask 138248   ;;  %vm221_vm1 = vcmask 132105   ;;  %vm226_vm2 = vcmask 137230   ;;  %vm291_vm3 = vcmask 7168  }
   0xe   : > { %s3475_s19 = smov 126   ;;  %vm294_vm4 = vcmask 1024   ;;  %s3476_s20 = smov 2   ;;  %vm365_vm5 = vcmask 146568   ;;  %vm368_vm6 = vcmask 140424   ;;  %vm444_vm7 = vcmask 1041409  }
   0xf   : > { %s7553_s13 = smov (!%p161_p3, %s3413_s13), 1  ;;  %s3477_s21 = smov 127   ;;  %vm446_vm8 = vcmask 1045509   ;;  %vm449_vm9 = vcmask 1042434   ;;  %vm451_vm10 = vcmask 1046534   ;;  %vm454_vm11 = vcmask 1043459  }
  0x10   : > { %s3426_s14 = sshll.u32 %s7553_s13, 6  ;;  %vm456_vm12 = vcmask 1047559   ;;  %vm539_vm13 = vcmask 125952   ;;  %s3478_s22 = smov 16   ;;  %vm721_vm14 = vcmask 257152   ;;  %vm903_vm15 = vcmask 388352  }
  0x11   : > { %s165_s17 = scalar_lea.vmem %s7036_s0, %s3426_s14  ;;  %s3479_s23 = smov 48  }
  0x12   : > { %v172_v0 = vld [vmem:[%s165_s17] sm:$0xff]  ;;  %v174_v1 = vld [vmem:[%s165_s17 + $0x10] sm:$0xff]  ;;  %v173_v2 = vld [vmem:[%s165_s17 + $0x8] sm:$0xff]  ;;  %s3480_s24 = smov 80   ;;  %s3481_s25 = smov 32  }
  0x13   : > { %188 = vrot.lane.b32.xlu0 %v172_v0, %s3474_s18  ;;  %192 = vrot.lane.b32.xlu1 %v174_v1, %s3474_s18  ;;  %v175_v3 = vld [vmem:[%s165_s17 + $0x18] sm:$0xff]  ;;  %v176_v4 = vld [vmem:[%s165_s17 + $0x20] sm:$0xff]  ;;  %s3482_s26 = smov 64   ;;  %s3483_s27 = smov 96  }
  0x14   : > { %v177_v5 = vld [vmem:[%s165_s17 + $0x28] sm:$0xff]  ;;  %v179_v6 = vld [vmem:[%s165_s17 + $0x38] sm:$0xff]  ;;  %v178_v7 = vld [vmem:[%s165_s17 + $0x30] sm:$0xff]  ;;  %s3484_s28 = smov 112   ;;  %s3427_s6 = sshll.u32 %s7553_s13, 4 }
  0x15   : > { %s170_s9 = scalar_lea.vmem %s7039_s3, %s3427_s6 }
  0x17   : > { %190 = vrot.lane.b32.xlu0 %v173_v2, %s3474_s18  ;;  %194 = vrot.lane.b32.xlu1 %v175_v3, %s3474_s18 }
  0x1b   : > { %196 = vrot.lane.b32.xlu0 %v176_v4, %s3474_s18  ;;  %198 = vrot.lane.b32.xlu1 %v177_v5, %s3474_s18 }
  0x1f   : > { %202 = vrot.lane.b32.xlu1 %v179_v6, %s3474_s18  ;;  %200 = vrot.lane.b32.xlu0 %v178_v7, %s3474_s18 }
  0x85   : > { %v189_v8 = vpop.permute.xlu0 %188  ;;  %v193_v9 = vpop.permute.xlu1 %192 }
  0x86   : > { %213 = vst.msk [vmem:[#allocation2 + $0x1] sm:$0xff] %vm212_vm0, %v189_v8  ;;  %215 = vst.msk [vmem:[#allocation2 + $0x19] sm:$0xff] %vm212_vm0, %v193_v9 }
  0x87   : > { %222 = vst.msk [vmem:[#allocation2 - $0x1] sm:$0x2] %vm221_vm1, %v189_v8  ;;  %223 = vst.msk [vmem:[#allocation2 + $0x17] sm:$0x2] %vm221_vm1, %v193_v9 }
  0x89   : > { %v191_v10 = vpop.permute.xlu0 %190  ;;  %v195_v11 = vpop.permute.xlu1 %194 }
  0x8a   : > { %214 = vst.msk [vmem:[#allocation2 + $0x9] sm:$0xff] %vm212_vm0, %v191_v10  ;;  %216 = vst.msk [vmem:[#allocation2 + $0x21] sm:$0xff] %vm212_vm0, %v195_v11 }
  0x8b   : > { %227 = vst.msk [vmem:[#allocation2 + $0xb] sm:$0x40] %vm226_vm2, %v191_v10  ;;  %228 = vst.msk [vmem:[#allocation2 + $0x23] sm:$0x40] %vm226_vm2, %v195_v11 }
  0x8d   : > { %v197_v13 = vpop.permute.xlu0 %196  ;;  %v199_v14 = vpop.permute.xlu1 %198 }
  0x8e   : > { %v231_v12 = vld [vmem:[#allocation2] sm:$0xff]  ;;  %217 = vst.msk [vmem:[#allocation2 + $0x31] sm:$0xff] %vm212_vm0, %v197_v13  ;;  %218 = vst.msk [vmem:[#allocation2 + $0x39] sm:$0xff] %vm212_vm0, %v199_v14  ;;  %v234_v20 = vld [vmem:[#allocation2 + $0x18] sm:$0xff] }
  0x8f   : > { %255 = vrot.lane.b32.xlu0 %v231_v12, %s3475_s19  ;;  %224 = vst.msk [vmem:[#allocation2 + $0x2f] sm:$0x2] %vm221_vm1, %v197_v13 }
  0x90   : > { %229 = vst.msk [vmem:[#allocation2 + $0x3b] sm:$0x40] %vm226_vm2, %v199_v14 }
  0x91   : > { %v232_v16 = vld [vmem:[#allocation2 + $0x8] sm:$0xff]  ;;  %v203_v17 = vpop.permute.xlu1 %202  ;;  %v201_v18 = vpop.permute.xlu0 %200  ;;  %v235_v19 = vld [vmem:[#allocation2 + $0x20] sm:$0xff] }
  0x92   : > { %v233_v15 = vld [vmem:[#allocation2 + $0x10] sm:$0x3]  ;;  %257 = vrot.lane.b32.xlu1 %v232_v16, %s3475_s19  ;;  %220 = vst.msk [vmem:[#allocation2 + $0x51] sm:$0xff] %vm212_vm0, %v203_v17  ;;  %219 = vst.msk [vmem:[#allocation2 + $0x49] sm:$0xff] %vm212_vm0, %v201_v18  ;;  %v236_v21 = vld [vmem:[#allocation2 + $0x28] sm:$0x3] }
  0x93   : > { %259 = vrot.lane.b32.xlu0 %v233_v15, %s3475_s19  ;;  %230 = vst.msk [vmem:[#allocation2 + $0x53] sm:$0x40] %vm226_vm2, %v203_v17  ;;  %vm1085_vm0 = vcmask 519552   ;;  %vm1449_vm2 = vcmask 781952  }
  0x94   : > { %225 = vst.msk [vmem:[#allocation2 + $0x47] sm:$0x2] %vm221_vm1, %v201_v18  ;;  %vm1267_vm1 = vcmask 650752  }
  0x95   : > { %v238_v23 = vld [vmem:[#allocation2 + $0x38] sm:$0xff] }
  0x96   : > { %261 = vrot.lane.b32.xlu1 %v234_v20, %s3475_s19  ;;  %v237_v22 = vld [vmem:[#allocation2 + $0x30] sm:$0xff] }
  0x97   : > { %263 = vrot.lane.b32.xlu0 %v235_v19, %s3475_s19  ;;  %v239_v24 = vld [vmem:[#allocation2 + $0x40] sm:$0x3] }
  0x99   : > { %v241_v25 = vld [vmem:[#allocation2 + $0x50] sm:$0xff] }
  0x9a   : > { %265 = vrot.lane.b32.xlu1 %v236_v21, %s3475_s19  ;;  %v242_v27 = vld [vmem:[#allocation2 + $0x58] sm:$0x3] }
  0x9b   : > { %267 = vrot.lane.b32.xlu0 %v237_v22, %s3475_s19  ;;  %v240_v26 = vld [vmem:[#allocation2 + $0x48] sm:$0xff] }
  0x9e   : > { %269 = vrot.lane.b32.xlu1 %v238_v23, %s3475_s19 }
  0x9f   : > { %271 = vrot.lane.b32.xlu0 %v239_v24, %s3475_s19 }
  0xa2   : > { %273 = vrot.lane.b32.xlu1 %v240_v26, %s3475_s19 }
  0xa3   : > { %275 = vrot.lane.b32.xlu0 %v241_v25, %s3475_s19 }
  0xa6   : > { %277 = vrot.lane.b32.xlu1 %v242_v27, %s3475_s19 }
 0x101   : > { %v256_v28 = vpop.permute.xlu0 %255 }
 0x102   : > { %292 = vst.msk [vmem:[#allocation2] sm:$0xff] %vm291_vm3, %v256_v28 }
 0x104   : > { %v258_v29 = vpop.permute.xlu1 %257 }
 0x105   : > { %v260_v30 = vpop.permute.xlu0 %259  ;;  %293 = vst.msk [vmem:[#allocation2 + $0x8] sm:$0xff] %vm291_vm3, %v258_v29 }
 0x106   : > { %295 = vst.msk [vmem:[#allocation2 + $0x10] sm:$0x3] %vm294_vm4, %v260_v30 }
 0x108   : > { %v262_v31 = vpop.permute.xlu1 %261 }
 0x109   : > { %v264_v32 = vpop.permute.xlu0 %263  ;;  %v305_v33 = vld [vmem:[#allocation2] sm:$0xff]  ;;  %296 = vst.msk [vmem:[#allocation2 + $0x18] sm:$0xff] %vm291_vm3, %v262_v31 }
 0x10a   : > { %297 = vst.msk [vmem:[#allocation2 + $0x20] sm:$0xff] %vm291_vm3, %v264_v32  ;;  %329 = vrot.lane.b32.xlu0 %v305_v33, %s3476_s20 }
 0x10c   : > { %v266_v34 = vpop.permute.xlu1 %265  ;;  %v306_v36 = vld [vmem:[#allocation2 + $0x8] sm:$0xff] }
 0x10d   : > { %v268_v35 = vpop.permute.xlu0 %267  ;;  %v307_v37 = vld [vmem:[#allocation2 + $0x10] sm:$0x3]  ;;  %298 = vst.msk [vmem:[#allocation2 + $0x28] sm:$0x3] %vm294_vm4, %v266_v34  ;;  %331 = vrot.lane.b32.xlu1 %v306_v36, %s3476_s20 }
 0x10e   : > { %299 = vst.msk [vmem:[#allocation2 + $0x30] sm:$0xff] %vm291_vm3, %v268_v35  ;;  %333 = vrot.lane.b32.xlu0 %v307_v37, %s3476_s20 }
 0x110   : > { %v270_v38 = vpop.permute.xlu1 %269  ;;  %v308_v40 = vld [vmem:[#allocation2 + $0x18] sm:$0xff] }
 0x111   : > { %v272_v39 = vpop.permute.xlu0 %271  ;;  %v309_v41 = vld [vmem:[#allocation2 + $0x20] sm:$0xff]  ;;  %300 = vst.msk [vmem:[#allocation2 + $0x38] sm:$0xff] %vm291_vm3, %v270_v38  ;;  %335 = vrot.lane.b32.xlu1 %v308_v40, %s3476_s20 }
 0x112   : > { %301 = vst.msk [vmem:[#allocation2 + $0x40] sm:$0x3] %vm294_vm4, %v272_v39  ;;  %337 = vrot.lane.b32.xlu0 %v309_v41, %s3476_s20 }
 0x114   : > { %v274_v42 = vpop.permute.xlu1 %273  ;;  %v310_v44 = vld [vmem:[#allocation2 + $0x28] sm:$0x3] }
 0x115   : > { %v276_v43 = vpop.permute.xlu0 %275  ;;  %v311_v45 = vld [vmem:[#allocation2 + $0x30] sm:$0xff]  ;;  %302 = vst.msk [vmem:[#allocation2 + $0x48] sm:$0xff] %vm291_vm3, %v274_v42  ;;  %339 = vrot.lane.b32.xlu1 %v310_v44, %s3476_s20 }
 0x116   : > { %303 = vst.msk [vmem:[#allocation2 + $0x50] sm:$0xff] %vm291_vm3, %v276_v43  ;;  %341 = vrot.lane.b32.xlu0 %v311_v45, %s3476_s20  ;;  %vm1631_vm3 = vcmask 913152  }
 0x118   : > { %v278_v46 = vpop.permute.xlu1 %277  ;;  %v312_v47 = vld [vmem:[#allocation2 + $0x38] sm:$0xff] }
 0x119   : > { %v313_v48 = vld [vmem:[#allocation2 + $0x40] sm:$0x3]  ;;  %304 = vst.msk [vmem:[#allocation2 + $0x58] sm:$0x3] %vm294_vm4, %v278_v46  ;;  %343 = vrot.lane.b32.xlu1 %v312_v47, %s3476_s20  ;;  %vm1813_vm4 = vcmask 1044352  }
 0x11a   : > { %345 = vrot.lane.b32.xlu0 %v313_v48, %s3476_s20 }
 0x11c   : > { %v314_v49 = vld [vmem:[#allocation2 + $0x48] sm:$0xff] }
 0x11d   : > { %v315_v50 = vld [vmem:[#allocation2 + $0x50] sm:$0xff]  ;;  %347 = vrot.lane.b32.xlu1 %v314_v49, %s3476_s20 }
 0x11e   : > { %349 = vrot.lane.b32.xlu0 %v315_v50, %s3476_s20 }
 0x120   : > { %v316_v51 = vld [vmem:[#allocation2 + $0x58] sm:$0x3] }
 0x121   : > { %351 = vrot.lane.b32.xlu1 %v316_v51, %s3476_s20 }
 0x17c   : > { %v330_v52 = vpop.permute.xlu0 %329 }
 0x17d   : > { %366 = vst.msk [vmem:[#allocation2] sm:$0xff] %vm365_vm5, %v330_v52 }
 0x17f   : > { %v332_v53 = vpop.permute.xlu1 %331 }
 0x180   : > { %v334_v54 = vpop.permute.xlu0 %333  ;;  %367 = vst.msk [vmem:[#allocation2 + $0x8] sm:$0xff] %vm365_vm5, %v332_v53 }
 0x181   : > { %369 = vst.msk [vmem:[#allocation2 + $0x10] sm:$0x3] %vm368_vm6, %v334_v54 }
 0x183   : > { %v336_v55 = vpop.permute.xlu1 %335 }
 0x184   : > { %v338_v56 = vpop.permute.xlu0 %337  ;;  %v3575_v57 = vld [vmem:[#allocation2] sm:$0x7]  ;;  %370 = vst.msk [vmem:[#allocation2 + $0x18] sm:$0xff] %vm365_vm5, %v336_v55  ;;  %v3604_v8 = vld [vmem:[#allocation2 + $0x3] sm:$0x7] }
 0x185   : > { %371 = vst.msk [vmem:[#allocation2 + $0x20] sm:$0xff] %vm365_vm5, %v338_v56  ;;  %387 = vrot.lane.b32.xlu0 %v3575_v57, %s3477_s21  ;;  %v3597_v4 = vld [vmem:[#allocation2 + $0x2] sm:$0x7]  ;;  %v3717_v51 = vrot.slane %v3575_v57, 2  ;;  %v3725_v54 = vrot.slane %v3575_v57, 1 }
 0x186   : > { %v3600_v6 = vld [vmem:[#allocation2 + $0x1] sm:$0x7] }
 0x187   : > { %v340_v58 = vpop.permute.xlu1 %339 }
 0x188   : > { %v342_v59 = vpop.permute.xlu0 %341  ;;  %372 = vst.msk [vmem:[#allocation2 + $0x28] sm:$0x3] %vm368_vm6, %v340_v58 }
 0x189   : > { %373 = vst.msk [vmem:[#allocation2 + $0x30] sm:$0xff] %vm365_vm5, %v342_v59 }
 0x18b   : > { %v344_v60 = vpop.permute.xlu1 %343  ;;  %v3583_v62 = vld [vmem:[#allocation2 + $0x18] sm:$0x7]  ;;  %v3595_v3 = vld [vmem:[#allocation2 + $0x1b] sm:$0x7] }
 0x18c   : > { %v346_v61 = vpop.permute.xlu0 %345  ;;  %v3585_v63 = vld [vmem:[#allocation2 + $0x19] sm:$0x7]  ;;  %374 = vst.msk [vmem:[#allocation2 + $0x38] sm:$0xff] %vm365_vm5, %v344_v60  ;;  %389 = vrot.lane.b32.xlu1 %v3583_v62, %s3477_s21  ;;  %v977_v5 = vrot.slane %v3595_v3, 7  ;;  %v3693_v43 = vrot.slane %v3583_v62, 2  ;;  %v3700_v44 = vrot.slane %v3583_v62, 1 }
 0x18d   : > { %v3587_v0 = vld [vmem:[#allocation2 + $0x1a] sm:$0x7]  ;;  %375 = vst.msk [vmem:[#allocation2 + $0x40] sm:$0x3] %vm368_vm6, %v346_v61  ;;  %v613_v1 = vrot.slane %v3585_v63, 7  ;;  %v443_v45 = vrot.slane %v3583_v62, 7 }
 0x18e   : > { %v795_v2 = vrot.slane %v3587_v0, 7  ;;  %v978_v13 = vsel %vm444_vm7, %v977_v5, %v3604_v8  ;;  %v503_v47 = vrot.slane %v3693_v43, 7  ;;  %v476_v49 = vrot.slane %v3700_v44, 7 }
 0x18f   : > { %v348_v9 = vpop.permute.xlu1 %347  ;;  %v614_v12 = vsel %vm444_vm7, %v613_v1, %v3600_v6  ;;  %v979_v25 = vsel %vm446_vm8, %v977_v5, %v978_v13  ;;  %v445_v53 = vsel %vm444_vm7, %v443_v45, %v3575_v57 }
 0x190   : > { %v796_v7 = vsel %vm444_vm7, %v795_v2, %v3597_v4  ;;  %v350_v10 = vpop.permute.xlu0 %349  ;;  %v3606_v11 = vld [vmem:[#allocation2 + $0x30] sm:$0x7]  ;;  %376 = vst.msk [vmem:[#allocation2 + $0x48] sm:$0xff] %vm365_vm5, %v348_v9  ;;  %v3621_v17 = vld [vmem:[#allocation2 + $0x33] sm:$0x7]  ;;  %v615_v18 = vsel %vm446_vm8, %v613_v1, %v614_v12  ;;  %v504_v58 = vsel %vm444_vm7, %v503_v47, %v3717_v51  ;;  %v447_v60 = vsel %vm446_vm8, %v443_v45, %v445_v53 }
 0x191   : > { %v797_v14 = vsel %vm446_vm8, %v795_v2, %v796_v7  ;;  %377 = vst.msk [vmem:[#allocation2 + $0x50] sm:$0xff] %vm365_vm5, %v350_v10  ;;  %391 = vrot.lane.b32.xlu0 %v3606_v11, %s3477_s21  ;;  %v3617_v15 = vld [vmem:[#allocation2 + $0x31] sm:$0x7]  ;;  %v980_v22 = vrot.slane %v3621_v17, 6  ;;  %v3704_v46 = vrot.slane %v3606_v11, 2  ;;  %v3712_v48 = vrot.slane %v3606_v11, 1 }
 0x192   : > { %v3619_v16 = vld [vmem:[#allocation2 + $0x32] sm:$0x7]  ;;  %v616_v20 = vrot.slane %v3617_v15, 6  ;;  %v448_v50 = vrot.slane %v3606_v11, 6  ;;  %v505_v2 = vsel %vm446_vm8, %v503_v47, %v504_v58  ;;  %vm3306_vm5 = vcmask 1041408  }
 0x193   : > { %v352_v19 = vpop.permute.xlu1 %351  ;;  %v798_v21 = vrot.slane %v3619_v16, 6  ;;  %v981_v28 = vsel %vm449_vm9, %v980_v22, %v979_v25  ;;  %v506_v56 = vrot.slane %v3704_v46, 6  ;;  %v479_v59 = vrot.slane %v3712_v48, 6  ;;  %v1824_v25 = vld [vmem:[#allocation2 + $0x20] sm:$0x7] }
 0x194   : > { %378 = vst.msk [vmem:[#allocation2 + $0x58] sm:$0x3] %vm368_vm6, %v352_v19  ;;  %v617_v24 = vsel %vm449_vm9, %v616_v20, %v615_v18  ;;  %v982_v33 = vsel %vm451_vm10, %v980_v22, %v981_v28  ;;  %v3781_v28 = vld [vmem:[#allocation2 + $0x4] sm:$0x7]  ;;  %v3803_v53 = vrot.slane %v1824_v25, 2  ;;  %vm3302_vm6 = vcmask 293888  }
 0x195   : > { %395 = vrot.lane.b32.xlu0 %v3575_v57, %s3475_s19  ;;  %v799_v26 = vsel %vm449_vm9, %v798_v21, %v797_v14  ;;  %v618_v27 = vsel %vm451_vm10, %v616_v20, %v617_v24  ;;  %v477_v57 = vsel %vm444_vm7, %v476_v49, %v3725_v54  ;;  %v507_v9 = vsel %vm449_vm9, %v506_v56, %v505_v2 }
 0x196   : > { %v800_v35 = vsel %vm451_vm10, %v798_v21, %v799_v26  ;;  %v478_v5 = vsel %vm446_vm8, %v476_v49, %v477_v57  ;;  %v1825_v26 = vld [vmem:[#allocation2 + $0x38] sm:$0x7]  ;;  %v3799_v49 = vld [vmem:[#allocation2 + $0x5] sm:$0x7]  ;;  %7099 = vst [vmem:[#allocation6_spill] sm:$0xff] %v3803_v53  ;;  %v1941_v2 = vrot.slane %v3803_v53, 7 }
 0x197   : > { %v3630_v23 = vld [vmem:[#allocation2 + $0x48] sm:$0x7]  ;;  %v3651_v30 = vld [vmem:[#allocation2 + $0x4b] sm:$0x7]  ;;  %v480_v12 = vsel %vm449_vm9, %v479_v59, %v478_v5  ;;  %v4048_v53 = vrot.slane %v3619_v16, 1 }
 0x198   : > { %393 = vrot.lane.b32.xlu1 %v3630_v23, %s3477_s21  ;;  %v3649_v29 = vld [vmem:[#allocation2 + $0x49] sm:$0x7]  ;;  %v983_v34 = vrot.slane %v3651_v30, 5  ;;  %v3720_v52 = vrot.slane %v3630_v23, 2  ;;  %v3728_v55 = vrot.slane %v3630_v23, 1  ;;  %v453_v7 = vrot.slane %v3630_v23, 5 }
 0x199   : > { %399 = vrot.lane.b32.xlu0 %v3606_v11, %s3475_s19  ;;  %v3657_v31 = vld [vmem:[#allocation2 + $0x4a] sm:$0x7]  ;;  %v619_v32 = vrot.slane %v3649_v29, 5  ;;  %v508_v11 = vsel %vm451_vm10, %v506_v56, %v507_v9  ;;  %v481_v18 = vsel %vm451_vm10, %v479_v59, %v480_v12 }
 0x19a   : > { %v984_v37 = vsel %vm454_vm11, %v983_v34, %v982_v33  ;;  %v801_v38 = vrot.slane %v3657_v31, 5  ;;  %v509_v61 = vrot.slane %v3720_v52, 5  ;;  %v482_v1 = vrot.slane %v3728_v55, 5  ;;  %v3775_v24 = vld [vmem:[#allocation2 + $0x4c] sm:$0x7] }
 0x19b   : > { %v620_v36 = vsel %vm454_vm11, %v619_v32, %v618_v27  ;;  %v3674_v40 = vsel %vm456_vm12, %v983_v34, %v984_v37  ;;  %v1887_v27 = vrot.slane %v1824_v25, 7  ;;  %v1890_v33 = vrot.slane %v1825_v26, 6  ;;  %v1826_v34 = vld [vmem:[#allocation2 + $0x50] sm:$0x7] }
 0x19c   : > { %397 = vrot.lane.b32.xlu1 %v3583_v62, %s3475_s19  ;;  %v3671_v39 = vsel %vm456_vm12, %v619_v32, %v620_v36  ;;  %v802_v41 = vsel %vm454_vm11, %v801_v38, %v800_v35  ;;  %v450_v62 = vsel %vm449_vm9, %v448_v50, %v447_v60  ;;  %v510_v14 = vsel %vm454_vm11, %v509_v61, %v508_v11  ;;  %v1823_v32 = vld [vmem:[#allocation2 + $0x8] sm:$0x7]  ;;  %v3788_v36 = vld [vmem:[#allocation2 + $0x34] sm:$0x7] }
 0x19d   : > { %557 = vrot.lane.b32.xlu0 %v3600_v6, %s3477_s21  ;;  %v3678_v42 = vsel %vm456_vm12, %v801_v38, %v802_v41  ;;  %v452_v10 = vsel %vm451_vm10, %v448_v50, %v450_v62  ;;  %v511_v20 = vsel %vm456_vm12, %v509_v61, %v510_v14  ;;  %v483_v21 = vsel %vm454_vm11, %v482_v1, %v481_v18  ;;  %v3817_v61 = vld [vmem:[#allocation2 + $0x35] sm:$0x7] }
 0x19e   : > { %v455_v13 = vsel %vm454_vm11, %v453_v7, %v452_v10  ;;  %546 = vst.msk [vmem:[#allocation3 + $0x30] sm:$0xf] %vm539_vm13, %v511_v20  ;;  %v484_v22 = vsel %vm456_vm12, %v482_v1, %v483_v21  ;;  %v1888_v35 = vsel %vm444_vm7, %v1887_v27, %v1823_v32  ;;  %v1893_v38 = vrot.slane %v1826_v34, 5 }
 0x19f   : > { %v457_v19 = vsel %vm456_vm12, %v453_v7, %v455_v13  ;;  %543 = vst.msk [vmem:[#allocation3 + $0x18] sm:$0xf] %vm539_vm13, %v484_v22  ;;  %v1889_v37 = vsel %vm446_vm8, %v1887_v27, %v1888_v35  ;;  %v3795_v41 = vrot.slane %v1824_v25, 1  ;;  %v3801_v50 = vrot.slane %v1825_v26, 1  ;;  %v3836_v13 = vld [vmem:[#allocation2 + $0x1d] sm:$0x7] }
 0x1a0   : > { %401 = vrot.lane.b32.xlu1 %v3630_v23, %s3475_s19  ;;  %540 = vst.msk [vmem:[#allocation3] sm:$0xf] %vm539_vm13, %v457_v19  ;;  %v3769_v23 = vld [vmem:[#allocation2 + $0x1c] sm:$0x7]  ;;  %v1891_v45 = vsel %vm449_vm9, %v1890_v33, %v1889_v37  ;;  %v3812_v57 = vrot.slane %v1826_v34, 1  ;;  %v3814_v60 = vrot.slane %v1825_v26, 2 }
 0x1a1   : > { %561 = vrot.lane.b32.xlu0 %v3617_v15, %s3477_s21  ;;  %7097 = vst [vmem:[#allocation4_spill] sm:$0xff] %v3795_v41  ;;  %v1892_v47 = vsel %vm451_vm10, %v1890_v33, %v1891_v45  ;;  %7098 = vst [vmem:[#allocation5_spill] sm:$0xff] %v3801_v50  ;;  %v1914_v59 = vrot.slane %v3795_v41, 7  ;;  %v3819_v62 = vrot.slane %v1823_v32, 1  ;;  %v1917_v1 = vrot.slane %v3801_v50, 6 }
 0x1a2   : > { %v1894_v56 = vsel %vm454_vm11, %v1893_v38, %v1892_v47  ;;  %7100 = vst [vmem:[#allocation7_spill] sm:$0xff] %v3812_v57  ;;  %7101 = vst [vmem:[#allocation8_spill] sm:$0xff] %v3814_v60  ;;  %v3827_v5 = vrot.slane %v1826_v34, 2  ;;  %v3829_v7 = vrot.slane %v1823_v32, 2  ;;  %v1944_v9 = vrot.slane %v3814_v60, 6 }
 0x1a3   : > { %v1895_v58 = vsel %vm456_vm12, %v1893_v38, %v1894_v56  ;;  %7102 = vst [vmem:[#allocation9_spill] sm:$0xff] %v3819_v62  ;;  %v1915_v10 = vsel %vm444_vm7, %v1914_v59, %v3819_v62  ;;  %v1920_v11 = vrot.slane %v3812_v57, 5  ;;  %v3852_v32 = vld [vmem:[#allocation2 + $0x4d] sm:$0x7]  ;;  %v3862_v35 = vld [vmem:[#allocation2 + $0x1e] sm:$0x7] }
 0x1a4   : > { %559 = vrot.lane.b32.xlu1 %v3585_v63, %s3477_s21  ;;  %1977 = vst.msk [vmem:[#allocation3 + $0x4] sm:$0xf] %vm539_vm13, %v1895_v58  ;;  %7103 = vst [vmem:[#allocation10_spill] sm:$0xff] %v3827_v5  ;;  %v1916_v12 = vsel %vm446_vm8, %v1914_v59, %v1915_v10  ;;  %v1942_v18 = vsel %vm444_vm7, %v1941_v2, %v3829_v7  ;;  %v1947_v21 = vrot.slane %v3827_v5, 5  ;;  %v3872_v37 = vld [vmem:[#allocation2 + $0x6] sm:$0x7] }
 0x1a5   : > { %565 = vrot.lane.b32.xlu0 %v3600_v6, %s3475_s19  ;;  %7104 = vst [vmem:[#allocation11_spill] sm:$0xff] %v3829_v7  ;;  %v1918_v14 = vsel %vm449_vm9, %v1917_v1, %v1916_v12  ;;  %v1943_v20 = vsel %vm446_vm8, %v1941_v2, %v1942_v18  ;;  %v3878_v38 = vld [vmem:[#allocation2 + $0x36] sm:$0x7]  ;;  %v4051_v60 = vrot.slane %v3587_v0, 2  ;;  %v4062_v41 = vrot.slane %v3657_v31, 2 }
 0x1a6   : > { %v1919_v19 = vsel %vm451_vm10, %v1917_v1, %v1918_v14  ;;  %v1945_v25 = vsel %vm449_vm9, %v1944_v9, %v1943_v20 }
 0x1a7   : > { %v1921_v22 = vsel %vm454_vm11, %v1920_v11, %v1919_v19  ;;  %v1946_v27 = vsel %vm451_vm10, %v1944_v9, %v1945_v25 }
 0x1a8   : > { %563 = vrot.lane.b32.xlu1 %v3649_v29, %s3477_s21  ;;  %v1922_v26 = vsel %vm456_vm12, %v1920_v11, %v1921_v22  ;;  %v1948_v33 = vsel %vm454_vm11, %v1947_v21, %v1946_v27 }
 0x1a9   : > { %569 = vrot.lane.b32.xlu0 %v3617_v15, %s3475_s19  ;;  %1980 = vst.msk [vmem:[#allocation3 + $0x1c] sm:$0xf] %vm539_vm13, %v1922_v26  ;;  %v1949_v34 = vsel %vm456_vm12, %v1947_v21, %v1948_v33  ;;  %v3925_v26 = vrot.slane %v3617_v15, 1 }
 0x1aa   : > { %1983 = vst.msk [vmem:[#allocation3 + $0x34] sm:$0xf] %vm539_vm13, %v1949_v34 }
 0x1ac   : > { %567 = vrot.lane.b32.xlu1 %v3585_v63, %s3475_s19 }
 0x1ad   : > { %741 = vrot.lane.b32.xlu0 %v3587_v0, %s3477_s21 }
 0x1b0   : > { %571 = vrot.lane.b32.xlu1 %v3649_v29, %s3475_s19 }
 0x1b1   : > { %745 = vrot.lane.b32.xlu0 %v3657_v31, %s3477_s21 }
 0x1b4   : > { %739 = vrot.lane.b32.xlu1 %v3597_v4, %s3477_s21 }
 0x1b5   : > { %749 = vrot.lane.b32.xlu0 %v3587_v0, %s3475_s19 }
 0x1b8   : > { %743 = vrot.lane.b32.xlu1 %v3619_v16, %s3477_s21 }
 0x1b9   : > { %753 = vrot.lane.b32.xlu0 %v3657_v31, %s3475_s19 }
 0x1bc   : > { %747 = vrot.lane.b32.xlu1 %v3597_v4, %s3475_s19 }
 0x1bd   : > { %921 = vrot.lane.b32.xlu0 %v3604_v8, %s3477_s21 }
 0x1c0   : > { %751 = vrot.lane.b32.xlu1 %v3619_v16, %s3475_s19 }
 0x1c1   : > { %925 = vrot.lane.b32.xlu0 %v3621_v17, %s3477_s21 }
 0x1c4   : > { %923 = vrot.lane.b32.xlu1 %v3595_v3, %s3477_s21 }
 0x1c5   : > { %929 = vrot.lane.b32.xlu0 %v3604_v8, %s3475_s19 }
 0x1c8   : > { %927 = vrot.lane.b32.xlu1 %v3651_v30, %s3477_s21 }
 0x1c9   : > { %933 = vrot.lane.b32.xlu0 %v3621_v17, %s3475_s19 }
 0x1cc   : > { %931 = vrot.lane.b32.xlu1 %v3595_v3, %s3475_s19 }
 0x1cd   : > { %1105 = vrot.lane.b32.xlu0 %v3769_v23, %s3477_s21 }
 0x1d0   : > { %935 = vrot.lane.b32.xlu1 %v3651_v30, %s3475_s19 }
 0x1d1   : > { %1109 = vrot.lane.b32.xlu0 %v3775_v24, %s3477_s21 }
 0x1d4   : > { %1103 = vrot.lane.b32.xlu1 %v3781_v28, %s3477_s21 }
 0x1d5   : > { %1113 = vrot.lane.b32.xlu0 %v3769_v23, %s3475_s19 }
 0x1d8   : > { %1107 = vrot.lane.b32.xlu1 %v3788_v36, %s3477_s21 }
 0x1d9   : > { %1117 = vrot.lane.b32.xlu0 %v3775_v24, %s3475_s19 }
 0x1dc   : > { %1111 = vrot.lane.b32.xlu1 %v3781_v28, %s3475_s19 }
 0x1dd   : > { %1285 = vrot.lane.b32.xlu0 %v3799_v49, %s3477_s21 }
 0x1e0   : > { %1115 = vrot.lane.b32.xlu1 %v3788_v36, %s3475_s19 }
 0x1e1   : > { %1289 = vrot.lane.b32.xlu0 %v3817_v61, %s3477_s21 }
 0x1e4   : > { %1287 = vrot.lane.b32.xlu1 %v3836_v13, %s3477_s21 }
 0x1e5   : > { %1293 = vrot.lane.b32.xlu0 %v3799_v49, %s3475_s19 }
 0x1e8   : > { %1291 = vrot.lane.b32.xlu1 %v3852_v32, %s3477_s21 }
 0x1e9   : > { %1297 = vrot.lane.b32.xlu0 %v3817_v61, %s3475_s19 }
 0x1ec   : > { %1295 = vrot.lane.b32.xlu1 %v3836_v13, %s3475_s19 }
 0x1ed   : > { %1469 = vrot.lane.b32.xlu0 %v3862_v35, %s3477_s21 }
 0x1f0   : > { %1299 = vrot.lane.b32.xlu1 %v3852_v32, %s3475_s19 }
 0x1f1   : > { %407 = vrot.lane.b32.xlu0 %v3725_v54, %s3477_s21 }
 0x1f4   : > { %1467 = vrot.lane.b32.xlu1 %v3872_v37, %s3477_s21 }
 0x1f5   : > { %411 = vrot.lane.b32.xlu0 %v3712_v48, %s3477_s21 }
 0x1f7   : > { %v388_v45 = vpop.permute.xlu0 %387 }
 0x1f8   : > { %1471 = vrot.lane.b32.xlu1 %v3878_v38, %s3477_s21 }
 0x1f9   : > { %415 = vrot.lane.b32.xlu0 %v3725_v54, %s3475_s19 }
 0x1fc   : > { %409 = vrot.lane.b32.xlu1 %v3700_v44, %s3477_s21 }
 0x1fd   : > { %419 = vrot.lane.b32.xlu0 %v3712_v48, %s3475_s19 }
 0x1fe   : > { %v390_v47 = vpop.permute.xlu1 %389 }
 0x1ff   : > { %v458_v56 = vrot.slane %v390_v47, 7 }
 0x200   : > { %413 = vrot.lane.b32.xlu1 %v3728_v55, %s3477_s21 }
 0x201   : > { %427 = vrot.lane.b32.xlu0 %v3717_v51, %s3477_s21  ;;  %v459_v54 = vsel %vm444_vm7, %v458_v56, %v388_v45 }
 0x202   : > { %v460_v1 = vsel %vm446_vm8, %v458_v56, %v459_v54 }
 0x203   : > { %v392_v58 = vpop.permute.xlu0 %391 }
 0x204   : > { %417 = vrot.lane.b32.xlu1 %v3700_v44, %s3475_s19  ;;  %v461_v59 = vrot.slane %v392_v58, 6 }
 0x205   : > { %431 = vrot.lane.b32.xlu0 %v3704_v46, %s3477_s21 }
 0x206   : > { %v462_v2 = vsel %vm449_vm9, %v461_v59, %v460_v1 }
 0x207   : > { %v396_v48 = vpop.permute.xlu0 %395  ;;  %v463_v11 = vsel %vm451_vm10, %v461_v59, %v462_v2  ;;  %v3949_v59 = vrot.slane %v3585_v63, 1  ;;  %v3963_v2 = vrot.slane %v3600_v6, 2 }
 0x208   : > { %421 = vrot.lane.b32.xlu1 %v3728_v55, %s3475_s19 }
 0x209   : > { %435 = vrot.lane.b32.xlu0 %v3717_v51, %s3475_s19  ;;  %v3912_v51 = vrot.slane %v3600_v6, 1 }
 0x20a   : > { %v394_v9 = vpop.permute.xlu1 %393 }
 0x20b   : > { %v400_v10 = vpop.permute.xlu0 %399  ;;  %v464_v44 = vrot.slane %v394_v9, 5 }
 0x20c   : > { %429 = vrot.lane.b32.xlu1 %v3693_v43, %s3477_s21 }
 0x20d   : > { %439 = vrot.lane.b32.xlu0 %v3704_v46, %s3475_s19  ;;  %v465_v12 = vsel %vm454_vm11, %v464_v44, %v463_v11  ;;  %v470_v46 = vrot.slane %v400_v10, 6 }
 0x20e   : > { %v398_v14 = vpop.permute.xlu1 %397  ;;  %v466_v18 = vsel %vm456_vm12, %v464_v44, %v465_v12  ;;  %v3974_v44 = vrot.slane %v3617_v15, 2 }
 0x20f   : > { %v3909_v55 = vpop.permute.xlu0 %557  ;;  %v467_v19 = vrot.slane %v398_v14, 7  ;;  %541 = vst.msk [vmem:[#allocation3 + $0x8] sm:$0xf] %vm539_vm13, %v466_v18  ;;  %v3993_v14 = vrot.slane %v3585_v63, 2 }
 0x210   : > { %7105 = vst [vmem:[#allocation12_spill] sm:$0xff] %v3909_v55  ;;  %433 = vrot.lane.b32.xlu1 %v3720_v52, %s3477_s21 }
 0x211   : > { %577 = vrot.lane.b32.xlu0 %v3912_v51, %s3477_s21  ;;  %v468_v20 = vsel %vm444_vm7, %v467_v19, %v396_v48 }
 0x212   : > { %v469_v21 = vsel %vm446_vm8, %v467_v19, %v468_v20  ;;  %v402_v22 = vpop.permute.xlu1 %401  ;;  %v4007_v20 = vrot.slane %v3587_v0, 1 }
 0x213   : > { %v3922_v25 = vpop.permute.xlu0 %561  ;;  %v471_v27 = vsel %vm449_vm9, %v470_v46, %v469_v21  ;;  %v473_v33 = vrot.slane %v402_v22, 5  ;;  %v4018_v22 = vrot.slane %v3657_v31, 1 }
 0x214   : > { %7106 = vst [vmem:[#allocation13_spill] sm:$0xff] %v3922_v25  ;;  %v472_v34 = vsel %vm451_vm10, %v470_v46, %v471_v27  ;;  %437 = vrot.lane.b32.xlu1 %v3693_v43, %s3475_s19  ;;  %v4004_v46 = vrot.slane %v3649_v29, 2 }
 0x215   : > { %581 = vrot.lane.b32.xlu0 %v3925_v26, %s3477_s21  ;;  %v474_v45 = vsel %vm454_vm11, %v473_v33, %v472_v34 }
 0x216   : > { %v3934_v47 = vpop.permute.xlu1 %559  ;;  %v475_v58 = vsel %vm456_vm12, %v473_v33, %v474_v45  ;;  %v4037_v45 = vrot.slane %v3597_v4, 1 }
 0x217   : > { %7107 = vst [vmem:[#allocation14_spill] sm:$0xff] %v3934_v47  ;;  %v3936_v56 = vpop.permute.xlu0 %565  ;;  %542 = vst.msk [vmem:[#allocation3 + $0x10] sm:$0xf] %vm539_vm13, %v475_v58  ;;  %v670_v47 = vrot.slane %v3974_v44, 6 }
 0x218   : > { %441 = vrot.lane.b32.xlu1 %v3720_v52, %s3475_s19  ;;  %v3960_v52 = vrot.slane %v3649_v29, 1 }
 0x219   : > { %585 = vrot.lane.b32.xlu0 %v3912_v51, %s3475_s19 }
 0x21a   : > { %v3944_v43 = vpop.permute.xlu1 %563 }
 0x21b   : > { %7108 = vst [vmem:[#allocation15_spill] sm:$0xff] %v3944_v43  ;;  %v3946_v54 = vpop.permute.xlu0 %569 }
 0x21c   : > { %7109 = vst [vmem:[#allocation16_spill] sm:$0xff] %v3946_v54  ;;  %579 = vrot.lane.b32.xlu1 %v3949_v59, %s3477_s21  ;;  %v1347_v54 = vrot.slane %v3852_v32, 5 }
 0x21d   : > { %589 = vrot.lane.b32.xlu0 %v3925_v26, %s3475_s19 }
 0x21e   : > { %v3955_v48 = vpop.permute.xlu1 %567 }
 0x21f   : > { %v3957_v1 = vpop.permute.xlu0 %741 }
 0x220   : > { %7110 = vst [vmem:[#allocation17_spill] sm:$0xff] %v3957_v1  ;;  %583 = vrot.lane.b32.xlu1 %v3960_v52, %s3477_s21  ;;  %v1344_v1 = vrot.slane %v3817_v61, 6 }
 0x221   : > { %597 = vrot.lane.b32.xlu0 %v3963_v2, %s3477_s21 }
 0x222   : > { %v3969_v9 = vpop.permute.xlu1 %571 }
 0x223   : > { %7111 = vst [vmem:[#allocation18_spill] sm:$0xff] %v3969_v9  ;;  %v3971_v10 = vpop.permute.xlu0 %745  ;;  %v4200_v9 = vrot.slane %v3781_v28, 1 }
 0x224   : > { %7112 = vst [vmem:[#allocation19_spill] sm:$0xff] %v3971_v10  ;;  %587 = vrot.lane.b32.xlu1 %v3949_v59, %s3475_s19 }
 0x225   : > { %601 = vrot.lane.b32.xlu0 %v3974_v44, %s3477_s21 }
 0x226   : > { %v3980_v6 = vpop.permute.xlu1 %739 }
 0x227   : > { %7113 = vst [vmem:[#allocation20_spill] sm:$0xff] %v3980_v6  ;;  %v3982_v11 = vpop.permute.xlu0 %749 }
 0x228   : > { %7114 = vst [vmem:[#allocation21_spill] sm:$0xff] %v3982_v11  ;;  %591 = vrot.lane.b32.xlu1 %v3960_v52, %s3475_s19 }
 0x229   : > { %605 = vrot.lane.b32.xlu0 %v3963_v2, %s3475_s19 }
 0x22a   : > { %v3988_v12 = vpop.permute.xlu1 %743 }
 0x22b   : > { %7115 = vst [vmem:[#allocation22_spill] sm:$0xff] %v3988_v12  ;;  %v3990_v15 = vpop.permute.xlu0 %753 }
 0x22c   : > { %7116 = vst [vmem:[#allocation23_spill] sm:$0xff] %v3990_v15  ;;  %599 = vrot.lane.b32.xlu1 %v3993_v14, %s3477_s21 }
 0x22d   : > { %609 = vrot.lane.b32.xlu0 %v3974_v44, %s3475_s19 }
 0x22e   : > { %v3999_v18 = vpop.permute.xlu1 %747 }
 0x22f   : > { %7117 = vst [vmem:[#allocation24_spill] sm:$0xff] %v3999_v18  ;;  %v4001_v19 = vpop.permute.xlu0 %921 }
 0x230   : > { %7118 = vst [vmem:[#allocation25_spill] sm:$0xff] %v4001_v19  ;;  %603 = vrot.lane.b32.xlu1 %v4004_v46, %s3477_s21  ;;  %v4136_v19 = vrot.slane %v3651_v30, 1 }
 0x231   : > { %761 = vrot.lane.b32.xlu0 %v4007_v20, %s3477_s21 }
 0x232   : > { %v4013_v63 = vpop.permute.xlu1 %751 }
 0x233   : > { %7119 = vst [vmem:[#allocation26_spill] sm:$0xff] %v4013_v63  ;;  %v4015_v21 = vpop.permute.xlu0 %925 }
 0x234   : > { %7120 = vst [vmem:[#allocation27_spill] sm:$0xff] %v4015_v21  ;;  %607 = vrot.lane.b32.xlu1 %v3993_v14, %s3475_s19  ;;  %v4095_v21 = vrot.slane %v3604_v8, 1 }
 0x235   : > { %765 = vrot.lane.b32.xlu0 %v4018_v22, %s3477_s21 }
 0x236   : > { %v4024_v29 = vpop.permute.xlu1 %923 }
 0x237   : > { %7121 = vst [vmem:[#allocation28_spill] sm:$0xff] %v4024_v29  ;;  %v4026_v27 = vpop.permute.xlu0 %929 }
 0x238   : > { %7122 = vst [vmem:[#allocation29_spill] sm:$0xff] %v4026_v27  ;;  %611 = vrot.lane.b32.xlu1 %v4004_v46, %s3475_s19 }
 0x239   : > { %769 = vrot.lane.b32.xlu0 %v4007_v20, %s3475_s19 }
 0x23a   : > { %v4032_v33 = vpop.permute.xlu1 %927 }
 0x23b   : > { %7123 = vst [vmem:[#allocation30_spill] sm:$0xff] %v4032_v33  ;;  %v4034_v34 = vpop.permute.xlu0 %933  ;;  %v4081_v33 = vrot.slane %v3597_v4, 2 }
 0x23c   : > { %7124 = vst [vmem:[#allocation31_spill] sm:$0xff] %v4034_v34  ;;  %759 = vrot.lane.b32.xlu1 %v4037_v45, %s3477_s21 }
 0x23d   : > { %773 = vrot.lane.b32.xlu0 %v4018_v22, %s3475_s19 }
 0x23e   : > { %v4043_v58 = vpop.permute.xlu1 %931 }
 0x23f   : > { %7125 = vst [vmem:[#allocation32_spill] sm:$0xff] %v4043_v58  ;;  %v4045_v5 = vpop.permute.xlu0 %1105  ;;  %v4226_v58 = vrot.slane %v3775_v24, 2 }
 0x240   : > { %7126 = vst [vmem:[#allocation33_spill] sm:$0xff] %v4045_v5  ;;  %763 = vrot.lane.b32.xlu1 %v4048_v53, %s3477_s21  ;;  %v4173_v5 = vrot.slane %v3769_v23, 1 }
 0x241   : > { %781 = vrot.lane.b32.xlu0 %v4051_v60, %s3477_s21 }
 0x242   : > { %v4057_v7 = vpop.permute.xlu1 %935 }
 0x243   : > { %7127 = vst [vmem:[#allocation34_spill] sm:$0xff] %v4057_v7  ;;  %v4059_v57 = vpop.permute.xlu0 %1109  ;;  %v4125_v7 = vrot.slane %v3595_v3, 1 }
 0x244   : > { %7128 = vst [vmem:[#allocation35_spill] sm:$0xff] %v4059_v57  ;;  %767 = vrot.lane.b32.xlu1 %v4037_v45, %s3475_s19 }
 0x245   : > { %785 = vrot.lane.b32.xlu0 %v4062_v41, %s3477_s21 }
 0x246   : > { %v4068_v0 = vpop.permute.xlu1 %1103 }
 0x247   : > { %7129 = vst [vmem:[#allocation36_spill] sm:$0xff] %v4068_v0  ;;  %v4070_v50 = vpop.permute.xlu0 %1113  ;;  %v4148_v0 = vrot.slane %v3621_v17, 2 }
 0x248   : > { %7130 = vst [vmem:[#allocation37_spill] sm:$0xff] %v4070_v50  ;;  %771 = vrot.lane.b32.xlu1 %v4048_v53, %s3475_s19  ;;  %v4092_v50 = vrot.slane %v3619_v16, 2 }
 0x249   : > { %789 = vrot.lane.b32.xlu0 %v4051_v60, %s3475_s19 }
 0x24a   : > { %v4076_v62 = vpop.permute.xlu1 %1107 }
 0x24b   : > { %7131 = vst [vmem:[#allocation38_spill] sm:$0xff] %v4076_v62  ;;  %v4078_v31 = vpop.permute.xlu0 %1117 }
 0x24c   : > { %7132 = vst [vmem:[#allocation39_spill] sm:$0xff] %v4078_v31  ;;  %779 = vrot.lane.b32.xlu1 %v4081_v33, %s3477_s21 }
 0x24d   : > { %793 = vrot.lane.b32.xlu0 %v4062_v41, %s3475_s19 }
 0x24e   : > { %v4087_v57 = vpop.permute.xlu1 %1111 }
 0x24f   : > { %7133 = vst [vmem:[#allocation40_spill] sm:$0xff] %v4087_v57  ;;  %v4089_v15 = vpop.permute.xlu0 %1285  ;;  %v4106_v57 = vrot.slane %v3621_v17, 1  ;;  %v4163_v17 = vrot.slane %v3595_v3, 2 }
 0x250   : > { %7134 = vst [vmem:[#allocation41_spill] sm:$0xff] %v4089_v15  ;;  %783 = vrot.lane.b32.xlu1 %v4092_v50, %s3477_s21 }
 0x251   : > { %941 = vrot.lane.b32.xlu0 %v4095_v21, %s3477_s21 }
 0x252   : > { %v4101_v4 = vpop.permute.xlu1 %1115 }
 0x253   : > { %7135 = vst [vmem:[#allocation42_spill] sm:$0xff] %v4101_v4  ;;  %v4103_v31 = vpop.permute.xlu0 %1289 }
 0x254   : > { %7136 = vst [vmem:[#allocation43_spill] sm:$0xff] %v4103_v31  ;;  %787 = vrot.lane.b32.xlu1 %v4081_v33, %s3475_s19 }
 0x255   : > { %945 = vrot.lane.b32.xlu0 %v4106_v57, %s3477_s21 }
 0x256   : > { %v4112_v16 = vpop.permute.xlu1 %1287 }
 0x257   : > { %7137 = vst [vmem:[#allocation44_spill] sm:$0xff] %v4112_v16  ;;  %v4114_v15 = vpop.permute.xlu0 %1293 }
 0x258   : > { %7138 = vst [vmem:[#allocation45_spill] sm:$0xff] %v4114_v15  ;;  %791 = vrot.lane.b32.xlu1 %v4092_v50, %s3475_s19 }
 0x259   : > { %949 = vrot.lane.b32.xlu0 %v4095_v21, %s3475_s19 }
 0x25a   : > { %v4120_v31 = vpop.permute.xlu1 %1291 }
 0x25b   : > { %7139 = vst [vmem:[#allocation46_spill] sm:$0xff] %v4120_v31  ;;  %v4122_v4 = vpop.permute.xlu0 %1297  ;;  %v4139_v31 = vrot.slane %v3604_v8, 2 }
 0x25c   : > { %7140 = vst [vmem:[#allocation47_spill] sm:$0xff] %v4122_v4  ;;  %943 = vrot.lane.b32.xlu1 %v4125_v7, %s3477_s21 }
 0x25d   : > { %953 = vrot.lane.b32.xlu0 %v4106_v57, %s3475_s19 }
 0x25e   : > { %v4131_v16 = vpop.permute.xlu1 %1295 }
 0x25f   : > { %7141 = vst [vmem:[#allocation48_spill] sm:$0xff] %v4131_v16  ;;  %v4133_v15 = vpop.permute.xlu0 %1469  ;;  %v4170_v16 = vrot.slane %v3651_v30, 2  ;;  %v4182_v30 = vrot.slane %v3775_v24, 1 }
 0x260   : > { %7142 = vst [vmem:[#allocation49_spill] sm:$0xff] %v4133_v15  ;;  %947 = vrot.lane.b32.xlu1 %v4136_v19, %s3477_s21 }
 0x261   : > { %961 = vrot.lane.b32.xlu0 %v4139_v31, %s3477_s21 }
 0x262   : > { %v4145_v4 = vpop.permute.xlu1 %1299 }
 0x263   : > { %7143 = vst [vmem:[#allocation50_spill] sm:$0xff] %v4145_v4  ;;  %v408_v62 = vpop.permute.xlu0 %407 }
 0x264   : > { %951 = vrot.lane.b32.xlu1 %v4125_v7, %s3475_s19 }
 0x265   : > { %965 = vrot.lane.b32.xlu0 %v4148_v0, %s3477_s21 }
 0x266   : > { %v4154_v8 = vpop.permute.xlu1 %1467 }
 0x267   : > { %7144 = vst [vmem:[#allocation51_spill] sm:$0xff] %v4154_v8  ;;  %v412_v15 = vpop.permute.xlu0 %411 }
 0x268   : > { %955 = vrot.lane.b32.xlu1 %v4136_v19, %s3475_s19  ;;  %v488_v3 = vrot.slane %v412_v15, 6 }
 0x269   : > { %969 = vrot.lane.b32.xlu0 %v4139_v31, %s3475_s19 }
 0x26a   : > { %v4160_v4 = vpop.permute.xlu1 %1471 }
 0x26b   : > { %7145 = vst [vmem:[#allocation52_spill] sm:$0xff] %v4160_v4  ;;  %v416_v10 = vpop.permute.xlu0 %415 }
 0x26c   : > { %963 = vrot.lane.b32.xlu1 %v4163_v17, %s3477_s21 }
 0x26d   : > { %973 = vrot.lane.b32.xlu0 %v4148_v0, %s3475_s19 }
 0x26e   : > { %v410_v8 = vpop.permute.xlu1 %409 }
 0x26f   : > { %v420_v43 = vpop.permute.xlu0 %419  ;;  %v485_v34 = vrot.slane %v410_v8, 7 }
 0x270   : > { %967 = vrot.lane.b32.xlu1 %v4170_v16, %s3477_s21 }
 0x271   : > { %1125 = vrot.lane.b32.xlu0 %v4173_v5, %s3477_s21  ;;  %v486_v4 = vsel %vm444_vm7, %v485_v34, %v408_v62 }
 0x272   : > { %v487_v63 = vsel %vm446_vm8, %v485_v34, %v486_v4  ;;  %v414_v29 = vpop.permute.xlu1 %413 }
 0x273   : > { %v428_v18 = vpop.permute.xlu0 %427  ;;  %v489_v11 = vsel %vm449_vm9, %v488_v3, %v487_v63  ;;  %v491_v27 = vrot.slane %v414_v29, 5 }
 0x274   : > { %v490_v8 = vsel %vm451_vm10, %v488_v3, %v489_v11  ;;  %971 = vrot.lane.b32.xlu1 %v4163_v17, %s3475_s19  ;;  %v497_v11 = vrot.slane %v420_v43, 6 }
 0x275   : > { %1129 = vrot.lane.b32.xlu0 %v4182_v30, %s3477_s21  ;;  %v492_v62 = vsel %vm454_vm11, %v491_v27, %v490_v8 }
 0x276   : > { %v418_v15 = vpop.permute.xlu1 %417  ;;  %v493_v4 = vsel %vm456_vm12, %v491_v27, %v492_v62 }
 0x277   : > { %v432_v34 = vpop.permute.xlu0 %431  ;;  %v494_v25 = vrot.slane %v418_v15, 7  ;;  %544 = vst.msk [vmem:[#allocation3 + $0x20] sm:$0xf] %vm539_vm13, %v493_v4  ;;  %v4210_v4 = vrot.slane %v3788_v36, 1 }
 0x278   : > { %975 = vrot.lane.b32.xlu1 %v4170_v16, %s3475_s19 }
 0x279   : > { %1133 = vrot.lane.b32.xlu0 %v4173_v5, %s3475_s19  ;;  %v495_v63 = vsel %vm444_vm7, %v494_v25, %v416_v10 }
 0x27a   : > { %v496_v29 = vsel %vm446_vm8, %v494_v25, %v495_v63  ;;  %v422_v3 = vpop.permute.xlu1 %421  ;;  %v4213_v63 = vrot.slane %v3769_v23, 2 }
 0x27b   : > { %v436_v8 = vpop.permute.xlu0 %435  ;;  %v498_v27 = vsel %vm449_vm9, %v497_v11, %v496_v29  ;;  %v500_v62 = vrot.slane %v422_v3, 5 }
 0x27c   : > { %v499_v15 = vsel %vm451_vm10, %v497_v11, %v498_v27  ;;  %1123 = vrot.lane.b32.xlu1 %v4200_v9, %s3477_s21  ;;  %v515_v11 = vrot.slane %v432_v34, 6 }
 0x27d   : > { %1137 = vrot.lane.b32.xlu0 %v4182_v30, %s3475_s19  ;;  %v501_v43 = vsel %vm454_vm11, %v500_v62, %v499_v15 }
 0x27e   : > { %v430_v10 = vpop.permute.xlu1 %429  ;;  %v502_v29 = vsel %vm456_vm12, %v500_v62, %v501_v43 }
 0x27f   : > { %v440_v25 = vpop.permute.xlu0 %439  ;;  %v512_v3 = vrot.slane %v430_v10, 7  ;;  %545 = vst.msk [vmem:[#allocation3 + $0x28] sm:$0xf] %vm539_vm13, %v502_v29 }
 0x280   : > { %1127 = vrot.lane.b32.xlu1 %v4210_v4, %s3477_s21 }
 0x281   : > { %1145 = vrot.lane.b32.xlu0 %v4213_v63, %s3477_s21  ;;  %v513_v27 = vsel %vm444_vm7, %v512_v3, %v428_v18 }
 0x282   : > { %v514_v15 = vsel %vm446_vm8, %v512_v3, %v513_v27  ;;  %v434_v12 = vpop.permute.xlu1 %433 }
 0x283   : > { %v4223_v6 = vpop.permute.xlu0 %577  ;;  %v516_v62 = vsel %vm449_vm9, %v515_v11, %v514_v15  ;;  %v518_v43 = vrot.slane %v434_v12, 5  ;;  %v524_v12 = vrot.slane %v440_v25, 6 }
 0x284   : > { %7146 = vst [vmem:[#allocation53_spill] sm:$0xff] %v4223_v6  ;;  %v517_v10 = vsel %vm451_vm10, %v515_v11, %v516_v62  ;;  %1131 = vrot.lane.b32.xlu1 %v4200_v9, %s3475_s19  ;;  %v1341_v6 = vrot.slane %v3836_v13, 7 }
 0x285   : > { %1149 = vrot.lane.b32.xlu0 %v4226_v58, %s3477_s21  ;;  %v519_v18 = vsel %vm454_vm11, %v518_v43, %v517_v10 }
 0x286   : > { %v438_v34 = vpop.permute.xlu1 %437  ;;  %v520_v3 = vsel %vm456_vm12, %v518_v43, %v519_v18 }
 0x287   : > { %v4235_v29 = vpop.permute.xlu0 %581  ;;  %v521_v27 = vrot.slane %v438_v34, 7  ;;  %547 = vst.msk [vmem:[#allocation3 + $0x38] sm:$0xf] %vm539_vm13, %v520_v3 }
 0x288   : > { %7147 = vst [vmem:[#allocation54_spill] sm:$0xff] %v4235_v29  ;;  %1135 = vrot.lane.b32.xlu1 %v4210_v4, %s3475_s19  ;;  %v4248_v29 = vrot.slane %v3781_v28, 2 }
 0x289   : > { %1153 = vrot.lane.b32.xlu0 %v4213_v63, %s3475_s19  ;;  %v522_v11 = vsel %vm444_vm7, %v521_v27, %v436_v8 }
 0x28a   : > { %v523_v15 = vsel %vm446_vm8, %v521_v27, %v522_v11  ;;  %v442_v62 = vpop.permute.xlu1 %441  ;;  %v4262_v27 = vrot.slane %v3788_v36, 2  ;;  %v4265_v11 = vrot.slane %v3799_v49, 1 }
 0x28b   : > { %v4245_v10 = vpop.permute.xlu0 %585  ;;  %v525_v43 = vsel %vm449_vm9, %v524_v12, %v523_v15  ;;  %v527_v18 = vrot.slane %v442_v62, 5 }
 0x28c   : > { %7148 = vst [vmem:[#allocation55_spill] sm:$0xff] %v4245_v10  ;;  %v526_v34 = vsel %vm451_vm10, %v524_v12, %v525_v43  ;;  %1143 = vrot.lane.b32.xlu1 %v4248_v29, %s3477_s21  ;;  %v4278_v43 = vrot.slane %v3817_v61, 1  ;;  %v4308_v10 = vrot.slane %v3852_v32, 1 }
 0x28d   : > { %1157 = vrot.lane.b32.xlu0 %v4226_v58, %s3475_s19  ;;  %v528_v8 = vsel %vm454_vm11, %v527_v18, %v526_v34 }
 0x28e   : > { %v4257_v25 = vpop.permute.xlu1 %579  ;;  %v529_v12 = vsel %vm456_vm12, %v527_v18, %v528_v8 }
 0x28f   : > { %7149 = vst [vmem:[#allocation56_spill] sm:$0xff] %v4257_v25  ;;  %v4259_v3 = vpop.permute.xlu0 %589  ;;  %548 = vst.msk [vmem:[#allocation3 + $0x40] sm:$0xf] %vm539_vm13, %v529_v12  ;;  %v4342_v25 = vrot.slane %v3836_v13, 2 }
 0x290   : > { %7150 = vst [vmem:[#allocation57_spill] sm:$0xff] %v4259_v3  ;;  %1147 = vrot.lane.b32.xlu1 %v4262_v27, %s3477_s21  ;;  %v4297_v3 = vrot.slane %v3836_v13, 1 }
 0x291   : > { %1305 = vrot.lane.b32.xlu0 %v4265_v11, %s3477_s21 }
 0x292   : > { %v4273_v15 = vpop.permute.xlu1 %583 }
 0x293   : > { %7151 = vst [vmem:[#allocation58_spill] sm:$0xff] %v4273_v15  ;;  %v4275_v62 = vpop.permute.xlu0 %597 }
 0x294   : > { %7152 = vst [vmem:[#allocation59_spill] sm:$0xff] %v4275_v62  ;;  %1151 = vrot.lane.b32.xlu1 %v4248_v29, %s3475_s19 }
 0x295   : > { %1309 = vrot.lane.b32.xlu0 %v4278_v43, %s3477_s21 }
 0x296   : > { %v4284_v18 = vpop.permute.xlu1 %587 }
 0x297   : > { %7153 = vst [vmem:[#allocation60_spill] sm:$0xff] %v4284_v18  ;;  %v4286_v34 = vpop.permute.xlu0 %601 }
 0x298   : > { %7154 = vst [vmem:[#allocation61_spill] sm:$0xff] %v4286_v34  ;;  %1155 = vrot.lane.b32.xlu1 %v4262_v27, %s3475_s19 }
 0x299   : > { %1313 = vrot.lane.b32.xlu0 %v4265_v11, %s3475_s19 }
 0x29a   : > { %v4292_v8 = vpop.permute.xlu1 %591 }
 0x29b   : > { %7155 = vst [vmem:[#allocation62_spill] sm:$0xff] %v4292_v8  ;;  %v4294_v12 = vpop.permute.xlu0 %605  ;;  %v4311_v8 = vrot.slane %v3799_v49, 2 }
 0x29c   : > { %7156 = vst [vmem:[#allocation63_spill] sm:$0xff] %v4294_v12  ;;  %1307 = vrot.lane.b32.xlu1 %v4297_v3, %s3477_s21 }
 0x29d   : > { %1317 = vrot.lane.b32.xlu0 %v4278_v43, %s3475_s19 }
 0x29e   : > { %v4303_v34 = vpop.permute.xlu1 %599 }
 0x29f   : > { %7157 = vst [vmem:[#allocation64_spill] sm:$0xff] %v4303_v34  ;;  %v4305_v62 = vpop.permute.xlu0 %609  ;;  %v4322_v34 = vrot.slane %v3817_v61, 2  ;;  %v4359_v61 = vrot.slane %v3852_v32, 2 }
 0x2a0   : > { %7158 = vst [vmem:[#allocation65_spill] sm:$0xff] %v4305_v62  ;;  %1311 = vrot.lane.b32.xlu1 %v4308_v10, %s3477_s21 }
 0x2a1   : > { %1325 = vrot.lane.b32.xlu0 %v4311_v8, %s3477_s21 }
 0x2a2   : > { %v4317_v12 = vpop.permute.xlu1 %603 }
 0x2a3   : > { %7159 = vst [vmem:[#allocation66_spill] sm:$0xff] %v4317_v12  ;;  %v4319_v15 = vpop.permute.xlu0 %761 }
 0x2a4   : > { %7160 = vst [vmem:[#allocation67_spill] sm:$0xff] %v4319_v15  ;;  %1315 = vrot.lane.b32.xlu1 %v4297_v3, %s3475_s19 }
 0x2a5   : > { %1329 = vrot.lane.b32.xlu0 %v4322_v34, %s3477_s21 }
 0x2a6   : > { %v4328_v62 = vpop.permute.xlu1 %607 }
 0x2a7   : > { %7161 = vst [vmem:[#allocation68_spill] sm:$0xff] %v4328_v62  ;;  %v4330_v18 = vpop.permute.xlu0 %765  ;;  %v667_v62 = vrot.slane %v3993_v14, 7 }
 0x2a8   : > { %7162 = vst [vmem:[#allocation69_spill] sm:$0xff] %v4330_v18  ;;  %1319 = vrot.lane.b32.xlu1 %v4308_v10, %s3475_s19  ;;  %v1342_v18 = vsel %vm444_vm7, %v1341_v6, %v3799_v49 }
 0x2a9   : > { %1333 = vrot.lane.b32.xlu0 %v4311_v8, %s3475_s19  ;;  %v1343_v49 = vsel %vm446_vm8, %v1341_v6, %v1342_v18  ;;  %v1162_v6 = vrot.slane %v3788_v36, 6  ;;  %v640_v18 = vrot.slane %v3949_v59, 7  ;;  %v673_v59 = vrot.slane %v4004_v46, 5 }
 0x2aa   : > { %v4337_v15 = vpop.permute.xlu1 %611  ;;  %v1345_v14 = vsel %vm449_vm9, %v1344_v1, %v1343_v49 }
 0x2ab   : > { %7163 = vst [vmem:[#allocation70_spill] sm:$0xff] %v4337_v15  ;;  %v4339_v12 = vpop.permute.xlu0 %769  ;;  %v1159_v15 = vrot.slane %v3769_v23, 7  ;;  %v668_v23 = vsel %vm444_vm7, %v667_v62, %v3963_v2  ;;  %v1031_v2 = vrot.slane %v4163_v17, 7 }
 0x2ac   : > { %7164 = vst [vmem:[#allocation71_spill] sm:$0xff] %v4339_v12  ;;  %1327 = vrot.lane.b32.xlu1 %v4342_v25, %s3477_s21  ;;  %v822_v12 = vrot.slane %v4007_v20, 7 }
 0x2ad   : > { %1337 = vrot.lane.b32.xlu0 %v4322_v34, %s3475_s19  ;;  %v1160_v20 = vsel %vm444_vm7, %v1159_v15, %v3781_v28  ;;  %v669_v28 = vsel %vm446_vm8, %v667_v62, %v668_v23  ;;  %v1165_v62 = vrot.slane %v3775_v24, 5  ;;  %v1032_v24 = vsel %vm444_vm7, %v1031_v2, %v4139_v31 }
 0x2ae   : > { %v4354_v55 = vpop.permute.xlu1 %759  ;;  %v823_v32 = vsel %vm444_vm7, %v822_v12, %v4037_v45  ;;  %v671_v36 = vsel %vm449_vm9, %v670_v47, %v669_v28  ;;  %v849_v45 = vrot.slane %v4051_v60, 7  ;;  %v1004_v31 = vrot.slane %v4125_v7, 7 }
 0x2af   : > { %7165 = vst [vmem:[#allocation72_spill] sm:$0xff] %v4354_v55  ;;  %v4356_v13 = vpop.permute.xlu0 %773 }
 0x2b0   : > { %7166 = vst [vmem:[#allocation73_spill] sm:$0xff] %v4356_v13  ;;  %1331 = vrot.lane.b32.xlu1 %v4359_v61, %s3477_s21  ;;  %v1346_v13 = vsel %vm451_vm10, %v1344_v1, %v1345_v14  ;;  %v1161_v1 = vsel %vm446_vm8, %v1159_v15, %v1160_v20  ;;  %v1034_v14 = vrot.slane %v4148_v0, 6  ;;  %v824_v15 = vsel %vm446_vm8, %v822_v12, %v823_v32 }
 0x2b1   : > { %694 = vrot.lane.b32.xlu0 %v3671_v39, %s3478_s22  ;;  %v825_v39 = vrot.slane %v4048_v53, 6  ;;  %v1348_v55 = vsel %vm454_vm11, %v1347_v54, %v1346_v13  ;;  %v643_v53 = vrot.slane %v3925_v26, 6  ;;  %v1163_v17 = vsel %vm449_vm9, %v1162_v6, %v1161_v1 }
 0x2b2   : > { %v4377_v44 = vpop.permute.xlu1 %763  ;;  %v852_v13 = vrot.slane %v4092_v50, 6  ;;  %v1349_v46 = vsel %vm456_vm12, %v1347_v54, %v1348_v55  ;;  %v672_v26 = vsel %vm451_vm10, %v670_v47, %v671_v36  ;;  %v641_v20 = vsel %vm444_vm7, %v640_v18, %v3912_v51 }
 0x2b3   : > { %v4379_v49 = vpop.permute.xlu0 %781  ;;  %v826_v60 = vsel %vm449_vm9, %v825_v39, %v824_v15  ;;  %v1186_v50 = vrot.slane %v4173_v5, 7  ;;  %v674_v55 = vsel %vm454_vm11, %v673_v59, %v672_v26  ;;  %v1164_v47 = vsel %vm451_vm10, %v1162_v6, %v1163_v17 }
 0x2b4   : > { %1335 = vrot.lane.b32.xlu1 %v4342_v25, %s3475_s19  ;;  %v828_v54 = vrot.slane %v4018_v22, 5  ;;  %v850_v51 = vsel %vm444_vm7, %v849_v45, %v4081_v33  ;;  %v1007_v0 = vrot.slane %v4106_v57, 6  ;;  %v1166_v5 = vsel %vm454_vm11, %v1165_v62, %v1164_v47 }
 0x2b5   : > { %1058 = vrot.lane.b32.xlu0 %v3674_v40, %s3479_s23  ;;  %v827_v28 = vsel %vm451_vm10, %v825_v39, %v826_v60  ;;  %v642_v36 = vsel %vm446_vm8, %v640_v18, %v641_v20  ;;  %v646_v6 = vrot.slane %v3960_v52, 5  ;;  %v1033_v22 = vsel %vm446_vm8, %v1031_v2, %v1032_v24 }
 0x2b6   : > { %v4399_v23 = vpop.permute.xlu1 %767  ;;  %v675_v33 = vsel %vm456_vm12, %v673_v59, %v674_v55  ;;  %v644_v1 = vsel %vm449_vm9, %v643_v53, %v642_v36  ;;  %v1035_v7 = vsel %vm449_vm9, %v1034_v14, %v1033_v22  ;;  %v1037_v17 = vrot.slane %v4170_v16, 5 }
 0x2b7   : > { %v4401_v40 = vpop.permute.xlu0 %785  ;;  %v1189_v15 = vrot.slane %v4210_v4, 6  ;;  %v1395_v39 = vrot.slane %v4342_v25, 7  ;;  %v829_v52 = vsel %vm454_vm11, %v828_v54, %v827_v28  ;;  %v1213_v18 = vrot.slane %v4213_v63, 7 }
 0x2b8   : > { %1339 = vrot.lane.b32.xlu1 %v4359_v61, %s3475_s19  ;;  %v1398_v2 = vrot.slane %v4322_v34, 6  ;;  %v1167_v16 = vsel %vm456_vm12, %v1165_v62, %v1166_v5  ;;  %v645_v25 = vsel %vm451_vm10, %v643_v53, %v644_v1  ;;  %v855_v60 = vrot.slane %v4062_v41, 5 }
 0x2b9   : > { %1422 = vrot.lane.b32.xlu0 %v1349_v46, %s3480_s24  ;;  %v1187_v46 = vsel %vm444_vm7, %v1186_v50, %v4200_v9  ;;  %v851_v9 = vsel %vm446_vm8, %v849_v45, %v850_v51  ;;  %v830_v63 = vsel %vm456_vm12, %v828_v54, %v829_v52  ;;  %v647_v34 = vsel %vm454_vm11, %v646_v6, %v645_v25 }
 0x2ba   : > { %v4423_v12 = vpop.permute.xlu1 %771  ;;  %v853_v26 = vsel %vm449_vm9, %v852_v13, %v851_v9  ;;  %v1188_v45 = vsel %vm446_vm8, %v1186_v50, %v1187_v46  ;;  %v1005_v41 = vsel %vm444_vm7, %v1004_v31, %v4095_v21  ;;  %v1396_v20 = vsel %vm444_vm7, %v1395_v39, %v4311_v8 }
 0x2bb   : > { %v4425_v32 = vpop.permute.xlu0 %789  ;;  %v1190_v53 = vsel %vm449_vm9, %v1189_v15, %v1188_v45  ;;  %v1214_v24 = vsel %vm444_vm7, %v1213_v18, %v4248_v29  ;;  %v1216_v50 = vrot.slane %v4262_v27, 6  ;;  %v854_v55 = vsel %vm451_vm10, %v852_v13, %v853_v26 }
 0x2bc   : > { %876 = vrot.lane.b32.xlu1 %v3678_v42, %s3481_s25  ;;  %v1036_v42 = vsel %vm451_vm10, %v1034_v14, %v1035_v7  ;;  %v1192_v14 = vrot.slane %v4182_v30, 5  ;;  %v1368_v47 = vrot.slane %v4297_v3, 7  ;;  %v648_v30 = vsel %vm456_vm12, %v646_v6, %v647_v34 }
 0x2bd   : > { %706 = vrot.lane.b32.xlu0 %v675_v33, %s3478_s22  ;;  %v1038_v62 = vsel %vm454_vm11, %v1037_v17, %v1036_v42  ;;  %v856_v5 = vsel %vm454_vm11, %v855_v60, %v854_v55  ;;  %v1191_v8 = vsel %vm451_vm10, %v1189_v15, %v1190_v53  ;;  %v1006_v29 = vsel %vm446_vm8, %v1004_v31, %v1005_v41 }
 0x2be   : > { %v4447_v59 = vpop.permute.xlu1 %779  ;;  %v1039_v21 = vsel %vm456_vm12, %v1037_v17, %v1038_v62  ;;  %v1010_v27 = vrot.slane %v4136_v19, 5  ;;  %v1397_v13 = vsel %vm446_vm8, %v1395_v39, %v1396_v20  ;;  %v1193_v3 = vsel %vm454_vm11, %v1192_v14, %v1191_v8 }
 0x2bf   : > { %v4449_v4 = vpop.permute.xlu0 %793  ;;  %v1008_v28 = vsel %vm449_vm9, %v1007_v0, %v1006_v29  ;;  %v1399_v36 = vsel %vm449_vm9, %v1398_v2, %v1397_v13  ;;  %v1401_v6 = vrot.slane %v4359_v61, 5  ;;  %v1371_v31 = vrot.slane %v4278_v43, 6 }
 0x2c0   : > { %1240 = vrot.lane.b32.xlu1 %v1167_v16, %s3482_s26  ;;  %v857_v33 = vsel %vm456_vm12, %v855_v60, %v856_v5  ;;  %v1215_v1 = vsel %vm446_vm8, %v1213_v18, %v1214_v24  ;;  %v1194_v7 = vsel %vm456_vm12, %v1192_v14, %v1193_v3  ;;  %v1009_v17 = vsel %vm451_vm10, %v1007_v0, %v1008_v28 }
 0x2c1   : > { %882 = vrot.lane.b32.xlu0 %v830_v63, %s3481_s25  ;;  %v1400_v46 = vsel %vm451_vm10, %v1398_v2, %v1399_v36  ;;  %v1217_v61 = vsel %vm449_vm9, %v1216_v50, %v1215_v1  ;;  %v1011_v43 = vsel %vm454_vm11, %v1010_v27, %v1009_v17  ;;  %v1219_v39 = vrot.slane %v4226_v58, 5  ;;  %v4529_v63 = vld [vmem:[#allocation2 + $0x4e] sm:$0x7] }
 0x2c2   : > { %v4472_v54 = vpop.permute.xlu1 %783  ;;  %v1402_v15 = vsel %vm454_vm11, %v1401_v6, %v1400_v46  ;;  %v1369_v52 = vsel %vm444_vm7, %v1368_v47, %v4265_v11  ;;  %v1012_v18 = vsel %vm456_vm12, %v1010_v27, %v1011_v43  ;;  %v1218_v16 = vsel %vm451_vm10, %v1216_v50, %v1217_v61 }
 0x2c3   : > { %v4474_v51 = vpop.permute.xlu0 %941  ;;  %v1403_v2 = vsel %vm456_vm12, %v1401_v6, %v1402_v15  ;;  %v1370_v9 = vsel %vm446_vm8, %v1368_v47, %v1369_v52  ;;  %v1220_v58 = vsel %vm454_vm11, %v1219_v39, %v1218_v16  ;;  %v1374_v25 = vrot.slane %v4308_v10, 5  ;;  %v7171_v52 = vld [vmem:[#allocation14_spill] sm:$0xff] }
 0x2c4   : > { %700 = vrot.lane.b32.xlu1 %v648_v30, %s3478_s22  ;;  %v1372_v11 = vsel %vm449_vm9, %v1371_v31, %v1370_v9  ;;  %v1221_v60 = vsel %vm456_vm12, %v1219_v39, %v1220_v58  ;;  %v1484_v50 = vrot.slane %v3862_v35, 1  ;;  %v1483_v30 = vrot.slane %v3872_v37, 1 }
 0x2c5   : > { %1070 = vrot.lane.b32.xlu0 %v1039_v21, %s3479_s23  ;;  %v1373_v34 = vsel %vm451_vm10, %v1371_v31, %v1372_v11  ;;  %v4566_v21 = vrot.slane %v4529_v63, 1  ;;  %v1485_v29 = vrot.slane %v3878_v38, 1  ;;  %v1504_v36 = vrot.slane %v3862_v35, 2 }
 0x2c6   : > { %v4492_v22 = vpop.permute.xlu1 %787  ;;  %v1375_v62 = vsel %vm454_vm11, %v1374_v25, %v1373_v34  ;;  %v631_v6 = vrot.slane %v3955_v48, 7  ;;  %v1550_v31 = vrot.slane %v1484_v50, 7  ;;  %v1503_v17 = vrot.slane %v3872_v37, 2 }
 0x2c7   : > { %v4494_v19 = vpop.permute.xlu0 %945  ;;  %v1376_v53 = vsel %vm456_vm12, %v1374_v25, %v1375_v62  ;;  %v4600_v46 = vrot.slane %v4529_v63, 2  ;;  %v1505_v61 = vrot.slane %v3878_v38, 2  ;;  %v1553_v15 = vrot.slane %v1485_v29, 6  ;;  %v7173_v25 = vld [vmem:[#allocation16_spill] sm:$0xff] }
 0x2c8   : > { %888 = vrot.lane.b32.xlu1 %v857_v33, %s3481_s25  ;;  %v1523_v33 = vrot.slane %v3862_v35, 7  ;;  %v632_v48 = vsel %vm444_vm7, %v631_v6, %v3936_v56  ;;  %v1551_v43 = vsel %vm444_vm7, %v1550_v31, %v1483_v30  ;;  %v1577_v39 = vrot.slane %v1504_v36, 7 }
 0x2c9   : > { %1246 = vrot.lane.b32.xlu0 %v1194_v7, %s3482_s26  ;;  %v633_v16 = vsel %vm446_vm8, %v631_v6, %v632_v48  ;;  %v1552_v58 = vsel %vm446_vm8, %v1550_v31, %v1551_v43  ;;  %v1556_v11 = vrot.slane %v4566_v21, 5  ;;  %v1580_v62 = vrot.slane %v1505_v61, 6 }
 0x2ca   : > { %v4511_v57 = vpop.permute.xlu1 %791  ;;  %v1578_v34 = vsel %vm444_vm7, %v1577_v39, %v1503_v17  ;;  %v1529_v43 = vrot.slane %v4529_v63, 5 }
 0x2cb   : > { %v4513_v0 = vpop.permute.xlu0 %949 }
 0x2cc   : > { %1064 = vrot.lane.b32.xlu1 %v1012_v18, %s3479_s23  ;;  %v1524_v18 = vsel %vm444_vm7, %v1523_v33, %v3872_v37 }
 0x2cd   : > { %1434 = vrot.lane.b32.xlu0 %v1403_v2, %s3480_s24  ;;  %v1526_v2 = vrot.slane %v3878_v38, 6 }
 0x2ce   : > { %v4524_v42 = vpop.permute.xlu1 %943 }
 0x2cf   : > { %v4526_v26 = vpop.permute.xlu0 %953 }
 0x2d0   : > { %1252 = vrot.lane.b32.xlu1 %v1221_v60, %s3482_s26  ;;  %v634_v60 = vrot.slane %v7173_v25, 6  ;;  %v7178_v25 = vld [vmem:[#allocation22_spill] sm:$0xff] }
 0x2d1   : > { %1473 = vrot.lane.b32.xlu0 %v4529_v63, %s3477_s21 }
 0x2d2   : > { %v4536_v45 = vpop.permute.xlu1 %947  ;;  %v635_v31 = vsel %vm449_vm9, %v634_v60, %v633_v16 }
 0x2d3   : > { %v4538_v10 = vpop.permute.xlu0 %961 }
 0x2d4   : > { %1428 = vrot.lane.b32.xlu1 %v1376_v53, %s3480_s24  ;;  %v1554_v53 = vsel %vm449_vm9, %v1553_v15, %v1552_v58 }
 0x2d5   : > { %1477 = vrot.lane.b32.xlu0 %v3862_v35, %s3475_s19  ;;  %v622_v35 = vrot.slane %v7171_v52, 7  ;;  %v7177_v52 = vld [vmem:[#allocation20_spill] sm:$0xff] }
 0x2d6   : > { %v4544_v14 = vpop.permute.xlu1 %951 }
 0x2d7   : > { %v4546_v41 = vpop.permute.xlu0 %965 }
 0x2d8   : > { %1475 = vrot.lane.b32.xlu1 %v3872_v37, %s3475_s19  ;;  %v7174_v37 = vld [vmem:[#allocation12_spill] sm:$0xff] }
 0x2d9   : > { %1481 = vrot.lane.b32.xlu0 %v4529_v63, %s3475_s19 }
 0x2da   : > { %v4552_v20 = vpop.permute.xlu1 %955 }
 0x2db   : > { %v4554_v24 = vpop.permute.xlu0 %969 }
 0x2dc   : > { %1479 = vrot.lane.b32.xlu1 %v3878_v38, %s3475_s19  ;;  %v623_v38 = vsel %vm444_vm7, %v622_v35, %v7174_v37  ;;  %v807_v37 = vrot.slane %v7178_v25, 6 }
 0x2dd   : > { %1489 = vrot.lane.b32.xlu0 %v1484_v50, %s3477_s21 }
 0x2de   : > { %v4560_v55 = vpop.permute.xlu1 %963 }
 0x2df   : > { %v4562_v47 = vpop.permute.xlu0 %973 }
 0x2e0   : > { %1487 = vrot.lane.b32.xlu1 %v1483_v30, %s3477_s21 }
 0x2e1   : > { %1493 = vrot.lane.b32.xlu0 %v4566_v21, %s3477_s21 }
 0x2e2   : > { %v4571_v5 = vpop.permute.xlu1 %967 }
 0x2e3   : > { %7167 = vst [vmem:[#allocation74_spill] sm:$0xff] %v4571_v5  ;;  %v4573_v8 = vpop.permute.xlu0 %1125  ;;  %v7181_v5 = vld [vmem:[#allocation13_spill] sm:$0xff] }
 0x2e4   : > { %1491 = vrot.lane.b32.xlu1 %v1485_v29, %s3477_s21 }
 0x2e5   : > { %1497 = vrot.lane.b32.xlu0 %v1484_v50, %s3475_s19  ;;  %v7175_v50 = vld [vmem:[#allocation17_spill] sm:$0xff] }
 0x2e6   : > { %v4578_v27 = vpop.permute.xlu1 %971 }
 0x2e7   : > { %v4580_v13 = vpop.permute.xlu0 %1129 }
 0x2e8   : > { %7168 = vst [vmem:[#allocation75_spill] sm:$0xff] %v4580_v13  ;;  %1495 = vrot.lane.b32.xlu1 %v1483_v30, %s3475_s19  ;;  %v804_v30 = vrot.slane %v7175_v50, 7  ;;  %v1555_v13 = vsel %vm451_vm10, %v1553_v15, %v1554_v53 }
 0x2e9   : > { %1501 = vrot.lane.b32.xlu0 %v4566_v21, %s3475_s19  ;;  %v1525_v21 = vsel %vm446_vm8, %v1523_v33, %v1524_v18  ;;  %v624_v33 = vsel %vm446_vm8, %v622_v35, %v623_v38  ;;  %v7180_v18 = vld [vmem:[#allocation18_spill] sm:$0xff] }
 0x2ea   : > { %v4585_v3 = vpop.permute.xlu1 %975  ;;  %v1527_v48 = vsel %vm449_vm9, %v1526_v2, %v1525_v21  ;;  %v805_v58 = vsel %vm444_vm7, %v804_v30, %v7177_v52  ;;  %v637_v16 = vrot.slane %v7180_v18, 5  ;;  %v1557_v21 = vsel %vm454_vm11, %v1556_v11, %v1555_v13 }
 0x2eb   : > { %v4587_v28 = vpop.permute.xlu0 %1133  ;;  %v625_v52 = vrot.slane %v7181_v5, 6  ;;  %v1528_v15 = vsel %vm451_vm10, %v1526_v2, %v1527_v48  ;;  %v806_v35 = vsel %vm446_vm8, %v804_v30, %v805_v58  ;;  %v1583_v5 = vrot.slane %v4600_v46, 5  ;;  %v7186_v48 = vld [vmem:[#allocation28_spill] sm:$0xff] }
 0x2ec   : > { %1499 = vrot.lane.b32.xlu1 %v1485_v29, %s3475_s19  ;;  %v7176_v29 = vld [vmem:[#allocation32_spill] sm:$0xff]  ;;  %v1530_v53 = vsel %vm454_vm11, %v1529_v43, %v1528_v15  ;;  %v1558_v2 = vsel %vm456_vm12, %v1556_v11, %v1557_v21  ;;  %v986_v58 = vrot.slane %v7186_v48, 7  ;;  %v7191_v11 = vld [vmem:[#allocation15_spill] sm:$0xff]  ;;  %v7194_v48 = vld [vmem:[#allocation38_spill] sm:$0xff] }
 0x2ed   : > { %1509 = vrot.lane.b32.xlu0 %v1504_v36, %s3477_s21  ;;  %v995_v6 = vrot.slane %v7176_v29, 7  ;;  %v626_v38 = vsel %vm449_vm9, %v625_v52, %v624_v33  ;;  %v7187_v33 = vld [vmem:[#allocation26_spill] sm:$0xff] }
 0x2ee   : > { %v4594_v1 = vpop.permute.xlu1 %1123  ;;  %v816_v15 = vrot.slane %v7187_v33, 6 }
 0x2ef   : > { %7169 = vst [vmem:[#allocation76_spill] sm:$0xff] %v4594_v1  ;;  %v4596_v7 = vpop.permute.xlu0 %1137 }
 0x2f0   : > { %7170 = vst [vmem:[#allocation77_spill] sm:$0xff] %v4596_v7  ;;  %1507 = vrot.lane.b32.xlu1 %v1503_v17, %s3477_s21 }
 0x2f1   : > { %1513 = vrot.lane.b32.xlu0 %v4600_v46, %s3477_s21 }
 0x2f2   : > { %v4614_v9 = vpop.permute.xlu1 %1127 }
 0x2f3   : > { %7172 = vst [vmem:[#allocation14_spill] sm:$0xff] %v4614_v9  ;;  %v4616_v56 = vpop.permute.xlu0 %1145  ;;  %v7182_v9 = vld [vmem:[#allocation29_spill] sm:$0xff] }
 0x2f4   : > { %1511 = vrot.lane.b32.xlu1 %v1505_v61, %s3477_s21  ;;  %v996_v25 = vsel %vm444_vm7, %v995_v6, %v7182_v9  ;;  %v808_v9 = vsel %vm449_vm9, %v807_v37, %v806_v35  ;;  %v7188_v35 = vld [vmem:[#allocation31_spill] sm:$0xff] }
 0x2f5   : > { %1517 = vrot.lane.b32.xlu0 %v1504_v36, %s3475_s19  ;;  %v1579_v36 = vsel %vm446_vm8, %v1577_v39, %v1578_v34  ;;  %v636_v39 = vsel %vm451_vm10, %v634_v60, %v635_v31  ;;  %v7183_v34 = vld [vmem:[#allocation21_spill] sm:$0xff]  ;;  %v7185_v31 = vld [vmem:[#allocation24_spill] sm:$0xff]  ;;  %v997_v18 = vsel %vm446_vm8, %v995_v6, %v996_v25  ;;  %v809_v21 = vsel %vm451_vm10, %v807_v37, %v808_v9  ;;  %v7192_v25 = vld [vmem:[#allocation19_spill] sm:$0xff] }
 0x2f6   : > { %v4636_v50 = vpop.permute.xlu1 %1131  ;;  %v1581_v63 = vsel %vm449_vm9, %v1580_v62, %v1579_v36  ;;  %v813_v13 = vrot.slane %v7183_v34, 7  ;;  %v998_v34 = vrot.slane %v7188_v35, 6  ;;  %v1531_v6 = vsel %vm456_vm12, %v1529_v43, %v1530_v53  ;;  %v7196_v37 = vld [vmem:[#allocation25_spill] sm:$0xff] }
 0x2f7   : > { %v4638_v29 = vpop.permute.xlu0 %1149  ;;  %v1582_v60 = vsel %vm451_vm10, %v1580_v62, %v1581_v63  ;;  %v628_v62 = vrot.slane %v7191_v11, 5  ;;  %v987_v43 = vsel %vm444_vm7, %v986_v58, %v7196_v37  ;;  %v627_v9 = vsel %vm451_vm10, %v625_v52, %v626_v38 }
 0x2f8   : > { %7179 = vst [vmem:[#allocation16_spill] sm:$0xff] %v4638_v29  ;;  %1515 = vrot.lane.b32.xlu1 %v1503_v17, %s3475_s19  ;;  %v814_v30 = vsel %vm444_vm7, %v813_v13, %v7185_v31  ;;  %v7189_v29 = vld [vmem:[#allocation33_spill] sm:$0xff]  ;;  %v1584_v63 = vsel %vm454_vm11, %v1583_v5, %v1582_v60  ;;  %v999_v31 = vsel %vm449_vm9, %v998_v34, %v997_v18  ;;  %v7197_v18 = vld [vmem:[#allocation34_spill] sm:$0xff] }
 0x2f9   : > { %1521 = vrot.lane.b32.xlu0 %v4600_v46, %s3475_s19  ;;  %v638_v46 = vsel %vm454_vm11, %v637_v16, %v636_v39  ;;  %v1168_v1 = vrot.slane %v7189_v29, 7  ;;  %v810_v39 = vrot.slane %v7192_v25, 5  ;;  %v7193_v29 = vld [vmem:[#allocation36_spill] sm:$0xff]  ;;  %v815_v35 = vsel %vm446_vm8, %v813_v13, %v814_v30  ;;  %v7198_v25 = vld [vmem:[#allocation45_spill] sm:$0xff] }
 0x2fa   : > { %v4660_v17 = vpop.permute.xlu1 %1135  ;;  %v639_v53 = vsel %vm456_vm12, %v637_v16, %v638_v46  ;;  %v817_v60 = vsel %vm449_vm9, %v816_v15, %v815_v35  ;;  %v1001_v11 = vrot.slane %v7197_v18, 5  ;;  %v988_v16 = vsel %vm446_vm8, %v986_v58, %v987_v43  ;;  %v7202_v18 = vld [vmem:[#allocation47_spill] sm:$0xff] }
 0x2fb   : > { %v4662_v36 = vpop.permute.xlu0 %1153  ;;  %v811_v13 = vsel %vm454_vm11, %v810_v39, %v809_v21  ;;  %v1585_v35 = vsel %vm456_vm12, %v1583_v5, %v1584_v63  ;;  %v818_v37 = vsel %vm451_vm10, %v816_v15, %v817_v60  ;;  %v7203_v63 = vld [vmem:[#allocation23_spill] sm:$0xff] }
 0x2fc   : > { %7184 = vst [vmem:[#allocation12_spill] sm:$0xff] %v4662_v36  ;;  %v7190_v36 = vld [vmem:[#allocation48_spill] sm:$0xff]  ;;  %1519 = vrot.lane.b32.xlu1 %v1505_v61, %s3475_s19  ;;  %v1171_v61 = vrot.slane %v7194_v48, 6  ;;  %v1000_v48 = vsel %vm451_vm10, %v998_v34, %v999_v31  ;;  %v812_v34 = vsel %vm456_vm12, %v810_v39, %v811_v13  ;;  %v7200_v31 = vld [vmem:[#allocation37_spill] sm:$0xff]  ;;  %v819_v15 = vrot.slane %v7203_v63, 5  ;;  %v7204_v60 = vld [vmem:[#allocation35_spill] sm:$0xff] }
 0x2fd   : > { %v1359_v7 = vrot.slane %v7190_v36, 7  ;;  %1610 = vrot.lane.b32.xlu0 %v1558_v2, %s3483_s27  ;;  %v1169_v36 = vsel %vm444_vm7, %v1168_v1, %v7193_v29  ;;  %v1177_v58 = vrot.slane %v7200_v31, 7  ;;  %v1002_v5 = vsel %vm454_vm11, %v1001_v11, %v1000_v48 }
 0x2fe   : > { %v4686_v33 = vpop.permute.xlu1 %1143  ;;  %v1170_v30 = vsel %vm446_vm8, %v1168_v1, %v1169_v36  ;;  %v7201_v36 = vld [vmem:[#allocation44_spill] sm:$0xff]  ;;  %v1174_v39 = vrot.slane %v7204_v60, 5  ;;  %v7210_v60 = vld [vmem:[#allocation50_spill] sm:$0xff] }
 0x2ff   : > { %v4688_v2 = vpop.permute.xlu0 %1157  ;;  %v1360_v29 = vsel %vm444_vm7, %v1359_v7, %v7198_v25  ;;  %v1172_v52 = vsel %vm449_vm9, %v1171_v61, %v1170_v30  ;;  %v1350_v43 = vrot.slane %v7201_v36, 7  ;;  %v1362_v25 = vrot.slane %v7202_v18, 6  ;;  %v7206_v30 = vld [vmem:[#allocation42_spill] sm:$0xff]  ;;  %v7209_v18 = vld [vmem:[#allocation41_spill] sm:$0xff] }
 0x300   : > { %7195 = vst [vmem:[#allocation17_spill] sm:$0xff] %v4688_v2  ;;  %1604 = vrot.lane.b32.xlu1 %v1531_v6, %s3483_s27  ;;  %v629_v6 = vsel %vm454_vm11, %v628_v62, %v627_v9  ;;  %v1361_v1 = vsel %vm446_vm8, %v1359_v7, %v1360_v29  ;;  %v1173_v7 = vsel %vm451_vm10, %v1171_v61, %v1172_v52  ;;  %v7205_v29 = vld [vmem:[#allocation40_spill] sm:$0xff]  ;;  %v7208_v61 = vld [vmem:[#allocation30_spill] sm:$0xff] }
 0x301   : > { %698 = vrot.lane.b32.xlu0 %v639_v53, %s3478_s22  ;;  %v7199_v53 = vld [vmem:[#allocation27_spill] sm:$0xff]  ;;  %v1178_v13 = vsel %vm444_vm7, %v1177_v58, %v7205_v29  ;;  %v1363_v31 = vsel %vm449_vm9, %v1362_v25, %v1361_v1  ;;  %v630_v48 = vsel %vm456_vm12, %v628_v62, %v629_v6  ;;  %v1003_v36 = vsel %vm456_vm12, %v1001_v11, %v1002_v5  ;;  %v7232_v2 = vld [vmem:[#allocation60_spill] sm:$0xff] }
 0x302   : > { %v4706_v38 = vpop.permute.xlu1 %1147  ;;  %v989_v21 = vrot.slane %v7199_v53, 6  ;;  %v1180_v53 = vrot.slane %v7206_v30, 6  ;;  %v992_v52 = vrot.slane %v7208_v61, 5  ;;  %v1351_v63 = vsel %vm444_vm7, %v1350_v43, %v7209_v18  ;;  %v7213_v18 = vld [vmem:[#allocation43_spill] sm:$0xff] }
 0x303   : > { %v4708_v46 = vpop.permute.xlu0 %1305  ;;  %v1365_v29 = vrot.slane %v7210_v60, 5  ;;  %v1175_v1 = vsel %vm454_vm11, %v1174_v39, %v1173_v7  ;;  %v1179_v30 = vsel %vm446_vm8, %v1177_v58, %v1178_v13  ;;  %v1364_v11 = vsel %vm451_vm10, %v1362_v25, %v1363_v31 }
 0x304   : > { %1616 = vrot.lane.b32.xlu1 %v1585_v35, %s3483_s27  ;;  %v990_v9 = vsel %vm449_vm9, %v989_v21, %v988_v16  ;;  %v820_v16 = vsel %vm454_vm11, %v819_v15, %v818_v37  ;;  %v1181_v6 = vsel %vm449_vm9, %v1180_v53, %v1179_v30  ;;  %v1352_v61 = vsel %vm446_vm8, %v1350_v43, %v1351_v63  ;;  %v7216_v63 = vld [vmem:[#allocation46_spill] sm:$0xff] }
 0x305   : > { %878 = vrot.lane.b32.xlu0 %v812_v34, %s3481_s25  ;;  %v991_v62 = vsel %vm451_vm10, %v989_v21, %v990_v9  ;;  %v1353_v7 = vrot.slane %v7213_v18, 6  ;;  %v1366_v58 = vsel %vm454_vm11, %v1365_v29, %v1364_v11  ;;  %v1182_v25 = vsel %vm451_vm10, %v1180_v53, %v1181_v6  ;;  %v7214_v9 = vld [vmem:[#allocation39_spill] sm:$0xff] }
 0x306   : > { %v4730_v35 = vpop.permute.xlu1 %1151  ;;  %v993_v21 = vsel %vm454_vm11, %v992_v52, %v991_v62  ;;  %v1183_v13 = vrot.slane %v7214_v9, 5  ;;  %v1356_v60 = vrot.slane %v7216_v63, 5  ;;  %v7226_v63 = vld [vmem:[#allocation56_spill] sm:$0xff] }
 0x307   : > { %7207 = vst [vmem:[#allocation32_spill] sm:$0xff] %v4730_v35  ;;  %v4732_v34 = vpop.permute.xlu0 %1309  ;;  %v1354_v43 = vsel %vm449_vm9, %v1353_v7, %v1352_v61  ;;  %v7241_v35 = vld [vmem:[#allocation65_spill] sm:$0xff] }
 0x308   : > { %696 = vrot.lane.b32.xlu1 %v630_v48, %s3478_s22  ;;  %v821_v48 = vsel %vm456_vm12, %v819_v15, %v820_v16  ;;  %v1367_v16 = vsel %vm456_vm12, %v1365_v29, %v1366_v58  ;;  %v1184_v53 = vsel %vm454_vm11, %v1183_v13, %v1182_v25 }
 0x309   : > { %1062 = vrot.lane.b32.xlu0 %v1003_v36, %s3479_s23  ;;  %v1176_v36 = vsel %vm456_vm12, %v1174_v39, %v1175_v1  ;;  %v994_v39 = vsel %vm456_vm12, %v992_v52, %v993_v21  ;;  %v1355_v1 = vsel %vm451_vm10, %v1353_v7, %v1354_v43  ;;  %v1185_v11 = vsel %vm456_vm12, %v1183_v13, %v1184_v53 }
 0x30a   : > { %v4748_v37 = vpop.permute.xlu1 %1155  ;;  %v1357_v52 = vsel %vm454_vm11, %v1356_v60, %v1355_v1 }
 0x30b   : > { %7211 = vst [vmem:[#allocation20_spill] sm:$0xff] %v4748_v37  ;;  %v4750_v5 = vpop.permute.xlu0 %1313  ;;  %v1358_v61 = vsel %vm456_vm12, %v1356_v60, %v1357_v52  ;;  %v649_v60 = vrot.slane %v7226_v63, 7  ;;  %v7238_v37 = vld [vmem:[#allocation71_spill] sm:$0xff] }
 0x30c   : > { %7212 = vst [vmem:[#allocation22_spill] sm:$0xff] %v4750_v5  ;;  %880 = vrot.lane.b32.xlu1 %v821_v48, %s3481_s25 }
 0x30d   : > { %1242 = vrot.lane.b32.xlu0 %v1176_v36, %s3482_s26 }
 0x30e   : > { %v4763_v31 = vpop.permute.xlu1 %1307 }
 0x30f   : > { %v4765_v15 = vpop.permute.xlu0 %1317 }
 0x310   : > { %7215 = vst [vmem:[#allocation18_spill] sm:$0xff] %v4765_v15  ;;  %1060 = vrot.lane.b32.xlu1 %v994_v39, %s3479_s23 }
 0x311   : > { %1426 = vrot.lane.b32.xlu0 %v1367_v16, %s3480_s24 }
 0x312   : > { %v4774_v30 = vpop.permute.xlu1 %1311 }
 0x313   : > { %7217 = vst [vmem:[#allocation13_spill] sm:$0xff] %v4774_v30  ;;  %v4776_v62 = vpop.permute.xlu0 %1325 }
 0x314   : > { %7218 = vst [vmem:[#allocation29_spill] sm:$0xff] %v4776_v62  ;;  %1244 = vrot.lane.b32.xlu1 %v1185_v11, %s3482_s26  ;;  %v7227_v11 = vld [vmem:[#allocation53_spill] sm:$0xff]  ;;  %v658_v62 = vrot.slane %v7232_v2, 7 }
 0x315   : > { %v650_v52 = vsel %vm444_vm7, %v649_v60, %v7227_v11  ;;  %v7233_v11 = vld [vmem:[#allocation68_spill] sm:$0xff] }
 0x316   : > { %v4781_v29 = vpop.permute.xlu1 %1315  ;;  %v651_v63 = vsel %vm446_vm8, %v649_v60, %v650_v52  ;;  %v685_v15 = vrot.slane %v7233_v11, 7  ;;  %v7235_v52 = vld [vmem:[#allocation58_spill] sm:$0xff]  ;;  %v7237_v11 = vld [vmem:[#allocation63_spill] sm:$0xff] }
 0x317   : > { %7219 = vst [vmem:[#allocation21_spill] sm:$0xff] %v4781_v29  ;;  %v4783_v6 = vpop.permute.xlu0 %1329 }
 0x318   : > { %7220 = vst [vmem:[#allocation24_spill] sm:$0xff] %v4783_v6  ;;  %1424 = vrot.lane.b32.xlu1 %v1358_v61, %s3480_s24  ;;  %v7231_v6 = vld [vmem:[#allocation54_spill] sm:$0xff] }
 0x31a   : > { %v4787_v48 = vpop.permute.xlu1 %1319 }
 0x31b   : > { %7221 = vst [vmem:[#allocation28_spill] sm:$0xff] %v4787_v48  ;;  %v4789_v36 = vpop.permute.xlu0 %1333  ;;  %v7230_v48 = vld [vmem:[#allocation52_spill] sm:$0xff] }
 0x31e   : > { %v4791_v18 = vpop.permute.xlu1 %1327 }
 0x31f   : > { %7222 = vst [vmem:[#allocation26_spill] sm:$0xff] %v4791_v18  ;;  %v4793_v7 = vpop.permute.xlu0 %1337 }
 0x320   : > { %7223 = vst [vmem:[#allocation31_spill] sm:$0xff] %v4793_v7 }
 0x322   : > { %v4795_v21 = vpop.permute.xlu1 %1331 }
 0x323   : > { %7224 = vst [vmem:[#allocation33_spill] sm:$0xff] %v4795_v21  ;;  %v695_v58 = vpop.permute.xlu0 %694 }
 0x324   : > { %722 = vst.msk [vmem:[#allocation3] sm:$0xf] %vm721_vm14, %v695_v58 }
 0x326   : > { %v4798_v25 = vpop.permute.xlu1 %1335 }
 0x327   : > { %v1059_v9 = vpop.permute.xlu0 %1058 }
 0x32a   : > { %v4800_v13 = vpop.permute.xlu1 %1339 }
 0x32b   : > { %7225 = vst [vmem:[#allocation48_spill] sm:$0xff] %v4800_v13  ;;  %v1423_v43 = vpop.permute.xlu0 %1422  ;;  %v686_v13 = vsel %vm444_vm7, %v685_v15, %v7237_v11  ;;  %v7240_v11 = vld [vmem:[#allocation57_spill] sm:$0xff] }
 0x32e   : > { %v877_v39 = vpop.permute.xlu1 %876 }
 0x32f   : > { %v707_v16 = vpop.permute.xlu0 %706  ;;  %904 = vst.msk [vmem:[#allocation3] sm:$0xf] %vm903_vm15, %v877_v39  ;;  %v7228_v39 = vld [vmem:[#allocation49_spill] sm:$0xff] }
 0x330   : > { %728 = vst.msk [vmem:[#allocation3 + $0x30] sm:$0xf] %vm721_vm14, %v707_v16  ;;  %v1532_v21 = vrot.slane %v7228_v39, 7 }
 0x331   : > { %1086 = vst.msk [vmem:[#allocation3] sm:$0xf] %vm1085_vm0, %v1059_v9  ;;  %v7229_v9 = vld [vmem:[#allocation51_spill] sm:$0xff] }
 0x332   : > { %v1241_v53 = vpop.permute.xlu1 %1240  ;;  %v1533_v16 = vsel %vm444_vm7, %v1532_v21, %v7229_v9  ;;  %v7236_v9 = vld [vmem:[#allocation55_spill] sm:$0xff] }
 0x333   : > { %v883_v1 = vpop.permute.xlu0 %882  ;;  %1268 = vst.msk [vmem:[#allocation3] sm:$0xf] %vm1267_vm1, %v1241_v53  ;;  %v1535_v53 = vrot.slane %v7230_v48, 6  ;;  %v1534_v60 = vsel %vm446_vm8, %v1532_v21, %v1533_v16  ;;  %v659_v2 = vsel %vm444_vm7, %v658_v62, %v7236_v9 }
 0x334   : > { %1450 = vst.msk [vmem:[#allocation3] sm:$0xf] %vm1449_vm2, %v1423_v43  ;;  %v652_v43 = vrot.slane %v7231_v6, 6  ;;  %v655_v6 = vrot.slane %v7235_v52, 5  ;;  %v687_v52 = vsel %vm446_vm8, %v685_v15, %v686_v13  ;;  %v7243_v13 = vld [vmem:[#allocation62_spill] sm:$0xff] }
 0x335   : > { %v1536_v48 = vsel %vm449_vm9, %v1535_v53, %v1534_v60  ;;  %v660_v60 = vsel %vm446_vm8, %v658_v62, %v659_v2  ;;  %v858_v62 = vrot.slane %v4379_v49, 7  ;;  %v1013_v49 = vrot.slane %v4524_v42, 7  ;;  %v7245_v42 = vld [vmem:[#allocation66_spill] sm:$0xff] }
 0x336   : > { %v701_v61 = vpop.permute.xlu1 %700  ;;  %v1537_v16 = vsel %vm451_vm10, %v1535_v53, %v1536_v48  ;;  %v664_v48 = vrot.slane %v7243_v13, 5 }
 0x337   : > { %v1071_v58 = vpop.permute.xlu0 %1070  ;;  %725 = vst.msk [vmem:[#allocation3 + $0x18] sm:$0xf] %vm721_vm14, %v701_v61  ;;  %v653_v61 = vsel %vm449_vm9, %v652_v43, %v651_v63  ;;  %v840_v63 = vrot.slane %v7238_v37, 7  ;;  %v661_v37 = vrot.slane %v7240_v11, 6  ;;  %v859_v2 = vsel %vm444_vm7, %v858_v62, %v4447_v59 }
 0x338   : > { %907 = vst.msk [vmem:[#allocation3 + $0x18] sm:$0xf] %vm903_vm15, %v883_v1  ;;  %v7234_v1 = vld [vmem:[#allocation64_spill] sm:$0xff] }
 0x339   : > { %v676_v39 = vrot.slane %v7234_v1, 7  ;;  %v7239_v1 = vld [vmem:[#allocation59_spill] sm:$0xff]  ;;  %v841_v9 = vsel %vm444_vm7, %v840_v63, %v4399_v23  ;;  %v662_v23 = vsel %vm449_vm9, %v661_v37, %v660_v60 }
 0x33a   : > { %v889_v18 = vpop.permute.xlu1 %888 }
 0x33b   : > { %v1247_v5 = vpop.permute.xlu0 %1246  ;;  %910 = vst.msk [vmem:[#allocation3 + $0x30] sm:$0xf] %vm903_vm15, %v889_v18  ;;  %v677_v21 = vsel %vm444_vm7, %v676_v39, %v7239_v1 }
 0x33c   : > { %1092 = vst.msk [vmem:[#allocation3 + $0x30] sm:$0xf] %vm1085_vm0, %v1071_v58  ;;  %v654_v58 = vsel %vm451_vm10, %v652_v43, %v653_v61  ;;  %v843_v43 = vrot.slane %v4423_v12, 6  ;;  %v678_v53 = vsel %vm446_vm8, %v676_v39, %v677_v21  ;;  %v842_v12 = vsel %vm446_vm8, %v840_v63, %v841_v9  ;;  %v7244_v21 = vld [vmem:[#allocation70_spill] sm:$0xff] }
 0x33d   : > { %v656_v1 = vsel %vm454_vm11, %v655_v6, %v654_v58  ;;  %v861_v39 = vrot.slane %v4472_v54, 6  ;;  %v691_v60 = vrot.slane %v7244_v21, 5  ;;  %v663_v54 = vsel %vm451_vm10, %v661_v37, %v662_v23  ;;  %v7248_v23 = vld [vmem:[#allocation73_spill] sm:$0xff] }
 0x33e   : > { %v1065_v29 = vpop.permute.xlu1 %1064  ;;  %v844_v11 = vsel %vm449_vm9, %v843_v43, %v842_v12 }
 0x33f   : > { %v1435_v18 = vpop.permute.xlu0 %1434  ;;  %1089 = vst.msk [vmem:[#allocation3 + $0x18] sm:$0xf] %vm1085_vm0, %v1065_v29  ;;  %v688_v29 = vrot.slane %v7241_v35, 6  ;;  %v845_v12 = vsel %vm451_vm10, %v843_v43, %v844_v11  ;;  %v834_v43 = vrot.slane %v4377_v44, 6  ;;  %v1016_v44 = vrot.slane %v4494_v19, 6 }
 0x340   : > { %1271 = vst.msk [vmem:[#allocation3 + $0x18] sm:$0xf] %vm1267_vm1, %v1247_v5  ;;  %v7242_v5 = vld [vmem:[#allocation61_spill] sm:$0xff] }
 0x341   : > { %v679_v30 = vrot.slane %v7242_v5, 6  ;;  %v689_v35 = vsel %vm449_vm9, %v688_v29, %v687_v52  ;;  %v860_v5 = vsel %vm446_vm8, %v858_v62, %v859_v2 }
 0x342   : > { %v1253_v61 = vpop.permute.xlu1 %1252  ;;  %v690_v59 = vsel %vm451_vm10, %v688_v29, %v689_v35  ;;  %v7247_v29 = vld [vmem:[#allocation72_spill] sm:$0xff]  ;;  %v846_v35 = vrot.slane %v7248_v23, 5 }
 0x343   : > { %v1474_v7 = vpop.permute.xlu0 %1473  ;;  %1274 = vst.msk [vmem:[#allocation3 + $0x30] sm:$0xf] %vm1267_vm1, %v1253_v61  ;;  %v692_v62 = vsel %vm454_vm11, %v691_v60, %v690_v59 }
 0x344   : > { %v1538_v15 = vrot.slane %v1474_v7, 5  ;;  %1456 = vst.msk [vmem:[#allocation3 + $0x30] sm:$0xf] %vm1449_vm2, %v1435_v18  ;;  %v680_v7 = vsel %vm449_vm9, %v679_v30, %v678_v53  ;;  %v682_v18 = vrot.slane %v7245_v42, 5  ;;  %v657_v53 = vsel %vm456_vm12, %v655_v6, %v656_v1 }
 0x345   : > { %v681_v21 = vsel %vm451_vm10, %v679_v30, %v680_v7  ;;  %v665_v6 = vsel %vm454_vm11, %v664_v48, %v663_v54  ;;  %v867_v1 = vrot.slane %v4425_v32, 7  ;;  %v847_v11 = vsel %vm454_vm11, %v846_v35, %v845_v12 }
 0x346   : > { %v1539_v58 = vsel %vm454_vm11, %v1538_v15, %v1537_v16  ;;  %v1429_v52 = vpop.permute.xlu1 %1428  ;;  %v7246_v16 = vld [vmem:[#allocation67_spill] sm:$0xff]  ;;  %v683_v59 = vsel %vm454_vm11, %v682_v18, %v681_v21  ;;  %v870_v32 = vrot.slane %v4511_v57, 6  ;;  %v864_v42 = vrot.slane %v4401_v40, 5 }
 0x347   : > { %v1478_v61 = vpop.permute.xlu0 %1477  ;;  %v1540_v63 = vsel %vm456_vm12, %v1538_v15, %v1539_v58  ;;  %1453 = vst.msk [vmem:[#allocation3 + $0x18] sm:$0xf] %vm1449_vm2, %v1429_v52  ;;  %v831_v9 = vrot.slane %v7246_v16, 7  ;;  %v862_v15 = vsel %vm449_vm9, %v861_v39, %v860_v5  ;;  %v1014_v58 = vsel %vm444_vm7, %v1013_v49, %v4474_v51 }
 0x348   : > { %1606 = vrot.lane.b32.xlu0 %v1540_v63, %s3483_s27  ;;  %v1049_v51 = vrot.slane %v4578_v27, 7  ;;  %v1541_v30 = vrot.slane %v1478_v61, 7  ;;  %v863_v2 = vsel %vm451_vm10, %v861_v39, %v862_v15  ;;  %v1015_v7 = vsel %vm446_vm8, %v1013_v49, %v1014_v58 }
 0x349   : > { %v832_v37 = vsel %vm444_vm7, %v831_v9, %v7247_v29  ;;  %v868_v54 = vsel %vm444_vm7, %v867_v1, %v4492_v22  ;;  %v1022_v39 = vrot.slane %v4544_v14, 7  ;;  %v693_v5 = vsel %vm456_vm12, %v691_v60, %v692_v62 }
 0x34a   : > { %v1476_v52 = vpop.permute.xlu1 %1475  ;;  %v833_v61 = vsel %vm446_vm8, %v831_v9, %v832_v37  ;;  %v1017_v22 = vsel %vm449_vm9, %v1016_v44, %v1015_v7  ;;  %v1050_v19 = vsel %vm444_vm7, %v1049_v51, %v4554_v24  ;;  %v869_v9 = vsel %vm446_vm8, %v867_v1, %v868_v54  ;;  %v7249_v1 = vld [vmem:[#allocation69_spill] sm:$0xff] }
 0x34b   : > { %v1482_v63 = vpop.permute.xlu0 %1481  ;;  %v1542_v27 = vsel %vm444_vm7, %v1541_v30, %v1476_v52  ;;  %v848_v14 = vsel %vm456_vm12, %v846_v35, %v847_v11  ;;  %v865_v12 = vsel %vm454_vm11, %v864_v42, %v863_v2  ;;  %v871_v60 = vsel %vm449_vm9, %v870_v32, %v869_v9 }
 0x34c   : > { %702 = vrot.lane.b32.xlu0 %v657_v53, %s3478_s22  ;;  %v835_v53 = vsel %vm449_vm9, %v834_v43, %v833_v61  ;;  %v1543_v40 = vsel %vm446_vm8, %v1541_v30, %v1542_v27  ;;  %v1019_v15 = vrot.slane %v4536_v45, 5  ;;  %v1547_v58 = vrot.slane %v1482_v63, 5 }
 0x34d   : > { %v1023_v24 = vsel %vm444_vm7, %v1022_v39, %v4513_v0  ;;  %v1051_v29 = vsel %vm446_vm8, %v1049_v51, %v1050_v19  ;;  %v1018_v35 = vsel %vm451_vm10, %v1016_v44, %v1017_v22  ;;  %v1040_v62 = vrot.slane %v4560_v55, 7 }
 0x34e   : > { %v1480_v49 = vpop.permute.xlu1 %1479  ;;  %v1052_v45 = vrot.slane %v4562_v47, 6  ;;  %v1204_v63 = vrot.slane %v4587_v28, 7  ;;  %v837_v51 = vrot.slane %v7249_v1, 5  ;;  %v666_v2 = vsel %vm456_vm12, %v664_v48, %v665_v6 }
 0x34f   : > { %v4900_v16 = vpop.permute.xlu0 %1489  ;;  %v1544_v57 = vrot.slane %v1480_v49, 6  ;;  %v684_v7 = vsel %vm456_vm12, %v682_v18, %v683_v59  ;;  %v836_v55 = vsel %vm451_vm10, %v834_v43, %v835_v53  ;;  %v1207_v11 = vrot.slane %v4660_v17, 6 }
 0x350   : > { %710 = vrot.lane.b32.xlu0 %v693_v5, %s3478_s22  ;;  %v1053_v47 = vsel %vm449_vm9, %v1052_v45, %v1051_v29  ;;  %v1205_v28 = vsel %vm444_vm7, %v1204_v63, %v4636_v50  ;;  %v872_v54 = vsel %vm451_vm10, %v870_v32, %v871_v60  ;;  %v1024_v44 = vsel %vm446_vm8, %v1022_v39, %v1023_v24 }
 0x351   : > { %v1545_v21 = vsel %vm449_vm9, %v1544_v57, %v1543_v40  ;;  %v866_v18 = vsel %vm456_vm12, %v864_v42, %v865_v12  ;;  %v1020_v6 = vsel %vm454_vm11, %v1019_v15, %v1018_v35  ;;  %v1041_v43 = vsel %vm444_vm7, %v1040_v62, %v4538_v10 }
 0x352   : > { %v1546_v37 = vsel %vm451_vm10, %v1544_v57, %v1545_v21  ;;  %v4919_v23 = vpop.permute.xlu1 %1487  ;;  %v1055_v50 = vrot.slane %v4585_v3, 5  ;;  %v1222_v17 = vrot.slane %v4616_v56, 7  ;;  %v1377_v59 = vrot.slane %v4763_v31, 7 }
 0x353   : > { %v4921_v52 = vpop.permute.xlu0 %1493  ;;  %v1548_v0 = vsel %vm454_vm11, %v1547_v58, %v1546_v37  ;;  %v873_v32 = vrot.slane %v4449_v4, 5  ;;  %v1025_v27 = vrot.slane %v4526_v26, 6  ;;  %v1206_v61 = vsel %vm446_vm8, %v1204_v63, %v1205_v28 }
 0x354   : > { %886 = vrot.lane.b32.xlu0 %v848_v14, %s3481_s25  ;;  %v1549_v30 = vsel %vm456_vm12, %v1547_v58, %v1548_v0  ;;  %v1054_v42 = vsel %vm451_vm10, %v1052_v45, %v1053_v47  ;;  %v1208_v39 = vsel %vm449_vm9, %v1207_v11, %v1206_v61  ;;  %v1223_v10 = vsel %vm444_vm7, %v1222_v17, %v4686_v33  ;;  %v7253_v0 = vld [vmem:[#allocation74_spill] sm:$0xff] }
 0x355   : > { %1608 = vrot.lane.b32.xlu1 %v1549_v30, %s3483_s27  ;;  %v1225_v3 = vrot.slane %v4706_v38, 6  ;;  %v838_v56 = vsel %vm454_vm11, %v837_v51, %v836_v55  ;;  %v1026_v31 = vsel %vm449_vm9, %v1025_v27, %v1024_v44  ;;  %v1042_v4 = vsel %vm446_vm8, %v1040_v62, %v1041_v43 }
 0x356   : > { %v4943_v13 = vpop.permute.xlu1 %1491  ;;  %v1021_v5 = vsel %vm456_vm12, %v1019_v15, %v1020_v6  ;;  %v874_v53 = vsel %vm454_vm11, %v873_v32, %v872_v54  ;;  %v1043_v22 = vrot.slane %v4546_v41, 6  ;;  %v1378_v33 = vsel %vm444_vm7, %v1377_v59, %v4708_v46  ;;  %v7250_v41 = vld [vmem:[#allocation77_spill] sm:$0xff]  ;;  %v7251_v15 = vld [vmem:[#allocation76_spill] sm:$0xff] }
 0x357   : > { %v4945_v48 = vpop.permute.xlu0 %1497  ;;  %v1413_v38 = vrot.slane %v4798_v25, 7  ;;  %v1056_v19 = vsel %vm454_vm11, %v1055_v50, %v1054_v42  ;;  %v1028_v57 = vrot.slane %v4552_v20, 5  ;;  %v1195_v9 = vrot.slane %v4573_v8, 7  ;;  %v7252_v20 = vld [vmem:[#allocation14_spill] sm:$0xff]  ;;  %v7258_v42 = vld [vmem:[#allocation32_spill] sm:$0xff] }
 0x358   : > { %890 = vrot.lane.b32.xlu0 %v866_v18, %s3481_s25  ;;  %v1209_v40 = vsel %vm451_vm10, %v1207_v11, %v1208_v39  ;;  %v1224_v14 = vsel %vm446_vm8, %v1222_v17, %v1223_v10  ;;  %v1044_v12 = vsel %vm449_vm9, %v1043_v22, %v1042_v4  ;;  %v1210_v60 = vrot.slane %v7250_v41, 5  ;;  %v7255_v11 = vld [vmem:[#allocation12_spill] sm:$0xff] }
 0x359   : > { %704 = vrot.lane.b32.xlu1 %v666_v2, %s3478_s22  ;;  %v1226_v46 = vsel %vm449_vm9, %v1225_v3, %v1224_v14  ;;  %v1027_v25 = vsel %vm451_vm10, %v1025_v27, %v1026_v31  ;;  %v1196_v58 = vsel %vm444_vm7, %v1195_v9, %v7251_v15  ;;  %v1198_v21 = vrot.slane %v7252_v20, 6  ;;  %v7259_v10 = vld [vmem:[#allocation20_spill] sm:$0xff]  ;;  %v7263_v15 = vld [vmem:[#allocation22_spill] sm:$0xff] }
 0x35a   : > { %v1496_v26 = vpop.permute.xlu1 %1495  ;;  %v1379_v8 = vsel %vm446_vm8, %v1377_v59, %v1378_v33  ;;  %v1057_v37 = vsel %vm456_vm12, %v1055_v50, %v1056_v19  ;;  %v1380_v35 = vrot.slane %v4732_v34, 6  ;;  %v1414_v62 = vsel %vm444_vm7, %v1413_v38, %v4789_v36  ;;  %v7254_v34 = vld [vmem:[#allocation16_spill] sm:$0xff]  ;;  %v7256_v50 = vld [vmem:[#allocation13_spill] sm:$0xff]  ;;  %v7257_v59 = vld [vmem:[#allocation31_spill] sm:$0xff] }
 0x35b   : > { %v4967_v49 = vpop.permute.xlu0 %1501  ;;  %v839_v45 = vsel %vm456_vm12, %v837_v51, %v838_v56  ;;  %v1211_v63 = vsel %vm454_vm11, %v1210_v60, %v1209_v40  ;;  %v1046_v1 = vrot.slane %v7253_v0, 5  ;;  %v1227_v30 = vsel %vm451_vm10, %v1225_v3, %v1226_v46  ;;  %v7260_v56 = vld [vmem:[#allocation21_spill] sm:$0xff]  ;;  %v7261_v33 = vld [vmem:[#allocation75_spill] sm:$0xff] }
 0x35c   : > { %1066 = vrot.lane.b32.xlu0 %v1021_v5, %s3479_s23  ;;  %v875_v2 = vsel %vm456_vm12, %v873_v32, %v874_v53  ;;  %v1197_v55 = vsel %vm446_vm8, %v1195_v9, %v1196_v58  ;;  %v1228_v47 = vrot.slane %v7254_v34, 5  ;;  %v1381_v36 = vsel %vm449_vm9, %v1380_v35, %v1379_v8  ;;  %v7264_v8 = vld [vmem:[#allocation26_spill] sm:$0xff] }
 0x35d   : > { %708 = vrot.lane.b32.xlu1 %v684_v7, %s3478_s22  ;;  %v1029_v7 = vsel %vm454_vm11, %v1028_v57, %v1027_v25  ;;  %v1045_v51 = vsel %vm451_vm10, %v1043_v22, %v1044_v12  ;;  %v1199_v28 = vsel %vm449_vm9, %v1198_v21, %v1197_v55  ;;  %v1231_v54 = vrot.slane %v7255_v11, 7 }
 0x35e   : > { %v4990_v24 = vpop.permute.xlu1 %1499  ;;  %v1415_v44 = vsel %vm446_vm8, %v1413_v38, %v1414_v62  ;;  %v1212_v43 = vsel %vm456_vm12, %v1210_v60, %v1211_v63  ;;  %v1383_v17 = vrot.slane %v7256_v50, 5  ;;  %v1416_v32 = vrot.slane %v7257_v59, 6 }
 0x35f   : > { %v4992_v29 = vpop.permute.xlu0 %1509  ;;  %v1568_v27 = vrot.slane %v4945_v48, 7  ;;  %v1229_v61 = vsel %vm454_vm11, %v1228_v47, %v1227_v30  ;;  %v1232_v39 = vsel %vm444_vm7, %v1231_v54, %v7258_v42  ;;  %v1234_v3 = vrot.slane %v7259_v10, 6 }
 0x360   : > { %1074 = vrot.lane.b32.xlu0 %v1057_v37, %s3479_s23  ;;  %v1386_v31 = vrot.slane %v7260_v56, 7  ;;  %v1382_v4 = vsel %vm451_vm10, %v1380_v35, %v1381_v36  ;;  %v1417_v5 = vsel %vm449_vm9, %v1416_v32, %v1415_v44  ;;  %v1571_v22 = vrot.slane %v4990_v24, 6  ;;  %v7265_v36 = vld [vmem:[#allocation18_spill] sm:$0xff]  ;;  %v7267_v44 = vld [vmem:[#allocation17_spill] sm:$0xff] }
 0x361   : > { %884 = vrot.lane.b32.xlu1 %v839_v45, %s3481_s25  ;;  %v1569_v53 = vsel %vm444_vm7, %v1568_v27, %v1496_v26  ;;  %v1030_v48 = vsel %vm456_vm12, %v1028_v57, %v1029_v7  ;;  %v1201_v38 = vrot.slane %v7261_v33, 5  ;;  %v1200_v19 = vsel %vm451_vm10, %v1198_v21, %v1199_v28  ;;  %v7262_v26 = vld [vmem:[#allocation48_spill] sm:$0xff]  ;;  %v7266_v28 = vld [vmem:[#allocation29_spill] sm:$0xff] }
 0x362   : > { %v1508_v18 = vpop.permute.xlu1 %1507  ;;  %v1230_v14 = vsel %vm456_vm12, %v1228_v47, %v1229_v61  ;;  %v1047_v12 = vsel %vm454_vm11, %v1046_v1, %v1045_v51  ;;  %v1233_v41 = vsel %vm446_vm8, %v1231_v54, %v1232_v39  ;;  %v1419_v60 = vrot.slane %v7262_v26, 5  ;;  %v7268_v39 = vld [vmem:[#allocation24_spill] sm:$0xff] }
 0x363   : > { %v5013_v6 = vpop.permute.xlu0 %1513  ;;  %v1586_v46 = vrot.slane %v4992_v29, 7  ;;  %v1384_v57 = vsel %vm454_vm11, %v1383_v17, %v1382_v4  ;;  %v1235_v25 = vsel %vm449_vm9, %v1234_v3, %v1233_v41  ;;  %v1387_v58 = vsel %vm444_vm7, %v1386_v31, %v7263_v15 }
 0x364   : > { %1250 = vrot.lane.b32.xlu0 %v1212_v43, %s3482_s26  ;;  %v1570_v20 = vsel %vm446_vm8, %v1568_v27, %v1569_v53  ;;  %v1418_v21 = vsel %vm451_vm10, %v1416_v32, %v1417_v5  ;;  %v1404_v24 = vrot.slane %v7264_v8, 7  ;;  %v1385_v63 = vsel %vm456_vm12, %v1383_v17, %v1384_v57 }
 0x365   : > { %892 = vrot.lane.b32.xlu1 %v875_v2, %s3481_s25  ;;  %v1572_v37 = vsel %vm449_vm9, %v1571_v22, %v1570_v20  ;;  %v1587_v35 = vsel %vm444_vm7, %v1586_v46, %v1508_v18  ;;  %v1048_v0 = vsel %vm456_vm12, %v1046_v1, %v1047_v12  ;;  %v1420_v30 = vsel %vm454_vm11, %v1419_v60, %v1418_v21 }
 0x366   : > { %v1512_v9 = vpop.permute.xlu1 %1511  ;;  %v1202_v2 = vsel %vm454_vm11, %v1201_v38, %v1200_v19  ;;  %v1236_v7 = vsel %vm451_vm10, %v1234_v3, %v1235_v25  ;;  %v1388_v55 = vsel %vm446_vm8, %v1386_v31, %v1387_v58  ;;  %v1573_v34 = vsel %vm451_vm10, %v1571_v22, %v1572_v37  ;;  %v7269_v3 = vld [vmem:[#allocation28_spill] sm:$0xff] }
 0x367   : > { %v5033_v40 = vpop.permute.xlu0 %1517  ;;  %v1589_v29 = vrot.slane %v1512_v9, 6  ;;  %v1588_v47 = vsel %vm446_vm8, %v1586_v46, %v1587_v35  ;;  %v1389_v51 = vrot.slane %v7265_v36, 6  ;;  %v1405_v11 = vsel %vm444_vm7, %v1404_v24, %v7266_v28  ;;  %v7270_v9 = vld [vmem:[#allocation33_spill] sm:$0xff]  ;;  %v1642_v28 = vld [vmem:[#allocation2 + $0x1f] sm:$0x7] }
 0x368   : > { %1254 = vrot.lane.b32.xlu0 %v1230_v14, %s3482_s26  ;;  %v1574_v1 = vrot.slane %v4967_v49, 5  ;;  %v1237_v18 = vrot.slane %v7267_v44, 5  ;;  %v1421_v17 = vsel %vm456_vm12, %v1419_v60, %v1420_v30  ;;  %v1406_v49 = vsel %vm446_vm8, %v1404_v24, %v1405_v11  ;;  %v1641_v24 = vld [vmem:[#allocation2 + $0x7] sm:$0x7] }
 0x369   : > { %1068 = vrot.lane.b32.xlu1 %v1030_v48, %s3479_s23  ;;  %v1590_v54 = vsel %vm449_vm9, %v1589_v29, %v1588_v47  ;;  %v1390_v59 = vsel %vm449_vm9, %v1389_v51, %v1388_v55  ;;  %v1203_v61 = vsel %vm456_vm12, %v1201_v38, %v1202_v2  ;;  %v1407_v10 = vrot.slane %v7268_v39, 6  ;;  %v1643_v2 = vld [vmem:[#allocation2 + $0x37] sm:$0x7] }
 0x36a   : > { %v1516_v62 = vpop.permute.xlu1 %1515  ;;  %v1575_v32 = vsel %vm454_vm11, %v1574_v1, %v1573_v34  ;;  %v1591_v27 = vsel %vm451_vm10, %v1589_v29, %v1590_v54  ;;  %v1238_v42 = vsel %vm454_vm11, %v1237_v18, %v1236_v7  ;;  %v1392_v56 = vrot.slane %v7269_v3, 5  ;;  %v1644_v54 = vld [vmem:[#allocation2 + $0x4f] sm:$0x7] }
 0x36b   : > { %v5051_v45 = vpop.permute.xlu0 %1521  ;;  %v1559_v31 = vrot.slane %v4900_v16, 7  ;;  %v1592_v4 = vrot.slane %v5013_v6, 5  ;;  %v1576_v22 = vsel %vm456_vm12, %v1574_v1, %v1575_v32  ;;  %v1391_v48 = vsel %vm451_vm10, %v1389_v51, %v1390_v59 }
 0x36c   : > { %1430 = vrot.lane.b32.xlu0 %v1385_v63, %s3480_s24  ;;  %v1408_v33 = vsel %vm449_vm9, %v1407_v10, %v1406_v49  ;;  %v1562_v19 = vrot.slane %v4943_v13, 6  ;;  %v1239_v6 = vsel %vm456_vm12, %v1237_v18, %v1238_v42  ;;  %v1410_v14 = vrot.slane %v7270_v9, 5 }
 0x36d   : > { %1072 = vrot.lane.b32.xlu1 %v1048_v0, %s3479_s23  ;;  %v1560_v38 = vsel %vm444_vm7, %v1559_v31, %v4919_v23  ;;  %v1593_v16 = vsel %vm454_vm11, %v1592_v4, %v1591_v27  ;;  %v1595_v12 = vrot.slane %v5033_v40, 7  ;;  %v1393_v23 = vsel %vm454_vm11, %v1392_v56, %v1391_v48 }
 0x36e   : > { %v1520_v43 = vpop.permute.xlu1 %1519  ;;  %v1561_v13 = vsel %vm446_vm8, %v1559_v31, %v1560_v38  ;;  %v1594_v60 = vsel %vm456_vm12, %v1592_v4, %v1593_v16  ;;  %v1409_v46 = vsel %vm451_vm10, %v1407_v10, %v1408_v33  ;;  %v1394_v40 = vsel %vm456_vm12, %v1392_v56, %v1393_v23 }
 0x36f   : > { %v1611_v50 = vpop.permute.xlu0 %1610  ;;  %v1563_v57 = vsel %vm449_vm9, %v1562_v19, %v1561_v13  ;;  %v1596_v25 = vsel %vm444_vm7, %v1595_v12, %v1516_v62  ;;  %v1598_v15 = vrot.slane %v1520_v43, 6  ;;  %v1411_v58 = vsel %vm454_vm11, %v1410_v14, %v1409_v46 }
 0x370   : > { %1635 = vst.msk [vmem:[#allocation3 + $0x18] sm:$0xf] %vm1631_vm3, %v1611_v50  ;;  %1438 = vrot.lane.b32.xlu0 %v1421_v17, %s3480_s24  ;;  %v1564_v20 = vsel %vm451_vm10, %v1562_v19, %v1563_v57  ;;  %v1597_v21 = vsel %vm446_vm8, %v1595_v12, %v1596_v25  ;;  %v1565_v37 = vrot.slane %v4921_v52, 5  ;;  %v1412_v62 = vsel %vm456_vm12, %v1410_v14, %v1411_v58 }
 0x371   : > { %1248 = vrot.lane.b32.xlu1 %v1203_v61, %s3482_s26  ;;  %v1599_v35 = vsel %vm449_vm9, %v1598_v15, %v1597_v21  ;;  %v1601_v52 = vrot.slane %v5051_v45, 5  ;;  %v5135_v11 = vrot.slane %v1641_v24, 1  ;;  %v5141_v44 = vrot.slane %v1643_v2, 1 }
 0x372   : > { %v1605_v5 = vpop.permute.xlu1 %1604  ;;  %v1566_v63 = vsel %vm454_vm11, %v1565_v37, %v1564_v20  ;;  %v1600_v0 = vsel %vm451_vm10, %v1598_v15, %v1599_v35  ;;  %v5151_v18 = vrot.slane %v1642_v28, 1  ;;  %v5155_v43 = vrot.slane %v1641_v24, 2 }
 0x373   : > { %v699_v53 = vpop.permute.xlu0 %698  ;;  %1632 = vst.msk [vmem:[#allocation3] sm:$0xf] %vm1631_vm3, %v1605_v5  ;;  %v1567_v7 = vsel %vm456_vm12, %v1565_v37, %v1566_v63  ;;  %v1602_v34 = vsel %vm454_vm11, %v1601_v52, %v1600_v0  ;;  %v1705_v50 = vrot.slane %v1642_v28, 7  ;;  %v5159_v17 = vrot.slane %v1644_v54, 1 }
 0x374   : > { %724 = vst.msk [vmem:[#allocation3 + $0x10] sm:$0xf] %vm721_vm14, %v699_v53  ;;  %1614 = vrot.lane.b32.xlu0 %v1576_v22, %s3483_s27  ;;  %v1603_v45 = vsel %vm456_vm12, %v1601_v52, %v1602_v34  ;;  %v5163_v59 = vrot.slane %v1643_v2, 2  ;;  %v1708_v32 = vrot.slane %v1643_v2, 6  ;;  %v1711_v42 = vrot.slane %v1644_v54, 5 }
 0x375   : > { %1256 = vrot.lane.b32.xlu1 %v1239_v6, %s3482_s26  ;;  %v1706_v49 = vsel %vm444_vm7, %v1705_v50, %v1641_v24  ;;  %v5179_v10 = vrot.slane %v1642_v28, 2  ;;  %v5186_v31 = vrot.slane %v1644_v54, 2  ;;  %v1732_v35 = vrot.slane %v5151_v18, 7 }
 0x376   : > { %v1617_v41 = vpop.permute.xlu1 %1616  ;;  %v1707_v27 = vsel %vm446_vm8, %v1705_v50, %v1706_v49  ;;  %v1735_v63 = vrot.slane %v5141_v44, 6 }
 0x377   : > { %v879_v26 = vpop.permute.xlu0 %878  ;;  %1638 = vst.msk [vmem:[#allocation3 + $0x30] sm:$0xf] %vm1631_vm3, %v1617_v41  ;;  %v1709_v61 = vsel %vm449_vm9, %v1708_v32, %v1707_v27 }
 0x378   : > { %1618 = vrot.lane.b32.xlu0 %v1594_v60, %s3483_s27  ;;  %v1710_v39 = vsel %vm451_vm10, %v1708_v32, %v1709_v61 }
 0x379   : > { %1432 = vrot.lane.b32.xlu1 %v1394_v40, %s3480_s24  ;;  %v1712_v3 = vsel %vm454_vm11, %v1711_v42, %v1710_v39 }
 0x37a   : > { %v697_v8 = vpop.permute.xlu1 %696  ;;  %v1713_v56 = vsel %vm456_vm12, %v1711_v42, %v1712_v3 }
 0x37b   : > { %723 = vst.msk [vmem:[#allocation3 + $0x8] sm:$0xf] %vm721_vm14, %v697_v8  ;;  %v1063_v29 = vpop.permute.xlu0 %1062 }
 0x37c   : > { %1649 = vrot.lane.b32.xlu0 %v1641_v24, %s3477_s21  ;;  %905 = vst.msk [vmem:[#allocation3 + $0x8] sm:$0xf] %vm903_vm15, %v879_v26 }
 0x37d   : > { %1436 = vrot.lane.b32.xlu1 %v1412_v62, %s3480_s24 }
 0x37e   : > { %v881_v30 = vpop.permute.xlu1 %880 }
 0x37f   : > { %906 = vst.msk [vmem:[#allocation3 + $0x10] sm:$0xf] %vm903_vm15, %v881_v30  ;;  %v1243_v55 = vpop.permute.xlu0 %1242  ;;  %v1733_v30 = vsel %vm444_vm7, %v1732_v35, %v5135_v11 }
 0x380   : > { %1653 = vrot.lane.b32.xlu0 %v1643_v2, %s3477_s21  ;;  %1088 = vst.msk [vmem:[#allocation3 + $0x10] sm:$0xf] %vm1085_vm0, %v1063_v29 }
 0x381   : > { %1612 = vrot.lane.b32.xlu1 %v1567_v7, %s3483_s27 }
 0x382   : > { %v1061_v47 = vpop.permute.xlu1 %1060 }
 0x383   : > { %1087 = vst.msk [vmem:[#allocation3 + $0x8] sm:$0xf] %vm1085_vm0, %v1061_v47  ;;  %v1427_v51 = vpop.permute.xlu0 %1426  ;;  %v1734_v47 = vsel %vm446_vm8, %v1732_v35, %v1733_v30 }
 0x384   : > { %1657 = vrot.lane.b32.xlu0 %v1641_v24, %s3475_s19  ;;  %1269 = vst.msk [vmem:[#allocation3 + $0x8] sm:$0xf] %vm1267_vm1, %v1243_v55 }
 0x385   : > { %1620 = vrot.lane.b32.xlu1 %v1603_v45, %s3483_s27 }
 0x386   : > { %v1245_v36 = vpop.permute.xlu1 %1244 }
 0x387   : > { %1270 = vst.msk [vmem:[#allocation3 + $0x10] sm:$0xf] %vm1267_vm1, %v1245_v36 }
 0x388   : > { %1661 = vrot.lane.b32.xlu0 %v1643_v2, %s3475_s19  ;;  %1452 = vst.msk [vmem:[#allocation3 + $0x10] sm:$0xf] %vm1449_vm2, %v1427_v51  ;;  %v1736_v51 = vsel %vm449_vm9, %v1735_v63, %v1734_v47 }
 0x389   : > { %1651 = vrot.lane.b32.xlu1 %v1642_v28, %s3477_s21  ;;  %v1737_v50 = vsel %vm451_vm10, %v1735_v63, %v1736_v51 }
 0x38a   : > { %v1425_v1 = vpop.permute.xlu1 %1424 }
 0x38b   : > { %1451 = vst.msk [vmem:[#allocation3 + $0x8] sm:$0xf] %vm1449_vm2, %v1425_v1 }
 0x38c   : > { %1669 = vrot.lane.b32.xlu0 %v5135_v11, %s3477_s21 }
 0x38d   : > { %1655 = vrot.lane.b32.xlu1 %v1644_v54, %s3477_s21 }
 0x390   : > { %1673 = vrot.lane.b32.xlu0 %v5141_v44, %s3477_s21 }
 0x391   : > { %1659 = vrot.lane.b32.xlu1 %v1642_v28, %s3475_s19  ;;  %v1738_v28 = vrot.slane %v5159_v17, 5 }
 0x393   : > { %v1739_v49 = vsel %vm454_vm11, %v1738_v28, %v1737_v50 }
 0x394   : > { %1677 = vrot.lane.b32.xlu0 %v5135_v11, %s3475_s19  ;;  %v1740_v3 = vsel %vm456_vm12, %v1738_v28, %v1739_v49 }
 0x395   : > { %1663 = vrot.lane.b32.xlu1 %v1644_v54, %s3475_s19 }
 0x398   : > { %1681 = vrot.lane.b32.xlu0 %v5141_v44, %s3475_s19 }
 0x399   : > { %1671 = vrot.lane.b32.xlu1 %v5151_v18, %s3477_s21 }
 0x39c   : > { %1689 = vrot.lane.b32.xlu0 %v5155_v43, %s3477_s21 }
 0x39d   : > { %1675 = vrot.lane.b32.xlu1 %v5159_v17, %s3477_s21 }
 0x3a0   : > { %1693 = vrot.lane.b32.xlu0 %v5163_v59, %s3477_s21 }
 0x3a1   : > { %1679 = vrot.lane.b32.xlu1 %v5151_v18, %s3475_s19 }
 0x3a4   : > { %1697 = vrot.lane.b32.xlu0 %v5155_v43, %s3475_s19 }
 0x3a5   : > { %1683 = vrot.lane.b32.xlu1 %v5159_v17, %s3475_s19 }
 0x3a8   : > { %1701 = vrot.lane.b32.xlu0 %v5163_v59, %s3475_s19 }
 0x3a9   : > { %1691 = vrot.lane.b32.xlu1 %v5179_v10, %s3477_s21 }
 0x3ac   : > { %1786 = vrot.lane.b32.xlu0 %v1713_v56, %s3484_s28  ;;  %v1759_v56 = vrot.slane %v5179_v10, 7 }
 0x3ad   : > { %1695 = vrot.lane.b32.xlu1 %v5186_v31, %s3477_s21 }
 0x3b1   : > { %1699 = vrot.lane.b32.xlu1 %v5179_v10, %s3475_s19  ;;  %v1760_v10 = vsel %vm444_vm7, %v1759_v56, %v5155_v43 }
 0x3b5   : > { %1703 = vrot.lane.b32.xlu1 %v5186_v31, %s3475_s19 }
 0x3ba   : > { %v1607_v4 = vpop.permute.xlu0 %1606 }
 0x3bb   : > { %1633 = vst.msk [vmem:[#allocation3 + $0x8] sm:$0xf] %vm1631_vm3, %v1607_v4 }
 0x3be   : > { %v703_v5 = vpop.permute.xlu0 %702 }
 0x3bf   : > { %726 = vst.msk [vmem:[#allocation3 + $0x20] sm:$0xf] %vm721_vm14, %v703_v5 }
 0x3c2   : > { %v711_v53 = vpop.permute.xlu0 %710 }
 0x3c3   : > { %730 = vst.msk [vmem:[#allocation3 + $0x40] sm:$0xf] %vm721_vm14, %v711_v53 }
 0x3c6   : > { %v887_v22 = vpop.permute.xlu0 %886 }
 0x3c7   : > { %v1609_v48 = vpop.permute.xlu1 %1608 }
 0x3c8   : > { %1634 = vst.msk [vmem:[#allocation3 + $0x10] sm:$0xf] %vm1631_vm3, %v1609_v48 }
 0x3ca   : > { %v891_v33 = vpop.permute.xlu0 %890 }
 0x3cb   : > { %v705_v38 = vpop.permute.xlu1 %704 }
 0x3cc   : > { %727 = vst.msk [vmem:[#allocation3 + $0x28] sm:$0xf] %vm721_vm14, %v705_v38 }
 0x3cd   : > { %909 = vst.msk [vmem:[#allocation3 + $0x28] sm:$0xf] %vm903_vm15, %v887_v22 }
 0x3ce   : > { %v1067_v19 = vpop.permute.xlu0 %1066 }
 0x3cf   : > { %v709_v16 = vpop.permute.xlu1 %708 }
 0x3d0   : > { %729 = vst.msk [vmem:[#allocation3 + $0x38] sm:$0xf] %vm721_vm14, %v709_v16 }
 0x3d1   : > { %911 = vst.msk [vmem:[#allocation3 + $0x38] sm:$0xf] %vm903_vm15, %v891_v33 }
 0x3d2   : > { %v1075_v6 = vpop.permute.xlu0 %1074 }
 0x3d3   : > { %v885_v9 = vpop.permute.xlu1 %884 }
 0x3d4   : > { %908 = vst.msk [vmem:[#allocation3 + $0x20] sm:$0xf] %vm903_vm15, %v885_v9 }
 0x3d5   : > { %1090 = vst.msk [vmem:[#allocation3 + $0x20] sm:$0xf] %vm1085_vm0, %v1067_v19  ;;  %v1762_v19 = vrot.slane %v5163_v59, 6 }
 0x3d6   : > { %v1251_v14 = vpop.permute.xlu0 %1250 }
 0x3d7   : > { %v893_v12 = vpop.permute.xlu1 %892 }
 0x3d8   : > { %912 = vst.msk [vmem:[#allocation3 + $0x40] sm:$0xf] %vm903_vm15, %v893_v12 }
 0x3d9   : > { %1094 = vst.msk [vmem:[#allocation3 + $0x40] sm:$0xf] %vm1085_vm0, %v1075_v6 }
 0x3da   : > { %v1255_v23 = vpop.permute.xlu0 %1254 }
 0x3db   : > { %v1069_v13 = vpop.permute.xlu1 %1068 }
 0x3dc   : > { %1091 = vst.msk [vmem:[#allocation3 + $0x28] sm:$0xf] %vm1085_vm0, %v1069_v13  ;;  %v1761_v13 = vsel %vm446_vm8, %v1759_v56, %v1760_v10  ;;  %v7277_v10 = vld [vmem:[#allocation6_spill] sm:$0xff] }
 0x3dd   : > { %1273 = vst.msk [vmem:[#allocation3 + $0x28] sm:$0xf] %vm1267_vm1, %v1251_v14  ;;  %v1763_v59 = vsel %vm449_vm9, %v1762_v19, %v1761_v13 }
 0x3de   : > { %v1431_v41 = vpop.permute.xlu0 %1430 }
 0x3df   : > { %v1073_v26 = vpop.permute.xlu1 %1072 }
 0x3e0   : > { %1093 = vst.msk [vmem:[#allocation3 + $0x38] sm:$0xf] %vm1085_vm0, %v1073_v26 }
 0x3e1   : > { %1275 = vst.msk [vmem:[#allocation3 + $0x38] sm:$0xf] %vm1267_vm1, %v1255_v23 }
 0x3e2   : > { %v1439_v60 = vpop.permute.xlu0 %1438 }
 0x3e3   : > { %v1249_v46 = vpop.permute.xlu1 %1248 }
 0x3e4   : > { %1272 = vst.msk [vmem:[#allocation3 + $0x20] sm:$0xf] %vm1267_vm1, %v1249_v46 }
 0x3e5   : > { %1454 = vst.msk [vmem:[#allocation3 + $0x20] sm:$0xf] %vm1449_vm2, %v1431_v41 }
 0x3e6   : > { %v1615_v57 = vpop.permute.xlu0 %1614 }
 0x3e7   : > { %v1257_v25 = vpop.permute.xlu1 %1256 }
 0x3e8   : > { %1276 = vst.msk [vmem:[#allocation3 + $0x40] sm:$0xf] %vm1267_vm1, %v1257_v25 }
 0x3e9   : > { %1458 = vst.msk [vmem:[#allocation3 + $0x40] sm:$0xf] %vm1449_vm2, %v1439_v60  ;;  %v1765_v60 = vrot.slane %v5186_v31, 5 }
 0x3ea   : > { %v1619_v15 = vpop.permute.xlu0 %1618 }
 0x3eb   : > { %v1433_v40 = vpop.permute.xlu1 %1432 }
 0x3ec   : > { %1455 = vst.msk [vmem:[#allocation3 + $0x28] sm:$0xf] %vm1449_vm2, %v1433_v40  ;;  %v1764_v40 = vsel %vm451_vm10, %v1762_v19, %v1763_v59  ;;  %v7275_v19 = vld [vmem:[#allocation11_spill] sm:$0xff] }
 0x3ed   : > { %1637 = vst.msk [vmem:[#allocation3 + $0x28] sm:$0xf] %vm1631_vm3, %v1615_v57 }
 0x3ee   : > { %v1650_v58 = vpop.permute.xlu0 %1649 }
 0x3ef   : > { %v1437_v20 = vpop.permute.xlu1 %1436 }
 0x3f0   : > { %1457 = vst.msk [vmem:[#allocation3 + $0x38] sm:$0xf] %vm1449_vm2, %v1437_v20  ;;  %v1766_v20 = vsel %vm454_vm11, %v1765_v60, %v1764_v40 }
 0x3f1   : > { %1639 = vst.msk [vmem:[#allocation3 + $0x38] sm:$0xf] %vm1631_vm3, %v1619_v15  ;;  %v1767_v35 = vsel %vm456_vm12, %v1765_v60, %v1766_v20 }
 0x3f2   : > { %v1654_v21 = vpop.permute.xlu0 %1653 }
 0x3f3   : > { %v1613_v8 = vpop.permute.xlu1 %1612  ;;  %v1717_v52 = vrot.slane %v1654_v21, 6 }
 0x3f4   : > { %1636 = vst.msk [vmem:[#allocation3 + $0x20] sm:$0xf] %vm1631_vm3, %v1613_v8 }
 0x3f6   : > { %v1658_v24 = vpop.permute.xlu0 %1657 }
 0x3f7   : > { %v1621_v37 = vpop.permute.xlu1 %1620 }
 0x3f8   : > { %1640 = vst.msk [vmem:[#allocation3 + $0x40] sm:$0xf] %vm1631_vm3, %v1621_v37 }
 0x3fa   : > { %v1662_v29 = vpop.permute.xlu0 %1661 }
 0x3fb   : > { %v1652_v62 = vpop.permute.xlu1 %1651  ;;  %v1726_v61 = vrot.slane %v1662_v29, 6 }
 0x3fc   : > { %v1714_v0 = vrot.slane %v1652_v62, 7 }
 0x3fe   : > { %v1670_v2 = vpop.permute.xlu0 %1669  ;;  %v1715_v7 = vsel %vm444_vm7, %v1714_v0, %v1650_v58 }
 0x3ff   : > { %v1716_v55 = vsel %vm446_vm8, %v1714_v0, %v1715_v7  ;;  %v1656_v34 = vpop.permute.xlu1 %1655 }
 0x400   : > { %v1718_v45 = vsel %vm449_vm9, %v1717_v52, %v1716_v55  ;;  %v1720_v36 = vrot.slane %v1656_v34, 5 }
 0x401   : > { %v1719_v54 = vsel %vm451_vm10, %v1717_v52, %v1718_v45 }
 0x402   : > { %v1674_v1 = vpop.permute.xlu0 %1673  ;;  %v1721_v11 = vsel %vm454_vm11, %v1720_v36, %v1719_v54 }
 0x403   : > { %v1660_v44 = vpop.permute.xlu1 %1659  ;;  %v1722_v18 = vsel %vm456_vm12, %v1720_v36, %v1721_v11  ;;  %v1744_v9 = vrot.slane %v1674_v1, 6 }
 0x404   : > { %v1723_v32 = vrot.slane %v1660_v44, 7  ;;  %1788 = vrot.lane.b32.xlu1 %v1722_v18, %s3484_s28 }
 0x406   : > { %v1678_v27 = vpop.permute.xlu0 %1677  ;;  %v1724_v42 = vsel %vm444_vm7, %v1723_v32, %v1658_v24 }
 0x407   : > { %v1725_v17 = vsel %vm446_vm8, %v1723_v32, %v1724_v42  ;;  %v1664_v39 = vpop.permute.xlu1 %1663 }
 0x408   : > { %v1727_v4 = vsel %vm449_vm9, %v1726_v61, %v1725_v17  ;;  %v1729_v5 = vrot.slane %v1664_v39, 5  ;;  %1792 = vrot.lane.b32.xlu1 %v1740_v3, %s3484_s28  ;;  %v3462_v17 = vld [vmem:[#allocation2 + $0x8] sm:$0x7] }
 0x409   : > { %v1728_v22 = vsel %vm451_vm10, %v1726_v61, %v1727_v4  ;;  %v3463_v4 = vld [vmem:[#allocation2 + $0x38] sm:$0x7] }
 0x40a   : > { %v1682_v53 = vpop.permute.xlu0 %1681  ;;  %v1730_v48 = vsel %vm454_vm11, %v1729_v5, %v1728_v22  ;;  %v7271_v22 = vld [vmem:[#allocation9_spill] sm:$0xff] }
 0x40b   : > { %v1672_v33 = vpop.permute.xlu1 %1671  ;;  %v1731_v38 = vsel %vm456_vm12, %v1729_v5, %v1730_v48  ;;  %v1753_v8 = vrot.slane %v1682_v53, 6  ;;  %v3464_v5 = vld [vmem:[#allocation2 + $0x20] sm:$0x7]  ;;  %v3465_v53 = vld [vmem:[#allocation2 + $0x50] sm:$0x7] }
 0x40c   : > { %v1741_v16 = vrot.slane %v1672_v33, 7  ;;  %1790 = vrot.lane.b32.xlu0 %v1731_v38, %s3484_s28  ;;  %v7272_v48 = vld [vmem:[#allocation5_spill] sm:$0xff]  ;;  %v7273_v33 = vld [vmem:[#allocation4_spill] sm:$0xff]  ;;  %v7274_v38 = vld [vmem:[#allocation7_spill] sm:$0xff] }
 0x40e   : > { %v1690_v6 = vpop.permute.xlu0 %1689  ;;  %v1742_v14 = vsel %vm444_vm7, %v1741_v16, %v1670_v2 }
 0x40f   : > { %v1743_v12 = vsel %vm446_vm8, %v1741_v16, %v1742_v14  ;;  %v1676_v23 = vpop.permute.xlu1 %1675  ;;  %v7276_v16 = vld [vmem:[#allocation8_spill] sm:$0xff]  ;;  %v1988_v14 = vld [vmem:[#allocation2 + $0x39] sm:$0x7] }
 0x410   : > { %v1745_v41 = vsel %vm449_vm9, %v1744_v9, %v1743_v12  ;;  %v1747_v26 = vrot.slane %v1676_v23, 5  ;;  %v1987_v12 = vld [vmem:[#allocation2 + $0x21] sm:$0x7]  ;;  %v1989_v23 = vld [vmem:[#allocation2 + $0x51] sm:$0x7] }
 0x411   : > { %v1746_v57 = vsel %vm451_vm10, %v1744_v9, %v1745_v41  ;;  %v1986_v9 = vld [vmem:[#allocation2 + $0x9] sm:$0x7]  ;;  %v5336_v41 = vrot.slane %v1988_v14, 1  ;;  %v5347_v59 = vrot.slane %v1989_v23, 1  ;;  %v5368_v20 = vrot.slane %v1987_v12, 2 }
 0x412   : > { %v1694_v46 = vpop.permute.xlu0 %1693  ;;  %v1748_v43 = vsel %vm454_vm11, %v1747_v26, %v1746_v57  ;;  %v5331_v13 = vrot.slane %v1986_v9, 1  ;;  %v2050_v57 = vrot.slane %v1987_v12, 7 }
 0x413   : > { %v1680_v25 = vpop.permute.xlu1 %1679  ;;  %v1749_v15 = vsel %vm456_vm12, %v1747_v26, %v1748_v43  ;;  %v1771_v34 = vrot.slane %v1694_v46, 6  ;;  %v5341_v26 = vrot.slane %v1987_v12, 1  ;;  %v5353_v46 = vrot.slane %v1986_v9, 2 }
 0x414   : > { %v1750_v58 = vrot.slane %v1680_v25, 7  ;;  %1794 = vrot.lane.b32.xlu0 %v1749_v15, %s3484_s28  ;;  %v5360_v25 = vrot.slane %v1988_v14, 2  ;;  %v2053_v15 = vrot.slane %v1988_v14, 6  ;;  %v2051_v40 = vsel %vm444_vm7, %v2050_v57, %v1986_v9 }
 0x416   : > { %v1698_v21 = vpop.permute.xlu0 %1697  ;;  %v1751_v24 = vsel %vm444_vm7, %v1750_v58, %v1678_v27 }
 0x417   : > { %v1752_v31 = vsel %vm446_vm8, %v1750_v58, %v1751_v24  ;;  %v1684_v37 = vpop.permute.xlu1 %1683  ;;  %v2056_v24 = vrot.slane %v1989_v23, 5 }
 0x418   : > { %v1754_v29 = vsel %vm449_vm9, %v1753_v8, %v1752_v31  ;;  %v1756_v62 = vrot.slane %v1684_v37, 5  ;;  %1798 = vrot.lane.b32.xlu0 %v1767_v35, %s3484_s28  ;;  %v5377_v31 = vrot.slane %v1989_v23, 2 }
 0x419   : > { %v1755_v0 = vsel %vm451_vm10, %v1753_v8, %v1754_v29 }
 0x41a   : > { %v1702_v63 = vpop.permute.xlu0 %1701  ;;  %v1757_v30 = vsel %vm454_vm11, %v1756_v62, %v1755_v0 }
 0x41b   : > { %v1692_v2 = vpop.permute.xlu1 %1691  ;;  %v1758_v52 = vsel %vm456_vm12, %v1756_v62, %v1757_v30  ;;  %v1780_v50 = vrot.slane %v1702_v63, 6 }
 0x41c   : > { %v1768_v7 = vrot.slane %v1692_v2, 7  ;;  %1796 = vrot.lane.b32.xlu1 %v1758_v52, %s3484_s28 }
 0x41e   : > { %v1787_v55 = vpop.permute.xlu0 %1786  ;;  %v1769_v47 = vsel %vm444_vm7, %v1768_v7, %v1690_v6  ;;  %v7278_v6 = vld [vmem:[#allocation10_spill] sm:$0xff] }
 0x41f   : > { %1814 = vst.msk [vmem:[#allocation3] sm:$0xf] %vm1813_vm4, %v1787_v55  ;;  %v1770_v45 = vsel %vm446_vm8, %v1768_v7, %v1769_v47  ;;  %v1696_v36 = vpop.permute.xlu1 %1695 }
 0x420   : > { %v1772_v51 = vsel %vm449_vm9, %v1771_v34, %v1770_v45  ;;  %v1774_v28 = vrot.slane %v1696_v36, 5 }
 0x421   : > { %v1773_v1 = vsel %vm451_vm10, %v1771_v34, %v1772_v51 }
 0x422   : > { %v1775_v54 = vsel %vm454_vm11, %v1774_v28, %v1773_v1 }
 0x423   : > { %v1700_v11 = vpop.permute.xlu1 %1699  ;;  %v1776_v44 = vsel %vm456_vm12, %v1774_v28, %v1775_v54 }
 0x424   : > { %v1777_v18 = vrot.slane %v1700_v11, 7  ;;  %1800 = vrot.lane.b32.xlu1 %v1776_v44, %s3484_s28 }
 0x426   : > { %v1778_v32 = vsel %vm444_vm7, %v1777_v18, %v1698_v21  ;;  %v2052_v21 = vsel %vm446_vm8, %v2050_v57, %v2051_v40 }
 0x427   : > { %v1779_v49 = vsel %vm446_vm8, %v1777_v18, %v1778_v32  ;;  %v1704_v27 = vpop.permute.xlu1 %1703  ;;  %v2054_v8 = vsel %vm449_vm9, %v2053_v15, %v2052_v21 }
 0x428   : > { %v1781_v61 = vsel %vm449_vm9, %v1780_v50, %v1779_v49  ;;  %v1783_v42 = vrot.slane %v1704_v27, 5  ;;  %1831 = vrot.lane.b32.xlu1 %v3462_v17, %s3477_s21  ;;  %v2055_v37 = vsel %vm451_vm10, %v2053_v15, %v2054_v8 }
 0x429   : > { %v1782_v39 = vsel %vm451_vm10, %v1780_v50, %v1781_v61  ;;  %v2057_v35 = vsel %vm454_vm11, %v2056_v24, %v2055_v37 }
 0x42a   : > { %v1784_v3 = vsel %vm454_vm11, %v1783_v42, %v1782_v39  ;;  %v2058_v62 = vsel %vm456_vm12, %v2056_v24, %v2057_v35 }
 0x42b   : > { %v1785_v56 = vsel %vm456_vm12, %v1783_v42, %v1784_v3 }
 0x42c   : > { %1835 = vrot.lane.b32.xlu1 %v3463_v4, %s3477_s21  ;;  %1802 = vrot.lane.b32.xlu0 %v1785_v56, %s3484_s28 }
 0x430   : > { %1839 = vrot.lane.b32.xlu1 %v3462_v17, %s3475_s19  ;;  %1833 = vrot.lane.b32.xlu0 %v3464_v5, %s3477_s21 }
 0x434   : > { %1843 = vrot.lane.b32.xlu1 %v3463_v4, %s3475_s19  ;;  %1837 = vrot.lane.b32.xlu0 %v3465_v53, %s3477_s21 }
 0x438   : > { %1851 = vrot.lane.b32.xlu1 %v7271_v22, %s3477_s21  ;;  %1841 = vrot.lane.b32.xlu0 %v3464_v5, %s3475_s19 }
 0x43c   : > { %1855 = vrot.lane.b32.xlu1 %v7272_v48, %s3477_s21  ;;  %1845 = vrot.lane.b32.xlu0 %v3465_v53, %s3475_s19 }
 0x440   : > { %1859 = vrot.lane.b32.xlu1 %v7271_v22, %s3475_s19  ;;  %1853 = vrot.lane.b32.xlu0 %v7273_v33, %s3477_s21 }
 0x444   : > { %1863 = vrot.lane.b32.xlu1 %v7272_v48, %s3475_s19  ;;  %1857 = vrot.lane.b32.xlu0 %v7274_v38, %s3477_s21 }
 0x448   : > { %1871 = vrot.lane.b32.xlu1 %v7275_v19, %s3477_s21  ;;  %1861 = vrot.lane.b32.xlu0 %v7273_v33, %s3475_s19 }
 0x44c   : > { %1875 = vrot.lane.b32.xlu1 %v7276_v16, %s3477_s21  ;;  %1865 = vrot.lane.b32.xlu0 %v7274_v38, %s3475_s19 }
 0x450   : > { %1879 = vrot.lane.b32.xlu1 %v7275_v19, %s3475_s19  ;;  %1873 = vrot.lane.b32.xlu0 %v7277_v10, %s3477_s21 }
 0x454   : > { %1883 = vrot.lane.b32.xlu1 %v7276_v16, %s3475_s19  ;;  %1877 = vrot.lane.b32.xlu0 %v7278_v6, %s3477_s21 }
 0x458   : > { %1994 = vrot.lane.b32.xlu1 %v1986_v9, %s3477_s21  ;;  %1881 = vrot.lane.b32.xlu0 %v7277_v10, %s3475_s19 }
 0x45c   : > { %1998 = vrot.lane.b32.xlu1 %v1988_v14, %s3477_s21  ;;  %1885 = vrot.lane.b32.xlu0 %v7278_v6, %s3475_s19 }
 0x460   : > { %2002 = vrot.lane.b32.xlu1 %v1986_v9, %s3475_s19  ;;  %1996 = vrot.lane.b32.xlu0 %v1987_v12, %s3477_s21 }
 0x464   : > { %2006 = vrot.lane.b32.xlu1 %v1988_v14, %s3475_s19  ;;  %2000 = vrot.lane.b32.xlu0 %v1989_v23, %s3477_s21 }
 0x468   : > { %2014 = vrot.lane.b32.xlu1 %v5331_v13, %s3477_s21  ;;  %2004 = vrot.lane.b32.xlu0 %v1987_v12, %s3475_s19 }
 0x46c   : > { %2018 = vrot.lane.b32.xlu1 %v5336_v41, %s3477_s21  ;;  %2008 = vrot.lane.b32.xlu0 %v1989_v23, %s3475_s19 }
 0x470   : > { %2022 = vrot.lane.b32.xlu1 %v5331_v13, %s3475_s19  ;;  %2016 = vrot.lane.b32.xlu0 %v5341_v26, %s3477_s21 }
 0x474   : > { %2026 = vrot.lane.b32.xlu1 %v5336_v41, %s3475_s19  ;;  %2020 = vrot.lane.b32.xlu0 %v5347_v59, %s3477_s21 }
 0x476   : > { %v1789_v60 = vpop.permute.xlu1 %1788 }
 0x477   : > { %1815 = vst.msk [vmem:[#allocation3 + $0x8] sm:$0xf] %vm1813_vm4, %v1789_v60 }
 0x478   : > { %2034 = vrot.lane.b32.xlu1 %v5353_v46, %s3477_s21  ;;  %2024 = vrot.lane.b32.xlu0 %v5341_v26, %s3475_s19 }
 0x47a   : > { %v1793_v43 = vpop.permute.xlu1 %1792 }
 0x47b   : > { %1817 = vst.msk [vmem:[#allocation3 + $0x18] sm:$0xf] %vm1813_vm4, %v1793_v43 }
 0x47c   : > { %2038 = vrot.lane.b32.xlu1 %v5360_v25, %s3477_s21  ;;  %2028 = vrot.lane.b32.xlu0 %v5347_v59, %s3475_s19 }
 0x47e   : > { %v1791_v58 = vpop.permute.xlu0 %1790 }
 0x47f   : > { %1816 = vst.msk [vmem:[#allocation3 + $0x10] sm:$0xf] %vm1813_vm4, %v1791_v58 }
 0x480   : > { %2042 = vrot.lane.b32.xlu1 %v5353_v46, %s3475_s19  ;;  %2036 = vrot.lane.b32.xlu0 %v5368_v20, %s3477_s21 }
 0x484   : > { %2046 = vrot.lane.b32.xlu1 %v5360_v25, %s3475_s19  ;;  %2040 = vrot.lane.b32.xlu0 %v5377_v31, %s3477_s21 }
 0x486   : > { %v1795_v29 = vpop.permute.xlu0 %1794 }
 0x487   : > { %1818 = vst.msk [vmem:[#allocation3 + $0x20] sm:$0xf] %vm1813_vm4, %v1795_v29 }
 0x488   : > { %2131 = vrot.lane.b32.xlu1 %v2058_v62, %s3478_s22  ;;  %2044 = vrot.lane.b32.xlu0 %v5368_v20, %s3475_s19 }
 0x48a   : > { %v1799_v63 = vpop.permute.xlu0 %1798 }
 0x48b   : > { %1820 = vst.msk [vmem:[#allocation3 + $0x30] sm:$0xf] %vm1813_vm4, %v1799_v63 }
 0x48c   : > { %2048 = vrot.lane.b32.xlu0 %v5377_v31, %s3475_s19 }
 0x48e   : > { %v1797_v0 = vpop.permute.xlu1 %1796 }
 0x48f   : > { %1819 = vst.msk [vmem:[#allocation3 + $0x28] sm:$0xf] %vm1813_vm4, %v1797_v0 }
 0x496   : > { %v1801_v30 = vpop.permute.xlu1 %1800 }
 0x497   : > { %1821 = vst.msk [vmem:[#allocation3 + $0x38] sm:$0xf] %vm1813_vm4, %v1801_v30 }
 0x49a   : > { %v1832_v2 = vpop.permute.xlu1 %1831 }
 0x49e   : > { %v1836_v52 = vpop.permute.xlu1 %1835  ;;  %v1803_v7 = vpop.permute.xlu0 %1802 }
 0x49f   : > { %1822 = vst.msk [vmem:[#allocation3 + $0x40] sm:$0xf] %vm1813_vm4, %v1803_v7  ;;  %v1899_v45 = vrot.slane %v1836_v52, 6 }
 0x4a2   : > { %v1840_v55 = vpop.permute.xlu1 %1839  ;;  %v1834_v34 = vpop.permute.xlu0 %1833 }
 0x4a3   : > { %v1896_v47 = vrot.slane %v1834_v34, 7 }
 0x4a5   : > { %v1897_v36 = vsel %vm444_vm7, %v1896_v47, %v1832_v2 }
 0x4a6   : > { %v1898_v51 = vsel %vm446_vm8, %v1896_v47, %v1897_v36  ;;  %v1844_v28 = vpop.permute.xlu1 %1843  ;;  %v1838_v1 = vpop.permute.xlu0 %1837 }
 0x4a7   : > { %v1900_v54 = vsel %vm449_vm9, %v1899_v45, %v1898_v51  ;;  %v1902_v11 = vrot.slane %v1838_v1, 5  ;;  %v1908_v61 = vrot.slane %v1844_v28, 6 }
 0x4a8   : > { %v1901_v44 = vsel %vm451_vm10, %v1899_v45, %v1900_v54 }
 0x4a9   : > { %v1903_v18 = vsel %vm454_vm11, %v1902_v11, %v1901_v44 }
 0x4aa   : > { %v1852_v50 = vpop.permute.xlu1 %1851  ;;  %v1842_v32 = vpop.permute.xlu0 %1841  ;;  %v1904_v49 = vsel %vm456_vm12, %v1902_v11, %v1903_v18 }
 0x4ab   : > { %v1905_v27 = vrot.slane %v1842_v32, 7  ;;  %1978 = vst.msk [vmem:[#allocation3 + $0xc] sm:$0xf] %vm539_vm13, %v1904_v49 }
 0x4ad   : > { %v1906_v42 = vsel %vm444_vm7, %v1905_v27, %v1840_v55 }
 0x4ae   : > { %v1907_v17 = vsel %vm446_vm8, %v1905_v27, %v1906_v42  ;;  %v1856_v39 = vpop.permute.xlu1 %1855  ;;  %v1846_v3 = vpop.permute.xlu0 %1845  ;;  %v2077_v42 = vrot.slane %v5341_v26, 7 }
 0x4af   : > { %v1909_v56 = vsel %vm449_vm9, %v1908_v61, %v1907_v17  ;;  %v1911_v4 = vrot.slane %v1846_v3, 5  ;;  %v1926_v19 = vrot.slane %v1856_v39, 6 }
 0x4b0   : > { %v1910_v5 = vsel %vm451_vm10, %v1908_v61, %v1909_v56 }
 0x4b1   : > { %v1912_v53 = vsel %vm454_vm11, %v1911_v4, %v1910_v5 }
 0x4b2   : > { %v1860_v22 = vpop.permute.xlu1 %1859  ;;  %v1854_v48 = vpop.permute.xlu0 %1853  ;;  %v1913_v33 = vsel %vm456_vm12, %v1911_v4, %v1912_v53 }
 0x4b3   : > { %v1923_v38 = vrot.slane %v1854_v48, 7  ;;  %1979 = vst.msk [vmem:[#allocation3 + $0x14] sm:$0xf] %vm539_vm13, %v1913_v33  ;;  %v2078_v33 = vsel %vm444_vm7, %v2077_v42, %v5331_v13 }
 0x4b5   : > { %v1924_v16 = vsel %vm444_vm7, %v1923_v38, %v1852_v50 }
 0x4b6   : > { %v1925_v10 = vsel %vm446_vm8, %v1923_v38, %v1924_v16  ;;  %v1864_v6 = vpop.permute.xlu1 %1863  ;;  %v1858_v9 = vpop.permute.xlu0 %1857 }
 0x4b7   : > { %v1927_v14 = vsel %vm449_vm9, %v1926_v19, %v1925_v10  ;;  %v1929_v12 = vrot.slane %v1858_v9, 5  ;;  %v1935_v58 = vrot.slane %v1864_v6, 6  ;;  %v2079_v6 = vsel %vm446_vm8, %v2077_v42, %v2078_v33 }
 0x4b8   : > { %v1928_v23 = vsel %vm451_vm10, %v1926_v19, %v1927_v14 }
 0x4b9   : > { %v1930_v60 = vsel %vm454_vm11, %v1929_v12, %v1928_v23 }
 0x4ba   : > { %v1872_v57 = vpop.permute.xlu1 %1871  ;;  %v1862_v43 = vpop.permute.xlu0 %1861  ;;  %v1931_v15 = vsel %vm456_vm12, %v1929_v12, %v1930_v60  ;;  %v2083_v12 = vrot.slane %v5347_v59, 5 }
 0x4bb   : > { %v1932_v40 = vrot.slane %v1862_v43, 7  ;;  %1981 = vst.msk [vmem:[#allocation3 + $0x24] sm:$0xf] %vm539_vm13, %v1931_v15 }
 0x4bd   : > { %v1933_v21 = vsel %vm444_vm7, %v1932_v40, %v1860_v22  ;;  %v2080_v22 = vrot.slane %v5336_v41, 6 }
 0x4be   : > { %v1934_v8 = vsel %vm446_vm8, %v1932_v40, %v1933_v21  ;;  %v1876_v24 = vpop.permute.xlu1 %1875  ;;  %v1866_v37 = vpop.permute.xlu0 %1865 }
 0x4bf   : > { %v1936_v35 = vsel %vm449_vm9, %v1935_v58, %v1934_v8  ;;  %v1938_v29 = vrot.slane %v1866_v37, 5  ;;  %v1953_v7 = vrot.slane %v1876_v24, 6  ;;  %v2081_v41 = vsel %vm449_vm9, %v2080_v22, %v2079_v6 }
 0x4c0   : > { %v1937_v62 = vsel %vm451_vm10, %v1935_v58, %v1936_v35  ;;  %v2082_v15 = vsel %vm451_vm10, %v2080_v22, %v2081_v41 }
 0x4c1   : > { %v1939_v63 = vsel %vm454_vm11, %v1938_v29, %v1937_v62  ;;  %v2084_v58 = vsel %vm454_vm11, %v2083_v12, %v2082_v15 }
 0x4c2   : > { %v1880_v0 = vpop.permute.xlu1 %1879  ;;  %v1874_v30 = vpop.permute.xlu0 %1873  ;;  %v1940_v2 = vsel %vm456_vm12, %v1938_v29, %v1939_v63  ;;  %v2085_v35 = vsel %vm456_vm12, %v2083_v12, %v2084_v58  ;;  %v2104_v29 = vrot.slane %v5368_v20, 7 }
 0x4c3   : > { %v1950_v52 = vrot.slane %v1874_v30, 7  ;;  %1982 = vst.msk [vmem:[#allocation3 + $0x2c] sm:$0xf] %vm539_vm13, %v1940_v2 }
 0x4c4   : > { %v2105_v20 = vsel %vm444_vm7, %v2104_v29, %v5353_v46 }
 0x4c5   : > { %v1951_v55 = vsel %vm444_vm7, %v1950_v52, %v1872_v57 }
 0x4c6   : > { %v1952_v34 = vsel %vm446_vm8, %v1950_v52, %v1951_v55  ;;  %v1884_v47 = vpop.permute.xlu1 %1883  ;;  %v1878_v45 = vpop.permute.xlu0 %1877  ;;  %v2107_v55 = vrot.slane %v5360_v25, 6 }
 0x4c7   : > { %v1954_v36 = vsel %vm449_vm9, %v1953_v7, %v1952_v34  ;;  %v1956_v51 = vrot.slane %v1878_v45, 5  ;;  %v1962_v50 = vrot.slane %v1884_v47, 6 }
 0x4c8   : > { %v1955_v28 = vsel %vm451_vm10, %v1953_v7, %v1954_v36 }
 0x4c9   : > { %v1957_v1 = vsel %vm454_vm11, %v1956_v51, %v1955_v28 }
 0x4ca   : > { %v1995_v54 = vpop.permute.xlu1 %1994  ;;  %v1882_v11 = vpop.permute.xlu0 %1881  ;;  %v1958_v44 = vsel %vm456_vm12, %v1956_v51, %v1957_v1  ;;  %v2106_v1 = vsel %vm446_vm8, %v2104_v29, %v2105_v20  ;;  %v5557_v20 = vld [vmem:[#allocation2 + $0x24] sm:$0x7] }
 0x4cb   : > { %v1959_v18 = vrot.slane %v1882_v11, 7  ;;  %1984 = vst.msk [vmem:[#allocation3 + $0x3c] sm:$0xf] %vm539_vm13, %v1958_v44  ;;  %v2108_v25 = vsel %vm449_vm9, %v2107_v55, %v2106_v1  ;;  %v2110_v44 = vrot.slane %v5377_v31, 5  ;;  %v5594_v1 = vld [vmem:[#allocation2 + $0xc] sm:$0x7] }
 0x4cd   : > { %v1960_v32 = vsel %vm444_vm7, %v1959_v18, %v1880_v0 }
 0x4ce   : > { %v1961_v49 = vsel %vm446_vm8, %v1959_v18, %v1960_v32  ;;  %v1999_v27 = vpop.permute.xlu1 %1998  ;;  %v1886_v61 = vpop.permute.xlu0 %1885 }
 0x4cf   : > { %v1963_v17 = vsel %vm449_vm9, %v1962_v50, %v1961_v49  ;;  %v1965_v39 = vrot.slane %v1886_v61, 5  ;;  %v2062_v26 = vrot.slane %v1999_v27, 6  ;;  %v2109_v27 = vsel %vm451_vm10, %v2107_v55, %v2108_v25 }
 0x4d0   : > { %v1964_v3 = vsel %vm451_vm10, %v1962_v50, %v1963_v17  ;;  %v2111_v42 = vsel %vm454_vm11, %v2110_v44, %v2109_v27 }
 0x4d1   : > { %v1966_v56 = vsel %vm454_vm11, %v1965_v39, %v1964_v3 }
 0x4d2   : > { %v2003_v4 = vpop.permute.xlu1 %2002  ;;  %v1997_v5 = vpop.permute.xlu0 %1996  ;;  %v1967_v53 = vsel %vm456_vm12, %v1965_v39, %v1966_v56 }
 0x4d3   : > { %v2059_v48 = vrot.slane %v1997_v5, 7  ;;  %1985 = vst.msk [vmem:[#allocation3 + $0x44] sm:$0xf] %vm539_vm13, %v1967_v53 }
 0x4d5   : > { %v2060_v38 = vsel %vm444_vm7, %v2059_v48, %v1995_v54 }
 0x4d6   : > { %v2061_v19 = vsel %vm446_vm8, %v2059_v48, %v2060_v38  ;;  %v2007_v16 = vpop.permute.xlu1 %2006  ;;  %v2001_v10 = vpop.permute.xlu0 %2000 }
 0x4d7   : > { %v2063_v9 = vsel %vm449_vm9, %v2062_v26, %v2061_v19  ;;  %v2065_v14 = vrot.slane %v2001_v10, 5  ;;  %v2071_v21 = vrot.slane %v2007_v16, 6 }
 0x4d8   : > { %v2064_v13 = vsel %vm451_vm10, %v2062_v26, %v2063_v9 }
 0x4d9   : > { %v2066_v23 = vsel %vm454_vm11, %v2065_v14, %v2064_v13 }
 0x4da   : > { %v2015_v60 = vpop.permute.xlu1 %2014  ;;  %v2005_v57 = vpop.permute.xlu0 %2004  ;;  %v2067_v43 = vsel %vm456_vm12, %v2065_v14, %v2066_v23 }
 0x4db   : > { %v2068_v40 = vrot.slane %v2005_v57, 7  ;;  %2133 = vrot.lane.b32.xlu0 %v2067_v43, %s3478_s22 }
 0x4dd   : > { %v2069_v8 = vsel %vm444_vm7, %v2068_v40, %v2003_v4  ;;  %v2112_v4 = vsel %vm456_vm12, %v2110_v44, %v2111_v42  ;;  %v5619_v44 = vld [vmem:[#allocation2 + $0xd] sm:$0x7]  ;;  %v5650_v42 = vld [vmem:[#allocation2 + $0x54] sm:$0x7] }
 0x4de   : > { %v2070_v59 = vsel %vm446_vm8, %v2068_v40, %v2069_v8  ;;  %v2019_v24 = vpop.permute.xlu1 %2018  ;;  %v2009_v37 = vpop.permute.xlu0 %2008  ;;  %7281 = vst [vmem:[#allocation36_spill] sm:$0xff] %v5650_v42 }
 0x4df   : > { %v2072_v62 = vsel %vm449_vm9, %v2071_v21, %v2070_v59  ;;  %v2074_v63 = vrot.slane %v2009_v37, 5  ;;  %2137 = vrot.lane.b32.xlu0 %v2085_v35, %s3478_s22  ;;  %v2089_v47 = vrot.slane %v2019_v24, 6  ;;  %v5498_v59 = vld [vmem:[#allocation2 + $0xa] sm:$0x7] }
 0x4e0   : > { %v2073_v0 = vsel %vm451_vm10, %v2071_v21, %v2072_v62  ;;  %v5505_v62 = vld [vmem:[#allocation2 + $0x3a] sm:$0x7] }
 0x4e1   : > { %v2075_v30 = vsel %vm454_vm11, %v2074_v63, %v2073_v0  ;;  %v5511_v0 = vld [vmem:[#allocation2 + $0x22] sm:$0x7] }
 0x4e2   : > { %v2023_v2 = vpop.permute.xlu1 %2022  ;;  %v2017_v52 = vpop.permute.xlu0 %2016  ;;  %v2076_v7 = vsel %vm456_vm12, %v2074_v63, %v2075_v30  ;;  %v5517_v30 = vld [vmem:[#allocation2 + $0x52] sm:$0x7] }
 0x4e3   : > { %v2086_v34 = vrot.slane %v2017_v52, 7  ;;  %2135 = vrot.lane.b32.xlu1 %v2076_v7, %s3478_s22  ;;  %v5531_v52 = vrot.slane %v5505_v62, 1  ;;  %v5538_v7 = vrot.slane %v5511_v0, 1  ;;  %v5545_v55 = vrot.slane %v5517_v30, 1 }
 0x4e5   : > { %v2087_v45 = vsel %vm444_vm7, %v2086_v34, %v2015_v60  ;;  %7279 = vst [vmem:[#allocation15_spill] sm:$0xff] %v5545_v55 }
 0x4e6   : > { %v2088_v36 = vsel %vm446_vm8, %v2086_v34, %v2087_v45  ;;  %v2027_v51 = vpop.permute.xlu1 %2026  ;;  %v2021_v28 = vpop.permute.xlu0 %2020  ;;  %v5551_v34 = vld [vmem:[#allocation2 + $0x23] sm:$0x7] }
 0x4e7   : > { %v2090_v54 = vsel %vm449_vm9, %v2089_v47, %v2088_v36  ;;  %v2092_v11 = vrot.slane %v2021_v28, 5  ;;  %v2098_v17 = vrot.slane %v2027_v51, 6  ;;  %v5573_v45 = vld [vmem:[#allocation2 + $0x25] sm:$0x7]  ;;  %v5575_v36 = vld [vmem:[#allocation2 + $0x3b] sm:$0x7] }
 0x4e8   : > { %v2091_v18 = vsel %vm451_vm10, %v2089_v47, %v2090_v54  ;;  %v5563_v47 = vld [vmem:[#allocation2 + $0xb] sm:$0x7]  ;;  %v5582_v51 = vrot.slane %v5511_v0, 2  ;;  %v5588_v28 = vld [vmem:[#allocation2 + $0x3c] sm:$0x7]  ;;  %v5613_v25 = vrot.slane %v5551_v34, 1 }
 0x4e9   : > { %v2093_v46 = vsel %vm454_vm11, %v2092_v11, %v2091_v18  ;;  %v5600_v54 = vld [vmem:[#allocation2 + $0x26] sm:$0x7] }
 0x4ea   : > { %v2035_v50 = vpop.permute.xlu1 %2034  ;;  %v2025_v32 = vpop.permute.xlu0 %2024  ;;  %v2094_v49 = vsel %vm456_vm12, %v2092_v11, %v2093_v46  ;;  %v5606_v11 = vld [vmem:[#allocation2 + $0x53] sm:$0x7]  ;;  %v5626_v46 = vrot.slane %v5551_v34, 2 }
 0x4eb   : > { %v2095_v61 = vrot.slane %v2025_v32, 7  ;;  %2139 = vrot.lane.b32.xlu1 %v2094_v49, %s3478_s22  ;;  %7280 = vst [vmem:[#allocation19_spill] sm:$0xff] %v5606_v11  ;;  %v5634_v32 = vld [vmem:[#allocation2 + $0x27] sm:$0x7]  ;;  %v5636_v49 = vld [vmem:[#allocation2 + $0x3d] sm:$0x7] }
 0x4ed   : > { %v2096_v39 = vsel %vm444_vm7, %v2095_v61, %v2023_v2  ;;  %v5524_v2 = vrot.slane %v5498_v59, 1 }
 0x4ee   : > { %v2097_v31 = vsel %vm446_vm8, %v2095_v61, %v2096_v39  ;;  %v2039_v3 = vpop.permute.xlu1 %2038  ;;  %v2029_v56 = vpop.permute.xlu0 %2028  ;;  %v5643_v61 = vrot.slane %v5498_v59, 2  ;;  %v5657_v39 = vrot.slane %v5557_v20, 1 }
 0x4ef   : > { %v2099_v5 = vsel %vm449_vm9, %v2098_v17, %v2097_v31  ;;  %v2101_v53 = vrot.slane %v2029_v56, 5  ;;  %2143 = vrot.lane.b32.xlu1 %v2112_v4, %s3478_s22  ;;  %v2116_v16 = vrot.slane %v2039_v3, 6  ;;  %v5660_v31 = vrot.slane %v5505_v62, 2 }
 0x4f0   : > { %v2100_v22 = vsel %vm451_vm10, %v2098_v17, %v2099_v5  ;;  %v5668_v56 = vrot.slane %v5557_v20, 2  ;;  %v5676_v5 = vld [vmem:[#allocation2 + $0x3e] sm:$0x7] }
 0x4f1   : > { %v2102_v48 = vsel %vm454_vm11, %v2101_v53, %v2100_v22 }
 0x4f2   : > { %v2043_v33 = vpop.permute.xlu1 %2042  ;;  %v2037_v26 = vpop.permute.xlu0 %2036  ;;  %v2103_v38 = vsel %vm456_vm12, %v2101_v53, %v2102_v48  ;;  %v5682_v53 = vld [vmem:[#allocation2 + $0xe] sm:$0x7]  ;;  %v5689_v48 = vrot.slane %v5575_v36, 1 }
 0x4f3   : > { %v2113_v19 = vrot.slane %v2037_v26, 7  ;;  %2141 = vrot.lane.b32.xlu0 %v2103_v38, %s3478_s22  ;;  %v5699_v26 = vrot.slane %v5563_v47, 1 }
 0x4f5   : > { %v2114_v10 = vsel %vm444_vm7, %v2113_v19, %v2035_v50 }
 0x4f6   : > { %v2115_v6 = vsel %vm446_vm8, %v2113_v19, %v2114_v10  ;;  %v2047_v9 = vpop.permute.xlu1 %2046  ;;  %v2041_v14 = vpop.permute.xlu0 %2040 }
 0x4f7   : > { %v2117_v41 = vsel %vm449_vm9, %v2116_v16, %v2115_v6  ;;  %v2119_v12 = vrot.slane %v2041_v14, 5  ;;  %v2125_v40 = vrot.slane %v2047_v9, 6  ;;  %v5720_v9 = vrot.slane %v5563_v47, 2  ;;  %v5722_v14 = vld [vmem:[#allocation2 + $0x55] sm:$0x7] }
 0x4f8   : > { %v2118_v13 = vsel %vm451_vm10, %v2116_v16, %v2117_v41  ;;  %v5708_v16 = vrot.slane %v5575_v36, 2  ;;  %7282 = vst [vmem:[#allocation38_spill] sm:$0xff] %v5722_v14 }
 0x4f9   : > { %v2120_v23 = vsel %vm454_vm11, %v2119_v12, %v2118_v13  ;;  %v5733_v13 = vrot.slane %v5573_v45, 1 }
 0x4fa   : > { %v2132_v60 = vpop.permute.xlu1 %2131  ;;  %v2045_v57 = vpop.permute.xlu0 %2044  ;;  %v2121_v43 = vsel %vm456_vm12, %v2119_v12, %v2120_v23 }
 0x4fb   : > { %2158 = vst.msk [vmem:[#allocation3 + $0x4] sm:$0xf] %vm721_vm14, %v2132_v60  ;;  %v2122_v15 = vrot.slane %v2045_v57, 7  ;;  %2145 = vrot.lane.b32.xlu0 %v2121_v43, %s3478_s22  ;;  %v5743_v57 = vld [vmem:[#allocation2 + $0xf] sm:$0x7] }
 0x4fd   : > { %v2123_v58 = vsel %vm444_vm7, %v2122_v15, %v2043_v33 }
 0x4fe   : > { %v2124_v21 = vsel %vm446_vm8, %v2122_v15, %v2123_v58  ;;  %v2049_v8 = vpop.permute.xlu0 %2048 }
 0x4ff   : > { %v2126_v24 = vsel %vm449_vm9, %v2125_v40, %v2124_v21  ;;  %v2128_v37 = vrot.slane %v2049_v8, 5  ;;  %2175 = vrot.lane.b32.xlu0 %v5498_v59, %s3477_s21  ;;  %v5765_v8 = vrot.slane %v5517_v30, 2 }
 0x500   : > { %v2127_v35 = vsel %vm451_vm10, %v2125_v40, %v2126_v24  ;;  %v5754_v40 = vrot.slane %v5573_v45, 2  ;;  %v5767_v24 = vld [vmem:[#allocation2 + $0x3f] sm:$0x7] }
 0x501   : > { %v2129_v29 = vsel %vm454_vm11, %v2128_v37, %v2127_v35  ;;  %7289 = vst [vmem:[#allocation47_spill] sm:$0xff] %v5765_v8 }
 0x502   : > { %v2130_v63 = vsel %vm456_vm12, %v2128_v37, %v2129_v29  ;;  %v5778_v29 = vrot.slane %v5594_v1, 1 }
 0x503   : > { %2179 = vrot.lane.b32.xlu0 %v5505_v62, %s3477_s21  ;;  %2147 = vrot.lane.b32.xlu1 %v2130_v63, %s3478_s22 }
 0x507   : > { %2183 = vrot.lane.b32.xlu0 %v5498_v59, %s3475_s19  ;;  %2177 = vrot.lane.b32.xlu1 %v5511_v0, %s3477_s21 }
 0x50b   : > { %2187 = vrot.lane.b32.xlu0 %v5505_v62, %s3475_s19  ;;  %2181 = vrot.lane.b32.xlu1 %v5517_v30, %s3477_s21 }
 0x50f   : > { %2195 = vrot.lane.b32.xlu0 %v5524_v2, %s3477_s21  ;;  %2185 = vrot.lane.b32.xlu1 %v5511_v0, %s3475_s19 }
 0x513   : > { %2199 = vrot.lane.b32.xlu0 %v5531_v52, %s3477_s21  ;;  %2189 = vrot.lane.b32.xlu1 %v5517_v30, %s3475_s19 }
 0x517   : > { %2203 = vrot.lane.b32.xlu0 %v5524_v2, %s3475_s19  ;;  %2197 = vrot.lane.b32.xlu1 %v5538_v7, %s3477_s21 }
 0x51b   : > { %2207 = vrot.lane.b32.xlu0 %v5531_v52, %s3475_s19  ;;  %2201 = vrot.lane.b32.xlu1 %v5545_v55, %s3477_s21 }
 0x51f   : > { %2358 = vrot.lane.b32.xlu0 %v5551_v34, %s3477_s21  ;;  %2205 = vrot.lane.b32.xlu1 %v5538_v7, %s3475_s19 }
 0x523   : > { %2539 = vrot.lane.b32.xlu0 %v5557_v20, %s3477_s21  ;;  %2209 = vrot.lane.b32.xlu1 %v5545_v55, %s3475_s19  ;;  %v5933_v55 = vrot.slane %v5634_v32, 2 }
 0x525   : > { %7332 = vst [vmem:[#allocation32_spill] sm:$0xff] %v5933_v55 }
 0x527   : > { %2356 = vrot.lane.b32.xlu0 %v5563_v47, %s3477_s21  ;;  %2366 = vrot.lane.b32.xlu1 %v5551_v34, %s3475_s19 }
 0x52b   : > { %2364 = vrot.lane.b32.xlu0 %v5563_v47, %s3475_s19  ;;  %2547 = vrot.lane.b32.xlu1 %v5557_v20, %s3475_s19 }
 0x52f   : > { %2720 = vrot.lane.b32.xlu0 %v5573_v45, %s3477_s21  ;;  %2360 = vrot.lane.b32.xlu1 %v5575_v36, %s3477_s21 }
 0x533   : > { %2217 = vrot.lane.b32.xlu0 %v5582_v51, %s3477_s21  ;;  %2368 = vrot.lane.b32.xlu1 %v5575_v36, %s3475_s19 }
 0x537   : > { %2541 = vrot.lane.b32.xlu0 %v5588_v28, %s3477_s21  ;;  %2728 = vrot.lane.b32.xlu1 %v5573_v45, %s3475_s19 }
 0x53b   : > { %2549 = vrot.lane.b32.xlu0 %v5588_v28, %s3475_s19  ;;  %2537 = vrot.lane.b32.xlu1 %v5594_v1, %s3477_s21 }
 0x53f   : > { %2909 = vrot.lane.b32.xlu0 %v5600_v54, %s3475_s19  ;;  %2545 = vrot.lane.b32.xlu1 %v5594_v1, %s3475_s19 }
 0x543   : > { %2370 = vrot.lane.b32.xlu0 %v5606_v11, %s3475_s19  ;;  %2901 = vrot.lane.b32.xlu1 %v5600_v54, %s3477_s21 }
 0x547   : > { %2386 = vrot.lane.b32.xlu0 %v5613_v25, %s3475_s19  ;;  %2362 = vrot.lane.b32.xlu1 %v5606_v11, %s3477_s21 }
 0x54b   : > { %2718 = vrot.lane.b32.xlu0 %v5619_v44, %s3477_s21  ;;  %2378 = vrot.lane.b32.xlu1 %v5613_v25, %s3477_s21 }
 0x54d   : > { %v2134_v18 = vpop.permute.xlu0 %2133 }
 0x54e   : > { %2159 = vst.msk [vmem:[#allocation3 + $0xc] sm:$0xf] %vm721_vm14, %v2134_v18 }
 0x54f   : > { %2726 = vrot.lane.b32.xlu0 %v5619_v44, %s3475_s19  ;;  %2398 = vrot.lane.b32.xlu1 %v5626_v46, %s3477_s21 }
 0x551   : > { %v2138_v50 = vpop.permute.xlu0 %2137 }
 0x552   : > { %2161 = vst.msk [vmem:[#allocation3 + $0x1c] sm:$0xf] %vm721_vm14, %v2138_v50 }
 0x553   : > { %3082 = vrot.lane.b32.xlu0 %v5634_v32, %s3477_s21  ;;  %2722 = vrot.lane.b32.xlu1 %v5636_v49, %s3477_s21 }
 0x555   : > { %v2136_v27 = vpop.permute.xlu1 %2135 }
 0x556   : > { %2160 = vst.msk [vmem:[#allocation3 + $0x14] sm:$0xf] %vm721_vm14, %v2136_v27 }
 0x557   : > { %2215 = vrot.lane.b32.xlu0 %v5643_v61, %s3477_s21  ;;  %2730 = vrot.lane.b32.xlu1 %v5636_v49, %s3475_s19 }
 0x55b   : > { %2543 = vrot.lane.b32.xlu0 %v5650_v42, %s3477_s21  ;;  %3090 = vrot.lane.b32.xlu1 %v5634_v32, %s3475_s19 }
 0x55d   : > { %v2140_v17 = vpop.permute.xlu1 %2139 }
 0x55e   : > { %2162 = vst.msk [vmem:[#allocation3 + $0x24] sm:$0xf] %vm721_vm14, %v2140_v17  ;;  %v5797_v17 = vrot.slane %v5594_v1, 2 }
 0x55f   : > { %2559 = vrot.lane.b32.xlu0 %v5657_v39, %s3477_s21  ;;  %2219 = vrot.lane.b32.xlu1 %v5660_v31, %s3477_s21 }
 0x561   : > { %v2144_v3 = vpop.permute.xlu1 %2143 }
 0x562   : > { %2164 = vst.msk [vmem:[#allocation3 + $0x34] sm:$0xf] %vm721_vm14, %v2144_v3  ;;  %v5800_v3 = vrot.slane %v5588_v28, 1 }
 0x563   : > { %2579 = vrot.lane.b32.xlu0 %v5668_v56, %s3477_s21  ;;  %2551 = vrot.lane.b32.xlu1 %v5650_v42, %s3475_s19 }
 0x565   : > { %v2142_v4 = vpop.permute.xlu0 %2141 }
 0x566   : > { %2163 = vst.msk [vmem:[#allocation3 + $0x2c] sm:$0xf] %vm721_vm14, %v2142_v4 }
 0x567   : > { %2903 = vrot.lane.b32.xlu0 %v5676_v5, %s3477_s21  ;;  %2567 = vrot.lane.b32.xlu1 %v5657_v39, %s3475_s19 }
 0x56b   : > { %2911 = vrot.lane.b32.xlu0 %v5676_v5, %s3475_s19  ;;  %2899 = vrot.lane.b32.xlu1 %v5682_v53, %s3477_s21 }
 0x56d   : > { %v2146_v22 = vpop.permute.xlu0 %2145 }
 0x56e   : > { %2165 = vst.msk [vmem:[#allocation3 + $0x3c] sm:$0xf] %vm721_vm14, %v2146_v22 }
 0x56f   : > { %2380 = vrot.lane.b32.xlu0 %v5689_v48, %s3477_s21  ;;  %2907 = vrot.lane.b32.xlu1 %v5682_v53, %s3475_s19 }
 0x571   : > { %v5696_v33 = vpop.permute.xlu0 %2175 }
 0x573   : > { %2388 = vrot.lane.b32.xlu0 %v5689_v48, %s3475_s19  ;;  %2376 = vrot.lane.b32.xlu1 %v5699_v26, %s3477_s21 }
 0x575   : > { %v2148_v38 = vpop.permute.xlu1 %2147  ;;  %v5705_v19 = vpop.permute.xlu0 %2179 }
 0x576   : > { %2166 = vst.msk [vmem:[#allocation3 + $0x44] sm:$0xf] %vm721_vm14, %v2148_v38  ;;  %v5810_v38 = vld [vmem:[#allocation2 + $0x56] sm:$0x7] }
 0x577   : > { %2400 = vrot.lane.b32.xlu0 %v5708_v16, %s3477_s21  ;;  %2384 = vrot.lane.b32.xlu1 %v5699_v26, %s3475_s19  ;;  %7298 = vst [vmem:[#allocation39_spill] sm:$0xff] %v5810_v38 }
 0x579   : > { %v5715_v10 = vpop.permute.xlu1 %2177  ;;  %v5717_v6 = vpop.permute.xlu0 %2183 }
 0x57b   : > { %2732 = vrot.lane.b32.xlu0 %v5722_v14, %s3475_s19  ;;  %2396 = vrot.lane.b32.xlu1 %v5720_v9, %s3477_s21 }
 0x57d   : > { %v5728_v41 = vpop.permute.xlu1 %2181  ;;  %v5730_v12 = vpop.permute.xlu0 %2187 }
 0x57e   : > { %7283 = vst [vmem:[#allocation25_spill] sm:$0xff] %v5728_v41  ;;  %v5901_v41 = vrot.slane %v5619_v44, 2 }
 0x57f   : > { %2748 = vrot.lane.b32.xlu0 %v5733_v13, %s3475_s19  ;;  %2724 = vrot.lane.b32.xlu1 %v5722_v14, %s3477_s21 }
 0x580   : > { %7323 = vst [vmem:[#allocation69_spill] sm:$0xff] %v5901_v41 }
 0x581   : > { %v5739_v23 = vpop.permute.xlu1 %2185  ;;  %v5741_v60 = vpop.permute.xlu0 %2195 }
 0x582   : > { %7284 = vst [vmem:[#allocation34_spill] sm:$0xff] %v5741_v60  ;;  %v5835_v60 = vrot.slane %v5600_v54, 2 }
 0x583   : > { %3080 = vrot.lane.b32.xlu0 %v5743_v57, %s3477_s21  ;;  %2740 = vrot.lane.b32.xlu1 %v5733_v13, %s3477_s21 }
 0x584   : > { %7305 = vst [vmem:[#allocation54_spill] sm:$0xff] %v5835_v60 }
 0x585   : > { %v5749_v43 = vpop.permute.xlu1 %2189  ;;  %v5751_v15 = vpop.permute.xlu0 %2199 }
 0x586   : > { %7285 = vst [vmem:[#allocation45_spill] sm:$0xff] %v5749_v43  ;;  %7286 = vst [vmem:[#allocation27_spill] sm:$0xff] %v5751_v15  ;;  %v6002_v43 = vrot.slane %v5722_v14, 1 }
 0x587   : > { %3088 = vrot.lane.b32.xlu0 %v5743_v57, %s3475_s19  ;;  %2760 = vrot.lane.b32.xlu1 %v5754_v40, %s3477_s21 }
 0x588   : > { %7351 = vst [vmem:[#allocation6_spill] sm:$0xff] %v6002_v43 }
 0x589   : > { %v5760_v58 = vpop.permute.xlu1 %2197  ;;  %v5762_v21 = vpop.permute.xlu0 %2203 }
 0x58a   : > { %7287 = vst [vmem:[#allocation37_spill] sm:$0xff] %v5760_v58  ;;  %7288 = vst [vmem:[#allocation44_spill] sm:$0xff] %v5762_v21  ;;  %v5821_v21 = vrot.slane %v5600_v54, 1 }
 0x58b   : > { %2221 = vrot.lane.b32.xlu0 %v5765_v8, %s3477_s21  ;;  %3084 = vrot.lane.b32.xlu1 %v5767_v24, %s3477_s21 }
 0x58c   : > { %7301 = vst [vmem:[#allocation53_spill] sm:$0xff] %v5821_v21 }
 0x58d   : > { %v5773_v37 = vpop.permute.xlu1 %2201  ;;  %v5775_v35 = vpop.permute.xlu0 %2207 }
 0x58e   : > { %7290 = vst [vmem:[#allocation23_spill] sm:$0xff] %v5773_v37  ;;  %7291 = vst [vmem:[#allocation35_spill] sm:$0xff] %v5775_v35  ;;  %v5824_v37 = vrot.slane %v5588_v28, 2 }
 0x58f   : > { %2557 = vrot.lane.b32.xlu0 %v5778_v29, %s3477_s21  ;;  %3092 = vrot.lane.b32.xlu1 %v5767_v24, %s3475_s19 }
 0x590   : > { %7302 = vst [vmem:[#allocation49_spill] sm:$0xff] %v5824_v37 }
 0x591   : > { %v5784_v63 = vpop.permute.xlu1 %2205  ;;  %v5786_v18 = vpop.permute.xlu0 %2358 }
 0x592   : > { %7292 = vst [vmem:[#allocation40_spill] sm:$0xff] %v5784_v63  ;;  %7293 = vst [vmem:[#allocation42_spill] sm:$0xff] %v5786_v18  ;;  %v5865_v18 = vrot.slane %v5606_v11, 2 }
 0x593   : > { %2565 = vrot.lane.b32.xlu0 %v5778_v29, %s3475_s19  ;;  %2225 = vrot.lane.b32.xlu1 %v5582_v51, %s3475_s19 }
 0x594   : > { %7313 = vst [vmem:[#allocation59_spill] sm:$0xff] %v5865_v18 }
 0x595   : > { %v5792_v50 = vpop.permute.xlu1 %2209  ;;  %v5794_v27 = vpop.permute.xlu0 %2539 }
 0x596   : > { %7294 = vst [vmem:[#allocation30_spill] sm:$0xff] %v5792_v50  ;;  %7295 = vst [vmem:[#allocation41_spill] sm:$0xff] %v5794_v27 }
 0x597   : > { %2577 = vrot.lane.b32.xlu0 %v5797_v17, %s3477_s21  ;;  %2561 = vrot.lane.b32.xlu1 %v5800_v3, %s3477_s21 }
 0x599   : > { %v5806_v4 = vpop.permute.xlu1 %2366  ;;  %v5808_v22 = vpop.permute.xlu0 %2356 }
 0x59a   : > { %7296 = vst [vmem:[#allocation50_spill] sm:$0xff] %v5806_v4  ;;  %7297 = vst [vmem:[#allocation43_spill] sm:$0xff] %v5808_v22  ;;  %v5958_v4 = vrot.slane %v5682_v53, 1 }
 0x59b   : > { %2905 = vrot.lane.b32.xlu0 %v5810_v38, %s3477_s21  ;;  %2569 = vrot.lane.b32.xlu1 %v5800_v3, %s3475_s19 }
 0x59c   : > { %7339 = vst [vmem:[#allocation18_spill] sm:$0xff] %v5958_v4 }
 0x59d   : > { %v5816_v50 = vpop.permute.xlu1 %2547  ;;  %v5818_v35 = vpop.permute.xlu0 %2364 }
 0x59e   : > { %7299 = vst [vmem:[#allocation46_spill] sm:$0xff] %v5816_v50  ;;  %7300 = vst [vmem:[#allocation56_spill] sm:$0xff] %v5818_v35  ;;  %v5846_v50 = vrot.slane %v5606_v11, 1  ;;  %v5890_v35 = vrot.slane %v5636_v49, 2  ;;  %v5936_v11 = vrot.slane %v5650_v42, 1 }
 0x59f   : > { %2921 = vrot.lane.b32.xlu0 %v5821_v21, %s3477_s21  ;;  %2581 = vrot.lane.b32.xlu1 %v5824_v37, %s3477_s21 }
 0x5a0   : > { %7308 = vst [vmem:[#allocation64_spill] sm:$0xff] %v5846_v50  ;;  %7320 = vst [vmem:[#allocation67_spill] sm:$0xff] %v5890_v35 }
 0x5a1   : > { %v5830_v63 = vpop.permute.xlu1 %2360  ;;  %v5832_v15 = vpop.permute.xlu0 %2720  ;;  %7333 = vst [vmem:[#allocation20_spill] sm:$0xff] %v5936_v11 }
 0x5a2   : > { %7303 = vst [vmem:[#allocation51_spill] sm:$0xff] %v5830_v63  ;;  %7304 = vst [vmem:[#allocation52_spill] sm:$0xff] %v5832_v15 }
 0x5a3   : > { %2941 = vrot.lane.b32.xlu0 %v5835_v60, %s3477_s21  ;;  %2913 = vrot.lane.b32.xlu1 %v5810_v38, %s3475_s19 }
 0x5a5   : > { %v5841_v58 = vpop.permute.xlu1 %2368  ;;  %v5843_v27 = vpop.permute.xlu0 %2217 }
 0x5a6   : > { %7306 = vst [vmem:[#allocation60_spill] sm:$0xff] %v5841_v58  ;;  %7307 = vst [vmem:[#allocation68_spill] sm:$0xff] %v5843_v27  ;;  %v5868_v58 = vrot.slane %v5636_v49, 1 }
 0x5a7   : > { %2390 = vrot.lane.b32.xlu0 %v5846_v50, %s3475_s19  ;;  %2929 = vrot.lane.b32.xlu1 %v5821_v21, %s3475_s19  ;;  %v6024_v21 = vrot.slane %v5743_v57, 1 }
 0x5a8   : > { %7314 = vst [vmem:[#allocation57_spill] sm:$0xff] %v5868_v58 }
 0x5a9   : > { %v5852_v15 = vpop.permute.xlu1 %2728  ;;  %v5854_v63 = vpop.permute.xlu0 %2541  ;;  %7357 = vst [vmem:[#allocation82_spill] sm:$0xff] %v6024_v21 }
 0x5aa   : > { %7309 = vst [vmem:[#allocation58_spill] sm:$0xff] %v5852_v15  ;;  %7310 = vst [vmem:[#allocation55_spill] sm:$0xff] %v5854_v63 }
 0x5ab   : > { %2406 = vrot.lane.b32.xlu0 %v5626_v46, %s3475_s19  ;;  %2382 = vrot.lane.b32.xlu1 %v5846_v50, %s3477_s21 }
 0x5ad   : > { %v5860_v27 = vpop.permute.xlu1 %2537  ;;  %v5862_v22 = vpop.permute.xlu0 %2549 }
 0x5ae   : > { %7311 = vst [vmem:[#allocation63_spill] sm:$0xff] %v5860_v27  ;;  %7312 = vst [vmem:[#allocation71_spill] sm:$0xff] %v5862_v22  ;;  %v5879_v27 = vrot.slane %v5619_v44, 1 }
 0x5af   : > { %2402 = vrot.lane.b32.xlu1 %v5865_v18, %s3477_s21  ;;  %2742 = vrot.lane.b32.xlu0 %v5868_v58, %s3477_s21 }
 0x5b0   : > { %7317 = vst [vmem:[#allocation62_spill] sm:$0xff] %v5879_v27 }
 0x5b1   : > { %v5874_v15 = vpop.permute.xlu1 %2545  ;;  %v5876_v63 = vpop.permute.xlu0 %2909 }
 0x5b2   : > { %7315 = vst [vmem:[#allocation65_spill] sm:$0xff] %v5874_v15  ;;  %7316 = vst [vmem:[#allocation61_spill] sm:$0xff] %v5876_v63 }
 0x5b3   : > { %2738 = vrot.lane.b32.xlu1 %v5879_v27, %s3477_s21  ;;  %2750 = vrot.lane.b32.xlu0 %v5868_v58, %s3475_s19  ;;  %v5903_v58 = vld [vmem:[#allocation2 + $0x57] sm:$0x7] }
 0x5b4   : > { %7324 = vst [vmem:[#allocation77_spill] sm:$0xff] %v5903_v58 }
 0x5b5   : > { %v5885_v22 = vpop.permute.xlu1 %2901  ;;  %v5887_v50 = vpop.permute.xlu0 %2370 }
 0x5b6   : > { %7318 = vst [vmem:[#allocation70_spill] sm:$0xff] %v5885_v22  ;;  %7319 = vst [vmem:[#allocation66_spill] sm:$0xff] %v5887_v50 }
 0x5b7   : > { %2746 = vrot.lane.b32.xlu1 %v5879_v27, %s3475_s19  ;;  %2762 = vrot.lane.b32.xlu0 %v5890_v35, %s3477_s21  ;;  %v5914_v27 = vrot.slane %v5634_v32, 1 }
 0x5b9   : > { %v5896_v63 = vpop.permute.xlu1 %2362  ;;  %v5898_v15 = vpop.permute.xlu0 %2386  ;;  %7327 = vst [vmem:[#allocation74_spill] sm:$0xff] %v5914_v27 }
 0x5ba   : > { %7321 = vst [vmem:[#allocation72_spill] sm:$0xff] %v5896_v63  ;;  %7322 = vst [vmem:[#allocation73_spill] sm:$0xff] %v5898_v15 }
 0x5bb   : > { %2758 = vrot.lane.b32.xlu1 %v5901_v41, %s3477_s21  ;;  %3094 = vrot.lane.b32.xlu0 %v5903_v58, %s3475_s19 }
 0x5bd   : > { %v5909_v22 = vpop.permute.xlu1 %2378  ;;  %v5911_v50 = vpop.permute.xlu0 %2718 }
 0x5be   : > { %7325 = vst [vmem:[#allocation76_spill] sm:$0xff] %v5909_v22  ;;  %7326 = vst [vmem:[#allocation14_spill] sm:$0xff] %v5911_v50 }
 0x5bf   : > { %3086 = vrot.lane.b32.xlu1 %v5903_v58, %s3477_s21  ;;  %3110 = vrot.lane.b32.xlu0 %v5914_v27, %s3475_s19 }
 0x5c1   : > { %v5920_v15 = vpop.permute.xlu1 %2398  ;;  %v5922_v63 = vpop.permute.xlu0 %2726 }
 0x5c2   : > { %7328 = vst [vmem:[#allocation16_spill] sm:$0xff] %v5920_v15  ;;  %7329 = vst [vmem:[#allocation12_spill] sm:$0xff] %v5922_v63 }
 0x5c3   : > { %3102 = vrot.lane.b32.xlu1 %v5914_v27, %s3477_s21  ;;  %2223 = vrot.lane.b32.xlu0 %v5643_v61, %s3475_s19 }
 0x5c5   : > { %v5928_v22 = vpop.permute.xlu1 %2722  ;;  %v5930_v50 = vpop.permute.xlu0 %3082 }
 0x5c6   : > { %7330 = vst [vmem:[#allocation13_spill] sm:$0xff] %v5928_v22  ;;  %7331 = vst [vmem:[#allocation31_spill] sm:$0xff] %v5930_v50  ;;  %v5947_v22 = vrot.slane %v5650_v42, 2  ;;  %v5977_v42 = vrot.slane %v5676_v5, 1 }
 0x5c7   : > { %3122 = vrot.lane.b32.xlu1 %v5933_v55, %s3477_s21  ;;  %2563 = vrot.lane.b32.xlu0 %v5936_v11, %s3477_s21 }
 0x5c8   : > { %7336 = vst [vmem:[#allocation48_spill] sm:$0xff] %v5947_v22  ;;  %7344 = vst [vmem:[#allocation33_spill] sm:$0xff] %v5977_v42 }
 0x5c9   : > { %v5942_v15 = vpop.permute.xlu1 %2730  ;;  %v5944_v63 = vpop.permute.xlu0 %2215 }
 0x5ca   : > { %7334 = vst [vmem:[#allocation21_spill] sm:$0xff] %v5942_v15  ;;  %7335 = vst [vmem:[#allocation75_spill] sm:$0xff] %v5944_v63 }
 0x5cb   : > { %2227 = vrot.lane.b32.xlu1 %v5660_v31, %s3475_s19  ;;  %2583 = vrot.lane.b32.xlu0 %v5947_v22, %s3477_s21 }
 0x5cd   : > { %v5953_v50 = vpop.permute.xlu1 %3090  ;;  %v5955_v27 = vpop.permute.xlu0 %2543 }
 0x5ce   : > { %7337 = vst [vmem:[#allocation22_spill] sm:$0xff] %v5953_v50  ;;  %7338 = vst [vmem:[#allocation26_spill] sm:$0xff] %v5955_v27 }
 0x5cf   : > { %2571 = vrot.lane.b32.xlu1 %v5936_v11, %s3475_s19  ;;  %2919 = vrot.lane.b32.xlu0 %v5958_v4, %s3477_s21  ;;  %v5980_v11 = vrot.slane %v5682_v53, 2 }
 0x5d1   : > { %v5964_v63 = vpop.permute.xlu1 %2219  ;;  %v5966_v15 = vpop.permute.xlu0 %2559  ;;  %7345 = vst [vmem:[#allocation9_spill] sm:$0xff] %v5980_v11 }
 0x5d2   : > { %7340 = vst [vmem:[#allocation29_spill] sm:$0xff] %v5964_v63  ;;  %7341 = vst [vmem:[#allocation17_spill] sm:$0xff] %v5966_v15 }
 0x5d3   : > { %2587 = vrot.lane.b32.xlu1 %v5668_v56, %s3475_s19  ;;  %2927 = vrot.lane.b32.xlu0 %v5958_v4, %s3475_s19 }
 0x5d5   : > { %v5972_v50 = vpop.permute.xlu1 %2551  ;;  %v5974_v27 = vpop.permute.xlu0 %2579 }
 0x5d6   : > { %7342 = vst [vmem:[#allocation24_spill] sm:$0xff] %v5972_v50  ;;  %7343 = vst [vmem:[#allocation28_spill] sm:$0xff] %v5974_v27  ;;  %v5999_v50 = vrot.slane %v5676_v5, 2 }
 0x5d7   : > { %2923 = vrot.lane.b32.xlu1 %v5977_v42, %s3477_s21  ;;  %2939 = vrot.lane.b32.xlu0 %v5980_v11, %s3477_s21 }
 0x5d8   : > { %7350 = vst [vmem:[#allocation8_spill] sm:$0xff] %v5999_v50 }
 0x5d9   : > { %v5986_v15 = vpop.permute.xlu1 %2567  ;;  %v5988_v63 = vpop.permute.xlu0 %2903 }
 0x5da   : > { %7346 = vst [vmem:[#allocation5_spill] sm:$0xff] %v5986_v15  ;;  %7347 = vst [vmem:[#allocation4_spill] sm:$0xff] %v5988_v63 }
 0x5db   : > { %2931 = vrot.lane.b32.xlu1 %v5977_v42, %s3475_s19  ;;  %2404 = vrot.lane.b32.xlu0 %v5720_v9, %s3475_s19 }
 0x5dd   : > { %v5994_v27 = vpop.permute.xlu1 %2899  ;;  %v5996_v4 = vpop.permute.xlu0 %2911 }
 0x5de   : > { %7348 = vst [vmem:[#allocation7_spill] sm:$0xff] %v5994_v27  ;;  %7349 = vst [vmem:[#allocation11_spill] sm:$0xff] %v5996_v4  ;;  %v6013_v27 = vrot.slane %v5722_v14, 2  ;;  %v6043_v14 = vrot.slane %v5767_v24, 1 }
 0x5df   : > { %2943 = vrot.lane.b32.xlu1 %v5999_v50, %s3477_s21  ;;  %2744 = vrot.lane.b32.xlu0 %v6002_v43, %s3477_s21 }
 0x5e0   : > { %7354 = vst [vmem:[#allocation79_spill] sm:$0xff] %v6013_v27  ;;  %7362 = vst [vmem:[#allocation87_spill] sm:$0xff] %v6043_v14 }
 0x5e1   : > { %v6008_v15 = vpop.permute.xlu1 %2907  ;;  %v6010_v63 = vpop.permute.xlu0 %2380 }
 0x5e2   : > { %7352 = vst [vmem:[#allocation10_spill] sm:$0xff] %v6008_v15  ;;  %7353 = vst [vmem:[#allocation78_spill] sm:$0xff] %v6010_v63 }
 0x5e3   : > { %2408 = vrot.lane.b32.xlu1 %v5708_v16, %s3475_s19  ;;  %2764 = vrot.lane.b32.xlu0 %v6013_v27, %s3477_s21 }
 0x5e5   : > { %v6019_v4 = vpop.permute.xlu1 %2376  ;;  %v6021_v42 = vpop.permute.xlu0 %2388 }
 0x5e6   : > { %7355 = vst [vmem:[#allocation80_spill] sm:$0xff] %v6019_v4  ;;  %7356 = vst [vmem:[#allocation81_spill] sm:$0xff] %v6021_v42 }
 0x5e7   : > { %2752 = vrot.lane.b32.xlu1 %v6002_v43, %s3475_s19  ;;  %3100 = vrot.lane.b32.xlu0 %v6024_v21, %s3477_s21  ;;  %v6046_v43 = vrot.slane %v5743_v57, 2 }
 0x5e9   : > { %v6030_v63 = vpop.permute.xlu1 %2384  ;;  %v6032_v15 = vpop.permute.xlu0 %2400  ;;  %7363 = vst [vmem:[#allocation88_spill] sm:$0xff] %v6046_v43 }
 0x5ea   : > { %7358 = vst [vmem:[#allocation83_spill] sm:$0xff] %v6030_v63  ;;  %7359 = vst [vmem:[#allocation84_spill] sm:$0xff] %v6032_v15 }
 0x5eb   : > { %2768 = vrot.lane.b32.xlu1 %v5754_v40, %s3475_s19  ;;  %3108 = vrot.lane.b32.xlu0 %v6024_v21, %s3475_s19 }
 0x5ed   : > { %v6038_v42 = vpop.permute.xlu1 %2396  ;;  %v6040_v4 = vpop.permute.xlu0 %2732 }
 0x5ee   : > { %7360 = vst [vmem:[#allocation85_spill] sm:$0xff] %v6038_v42  ;;  %7361 = vst [vmem:[#allocation86_spill] sm:$0xff] %v6040_v4  ;;  %v6065_v4 = vrot.slane %v5767_v24, 2 }
 0x5ef   : > { %3104 = vrot.lane.b32.xlu1 %v6043_v14, %s3477_s21  ;;  %3120 = vrot.lane.b32.xlu0 %v6046_v43, %s3477_s21 }
 0x5f0   : > { %7368 = vst [vmem:[#allocation93_spill] sm:$0xff] %v6065_v4 }
 0x5f1   : > { %v6052_v15 = vpop.permute.xlu1 %2724  ;;  %v6054_v63 = vpop.permute.xlu0 %2748 }
 0x5f2   : > { %7364 = vst [vmem:[#allocation89_spill] sm:$0xff] %v6052_v15  ;;  %7365 = vst [vmem:[#allocation90_spill] sm:$0xff] %v6054_v63 }
 0x5f3   : > { %3112 = vrot.lane.b32.xlu1 %v6043_v14, %s3475_s19  ;;  %2229 = vrot.lane.b32.xlu0 %v5765_v8, %s3475_s19  ;;  %v6076_v14 = vrot.slane %v5810_v38, 1  ;;  %v6095_v8 = vrot.slane %v5810_v38, 2 }
 0x5f5   : > { %v6060_v42 = vpop.permute.xlu1 %2740  ;;  %v6062_v21 = vpop.permute.xlu0 %3080  ;;  %7371 = vst [vmem:[#allocation96_spill] sm:$0xff] %v6076_v14  ;;  %7376 = vst [vmem:[#allocation101_spill] sm:$0xff] %v6095_v8 }
 0x5f6   : > { %7366 = vst [vmem:[#allocation91_spill] sm:$0xff] %v6060_v42  ;;  %7367 = vst [vmem:[#allocation92_spill] sm:$0xff] %v6062_v21 }
 0x5f7   : > { %3124 = vrot.lane.b32.xlu1 %v6065_v4, %s3477_s21  ;;  %2589 = vrot.lane.b32.xlu0 %v5824_v37, %s3475_s19 }
 0x5f9   : > { %v6071_v63 = vpop.permute.xlu1 %2760  ;;  %v6073_v15 = vpop.permute.xlu0 %3088 }
 0x5fa   : > { %7369 = vst [vmem:[#allocation94_spill] sm:$0xff] %v6071_v63  ;;  %7370 = vst [vmem:[#allocation95_spill] sm:$0xff] %v6073_v15 }
 0x5fb   : > { %2585 = vrot.lane.b32.xlu1 %v5797_v17, %s3475_s19  ;;  %2933 = vrot.lane.b32.xlu0 %v6076_v14, %s3475_s19 }
 0x5fd   : > { %v6082_v42 = vpop.permute.xlu1 %3084  ;;  %v6084_v21 = vpop.permute.xlu0 %2221 }
 0x5fe   : > { %7372 = vst [vmem:[#allocation97_spill] sm:$0xff] %v6082_v42  ;;  %7373 = vst [vmem:[#allocation98_spill] sm:$0xff] %v6084_v21 }
 0x5ff   : > { %2925 = vrot.lane.b32.xlu1 %v6076_v14, %s3477_s21  ;;  %2949 = vrot.lane.b32.xlu0 %v5835_v60, %s3475_s19  ;;  %v6106_v14 = vrot.slane %v5903_v58, 1 }
 0x601   : > { %v6090_v63 = vpop.permute.xlu1 %3092  ;;  %v6092_v15 = vpop.permute.xlu0 %2557  ;;  %7379 = vst [vmem:[#allocation104_spill] sm:$0xff] %v6106_v14 }
 0x602   : > { %7374 = vst [vmem:[#allocation99_spill] sm:$0xff] %v6090_v63  ;;  %7375 = vst [vmem:[#allocation100_spill] sm:$0xff] %v6092_v15  ;;  %v6117_v63 = vrot.slane %v5903_v58, 2  ;;  %v2231_v58 = vrot.slane %v5511_v0, 7  ;;  %v7383_v0 = vrot.slane %v5551_v34, 7 }
 0x603   : > { %2945 = vrot.lane.b32.xlu1 %v6095_v8, %s3477_s21  ;;  %2766 = vrot.lane.b32.xlu0 %v5901_v41, %s3475_s19 }
 0x604   : > { %v2413_v38 = vsel %vm444_vm7, %v7383_v0, %v5563_v47 }
 0x605   : > { %v6101_v42 = vpop.permute.xlu1 %2225  ;;  %v6103_v21 = vpop.permute.xlu0 %2565 }
 0x606   : > { %7377 = vst [vmem:[#allocation102_spill] sm:$0xff] %v6101_v42  ;;  %7378 = vst [vmem:[#allocation103_spill] sm:$0xff] %v6103_v21 }
 0x607   : > { %2410 = vrot.lane.b32.xlu1 %v5865_v18, %s3475_s19  ;;  %3106 = vrot.lane.b32.xlu0 %v6106_v14, %s3477_s21 }
 0x609   : > { %v6112_v60 = vpop.permute.xlu1 %2561  ;;  %v6114_v15 = vpop.permute.xlu0 %2577 }
 0x60a   : > { %7380 = vst [vmem:[#allocation105_spill] sm:$0xff] %v6112_v60  ;;  %7381 = vst [vmem:[#allocation106_spill] sm:$0xff] %v6114_v15  ;;  %v2234_v15 = vrot.slane %v5505_v62, 6  ;;  %v7386_v60 = vrot.slane %v5557_v20, 7  ;;  %v7387_v62 = vrot.slane %v5573_v45, 7 }
 0x60b   : > { %2770 = vrot.lane.b32.xlu1 %v5890_v35, %s3475_s19  ;;  %3126 = vrot.lane.b32.xlu0 %v6117_v63, %s3477_s21  ;;  %v2249_v35 = vrot.slane %v5739_v23, 7  ;;  %v2240_v23 = vrot.slane %v5715_v10, 7 }
 0x60c   : > { %v6157_v18 = vsel %vm444_vm7, %v7386_v60, %v5594_v1  ;;  %v6163_v47 = vsel %vm444_vm7, %v7387_v62, %v5619_v44  ;;  %v2232_v44 = vsel %vm444_vm7, %v2231_v58, %v5498_v59  ;;  %v7391_v60 = vrot.slane %v5634_v32, 7 }
 0x60d   : > { %v6124_v21 = vpop.permute.xlu1 %2569  ;;  %v6126_v41 = vpop.permute.xlu0 %2905  ;;  %v2250_v1 = vsel %vm444_vm7, %v2249_v35, %v5717_v6  ;;  %v2241_v0 = vsel %vm444_vm7, %v2240_v23, %v5696_v33 }
 0x60e   : > { %7382 = vst [vmem:[#allocation107_spill] sm:$0xff] %v6124_v21  ;;  %v7388_v21 = vrot.slane %v5582_v51, 7  ;;  %v6203_v62 = vsel %vm444_vm7, %v7391_v60, %v5743_v57  ;;  %v2252_v57 = vrot.slane %v5730_v12, 6  ;;  %v2242_v60 = vsel %vm446_vm8, %v2240_v23, %v2241_v0  ;;  %v7398_v0 = vld [vmem:[#allocation53_spill] sm:$0xff] }
 0x60f   : > { %3114 = vrot.lane.b32.xlu1 %v6106_v14, %s3475_s19  ;;  %2591 = vrot.lane.b32.xlu0 %v5947_v22, %s3475_s19  ;;  %v7390_v14 = vrot.slane %v5613_v25, 7 }
 0x611   : > { %v6149_v22 = vpop.permute.xlu1 %2581  ;;  %v6151_v42 = vpop.permute.xlu0 %2921  ;;  %v6197_v59 = vsel %vm444_vm7, %v7390_v14, %v5699_v26  ;;  %v2233_v26 = vsel %vm446_vm8, %v2231_v58, %v2232_v44  ;;  %v7393_v14 = vrot.slane %v5626_v46, 7  ;;  %v7397_v44 = vrot.slane %v5538_v7, 7 }
 0x612   : > { %7384 = vst [vmem:[#allocation108_spill] sm:$0xff] %v6149_v22  ;;  %7385 = vst [vmem:[#allocation109_spill] sm:$0xff] %v6151_v42  ;;  %v6172_v42 = vsel %vm444_vm7, %v7388_v21, %v5643_v61  ;;  %v7389_v61 = vrot.slane %v5600_v54, 7  ;;  %v2251_v21 = vsel %vm446_vm8, %v2249_v35, %v2250_v1  ;;  %v2235_v33 = vsel %vm449_vm9, %v2234_v15, %v2233_v26 }
 0x613   : > { %3130 = vrot.lane.b32.xlu1 %v5933_v55, %s3475_s19  ;;  %2951 = vrot.lane.b32.xlu0 %v5999_v50, %s3475_s19  ;;  %v6218_v50 = vsel %vm444_vm7, %v7393_v14, %v5720_v9  ;;  %v2237_v35 = vrot.slane %v5517_v30, 5  ;;  %v7394_v9 = vrot.slane %v5657_v39, 7  ;;  %v2253_v14 = vsel %vm449_vm9, %v2252_v57, %v2251_v21  ;;  %v7408_v55 = vld [vmem:[#allocation25_spill] sm:$0xff] }
 0x614   : > { %v6189_v6 = vsel %vm444_vm7, %v7389_v61, %v5682_v53  ;;  %v7395_v26 = vrot.slane %v5668_v56, 7  ;;  %v2236_v58 = vsel %vm451_vm10, %v2234_v15, %v2235_v33  ;;  %v2254_v15 = vsel %vm451_vm10, %v2252_v57, %v2253_v14  ;;  %v7407_v14 = vld [vmem:[#allocation15_spill] sm:$0xff] }
 0x615   : > { %v6205_v10 = vpop.permute.xlu1 %2913  ;;  %v6207_v53 = vpop.permute.xlu0 %2941  ;;  %v6234_v12 = vsel %vm444_vm7, %v7394_v9, %v5778_v29  ;;  %v2259_v29 = vsel %vm444_vm7, %v7397_v44, %v5524_v2  ;;  %v2243_v9 = vrot.slane %v5705_v19, 6  ;;  %v2238_v2 = vsel %vm454_vm11, %v2237_v35, %v2236_v58 }
 0x616   : > { %7392 = vst [vmem:[#allocation110_spill] sm:$0xff] %v6207_v53  ;;  %v6242_v30 = vsel %vm444_vm7, %v7395_v26, %v5797_v17  ;;  %v7400_v19 = vrot.slane %v5551_v34, 7  ;;  %v7402_v26 = vrot.slane %v5538_v7, 7  ;;  %v7403_v53 = vld [vmem:[#allocation50_spill] sm:$0xff]  ;;  %v7405_v34 = vld [vmem:[#allocation19_spill] sm:$0xff] }
 0x617   : > { %2947 = vrot.lane.b32.xlu1 %v5980_v11, %s3475_s19  ;;  %3128 = vrot.lane.b32.xlu0 %v6046_v43, %s3475_s19  ;;  %v7399_v43 = vld [vmem:[#allocation45_spill] sm:$0xff]  ;;  %v2244_v21 = vsel %vm449_vm9, %v2243_v9, %v2242_v60  ;;  %v7406_v60 = vrot.slane %v5531_v52, 6 }
 0x618   : > { %v2255_v17 = vrot.slane %v7399_v43, 5  ;;  %v2414_v44 = vsel %vm446_vm8, %v7400_v19, %v2413_v38  ;;  %v7401_v43 = vrot.slane %v5575_v36, 6  ;;  %v2260_v23 = vsel %vm446_vm8, %v7402_v26, %v2259_v29 }
 0x619   : > { %v6244_v61 = vpop.permute.xlu1 %2929  ;;  %v6246_v1 = vpop.permute.xlu0 %2390  ;;  %v2418_v38 = vrot.slane %v7405_v34, 5  ;;  %v2262_v57 = vsel %vm449_vm9, %v7406_v60, %v2260_v23  ;;  %v2264_v19 = vrot.slane %v7407_v14, 5  ;;  %v7411_v29 = vrot.slane %v5733_v13, 7  ;;  %v7414_v60 = vld [vmem:[#allocation42_spill] sm:$0xff] }
 0x61a   : > { %7396 = vst [vmem:[#allocation111_spill] sm:$0xff] %v6244_v61  ;;  %v2416_v33 = vsel %vm449_vm9, %v7401_v43, %v2414_v44  ;;  %v2246_v44 = vrot.slane %v7408_v55, 5  ;;  %v7409_v43 = vld [vmem:[#allocation57_spill] sm:$0xff]  ;;  %v7410_v61 = vld [vmem:[#allocation62_spill] sm:$0xff]  ;;  %v2239_v26 = vsel %vm456_vm12, %v2237_v35, %v2238_v2  ;;  %v2256_v55 = vsel %vm454_vm11, %v2255_v17, %v2254_v15 }
 0x61b   : > { %2772 = vrot.lane.b32.xlu1 %v6013_v27, %s3475_s19  ;;  %2953 = vrot.lane.b32.xlu0 %v6095_v8, %s3475_s19  ;;  %v2430_v8 = vrot.slane %v7403_v53, 7  ;;  %v6290_v53 = vsel %vm444_vm7, %v7411_v29, %v7410_v61  ;;  %v7413_v27 = vld [vmem:[#allocation60_spill] sm:$0xff]  ;;  %v2245_v23 = vsel %vm451_vm10, %v2243_v9, %v2244_v21  ;;  %v2421_v14 = vrot.slane %v7414_v60, 7 }
 0x61c   : > { %v2433_v22 = vrot.slane %v7413_v27, 6  ;;  %v7415_v61 = vrot.slane %v5575_v36, 6  ;;  %v7416_v2 = vrot.slane %v5531_v52, 6  ;;  %v7417_v27 = vrot.slane %v5557_v20, 7  ;;  %v7420_v52 = vld [vmem:[#allocation36_spill] sm:$0xff] }
 0x61d   : > { %v6275_v11 = vpop.permute.xlu1 %2382  ;;  %v6277_v58 = vpop.permute.xlu0 %2406  ;;  %v7419_v36 = vrot.slane %v5588_v28, 6  ;;  %v2599_v60 = vrot.slane %v7420_v52, 5 }
 0x61e   : > { %7404 = vst [vmem:[#allocation53_spill] sm:$0xff] %v6277_v58  ;;  %v7412_v58 = vld [vmem:[#allocation56_spill] sm:$0xff]  ;;  %v2417_v35 = vsel %vm451_vm10, %v7415_v61, %v2416_v33  ;;  %v2595_v29 = vsel %vm446_vm8, %v7417_v27, %v6157_v18  ;;  %v2257_v18 = vsel %vm456_vm12, %v2255_v17, %v2256_v55  ;;  %v7422_v27 = vld [vmem:[#allocation46_spill] sm:$0xff] }
 0x61f   : > { %v2431_v34 = vsel %vm444_vm7, %v2430_v8, %v7412_v58  ;;  %3132 = vrot.lane.b32.xlu1 %v6065_v4, %s3475_s19  ;;  %2312 = vrot.lane.b32.xlu0 %v2239_v26, %s3481_s25  ;;  %v2263_v58 = vsel %vm451_vm10, %v7416_v2, %v2262_v57  ;;  %v2419_v9 = vsel %vm454_vm11, %v2418_v38, %v2417_v35  ;;  %v7421_v57 = vld [vmem:[#allocation43_spill] sm:$0xff]  ;;  %v2611_v7 = vrot.slane %v7422_v27, 7 }
 0x620   : > { %v2265_v21 = vsel %vm454_vm11, %v2264_v19, %v2263_v58  ;;  %v2597_v33 = vsel %vm449_vm9, %v7419_v36, %v2595_v29  ;;  %v2422_v61 = vsel %vm444_vm7, %v2421_v14, %v7421_v57  ;;  %v2432_v20 = vsel %vm446_vm8, %v2430_v8, %v2431_v34  ;;  %v7423_v35 = vld [vmem:[#allocation51_spill] sm:$0xff]  ;;  %v7425_v29 = vld [vmem:[#allocation74_spill] sm:$0xff] }
 0x621   : > { %v6312_v26 = vpop.permute.xlu1 %2402  ;;  %v6314_v15 = vpop.permute.xlu0 %2742  ;;  %v2247_v2 = vsel %vm454_vm11, %v2246_v44, %v2245_v23  ;;  %v2424_v4 = vrot.slane %v7423_v35, 6  ;;  %v2434_v58 = vsel %vm449_vm9, %v2433_v22, %v2432_v20  ;;  %v2420_v8 = vsel %vm456_vm12, %v2418_v38, %v2419_v9  ;;  %v7427_v23 = vld [vmem:[#allocation65_spill] sm:$0xff]  ;;  %v7430_v9 = vld [vmem:[#allocation64_spill] sm:$0xff] }
 0x622   : > { %7418 = vst [vmem:[#allocation45_spill] sm:$0xff] %v6314_v15  ;;  %v7424_v15 = vld [vmem:[#allocation66_spill] sm:$0xff]  ;;  %v2266_v17 = vsel %vm456_vm12, %v2264_v19, %v2265_v21  ;;  %v7426_v34 = vrot.slane %v5613_v25, 7  ;;  %v2612_v52 = vsel %vm444_vm7, %v2611_v7, %v7427_v23  ;;  %v7428_v20 = vmov %v7419_v36  ;;  %v7431_v25 = vld [vmem:[#allocation41_spill] sm:$0xff]  ;;  %v7432_v36 = vld [vmem:[#allocation72_spill] sm:$0xff] }
 0x623   : > { %v2436_v37 = vrot.slane %v7424_v15, 5  ;;  %3134 = vrot.lane.b32.xlu1 %v6117_v63, %s3475_s19  ;;  %2316 = vrot.lane.b32.xlu0 %v2257_v18, %s3481_s25  ;;  %v2598_v18 = vsel %vm451_vm10, %v7428_v20, %v2597_v33  ;;  %v7429_v38 = vrot.slane %v5689_v48, 6  ;;  %v2445_v21 = vrot.slane %v7430_v9, 5  ;;  %v7433_v20 = vld [vmem:[#allocation63_spill] sm:$0xff] }
 0x624   : > { %v2441_v55 = vsel %vm446_vm8, %v7426_v34, %v6197_v59  ;;  %v2602_v27 = vrot.slane %v7431_v25, 7  ;;  %v2423_v59 = vsel %vm446_vm8, %v2421_v14, %v2422_v61  ;;  %v2435_v35 = vsel %vm451_vm10, %v2433_v22, %v2434_v58  ;;  %v7436_v58 = vld [vmem:[#allocation71_spill] sm:$0xff] }
 0x625   : > { %v6343_v15 = vpop.permute.xlu1 %2738  ;;  %v6345_v57 = vpop.permute.xlu0 %2750  ;;  %v2443_v19 = vsel %vm449_vm9, %v7429_v38, %v2441_v55  ;;  %v2248_v34 = vsel %vm456_vm12, %v2246_v44, %v2247_v2  ;;  %v2425_v23 = vsel %vm449_vm9, %v2424_v4, %v2423_v59  ;;  %v2427_v28 = vrot.slane %v7432_v36, 5 }
 0x626   : > { %v2437_v33 = vsel %vm454_vm11, %v2436_v37, %v2435_v35  ;;  %v2600_v55 = vsel %vm454_vm11, %v2599_v60, %v2598_v18  ;;  %v2603_v38 = vsel %vm444_vm7, %v2602_v27, %v7433_v20  ;;  %v2613_v14 = vsel %vm446_vm8, %v2611_v7, %v2612_v52 }
 0x627   : > { %2314 = vrot.lane.b32.xlu1 %v2248_v34, %s3481_s25  ;;  %2493 = vrot.lane.b32.xlu0 %v2420_v8, %s3479_s23  ;;  %v7434_v22 = vrot.slane %v5689_v48, 6  ;;  %v7435_v61 = vrot.slane %v5573_v45, 7  ;;  %v2614_v36 = vrot.slane %v7436_v58, 6  ;;  %v7437_v25 = vrot.slane %v5636_v49, 6  ;;  %v7438_v48 = vld [vmem:[#allocation38_spill] sm:$0xff]  ;;  %v7446_v49 = vld [vmem:[#allocation20_spill] sm:$0xff] }
 0x628   : > { %v2780_v52 = vrot.slane %v7438_v48, 5  ;;  %v2426_v45 = vsel %vm451_vm10, %v2424_v4, %v2425_v23  ;;  %v2601_v35 = vsel %vm456_vm12, %v2599_v60, %v2600_v55  ;;  %v2604_v34 = vsel %vm446_vm8, %v2602_v27, %v2603_v38 }
 0x629   : > { %v2444_v44 = vsel %vm451_vm10, %v7434_v22, %v2443_v19  ;;  %v2776_v2 = vsel %vm446_vm8, %v7435_v61, %v6163_v47  ;;  %v6375_v8 = vpop.permute.xlu1 %2746  ;;  %v6377_v9 = vpop.permute.xlu0 %2762  ;;  %v7439_v19 = vld [vmem:[#allocation37_spill] sm:$0xff]  ;;  %v2438_v47 = vsel %vm456_vm12, %v2436_v37, %v2437_v33  ;;  %v2615_v20 = vsel %vm449_vm9, %v2614_v36, %v2613_v14  ;;  %v7440_v22 = vld [vmem:[#allocation24_spill] sm:$0xff]  ;;  %v7444_v33 = vld [vmem:[#allocation58_spill] sm:$0xff] }
 0x62a   : > { %v2446_v18 = vsel %vm454_vm11, %v2445_v21, %v2444_v44  ;;  %v2778_v7 = vsel %vm449_vm9, %v7437_v25, %v2776_v2  ;;  %v2267_v59 = vrot.slane %v7439_v19, 7  ;;  %v2617_v44 = vrot.slane %v7440_v22, 5  ;;  %v7441_v2 = vld [vmem:[#allocation55_spill] sm:$0xff]  ;;  %v7449_v22 = vld [vmem:[#allocation21_spill] sm:$0xff] }
 0x62b   : > { %2318 = vrot.lane.b32.xlu1 %v2266_v17, %s3481_s25  ;;  %2497 = vrot.lane.b32.xlu0 %v2438_v47, %s3479_s23  ;;  %v2428_v61 = vsel %vm454_vm11, %v2427_v28, %v2426_v45  ;;  %v2605_v58 = vrot.slane %v7441_v2, 6  ;;  %v2447_v4 = vsel %vm456_vm12, %v2445_v21, %v2446_v18  ;;  %v7442_v37 = vmov %v7437_v25  ;;  %v7448_v45 = vld [vmem:[#allocation12_spill] sm:$0xff] }
 0x62c   : > { %v2779_v60 = vsel %vm451_vm10, %v7442_v37, %v2778_v7  ;;  %v7443_v27 = vrot.slane %v5657_v39, 7  ;;  %v2792_v55 = vrot.slane %v7444_v33, 7  ;;  %v7445_v25 = vrot.slane %v5800_v3, 6  ;;  %v7447_v7 = vld [vmem:[#allocation34_spill] sm:$0xff] }
 0x62d   : > { %v6404_v17 = vpop.permute.xlu1 %2758  ;;  %v6406_v38 = vpop.permute.xlu0 %3094  ;;  %v2781_v14 = vsel %vm454_vm11, %v2780_v52, %v2779_v60  ;;  %v2626_v18 = vrot.slane %v7446_v49, 5  ;;  %v2268_v48 = vsel %vm444_vm7, %v2267_v59, %v7447_v7  ;;  %v2606_v39 = vsel %vm449_vm9, %v2605_v58, %v2604_v34  ;;  %v7450_v37 = vld [vmem:[#allocation26_spill] sm:$0xff] }
 0x62e   : > { %v2622_v23 = vsel %vm446_vm8, %v7443_v27, %v6234_v12  ;;  %v2429_v12 = vsel %vm456_vm12, %v2427_v28, %v2428_v61  ;;  %v2616_v19 = vsel %vm451_vm10, %v2614_v36, %v2615_v20  ;;  %v2793_v47 = vsel %vm444_vm7, %v2792_v55, %v7448_v45 }
 0x62f   : > { %v2624_v21 = vsel %vm449_vm9, %v7445_v25, %v2622_v23  ;;  %v2795_v2 = vrot.slane %v7449_v22, 6  ;;  %v2608_v60 = vrot.slane %v7450_v37, 5  ;;  %2495 = vrot.lane.b32.xlu1 %v2429_v12, %s3479_s23  ;;  %2674 = vrot.lane.b32.xlu0 %v2601_v35, %s3482_s26  ;;  %v2618_v27 = vsel %vm454_vm11, %v2617_v44, %v2616_v19  ;;  %v7451_v23 = vld [vmem:[#allocation52_spill] sm:$0xff] }
 0x630   : > { %v2783_v33 = vrot.slane %v7451_v23, 7  ;;  %v2782_v34 = vsel %vm456_vm12, %v2780_v52, %v2781_v14  ;;  %v7452_v28 = vmov %v7445_v25  ;;  %v7453_v20 = vrot.slane %v5733_v13, 7  ;;  %v7454_v25 = vld [vmem:[#allocation27_spill] sm:$0xff]  ;;  %v7455_v35 = vld [vmem:[#allocation40_spill] sm:$0xff]  ;;  %v7457_v14 = vld [vmem:[#allocation14_spill] sm:$0xff] }
 0x631   : > { %v2625_v36 = vsel %vm451_vm10, %v7452_v28, %v2624_v21  ;;  %v2270_v49 = vrot.slane %v7454_v25, 6  ;;  %v2269_v7 = vsel %vm446_vm8, %v2267_v59, %v2268_v48  ;;  %v2276_v12 = vrot.slane %v7455_v35, 7  ;;  %v6437_v19 = vpop.permute.xlu1 %3086  ;;  %v6439_v45 = vpop.permute.xlu0 %3110  ;;  %v7458_v59 = vld [vmem:[#allocation13_spill] sm:$0xff]  ;;  %v7459_v23 = vld [vmem:[#allocation86_spill] sm:$0xff] }
 0x632   : > { %v2803_v61 = vsel %vm446_vm8, %v7453_v20, %v6290_v53  ;;  %v7456_v52 = vrot.slane %v7409_v43, 6  ;;  %v2784_v21 = vsel %vm444_vm7, %v2783_v33, %v7457_v14  ;;  %v2794_v13 = vsel %vm446_vm8, %v2792_v55, %v2793_v47  ;;  %v7460_v47 = vld [vmem:[#allocation6_spill] sm:$0xff]  ;;  %v7466_v43 = vld [vmem:[#allocation89_spill] sm:$0xff] }
 0x633   : > { %v2619_v53 = vsel %vm456_vm12, %v2617_v44, %v2618_v27  ;;  %v2607_v22 = vsel %vm451_vm10, %v2605_v58, %v2606_v39  ;;  %v2786_v48 = vrot.slane %v7458_v59, 6  ;;  %v2796_v37 = vsel %vm449_vm9, %v2795_v2, %v2794_v13  ;;  %2499 = vrot.lane.b32.xlu1 %v2447_v4, %s3479_s23  ;;  %v7462_v27 = vld [vmem:[#allocation23_spill] sm:$0xff] }
 0x634   : > { %v2805_v3 = vsel %vm449_vm9, %v7456_v52, %v2803_v61  ;;  %v2798_v28 = vrot.slane %v7459_v23, 5  ;;  %2678 = vrot.lane.b32.xlu0 %v2619_v53, %s3482_s26  ;;  %v2609_v20 = vsel %vm454_vm11, %v2608_v60, %v2607_v22  ;;  %v2271_v61 = vsel %vm449_vm9, %v2270_v49, %v2269_v7  ;;  %v7464_v13 = vld [vmem:[#allocation47_spill] sm:$0xff]  ;;  %v7465_v22 = vld [vmem:[#allocation44_spill] sm:$0xff] }
 0x635   : > { %v2627_v55 = vsel %vm454_vm11, %v2626_v18, %v2625_v36  ;;  %v2807_v44 = vrot.slane %v7460_v47, 5  ;;  %v7461_v58 = vrot.slane %v5582_v51, 7  ;;  %v2273_v25 = vrot.slane %v7462_v27, 5  ;;  %v6463_v35 = vpop.permute.xlu1 %3102  ;;  %v6465_v4 = vpop.permute.xlu0 %2223  ;;  %v7467_v27 = vld [vmem:[#allocation18_spill] sm:$0xff] }
 0x636   : > { %v2806_v14 = vsel %vm451_vm10, %v7456_v52, %v2805_v3  ;;  %v7463_v7 = vrot.slane %v5660_v31, 6  ;;  %v2291_v53 = vrot.slane %v7464_v13, 5  ;;  %v2277_v51 = vsel %vm444_vm7, %v2276_v12, %v7465_v22 }
 0x637   : > { %v2287_v39 = vsel %vm446_vm8, %v7461_v58, %v6172_v42  ;;  %v2785_v42 = vsel %vm446_vm8, %v2783_v33, %v2784_v21  ;;  %v2797_v59 = vsel %vm451_vm10, %v2795_v2, %v2796_v37  ;;  %v2610_v23 = vsel %vm456_vm12, %v2608_v60, %v2609_v20  ;;  %v7469_v2 = vld [vmem:[#allocation33_spill] sm:$0xff] }
 0x638   : > { %v2289_v36 = vsel %vm449_vm9, %v7463_v7, %v2287_v39  ;;  %v2787_v47 = vsel %vm449_vm9, %v2786_v48, %v2785_v42  ;;  %v2789_v58 = vrot.slane %v7466_v43, 5  ;;  %2676 = vrot.lane.b32.xlu1 %v2610_v23, %s3482_s26  ;;  %2855 = vrot.lane.b32.xlu0 %v2782_v34, %s3480_s24  ;;  %v2799_v3 = vsel %vm454_vm11, %v2798_v28, %v2797_v59  ;;  %v7472_v42 = vld [vmem:[#allocation39_spill] sm:$0xff]  ;;  %v7474_v23 = vld [vmem:[#allocation61_spill] sm:$0xff] }
 0x639   : > { %v2272_v39 = vsel %vm451_vm10, %v2270_v49, %v2271_v61  ;;  %v7468_v52 = vrot.slane %v7398_v0, 7  ;;  %v2985_v21 = vrot.slane %v7469_v2, 6  ;;  %v2628_v60 = vsel %vm456_vm12, %v2626_v18, %v2627_v55  ;;  %v6493_v7 = vpop.permute.xlu1 %3122  ;;  %v6495_v34 = vpop.permute.xlu0 %2563  ;;  %v7473_v18 = vld [vmem:[#allocation35_spill] sm:$0xff] }
 0x63a   : > { %v2808_v37 = vsel %vm454_vm11, %v2807_v44, %v2806_v14  ;;  %v2278_v20 = vsel %vm446_vm8, %v2276_v12, %v2277_v51  ;;  %v7470_v13 = vrot.slane %v5660_v31, 6  ;;  %v7471_v61 = vrot.slane %v5600_v54, 7 }
 0x63b   : > { %v2983_v33 = vsel %vm444_vm7, %v7468_v52, %v7467_v27  ;;  %v2961_v59 = vrot.slane %v7472_v42, 5  ;;  %v2279_v55 = vrot.slane %v7473_v18, 6  ;;  %v2788_v14 = vsel %vm451_vm10, %v2786_v48, %v2787_v47  ;;  %v7481_v42 = vld [vmem:[#allocation10_spill] sm:$0xff] }
 0x63c   : > { %v2290_v49 = vsel %vm451_vm10, %v7470_v13, %v2289_v36  ;;  %v2957_v22 = vsel %vm446_vm8, %v7471_v61, %v6189_v6  ;;  %v2800_v12 = vsel %vm456_vm12, %v2798_v28, %v2799_v3  ;;  %v2274_v51 = vsel %vm454_vm11, %v2273_v25, %v2272_v39  ;;  %2680 = vrot.lane.b32.xlu1 %v2628_v60, %s3482_s26  ;;  %v7476_v28 = vld [vmem:[#allocation68_spill] sm:$0xff]  ;;  %v7479_v60 = vld [vmem:[#allocation30_spill] sm:$0xff] }
 0x63d   : > { %v2973_v43 = vrot.slane %v7474_v23, 7  ;;  %2859 = vrot.lane.b32.xlu0 %v2800_v12, %s3480_s24  ;;  %v2790_v54 = vsel %vm454_vm11, %v2789_v58, %v2788_v14  ;;  %v2292_v31 = vsel %vm454_vm11, %v2291_v53, %v2290_v49  ;;  %v7475_v6 = vrot.slane %v5626_v46, 7  ;;  %v7480_v49 = vld [vmem:[#allocation70_spill] sm:$0xff]  ;;  %v7482_v14 = vld [vmem:[#allocation76_spill] sm:$0xff] }
 0x63e   : > { %v2280_v48 = vsel %vm449_vm9, %v2279_v55, %v2278_v20  ;;  %v2294_v47 = vrot.slane %v7476_v28, 7  ;;  %v7477_v3 = vrot.slane %v5676_v5, 6  ;;  %v7478_v27 = vrot.slane %v5708_v16, 6  ;;  %v6532_v20 = vpop.permute.xlu0 %2583 }
 0x63f   : > { %v2468_v36 = vsel %vm446_vm8, %v7475_v6, %v6218_v50  ;;  %v2282_v13 = vrot.slane %v7479_v60, 5  ;;  %v2964_v61 = vrot.slane %v7480_v49, 7  ;;  %v2974_v46 = vsel %vm444_vm7, %v2973_v43, %v7481_v42  ;;  %v6530_v50 = vpop.permute.xlu1 %2227  ;;  %v7484_v6 = vld [vmem:[#allocation29_spill] sm:$0xff] }
 0x640   : > { %v2959_v39 = vsel %vm449_vm9, %v7477_v3, %v2957_v22  ;;  %v2470_v52 = vsel %vm449_vm9, %v7478_v27, %v2468_v36  ;;  %v2275_v18 = vsel %vm456_vm12, %v2273_v25, %v2274_v51  ;;  %v2448_v12 = vrot.slane %v7482_v14, 7  ;;  %v7483_v22 = vld [vmem:[#allocation75_spill] sm:$0xff]  ;;  %v7487_v14 = vld [vmem:[#allocation80_spill] sm:$0xff] }
 0x641   : > { %v2295_v23 = vsel %vm444_vm7, %v2294_v47, %v7483_v22  ;;  %v2297_v36 = vrot.slane %v7484_v6, 6  ;;  %v2791_v28 = vsel %vm456_vm12, %v2789_v58, %v2790_v54  ;;  %v7485_v3 = vld [vmem:[#allocation7_spill] sm:$0xff]  ;;  %2320 = vrot.lane.b32.xlu0 %v2275_v18, %s3481_s25  ;;  %v2809_v60 = vsel %vm456_vm12, %v2807_v44, %v2808_v37 }
 0x642   : > { %v2965_v27 = vsel %vm444_vm7, %v2964_v61, %v7485_v3  ;;  %2857 = vrot.lane.b32.xlu1 %v2791_v28, %s3480_s24  ;;  %v2281_v25 = vsel %vm451_vm10, %v2279_v55, %v2280_v48  ;;  %v7486_v51 = vld [vmem:[#allocation59_spill] sm:$0xff]  ;;  %v2975_v42 = vsel %vm446_vm8, %v2973_v43, %v2974_v46  ;;  %v2449_v22 = vsel %vm444_vm7, %v2448_v12, %v7487_v14  ;;  %v6558_v37 = vpop.permute.xlu0 %2919  ;;  %v7494_v14 = vld [vmem:[#allocation4_spill] sm:$0xff] }
 0x643   : > { %v2472_v49 = vrot.slane %v7486_v51, 5  ;;  %v2293_v58 = vsel %vm456_vm12, %v2291_v53, %v2292_v31  ;;  %v7488_v54 = vrot.slane %v5676_v5, 6  ;;  %v2296_v28 = vsel %vm446_vm8, %v2294_v47, %v2295_v23  ;;  %v7489_v18 = vld [vmem:[#allocation11_spill] sm:$0xff]  ;;  %v6556_v44 = vpop.permute.xlu1 %2571  ;;  %v7492_v51 = vld [vmem:[#allocation98_spill] sm:$0xff] }
 0x644   : > { %v2976_v3 = vrot.slane %v7489_v18, 6  ;;  %v7490_v55 = vrot.slane %v5708_v16, 6  ;;  %v7491_v48 = vrot.slane %v7398_v0, 7  ;;  %v2298_v5 = vsel %vm449_vm9, %v2297_v36, %v2296_v28  ;;  %v7493_v0 = vld [vmem:[#allocation73_spill] sm:$0xff]  ;;  %v7496_v18 = vld [vmem:[#allocation83_spill] sm:$0xff] }
 0x645   : > { %v2960_v6 = vsel %vm451_vm10, %v7488_v54, %v2959_v39  ;;  %v2966_v31 = vsel %vm446_vm8, %v2964_v61, %v2965_v27  ;;  %v2283_v47 = vsel %vm454_vm11, %v2282_v13, %v2281_v25  ;;  %v2450_v23 = vsel %vm446_vm8, %v2448_v12, %v2449_v22  ;;  %2324 = vrot.lane.b32.xlu0 %v2293_v58, %s3481_s25  ;;  %v7495_v27 = vld [vmem:[#allocation78_spill] sm:$0xff] }
 0x646   : > { %v2471_v43 = vsel %vm451_vm10, %v7490_v55, %v2470_v52  ;;  %v2984_v53 = vsel %vm446_vm8, %v7491_v48, %v2983_v33  ;;  %v2962_v39 = vsel %vm454_vm11, %v2961_v59, %v2960_v6  ;;  %v2977_v46 = vsel %vm449_vm9, %v2976_v3, %v2975_v42  ;;  %2861 = vrot.lane.b32.xlu1 %v2809_v60, %s3480_s24  ;;  %v6583_v12 = vpop.permute.xlu0 %2927 }
 0x647   : > { %v2300_v16 = vrot.slane %v7492_v51, 5  ;;  %v2979_v52 = vrot.slane %v6205_v10, 5  ;;  %v2457_v33 = vrot.slane %v7493_v0, 7  ;;  %v2967_v61 = vrot.slane %v7494_v14, 6  ;;  %v6581_v6 = vpop.permute.xlu1 %2587  ;;  %v7503_v51 = vld [vmem:[#allocation16_spill] sm:$0xff] }
 0x648   : > { %v2451_v25 = vrot.slane %v7495_v27, 6  ;;  %v2473_v54 = vsel %vm454_vm11, %v2472_v49, %v2471_v43  ;;  %v2299_v42 = vsel %vm451_vm10, %v2297_v36, %v2298_v5  ;;  %v2284_v10 = vsel %vm456_vm12, %v2282_v13, %v2283_v47 }
 0x649   : > { %v2963_v60 = vsel %vm456_vm12, %v2961_v59, %v2962_v39  ;;  %v2986_v22 = vsel %vm449_vm9, %v2985_v21, %v2984_v53  ;;  %v2968_v58 = vsel %vm449_vm9, %v2967_v61, %v2966_v31  ;;  %v2458_v55 = vsel %vm444_vm7, %v2457_v33, %v7496_v18  ;;  %v7497_v53 = vld [vmem:[#allocation67_spill] sm:$0xff]  ;;  %v7498_v31 = vld [vmem:[#allocation69_spill] sm:$0xff] }
 0x64a   : > { %v2452_v28 = vsel %vm449_vm9, %v2451_v25, %v2450_v23  ;;  %v2978_v36 = vsel %vm451_vm10, %v2976_v3, %v2977_v46  ;;  %v2970_v43 = vrot.slane %v6126_v41, 5  ;;  %v2454_v48 = vrot.slane %v6275_v11, 5  ;;  %2322 = vrot.lane.b32.xlu1 %v2284_v10, %s3481_s25  ;;  %3036 = vrot.lane.b32.xlu0 %v2963_v60, %s3483_s27  ;;  %v7500_v3 = vld [vmem:[#allocation82_spill] sm:$0xff]  ;;  %v7502_v46 = vld [vmem:[#allocation96_spill] sm:$0xff]  ;;  %v6616_v27 = vpop.permute.xlu0 %2939 }
 0x64b   : > { %v2980_v59 = vsel %vm454_vm11, %v2979_v52, %v2978_v36  ;;  %v2301_v13 = vsel %vm454_vm11, %v2300_v16, %v2299_v42  ;;  %v2831_v5 = vrot.slane %v7497_v53, 6  ;;  %v7499_v47 = vrot.slane %v5754_v40, 7  ;;  %v6614_v14 = vpop.permute.xlu1 %2923 }
 0x64c   : > { %v7501_v41 = vrot.slane %v7425_v29, 7  ;;  %v2988_v23 = vrot.slane %v7502_v46, 5  ;;  %v2475_v0 = vrot.slane %v7503_v51, 7  ;;  %v2969_v42 = vsel %vm451_vm10, %v2967_v61, %v2968_v58  ;;  %v7505_v46 = vld [vmem:[#allocation87_spill] sm:$0xff]  ;;  %v7508_v61 = vld [vmem:[#allocation77_spill] sm:$0xff] }
 0x64d   : > { %v6606_v39 = vsel %vm444_vm7, %v7499_v47, %v7498_v31  ;;  %v2474_v10 = vsel %vm456_vm12, %v2472_v49, %v2473_v54  ;;  %v2987_v60 = vsel %vm451_vm10, %v2985_v21, %v2986_v22  ;;  %v2459_v18 = vsel %vm446_vm8, %v2457_v33, %v2458_v55  ;;  %v7506_v49 = vld [vmem:[#allocation81_spill] sm:$0xff]  ;;  %v7510_v58 = vld [vmem:[#allocation31_spill] sm:$0xff]  ;;  %v7511_v55 = vld [vmem:[#allocation22_spill] sm:$0xff] }
 0x64e   : > { %v3164_v11 = vsel %vm444_vm7, %v7501_v41, %v7500_v3  ;;  %v2981_v36 = vsel %vm456_vm12, %v2979_v52, %v2980_v59  ;;  %v2302_v31 = vsel %vm456_vm12, %v2300_v16, %v2301_v13  ;;  %v2453_v47 = vsel %vm451_vm10, %v2451_v25, %v2452_v28  ;;  %v7504_v3 = vld [vmem:[#allocation85_spill] sm:$0xff] }
 0x64f   : > { %v2476_v41 = vsel %vm444_vm7, %v2475_v0, %v7504_v3  ;;  %v3166_v51 = vrot.slane %v7505_v46, 6  ;;  %3040 = vrot.lane.b32.xlu0 %v2981_v36, %s3483_s27  ;;  %2326 = vrot.lane.b32.xlu1 %v2302_v31, %s3481_s25  ;;  %v2455_v2 = vsel %vm454_vm11, %v2454_v48, %v2453_v47  ;;  %v2971_v21 = vsel %vm454_vm11, %v2970_v43, %v2969_v42  ;;  %v6645_v13 = vpop.permute.xlu1 %2931  ;;  %v6647_v42 = vpop.permute.xlu0 %2404  ;;  %v7513_v3 = vld [vmem:[#allocation84_spill] sm:$0xff] }
 0x650   : > { %v2460_v33 = vrot.slane %v7506_v49, 6  ;;  %v7507_v16 = vrot.slane %v5634_v32, 7  ;;  %v3142_v25 = vrot.slane %v7508_v61, 5  ;;  %v7509_v54 = vrot.slane %v7425_v29, 7 }
 0x651   : > { %v3145_v28 = vrot.slane %v7510_v58, 7  ;;  %v3154_v59 = vrot.slane %v7511_v55, 7  ;;  %v2989_v36 = vsel %vm454_vm11, %v2988_v23, %v2987_v60  ;;  %v7512_v32 = vrot.slane %v5767_v24, 6 }
 0x652   : > { %v3138_v52 = vsel %vm446_vm8, %v7507_v16, %v6203_v62  ;;  %v3165_v22 = vsel %vm446_vm8, %v7509_v54, %v3164_v11  ;;  %v2461_v31 = vsel %vm449_vm9, %v2460_v33, %v2459_v18  ;;  %v2477_v29 = vsel %vm446_vm8, %v2475_v0, %v2476_v41  ;;  %v7514_v16 = vld [vmem:[#allocation95_spill] sm:$0xff]  ;;  %v7516_v18 = vld [vmem:[#allocation17_spill] sm:$0xff] }
 0x653   : > { %v3140_v62 = vsel %vm449_vm9, %v7512_v32, %v3138_v52  ;;  %v2456_v11 = vsel %vm456_vm12, %v2454_v48, %v2455_v2  ;;  %v2972_v47 = vsel %vm456_vm12, %v2970_v43, %v2971_v21  ;;  %v2478_v49 = vrot.slane %v7513_v3, 6  ;;  %v7515_v54 = vld [vmem:[#allocation99_spill] sm:$0xff]  ;;  %v7518_v21 = vld [vmem:[#allocation92_spill] sm:$0xff]  ;;  %v6675_v55 = vpop.permute.xlu1 %2943  ;;  %v7521_v3 = vld [vmem:[#allocation105_spill] sm:$0xff] }
 0x654   : > { %v3155_v61 = vsel %vm444_vm7, %v3154_v59, %v7514_v16  ;;  %v3157_v58 = vrot.slane %v7515_v54, 6  ;;  %v2463_v60 = vrot.slane %v6246_v1, 5  ;;  %2501 = vrot.lane.b32.xlu0 %v2456_v11, %s3479_s23  ;;  %3038 = vrot.lane.b32.xlu1 %v2972_v47, %s3483_s27  ;;  %v2629_v52 = vrot.slane %v7516_v18, 7  ;;  %v7520_v47 = vld [vmem:[#allocation100_spill] sm:$0xff] }
 0x655   : > { %v2990_v0 = vsel %vm456_vm12, %v2988_v23, %v2989_v36  ;;  %v7517_v48 = vmov %v7512_v32  ;;  %v3167_v41 = vsel %vm449_vm9, %v3166_v51, %v3165_v22  ;;  %v2479_v2 = vsel %vm449_vm9, %v2478_v49, %v2477_v29  ;;  %v6677_v32 = vpop.permute.xlu0 %2744  ;;  %v7519_v36 = vld [vmem:[#allocation97_spill] sm:$0xff] }
 0x656   : > { %v3141_v43 = vsel %vm451_vm10, %v7517_v48, %v3140_v62  ;;  %v3146_v1 = vsel %vm444_vm7, %v3145_v28, %v7518_v21  ;;  %v2462_v23 = vsel %vm451_vm10, %v2460_v33, %v2461_v31  ;;  %v3156_v24 = vsel %vm446_vm8, %v3154_v59, %v3155_v61  ;;  %v7522_v59 = vld [vmem:[#allocation5_spill] sm:$0xff]  ;;  %v7523_v48 = vld [vmem:[#allocation104_spill] sm:$0xff] }
 0x657   : > { %v3143_v11 = vsel %vm454_vm11, %v3142_v25, %v3141_v43  ;;  %v3148_v62 = vrot.slane %v7519_v36, 6  ;;  %v2630_v22 = vsel %vm444_vm7, %v2629_v52, %v7520_v47  ;;  %v2632_v29 = vrot.slane %v7521_v3, 6 }
 0x658   : > { %v3158_v16 = vsel %vm449_vm9, %v3157_v58, %v3156_v24  ;;  %v2481_v54 = vrot.slane %v6312_v26, 5  ;;  %v3160_v18 = vrot.slane %v6406_v38, 5  ;;  %2505 = vrot.lane.b32.xlu0 %v2474_v10, %s3479_s23  ;;  %3042 = vrot.lane.b32.xlu1 %v2990_v0, %s3483_s27  ;;  %v2464_v33 = vsel %vm454_vm11, %v2463_v60, %v2462_v23  ;;  %v7525_v26 = vld [vmem:[#allocation91_spill] sm:$0xff]  ;;  %v6702_v0 = vpop.permute.xlu1 %2408 }
 0x659   : > { %v2638_v31 = vrot.slane %v7522_v59, 7  ;;  %v3144_v61 = vsel %vm456_vm12, %v3142_v25, %v3143_v11  ;;  %v3169_v43 = vrot.slane %v7523_v48, 5  ;;  %v7524_v21 = vrot.slane %v5668_v56, 7  ;;  %v6704_v23 = vpop.permute.xlu0 %2764  ;;  %v7530_v59 = vld [vmem:[#allocation103_spill] sm:$0xff] }
 0x65a   : > { %v2810_v36 = vrot.slane %v7525_v26, 7  ;;  %v3147_v38 = vsel %vm446_vm8, %v3145_v28, %v3146_v1  ;;  %v2631_v10 = vsel %vm446_vm8, %v2629_v52, %v2630_v22  ;;  %v2480_v47 = vsel %vm451_vm10, %v2478_v49, %v2479_v2  ;;  %v7526_v2 = vld [vmem:[#allocation49_spill] sm:$0xff]  ;;  %v7528_v22 = vld [vmem:[#allocation48_spill] sm:$0xff] }
 0x65b   : > { %v2649_v24 = vsel %vm446_vm8, %v7524_v21, %v6242_v30  ;;  %v3149_v25 = vsel %vm449_vm9, %v3148_v62, %v3147_v38  ;;  %v3159_v11 = vsel %vm451_vm10, %v3157_v58, %v3158_v16  ;;  %v2633_v56 = vsel %vm449_vm9, %v2632_v29, %v2631_v10  ;;  %v7532_v26 = vld [vmem:[#allocation28_spill] sm:$0xff] }
 0x65c   : > { %v2465_v30 = vsel %vm456_vm12, %v2463_v60, %v2464_v33  ;;  %v3151_v3 = vrot.slane %v6437_v19, 5  ;;  %v2635_v28 = vrot.slane %v6495_v34, 5  ;;  %3217 = vrot.lane.b32.xlu0 %v3144_v61, %s3484_s28  ;;  %v2482_v52 = vsel %vm454_vm11, %v2481_v54, %v2480_v47 }
 0x65d   : > { %2503 = vrot.lane.b32.xlu1 %v2465_v30, %s3479_s23  ;;  %v3161_v49 = vsel %vm454_vm11, %v3160_v18, %v3159_v11  ;;  %v3168_v58 = vsel %vm451_vm10, %v3166_v51, %v3167_v41  ;;  %v7527_v1 = vrot.slane %v7526_v2, 6  ;;  %v2653_v19 = vrot.slane %v7528_v22, 5  ;;  %v6733_v51 = vpop.permute.xlu1 %2752  ;;  %v6735_v41 = vpop.permute.xlu0 %3100  ;;  %v7537_v2 = vld [vmem:[#allocation45_spill] sm:$0xff] }
 0x65e   : > { %v7529_v34 = vrot.slane %v5754_v40, 7  ;;  %v3150_v33 = vsel %vm451_vm10, %v3148_v62, %v3149_v25  ;;  %v2639_v61 = vsel %vm444_vm7, %v2638_v31, %v7530_v59  ;;  %v2811_v46 = vsel %vm444_vm7, %v2810_v36, %v6343_v15  ;;  %v7534_v25 = vld [vmem:[#allocation90_spill] sm:$0xff] }
 0x65f   : > { %v2651_v60 = vsel %vm449_vm9, %v7527_v1, %v2649_v24  ;;  %v3170_v48 = vsel %vm454_vm11, %v3169_v43, %v3168_v58  ;;  %v2634_v21 = vsel %vm451_vm10, %v2632_v29, %v2633_v56  ;;  %v7531_v24 = vld [vmem:[#allocation107_spill] sm:$0xff]  ;;  %v3162_v62 = vsel %vm456_vm12, %v3160_v18, %v3161_v49  ;;  %v7536_v58 = vld [vmem:[#allocation108_spill] sm:$0xff] }
 0x660   : > { %v2830_v16 = vsel %vm446_vm8, %v7529_v34, %v6606_v39  ;;  %v2641_v40 = vrot.slane %v7531_v24, 6  ;;  %v2483_v39 = vsel %vm456_vm12, %v2481_v54, %v2482_v52  ;;  %v2656_v38 = vrot.slane %v7532_v26, 7  ;;  %3221 = vrot.lane.b32.xlu0 %v3162_v62, %s3484_s28  ;;  %v7535_v52 = vld [vmem:[#allocation106_spill] sm:$0xff] }
 0x661   : > { %2507 = vrot.lane.b32.xlu1 %v2483_v39, %s3479_s23  ;;  %v3152_v15 = vsel %vm454_vm11, %v3151_v3, %v3150_v33  ;;  %v2636_v10 = vsel %vm454_vm11, %v2635_v28, %v2634_v21  ;;  %v7533_v47 = vmov %v7527_v1  ;;  %v2819_v11 = vrot.slane %v7534_v25, 7  ;;  %v6763_v34 = vpop.permute.xlu0 %3108  ;;  %v7538_v24 = vld [vmem:[#allocation94_spill] sm:$0xff] }
 0x662   : > { %v2652_v29 = vsel %vm451_vm10, %v7533_v47, %v2651_v60  ;;  %v2812_v54 = vsel %vm446_vm8, %v2810_v36, %v2811_v46  ;;  %v2832_v56 = vsel %vm449_vm9, %v2831_v5, %v2830_v16  ;;  %v2640_v30 = vsel %vm446_vm8, %v2638_v31, %v2639_v61  ;;  %v6761_v60 = vpop.permute.xlu1 %2768 }
 0x663   : > { %v2654_v18 = vsel %vm454_vm11, %v2653_v19, %v2652_v29  ;;  %v2657_v49 = vsel %vm444_vm7, %v2656_v38, %v7535_v52  ;;  %v2659_v1 = vrot.slane %v7536_v58, 6  ;;  %v2813_v22 = vrot.slane %v7537_v2, 6 }
 0x664   : > { %v2642_v36 = vsel %vm449_vm9, %v2641_v40, %v2640_v30  ;;  %v3153_v33 = vsel %vm456_vm12, %v3151_v3, %v3152_v15  ;;  %v2637_v59 = vsel %vm456_vm12, %v2635_v28, %v2636_v10  ;;  %v3171_v16 = vsel %vm456_vm12, %v3169_v43, %v3170_v48  ;;  %v7539_v3 = vld [vmem:[#allocation102_spill] sm:$0xff]  ;;  %v7540_v15 = vld [vmem:[#allocation79_spill] sm:$0xff] }
 0x665   : > { %v2814_v31 = vsel %vm449_vm9, %v2813_v22, %v2812_v54  ;;  %v2820_v61 = vsel %vm444_vm7, %v2819_v11, %v6375_v8  ;;  %v2644_v46 = vrot.slane %v6556_v44, 5  ;;  %v2816_v21 = vrot.slane %v6677_v32, 5  ;;  %3219 = vrot.lane.b32.xlu1 %v3153_v33, %s3484_s28  ;;  %2682 = vrot.lane.b32.xlu0 %v2637_v59, %s3482_s26  ;;  %v6785_v32 = vpop.permute.xlu0 %3120 }
 0x666   : > { %v2837_v39 = vrot.slane %v7538_v24, 7  ;;  %v2303_v62 = vrot.slane %v7539_v3, 7  ;;  %v2658_v28 = vsel %vm446_vm8, %v2656_v38, %v2657_v49  ;;  %v2655_v43 = vsel %vm456_vm12, %v2653_v19, %v2654_v18  ;;  %v6783_v26 = vpop.permute.xlu1 %3104 }
 0x667   : > { %v2643_v48 = vsel %vm451_vm10, %v2641_v40, %v2642_v36  ;;  %v2660_v8 = vsel %vm449_vm9, %v2659_v1, %v2658_v28  ;;  %v2822_v44 = vrot.slane %v6345_v57, 6  ;;  %v2834_v10 = vrot.slane %v7540_v15, 5  ;;  %v7542_v36 = vld [vmem:[#allocation109_spill] sm:$0xff] }
 0x668   : > { %v2821_v47 = vsel %vm446_vm8, %v2819_v11, %v2820_v61  ;;  %v2838_v29 = vsel %vm444_vm7, %v2837_v39, %v6404_v17  ;;  %v2304_v19 = vsel %vm444_vm7, %v2303_v62, %v6465_v4  ;;  %v2815_v40 = vsel %vm451_vm10, %v2813_v22, %v2814_v31  ;;  %v7541_v11 = vld [vmem:[#allocation111_spill] sm:$0xff]  ;;  %v7543_v61 = vld [vmem:[#allocation54_spill] sm:$0xff] }
 0x669   : > { %v2306_v38 = vrot.slane %v6530_v50, 6  ;;  %v2662_v57 = vrot.slane %v6532_v20, 5  ;;  %v2645_v25 = vsel %vm454_vm11, %v2644_v46, %v2643_v48  ;;  %v2817_v54 = vsel %vm454_vm11, %v2816_v21, %v2815_v40  ;;  %3223 = vrot.lane.b32.xlu1 %v3171_v16, %s3484_s28  ;;  %2686 = vrot.lane.b32.xlu0 %v2655_v43, %s3482_s26  ;;  %v2230_v20 = vpop.permute.xlu0 %2229 }
 0x66a   : > { %v2833_v17 = vsel %vm451_vm10, %v2831_v5, %v2832_v56  ;;  %v2661_v4 = vsel %vm451_vm10, %v2659_v1, %v2660_v8  ;;  %v3000_v18 = vrot.slane %v7541_v11, 7  ;;  %v2823_v50 = vsel %vm449_vm9, %v2822_v44, %v2821_v47  ;;  %v6806_v30 = vpop.permute.xlu1 %3112  ;;  %v7544_v8 = vld [vmem:[#allocation32_spill] sm:$0xff] }
 0x66b   : > { %v2835_v52 = vsel %vm454_vm11, %v2834_v10, %v2833_v17  ;;  %v2839_v49 = vsel %vm446_vm8, %v2837_v39, %v2838_v29  ;;  %v2305_v58 = vsel %vm446_vm8, %v2303_v62, %v2304_v19  ;;  %v2646_v2 = vsel %vm456_vm12, %v2644_v46, %v2645_v25  ;;  %v7546_v29 = vld [vmem:[#allocation8_spill] sm:$0xff] }
 0x66c   : > { %v2818_v53 = vsel %vm456_vm12, %v2816_v21, %v2817_v54  ;;  %v2307_v5 = vsel %vm449_vm9, %v2306_v38, %v2305_v58  ;;  %v2663_v56 = vsel %vm454_vm11, %v2662_v57, %v2661_v4  ;;  %v2825_v1 = vrot.slane %v6733_v51, 5 }
 0x66d   : > { %v2309_v22 = vrot.slane %v2230_v20, 5  ;;  %2684 = vrot.lane.b32.xlu1 %v2646_v2, %s3482_s26  ;;  %2863 = vrot.lane.b32.xlu0 %v2818_v53, %s3480_s24  ;;  %v2991_v33 = vrot.slane %v7542_v36, 7  ;;  %v2840_v59 = vrot.slane %v6377_v9, 6  ;;  %v3001_v16 = vsel %vm444_vm7, %v3000_v18, %v6583_v12  ;;  %v6827_v51 = vpop.permute.xlu0 %2589  ;;  %v7550_v36 = vld [vmem:[#allocation101_spill] sm:$0xff] }
 0x66e   : > { %v3003_v31 = vrot.slane %v6645_v13, 6  ;;  %v3009_v46 = vrot.slane %v7543_v61, 7  ;;  %v2824_v21 = vsel %vm451_vm10, %v2822_v44, %v2823_v50  ;;  %v6825_v24 = vpop.permute.xlu1 %3124  ;;  %v2836_v39 = vsel %vm456_vm12, %v2834_v10, %v2835_v52  ;;  %v7545_v10 = vld [vmem:[#allocation9_spill] sm:$0xff]  ;;  %v7548_v52 = vld [vmem:[#allocation88_spill] sm:$0xff] }
 0x66f   : > { %v2841_v3 = vsel %vm449_vm9, %v2840_v59, %v2839_v49  ;;  %v2308_v62 = vsel %vm451_vm10, %v2306_v38, %v2307_v5  ;;  %v2992_v9 = vsel %vm444_vm7, %v2991_v33, %v6558_v37  ;;  %v2664_v12 = vsel %vm456_vm12, %v2662_v57, %v2663_v56 }
 0x670   : > { %v3002_v13 = vsel %vm446_vm8, %v3000_v18, %v3001_v16  ;;  %v2843_v28 = vrot.slane %v6704_v23, 5  ;;  %v2826_v43 = vsel %vm454_vm11, %v2825_v1, %v2824_v21  ;;  %v2310_v48 = vsel %vm454_vm11, %v2309_v22, %v2308_v62  ;;  %v7547_v23 = vld [vmem:[#allocation110_spill] sm:$0xff] }
 0x671   : > { %2688 = vrot.lane.b32.xlu1 %v2664_v12, %s3482_s26  ;;  %2867 = vrot.lane.b32.xlu0 %v2836_v39, %s3480_s24  ;;  %v3190_v44 = vrot.slane %v7544_v8, 7  ;;  %v2994_v15 = vrot.slane %v6614_v14, 6  ;;  %v3004_v37 = vsel %vm449_vm9, %v3003_v31, %v3002_v13  ;;  %v3010_v47 = vsel %vm444_vm7, %v3009_v46, %v7545_v10  ;;  %v2934_v25 = vpop.permute.xlu0 %2933  ;;  %v7551_v12 = vld [vmem:[#allocation93_spill] sm:$0xff] }
 0x672   : > { %v3012_v19 = vrot.slane %v7546_v29, 6  ;;  %v3018_v40 = vrot.slane %v7547_v23, 7  ;;  %v2842_v38 = vsel %vm451_vm10, %v2840_v59, %v2841_v3  ;;  %v2586_v57 = vpop.permute.xlu1 %2585  ;;  %v2993_v54 = vsel %vm446_vm8, %v2991_v33, %v2992_v9 }
 0x673   : > { %v3006_v17 = vrot.slane %v2934_v25, 5  ;;  %v2827_v4 = vsel %vm456_vm12, %v2825_v1, %v2826_v43  ;;  %v2311_v14 = vsel %vm456_vm12, %v2309_v22, %v2310_v48  ;;  %v3005_v18 = vsel %vm451_vm10, %v3003_v31, %v3004_v37 }
 0x674   : > { %v3019_v11 = vsel %vm444_vm7, %v3018_v40, %v6616_v27  ;;  %v3021_v50 = vrot.slane %v6675_v55, 6  ;;  %v2844_v20 = vsel %vm454_vm11, %v2843_v28, %v2842_v38  ;;  %v3191_v49 = vsel %vm444_vm7, %v3190_v44, %v7548_v52  ;;  %v7549_v27 = vld [vmem:[#allocation53_spill] sm:$0xff] }
 0x675   : > { %2865 = vrot.lane.b32.xlu1 %v2827_v4, %s3480_s24  ;;  %2328 = vrot.lane.b32.xlu0 %v2311_v14, %s3481_s25  ;;  %v2995_v58 = vsel %vm449_vm9, %v2994_v15, %v2993_v54  ;;  %v3007_v2 = vsel %vm454_vm11, %v3006_v17, %v3005_v18  ;;  %v3011_v53 = vsel %vm446_vm8, %v3009_v46, %v3010_v47  ;;  %v2484_v5 = vrot.slane %v7549_v27, 7  ;;  %v6865_v1 = vpop.permute.xlu0 %2949 }
 0x676   : > { %v2926_v56 = vpop.permute.xlu1 %2925  ;;  %v3008_v55 = vsel %vm456_vm12, %v3006_v17, %v3007_v2  ;;  %v3013_v22 = vsel %vm449_vm9, %v3012_v19, %v3011_v53  ;;  %v3015_v33 = vrot.slane %v7550_v36, 5  ;;  %v3172_v59 = vrot.slane %v6463_v35, 7 }
 0x677   : > { %v3020_v16 = vsel %vm446_vm8, %v3018_v40, %v3019_v11  ;;  %v2997_v31 = vrot.slane %v2926_v56, 5  ;;  %v2845_v61 = vsel %vm456_vm12, %v2843_v28, %v2844_v20  ;;  %v2996_v46 = vsel %vm451_vm10, %v2994_v15, %v2995_v58 }
 0x678   : > { %v2485_v21 = vsel %vm444_vm7, %v2484_v5, %v6647_v42  ;;  %v3022_v39 = vsel %vm449_vm9, %v3021_v50, %v3020_v16  ;;  %v2487_v3 = vrot.slane %v6702_v0, 6  ;;  %v3173_v35 = vsel %vm444_vm7, %v3172_v59, %v6735_v41 }
 0x679   : > { %2869 = vrot.lane.b32.xlu1 %v2845_v61, %s3480_s24  ;;  %3046 = vrot.lane.b32.xlu0 %v3008_v55, %s3483_s27  ;;  %v3175_v62 = vrot.slane %v6783_v26, 6  ;;  %v2998_v9 = vsel %vm454_vm11, %v2997_v31, %v2996_v46  ;;  %v3193_v13 = vrot.slane %v7551_v12, 6  ;;  %v6885_v43 = vpop.permute.xlu0 %2766  ;;  %v3014_v48 = vsel %vm451_vm10, %v3012_v19, %v3013_v22 }
 0x67a   : > { %v2946_v28 = vpop.permute.xlu1 %2945  ;;  %v2999_v42 = vsel %vm456_vm12, %v2997_v31, %v2998_v9  ;;  %v3016_v15 = vsel %vm454_vm11, %v3015_v33, %v3014_v48  ;;  %v2486_v0 = vsel %vm446_vm8, %v2484_v5, %v2485_v21  ;;  %v3023_v41 = vsel %vm451_vm10, %v3021_v50, %v3022_v39 }
 0x67b   : > { %v3024_v8 = vrot.slane %v2946_v28, 5  ;;  %v3174_v26 = vsel %vm446_vm8, %v3172_v59, %v3173_v35  ;;  %v3192_v37 = vsel %vm446_vm8, %v3190_v44, %v3191_v49  ;;  %v2665_v10 = vrot.slane %v6581_v6, 7 }
 0x67c   : > { %v2488_v47 = vsel %vm449_vm9, %v2487_v3, %v2486_v0  ;;  %v3176_v29 = vsel %vm449_vm9, %v3175_v62, %v3174_v26  ;;  %v3017_v25 = vsel %vm456_vm12, %v3015_v33, %v3016_v15  ;;  %v3194_v54 = vsel %vm449_vm9, %v3193_v13, %v3192_v37 }
 0x67d   : > { %3044 = vrot.lane.b32.xlu1 %v2999_v42, %s3483_s27  ;;  %v3025_v19 = vsel %vm454_vm11, %v3024_v8, %v3023_v41  ;;  %v3107_v40 = vpop.permute.xlu0 %3106  ;;  %v3196_v17 = vrot.slane %v6117_v63, 5  ;;  %v3181_v44 = vrot.slane %v6439_v45, 7  ;;  %v2666_v6 = vsel %vm444_vm7, %v2665_v10, %v2586_v57 }
 0x67e   : > { %v2411_v23 = vpop.permute.xlu1 %2410  ;;  %v3026_v38 = vsel %vm456_vm12, %v3024_v8, %v3025_v19  ;;  %v3178_v14 = vrot.slane %v3107_v40, 5  ;;  %v3199_v11 = vrot.slane %v6493_v7, 7  ;;  %v2489_v18 = vsel %vm451_vm10, %v2487_v3, %v2488_v47 }
 0x67f   : > { %v2490_v4 = vrot.slane %v2411_v23, 5  ;;  %3050 = vrot.lane.b32.xlu0 %v3026_v38, %s3483_s27  ;;  %v3177_v50 = vsel %vm451_vm10, %v3175_v62, %v3176_v29  ;;  %v3182_v20 = vsel %vm444_vm7, %v3181_v44, %v6763_v34  ;;  %v3184_v63 = vrot.slane %v6806_v30, 6 }
 0x680   : > { %v3179_v57 = vsel %vm454_vm11, %v3178_v14, %v3177_v50  ;;  %v2667_v52 = vsel %vm446_vm8, %v2665_v10, %v2666_v6  ;;  %v3195_v53 = vsel %vm451_vm10, %v3193_v13, %v3194_v54  ;;  %v3200_v27 = vsel %vm444_vm7, %v3199_v11, %v6785_v32 }
 0x681   : > { %3048 = vrot.lane.b32.xlu1 %v3017_v25, %s3483_s27  ;;  %v2491_v45 = vsel %vm454_vm11, %v2490_v4, %v2489_v18  ;;  %v3127_v58 = vpop.permute.xlu0 %3126  ;;  %v3180_v7 = vsel %vm456_vm12, %v3178_v14, %v3179_v57  ;;  %v3202_v34 = vrot.slane %v6825_v24, 6  ;;  %v2668_v30 = vrot.slane %v6827_v51, 6 }
 0x682   : > { %v2771_v49 = vpop.permute.xlu1 %2770  ;;  %v2492_v2 = vsel %vm456_vm12, %v2490_v4, %v2491_v45  ;;  %v3197_v5 = vsel %vm454_vm11, %v3196_v17, %v3195_v53  ;;  %v3183_v56 = vsel %vm446_vm8, %v3181_v44, %v3182_v20  ;;  %v3201_v36 = vsel %vm446_vm8, %v3199_v11, %v3200_v27 }
 0x683   : > { %3225 = vrot.lane.b32.xlu0 %v3180_v7, %s3484_s28  ;;  %v3185_v55 = vsel %vm449_vm9, %v3184_v63, %v3183_v56  ;;  %v2669_v22 = vsel %vm449_vm9, %v2668_v30, %v2667_v52  ;;  %v3198_v24 = vsel %vm456_vm12, %v3196_v17, %v3197_v5  ;;  %v3203_v51 = vsel %vm449_vm9, %v3202_v34, %v3201_v36 }
 0x684   : > { %v3205_v59 = vrot.slane %v3127_v58, 5  ;;  %v3186_v61 = vsel %vm451_vm10, %v3184_v63, %v3185_v55  ;;  %v2670_v46 = vsel %vm451_vm10, %v2668_v30, %v2669_v22  ;;  %v3204_v3 = vsel %vm451_vm10, %v3202_v34, %v3203_v51  ;;  %v3296_v30 = vld [vmem:[%s7038_s2] sm:$0xff] }
 0x685   : > { %2509 = vrot.lane.b32.xlu1 %v2492_v2, %s3479_s23  ;;  %v2592_v32 = vpop.permute.xlu0 %2591  ;;  %v2846_v13 = vrot.slane %v6761_v60, 7  ;;  %v3027_v42 = vrot.slane %v6865_v1, 7  ;;  %v2849_v8 = vrot.slane %v2771_v49, 6  ;;  %v3485_v53 = vmov 0  }
 0x686   : > { %v3115_v33 = vpop.permute.xlu1 %3114  ;;  %v2671_v31 = vrot.slane %v2592_v32, 5  ;;  %v3206_v28 = vsel %vm454_vm11, %v3205_v59, %v3204_v3  ;;  %3345 = vmatprep.mubr.bf16.mxu0 %v3485_v53  ;;  %3448 = vset.pattern.permute.xlu0 %v3485_v53 }
 0x687   : > { %v3187_v16 = vrot.slane %v3115_v33, 5  ;;  %3229 = vrot.lane.b32.xlu0 %v3198_v24, %s3484_s28  ;;  %v2847_v48 = vsel %vm444_vm7, %v2846_v13, %v6885_v43  ;;  %v3207_v41 = vsel %vm456_vm12, %v3205_v59, %v3206_v28 }
 0x688   : > { %v2672_v39 = vsel %vm454_vm11, %v2671_v31, %v2670_v46  ;;  %v2848_v60 = vsel %vm446_vm8, %v2846_v13, %v2847_v48 }
 0x689   : > { %v3188_v21 = vsel %vm454_vm11, %v3187_v16, %v3186_v61  ;;  %v2952_v62 = vpop.permute.xlu0 %2951  ;;  %v2673_v12 = vsel %vm456_vm12, %v2671_v31, %v2672_v39  ;;  %v2850_v47 = vsel %vm449_vm9, %v2849_v8, %v2848_v60  ;;  %v3453_v60 = vld [vmem:[#allocation3] ss:$8 sps:$4 sm:$0xff]  }
 0x68a   : > { %v3131_v35 = vpop.permute.xlu1 %3130  ;;  %v3189_v9 = vsel %vm456_vm12, %v3187_v16, %v3188_v21  ;;  %v3030_v26 = vrot.slane %v2952_v62, 6  ;;  %v2851_v38 = vsel %vm451_vm10, %v2849_v8, %v2850_v47 }
 0x68b   : > { %3227 = vrot.lane.b32.xlu1 %v3189_v9, %s3484_s28  ;;  %2690 = vrot.lane.b32.xlu0 %v2673_v12, %s3482_s26  ;;  %v3208_v19 = vrot.slane %v3131_v35, 7 }
 0x68d   : > { %v3129_v0 = vpop.permute.xlu0 %3128 }
 0x68e   : > { %v2948_v15 = vpop.permute.xlu1 %2947  ;;  %v3209_v54 = vsel %vm444_vm7, %v3208_v19, %v3129_v0 }
 0x68f   : > { %v3028_v37 = vsel %vm444_vm7, %v3027_v42, %v2948_v15  ;;  %3231 = vrot.lane.b32.xlu1 %v3207_v41, %s3484_s28  ;;  %v3210_v50 = vsel %vm446_vm8, %v3208_v19, %v3209_v54 }
 0x690   : > { %v3029_v10 = vsel %vm446_vm8, %v3027_v42, %v3028_v37 }
 0x691   : > { %v3031_v1 = vsel %vm449_vm9, %v3030_v26, %v3029_v10  ;;  %v2954_v43 = vpop.permute.xlu0 %2953 }
 0x692   : > { %v2773_v29 = vpop.permute.xlu1 %2772  ;;  %v3033_v40 = vrot.slane %v2954_v43, 5  ;;  %v3032_v25 = vsel %vm451_vm10, %v3030_v26, %v3031_v1 }
 0x693   : > { %v2852_v23 = vrot.slane %v2773_v29, 5  ;;  %v3454_v29 = vld [vmem:[#allocation3 + $0x10] ss:$8 sps:$4 sm:$0xff]  }
 0x694   : > { %v3034_v44 = vsel %vm454_vm11, %v3033_v40, %v3032_v25  ;;  %v3289_v19 = vpack.c.bf16 %v3454_v29, %v3453_v60 }
 0x695   : > { %v2853_v17 = vsel %vm454_vm11, %v2852_v23, %v2851_v38  ;;  %v2313_v4 = vpop.permute.xlu0 %2312  ;;  %v3035_v11 = vsel %vm456_vm12, %v3033_v40, %v3034_v44 }
 0x696   : > { %v3133_v6 = vpop.permute.xlu1 %3132  ;;  %v2854_v14 = vsel %vm456_vm12, %v2852_v23, %v2853_v17  ;;  %2339 = vst.msk [vmem:[#allocation3 + $0x4] sm:$0xf] %vm903_vm15, %v2313_v4  ;;  %3052 = vrot.lane.b32.xlu0 %v3035_v11, %s3483_s27 }
 0x697   : > { %v3211_v18 = vrot.slane %v3133_v6, 6  ;;  %2871 = vrot.lane.b32.xlu1 %v2854_v14, %s3480_s24 }
 0x699   : > { %v3212_v20 = vsel %vm449_vm9, %v3211_v18, %v3210_v50  ;;  %v2317_v45 = vpop.permute.xlu0 %2316 }
 0x69a   : > { %v3135_v63 = vpop.permute.xlu1 %3134  ;;  %2341 = vst.msk [vmem:[#allocation3 + $0x14] sm:$0xf] %vm903_vm15, %v2317_v45  ;;  %v3213_v52 = vsel %vm451_vm10, %v3211_v18, %v3212_v20  ;;  %3299 = vperm.xlu0 %3448, %v3296_v30  }
 0x69b   : > { %v3214_v57 = vrot.slane %v3135_v63, 5  ;;  %v3459_v63 = vld [vmem:[#allocation3 + $0x20] ss:$8 sps:$4 sm:$0xff]  }
 0x69d   : > { %v3215_v49 = vsel %vm454_vm11, %v3214_v57, %v3213_v52  ;;  %v2494_v7 = vpop.permute.xlu0 %2493 }
 0x69e   : > { %v2315_v58 = vpop.permute.xlu1 %2314  ;;  %v3216_v2 = vsel %vm456_vm12, %v3214_v57, %v3215_v49  ;;  %2520 = vst.msk [vmem:[#allocation3 + $0x4] sm:$0xf] %vm1085_vm0, %v2494_v7  ;;  %v3460_v49 = vld [vmem:[#allocation3 + $0x30] ss:$8 sps:$4 sm:$0xff]  }
 0x69f   : > { %2340 = vst.msk [vmem:[#allocation3 + $0xc] sm:$0xf] %vm903_vm15, %v2315_v58  ;;  %3233 = vrot.lane.b32.xlu1 %v3216_v2, %s3484_s28  ;;  %v3291_v7 = vpack.c.bf16 %v3460_v49, %v3459_v63 }
 0x6a1   : > { %v2498_v34 = vpop.permute.xlu0 %2497 }
 0x6a2   : > { %v2319_v27 = vpop.permute.xlu1 %2318  ;;  %2522 = vst.msk [vmem:[#allocation3 + $0x14] sm:$0xf] %vm1085_vm0, %v2498_v34 }
 0x6a3   : > { %2342 = vst.msk [vmem:[#allocation3 + $0x1c] sm:$0xf] %vm903_vm15, %v2319_v27 }
 0x6a5   : > { %v2675_v56 = vpop.permute.xlu0 %2674 }
 0x6a6   : > { %v2496_v5 = vpop.permute.xlu1 %2495  ;;  %2701 = vst.msk [vmem:[#allocation3 + $0x4] sm:$0xf] %vm1267_vm1, %v2675_v56  ;;  %v3295_v56 = vld [vmem:[%s7037_s1] sm:$0xf] }
 0x6a7   : > { %2521 = vst.msk [vmem:[#allocation3 + $0xc] sm:$0xf] %vm1085_vm0, %v2496_v5 }
 0x6a9   : > { %v2679_v22 = vpop.permute.xlu0 %2678 }
 0x6aa   : > { %v2500_v55 = vpop.permute.xlu1 %2499  ;;  %2703 = vst.msk [vmem:[#allocation3 + $0x14] sm:$0xf] %vm1267_vm1, %v2679_v22 }
 0x6ab   : > { %2523 = vst.msk [vmem:[#allocation3 + $0x1c] sm:$0xf] %vm1085_vm0, %v2500_v55 }
 0x6ad   : > { %v2856_v33 = vpop.permute.xlu0 %2855 }
 0x6ae   : > { %v2677_v36 = vpop.permute.xlu1 %2676  ;;  %2882 = vst.msk [vmem:[#allocation3 + $0x4] sm:$0xf] %vm1449_vm2, %v2856_v33 }
 0x6af   : > { %2702 = vst.msk [vmem:[#allocation3 + $0xc] sm:$0xf] %vm1267_vm1, %v2677_v36 }
 0x6b1   : > { %v2860_v24 = vpop.permute.xlu0 %2859 }
 0x6b2   : > { %v2681_v32 = vpop.permute.xlu1 %2680  ;;  %2884 = vst.msk [vmem:[#allocation3 + $0x14] sm:$0xf] %vm1449_vm2, %v2860_v24 }
 0x6b3   : > { %2704 = vst.msk [vmem:[#allocation3 + $0x1c] sm:$0xf] %vm1267_vm1, %v2681_v32 }
 0x6b5   : > { %v2321_v59 = vpop.permute.xlu0 %2320 }
 0x6b6   : > { %v2858_v51 = vpop.permute.xlu1 %2857  ;;  %2343 = vst.msk [vmem:[#allocation3 + $0x24] sm:$0xf] %vm903_vm15, %v2321_v59 }
 0x6b7   : > { %2883 = vst.msk [vmem:[#allocation3 + $0xc] sm:$0xf] %vm1449_vm2, %v2858_v51 }
 0x6b9   : > { %v2325_v31 = vpop.permute.xlu0 %2324 }
 0x6ba   : > { %v2862_v16 = vpop.permute.xlu1 %2861  ;;  %2345 = vst.msk [vmem:[#allocation3 + $0x34] sm:$0xf] %vm903_vm15, %v2325_v31 }
 0x6bb   : > { %2885 = vst.msk [vmem:[#allocation3 + $0x1c] sm:$0xf] %vm1449_vm2, %v2862_v16 }
 0x6bd   : > { %v3037_v46 = vpop.permute.xlu0 %3036 }
 0x6be   : > { %v2323_v61 = vpop.permute.xlu1 %2322  ;;  %3063 = vst.msk [vmem:[#allocation3 + $0x4] sm:$0xf] %vm1631_vm3, %v3037_v46 }
 0x6bf   : > { %2344 = vst.msk [vmem:[#allocation3 + $0x2c] sm:$0xf] %vm903_vm15, %v2323_v61 }
 0x6c1   : > { %v3041_v39 = vpop.permute.xlu0 %3040 }
 0x6c2   : > { %v2327_v21 = vpop.permute.xlu1 %2326  ;;  %3065 = vst.msk [vmem:[#allocation3 + $0x14] sm:$0xf] %vm1631_vm3, %v3041_v39 }
 0x6c3   : > { %2346 = vst.msk [vmem:[#allocation3 + $0x3c] sm:$0xf] %vm903_vm15, %v2327_v21 }
 0x6c6   : > { %v3039_v3 = vpop.permute.xlu1 %3038  ;;  %v2502_v35 = vpop.permute.xlu0 %2501 }
 0x6c7   : > { %3064 = vst.msk [vmem:[#allocation3 + $0xc] sm:$0xf] %vm1631_vm3, %v3039_v3 }
 0x6c8   : > { %2524 = vst.msk [vmem:[#allocation3 + $0x24] sm:$0xf] %vm1085_vm0, %v2502_v35 }
 0x6ca   : > { %v3043_v62 = vpop.permute.xlu1 %3042  ;;  %v2506_v9 = vpop.permute.xlu0 %2505 }
 0x6cb   : > { %3066 = vst.msk [vmem:[#allocation3 + $0x1c] sm:$0xf] %vm1631_vm3, %v3043_v62 }
 0x6cc   : > { %2526 = vst.msk [vmem:[#allocation3 + $0x34] sm:$0xf] %vm1085_vm0, %v2506_v9 }
 0x6ce   : > { %v3218_v13 = vpop.permute.xlu0 %3217 }
 0x6cf   : > { %v2504_v12 = vpop.permute.xlu1 %2503  ;;  %3244 = vst.msk [vmem:[#allocation3 + $0x4] sm:$0xf] %vm1813_vm4, %v3218_v13 }
 0x6d0   : > { %2525 = vst.msk [vmem:[#allocation3 + $0x2c] sm:$0xf] %vm1085_vm0, %v2504_v12 }
 0x6d2   : > { %v3222_v42 = vpop.permute.xlu0 %3221 }
 0x6d3   : > { %v2508_v28 = vpop.permute.xlu1 %2507  ;;  %3246 = vst.msk [vmem:[#allocation3 + $0x14] sm:$0xf] %vm1813_vm4, %v3222_v42 }
 0x6d4   : > { %2527 = vst.msk [vmem:[#allocation3 + $0x3c] sm:$0xf] %vm1085_vm0, %v2508_v28 }
 0x6d7   : > { %v3220_v48 = vpop.permute.xlu1 %3219  ;;  %v2683_v8 = vpop.permute.xlu0 %2682 }
 0x6d8   : > { %3245 = vst.msk [vmem:[#allocation3 + $0xc] sm:$0xf] %vm1813_vm4, %v3220_v48 }
 0x6d9   : > { %2705 = vst.msk [vmem:[#allocation3 + $0x24] sm:$0xf] %vm1267_vm1, %v2683_v8 }
 0x6db   : > { %v3224_v15 = vpop.permute.xlu1 %3223  ;;  %v2687_v0 = vpop.permute.xlu0 %2686 }
 0x6dc   : > { %3247 = vst.msk [vmem:[#allocation3 + $0x1c] sm:$0xf] %vm1813_vm4, %v3224_v15 }
 0x6dd   : > { %2707 = vst.msk [vmem:[#allocation3 + $0x34] sm:$0xf] %vm1267_vm1, %v2687_v0 }
 0x6df   : > { %v2685_v41 = vpop.permute.xlu1 %2684  ;;  %v2864_v26 = vpop.permute.xlu0 %2863  ;;  %v3449_v37 = vld [vmem:[#allocation3 + $0x4] ss:$8 sps:$4 sm:$0xff]  }
 0x6e0   : > { %2706 = vst.msk [vmem:[#allocation3 + $0x2c] sm:$0xf] %vm1267_vm1, %v2685_v41 }
 0x6e1   : > { %2886 = vst.msk [vmem:[#allocation3 + $0x24] sm:$0xf] %vm1449_vm2, %v2864_v26 }
 0x6e3   : > { %v2689_v10 = vpop.permute.xlu1 %2688  ;;  %v2868_v47 = vpop.permute.xlu0 %2867  ;;  %v3451_v1 = vld [vmem:[#allocation3 + $0x14] ss:$8 sps:$4 sm:$0xff]  }
 0x6e4   : > { %2708 = vst.msk [vmem:[#allocation3 + $0x3c] sm:$0xf] %vm1267_vm1, %v2689_v10  ;;  %v3290_v43 = vpack.c.bf16 %v3451_v1, %v3449_v37 }
 0x6e5   : > { %2888 = vst.msk [vmem:[#allocation3 + $0x34] sm:$0xf] %vm1449_vm2, %v2868_v47 }
 0x6e6   : > { %3313 = vmatprep.subr.bf16.mxu0 %v3290_v43 }
 0x6e7   : > { %v2866_v23 = vpop.permute.xlu1 %2865  ;;  %v2329_v40 = vpop.permute.xlu0 %2328  ;;  %3314 = vmatpush1.bf16.msra.mxu0 %v3289_v19 }
 0x6e8   : > { %2887 = vst.msk [vmem:[#allocation3 + $0x2c] sm:$0xf] %vm1449_vm2, %v2866_v23 }
 0x6e9   : > { %2347 = vst.msk [vmem:[#allocation3 + $0x44] sm:$0xf] %vm903_vm15, %v2329_v40 }
 0x6eb   : > { %v2870_v38 = vpop.permute.xlu1 %2869  ;;  %v3047_v25 = vpop.permute.xlu0 %3046 }
 0x6ec   : > { %2889 = vst.msk [vmem:[#allocation3 + $0x3c] sm:$0xf] %vm1449_vm2, %v2870_v38 }
 0x6ed   : > { %3068 = vst.msk [vmem:[#allocation3 + $0x2c] sm:$0xf] %vm1631_vm3, %v3047_v25 }
 0x6ef   : > { %v3045_v54 = vpop.permute.xlu1 %3044 }
 0x6f0   : > { %3067 = vst.msk [vmem:[#allocation3 + $0x24] sm:$0xf] %vm1631_vm3, %v3045_v54 }
 0x6f1   : > { %v3051_v17 = vpop.permute.xlu0 %3050 }
 0x6f2   : > { %3070 = vst.msk [vmem:[#allocation3 + $0x3c] sm:$0xf] %vm1631_vm3, %v3051_v17 }
 0x6f3   : > { %v3049_v44 = vpop.permute.xlu1 %3048 }
 0x6f4   : > { %3069 = vst.msk [vmem:[#allocation3 + $0x34] sm:$0xf] %vm1631_vm3, %v3049_v44 }
 0x6f5   : > { %v3226_v6 = vpop.permute.xlu0 %3225 }
 0x6f6   : > { %3248 = vst.msk [vmem:[#allocation3 + $0x24] sm:$0xf] %vm1813_vm4, %v3226_v6 }
 0x6f7   : > { %v2510_v4 = vpop.permute.xlu1 %2509 }
 0x6f8   : > { %2528 = vst.msk [vmem:[#allocation3 + $0x44] sm:$0xf] %vm1085_vm0, %v2510_v4 }
 0x6f9   : > { %v3230_v14 = vpop.permute.xlu0 %3229 }
 0x6fa   : > { %3250 = vst.msk [vmem:[#allocation3 + $0x34] sm:$0xf] %vm1813_vm4, %v3230_v14 }
 0x6fd   : > { %v3228_v11 = vpop.permute.xlu1 %3227  ;;  %v2691_v18 = vpop.permute.xlu0 %2690 }
 0x6fe   : > { %3249 = vst.msk [vmem:[#allocation3 + $0x2c] sm:$0xf] %vm1813_vm4, %v3228_v11 }
 0x6ff   : > { %2709 = vst.msk [vmem:[#allocation3 + $0x44] sm:$0xf] %vm1267_vm1, %v2691_v18 }
 0x701   : > { %v3232_v50 = vpop.permute.xlu1 %3231 }
 0x702   : > { %3251 = vst.msk [vmem:[#allocation3 + $0x3c] sm:$0xf] %vm1813_vm4, %v3232_v50 }
 0x705   : > { %v3455_v20 = vld [vmem:[#allocation3 + $0x24] ss:$8 sps:$4 sm:$0xff]  }
 0x708   : > { %v3053_v57 = vpop.permute.xlu0 %3052 }
 0x709   : > { %v2872_v45 = vpop.permute.xlu1 %2871  ;;  %v3457_v52 = vld [vmem:[#allocation3 + $0x34] ss:$8 sps:$4 sm:$0xff]  }
 0x70a   : > { %2890 = vst.msk [vmem:[#allocation3 + $0x44] sm:$0xf] %vm1449_vm2, %v2872_v45  ;;  %v3292_v58 = vpack.c.bf16 %v3457_v52, %v3455_v20 }
 0x70b   : > { %3071 = vst.msk [vmem:[#allocation3 + $0x44] sm:$0xf] %vm1631_vm3, %v3053_v57 }
 0x70c   : > { %3315 = vmatprep.subr.bf16.mxu0 %v3292_v58 }
 0x70d   : > { %3316 = vmatpush1.bf16.msra.mxu0 %v3291_v7 }
 0x711   : > { %v3234_v2 = vpop.permute.xlu1 %3233 }
 0x712   : > { %3252 = vst.msk [vmem:[#allocation3 + $0x44] sm:$0xf] %vm1813_vm4, %v3234_v2 }
 0x719   : > { %v3261_v53 = vld [vmem:[#allocation3 + $0x40] sm:$0xff]  ;;  %v3300_v55 = vpop.permute.xlu0 %3299 }
 0x71a   : > { %v3279_v27 = vcombine.high %v3261_v53, %v3261_v53  ;;  %v3293_v34 = vpack.c.bf16 %v3261_v53, %v3261_v53 }
 0x71c   : > { %v3294_v30 = vpack.c.bf16 %v3279_v27, %v3279_v27  ;;  %v3308_v5 = vsel %vm3306_vm5, %v3293_v34, 0 }
 0x71e   : > { %3422 = vmatprep.subr.msk.bf16.mxu0 %vm3306_vm5, %v3294_v30 }
 0x71f   : > { %3318 = vmatpush1.bf16.msra.mxu0 %v3308_v5 }
 0x722   : > { %3423 = vmatmul.mubr.msk.bf16.vlgmr.msra.gmra.mrb[0].mxu0 %vm3302_vm6, %v3295_v56 }
 0x7f5   : > { %v3347_v22 = vpop.f32.mrb[0].mxu0 }
 0x7f6   : > { %v3348_v36 = vadd.f32 %v3347_v22, %v3300_v55  ;;  %v3349_v33 = vpop.f32.mrb[1].mxu0 }
 0x7f7   : > { %v3350_v32 = vadd.f32 %v3349_v33, %v3300_v55  ;;  %v3351_v24 = vpop.f32.mrb[2].mxu0 }
 0x7f8   : > { %v3354_v51 = vmax.f32 %v3348_v36, 0.0  ;;  %v3352_v59 = vpop.f32.mrb[3].mxu0 }
 0x7f9   : > { %v3355_v16 = vmax.f32 %v3350_v32, 0.0 }
 0x7fa   : > { %3356 = vst [vmem:[%s170_s9] sm:$0xff] %v3354_v51 }
 0x7fb   : > { %3357 = vst [vmem:[%s170_s9 + $0x8] sm:$0xff] %v3355_v16 }
 0x7fc PF: > { %s13_s12 = sadd.s32 1, %s3472_s12  }
 0x7fd   : > { %p10_p4 = scmp.ge.s32.totalorder %s13_s12, 4  }
 0x7ff   :  { %12 = sbr.rel (!%p10_p4) target bundleno = 1 (0x1), region = 62 }

</bundles_post_ra>
